<compile_context>
chip_gen: v7x
topology: tpu7x:2x2x1
jax: 0.10.0
libtpu: 0.0.40
codegen_flags: <defaults>
</compile_context>

<pallas_src>
import functools

import jax
import jax.numpy as jnp
from jax.experimental import pallas as pl
from jax.experimental.pallas import tpu as pltpu

NUM_LAYERS = 4  # num_layers=4 for both nn.LSTM stacks in the module


# ----------------------------------------------------------------------------
# Fused kernel: encoder LSTM + decoder LSTM + LayerNorm + SelfAttention +
# tagging head + masked softmax + CE partial sums.  grid = (1,), everything
# (inputs, weights, recurrent state, activations) resident in VMEM / vregs.
# ----------------------------------------------------------------------------
def seq2seq_kernel(x_ref, wih1_ref, whh1_ref, b1_ref,
                   wih2_ref, whh2_ref, b2_ref,
                   gamma_ref, beta_ref,
                   wq_ref, bq_ref, wk_ref, bk_ref, wv_ref, bv_ref,
                   wo_ref, bo_ref,
                   attn_bias_ref, mask_ref, labels_ref,
                   prob_ref, nll_ref, cnt_ref,
                   y_sc,
                   *, T, B, E, L, NT, pad_id):
    f32 = jnp.float32
    bf16 = jnp.bfloat16

    # Hoist per-layer fused-gate weights / biases once (tiny VMEM loads).
    enc_wih = [wih1_ref[l] for l in range(L)]     # (E, 4E) bf16
    enc_whh = [whh1_ref[l] for l in range(L)]     # (E, 4E) bf16
    enc_b = [b1_ref[l] for l in range(L)]         # (1, 4E) f32
    dec_wih = [wih2_ref[l] for l in range(L)]
    dec_whh = [whh2_ref[l] for l in range(L)]
    dec_b = [b2_ref[l] for l in range(L)]

    def cell(x_contrib, h_prev, c_prev, whh_l, b_l):
        # One lane-dense (B,E)@(E,4E) recurrent matmul; gate order i|f|g|o.
        a = (x_contrib
             + jnp.dot(h_prev.astype(bf16), whh_l, preferred_element_type=f32)
             + b_l)                                              # (B, 4E) f32
        # 2 full-width EUP pushes instead of 4 quarter-width ones.
        sig = jax.nn.sigmoid(a)
        tnh = jnp.tanh(a)
        i_g = sig[:, 0 * E:1 * E]
        f_g = sig[:, 1 * E:2 * E]
        g_g = tnh[:, 2 * E:3 * E]
        o_g = sig[:, 3 * E:4 * E]
        c_new = f_g * c_prev + i_g * g_g
        h_new = o_g * jnp.tanh(c_new)
        return h_new, c_new

    # ------------------------------------------------------------------
    # Encoder (rnn): 4-layer LSTM over T steps, zero initial state.
    # Layer-0 input projection prefused as one (T*B, E) @ (E, 4E) matmul.
    # ------------------------------------------------------------------
    x = x_ref[...]                                               # (T*B, E) f32, time-major
    pre0 = jnp.dot(x.astype(bf16), enc_wih[0], preferred_element_type=f32)  # (T*B, 4E)

    zeros = jnp.zeros((B, E), f32)
    h_enc = [zeros] * L
    c_enc = [zeros] * L
    # TODO(synk): at larger T convert these unrolled loops to lax.fori_loop (unroll=2-4).
    for t in range(T):
        h_enc[0], c_enc[0] = cell(pre0[t * B:(t + 1) * B],
                                  h_enc[0], c_enc[0], enc_whh[0], enc_b[0])
        for l in range(1, L):
            xc = jnp.dot(h_enc[l - 1].astype(bf16), enc_wih[l],
                         preferred_element_type=f32)
            h_enc[l], c_enc[l] = cell(xc, h_enc[l], c_enc[l], enc_whh[l], enc_b[l])

    # ------------------------------------------------------------------
    # Decoder (rnn2): autoregressive, seeded with the encoder final state;
    # first input = encoder's last top-layer output (== rnn_out[:, -1, :]).
    # Top-layer outputs written straight into the (T*B, E) VMEM scratch.
    # ------------------------------------------------------------------
    h_dec = list(h_enc)
    c_dec = list(c_enc)
    inp = h_enc[L - 1]
    for t in range(T):
        for l in range(L):
            xc = jnp.dot(inp.astype(bf16), dec_wih[l], preferred_element_type=f32)
            h_dec[l], c_dec[l] = cell(xc, h_dec[l], c_dec[l], dec_whh[l], dec_b[l])
            inp = h_dec[l]
        y_sc[pl.ds(t * B, B), :] = inp                           # rows t*B .. t*B+B-1

    # ------------------------------------------------------------------
    # nn.LayerNorm(E), eps=1e-5 (f32 math), over all B*T rows at once.
    # ------------------------------------------------------------------
    y = y_sc[...]                                                # (T*B, E) f32
    mu = jnp.mean(y, axis=-1, keepdims=True)
    var = jnp.mean((y - mu) ** 2, axis=-1, keepdims=True)
    yn = (y - mu) * jax.lax.rsqrt(var + 1e-5) * gamma_ref[...] + beta_ref[...]

    # ------------------------------------------------------------------
    # SelfAttention, fused over all B*T rows.  1/sqrt(d_model) folded into Wq/bq.
    # Cross-batch score entries disabled by the precomputed additive block mask.
    # Score dropout is eval-mode identity.
    # ------------------------------------------------------------------
    yn_bf = yn.astype(bf16)
    q = jnp.dot(yn_bf, wq_ref[...], preferred_element_type=f32) + bq_ref[...]
    k = jnp.dot(yn_bf, wk_ref[...], preferred_element_type=f32) + bk_ref[...]
    v = jnp.dot(yn_bf, wv_ref[...], preferred_element_type=f32) + bv_ref[...]

    scores = jax.lax.dot_general(q.astype(bf16), k.astype(bf16),
                                 (((1,), (1,)), ((), ())),
                                 preferred_element_type=f32)     # (T*B, T*B)
    scores = scores + attn_bias_ref[...]
    m = jnp.max(scores, axis=-1, keepdims=True)
    e = jnp.exp(scores - m)
    attn = e * pl.reciprocal(jnp.sum(e, axis=-1, keepdims=True), approx=True)
    ctx = jnp.dot(attn.astype(bf16), v.astype(bf16),
                  preferred_element_type=f32)                    # (T*B, E)

    # ------------------------------------------------------------------
    # TaggingFNNDecoder: logits + mask + softmax + CE (single fused pass).
    # ------------------------------------------------------------------
    logits = (jnp.dot(ctx.astype(bf16), wo_ref[...], preferred_element_type=f32)
              + bo_ref[...])                                     # (T*B, NT)
    logits = logits + (1.0 - mask_ref[...]) * (-1e32)

    lmax = jnp.max(logits, axis=-1, keepdims=True)
    eg = jnp.exp(logits - lmax)
    s = jnp.sum(eg, axis=-1, keepdims=True)
    prob_ref[...] = eg / s        # exact division on the user-visible softmax
    lse = jnp.log(s) + lmax

    labels = labels_ref[...]                                     # (T*B, 1) int32
    tag_iota = jax.lax.broadcasted_iota(jnp.int32, logits.shape, 1)
    picked = jnp.sum(jnp.where(tag_iota == labels, logits, 0.0),
                     axis=-1, keepdims=True)
    valid = (labels != pad_id).astype(f32)
    nll_ref[...] = jnp.sum((lse - picked) * valid, keepdims=True)
    cnt_ref[...] = jnp.sum(valid, keepdims=True)


def run_seq2seq(x_flat, p, attn_bias, mask_flat, labels_flat, pad_id, T, B):
    TB, E = x_flat.shape
    L = NUM_LAYERS
    NT = p["wo_t"].shape[1]
    kernel = functools.partial(seq2seq_kernel, T=T, B=B, E=E, L=L, NT=NT,
                               pad_id=int(pad_id))

    def full(shape):
        return pl.BlockSpec(tuple(shape), lambda i, _n=len(shape): (0,) * _n)

    # TODO(synk): on v7x (2 TensorCores / chip) split the batch across cores with
    # grid=(B,), dimension_semantics=("parallel",) and per-b nll/cnt partials; on
    # v5e/v6e (1 TC) grid=(1,) keeps the recurrence batched and is faster.
    return pl.pallas_call(
        kernel,
        out_shape=(jax.ShapeDtypeStruct((TB, NT), jnp.float32),
                   jax.ShapeDtypeStruct((1, 1), jnp.float32),
                   jax.ShapeDtypeStruct((1, 1), jnp.float32)),
        grid=(1,),
        in_specs=[full(x_flat.shape),
                  full(p["wih1"].shape), full(p["whh1"].shape), full(p["b1"].shape),
                  full(p["wih2"].shape), full(p["whh2"].shape), full(p["b2"].shape),
                  full(p["gamma"].shape), full(p["beta"].shape),
                  full(p["wq_t"].shape), full(p["bq"].shape),
                  full(p["wk_t"].shape), full(p["bk"].shape),
                  full(p["wv_t"].shape), full(p["bv"].shape),
                  full(p["wo_t"].shape), full(p["bo"].shape),
                  full(attn_bias.shape), full(mask_flat.shape),
                  full(labels_flat.shape)],
        out_specs=(full((TB, NT)), full((1, 1)), full((1, 1))),
        scratch_shapes=[pltpu.VMEM((TB, E), jnp.float32)],
        compiler_params=pltpu.CompilerParams(dimension_semantics=("arbitrary",)),
    )(x_flat, p["wih1"], p["whh1"], p["b1"], p["wih2"], p["whh2"], p["b2"],
      p["gamma"], p["beta"], p["wq_t"], p["bq"], p["wk_t"], p["bk"],
      p["wv_t"], p["bv"], p["wo_t"], p["bo"], attn_bias, mask_flat, labels_flat)


# ----------------------------------------------------------------------------
# Parameter preparation (PyTorch layouts -> kernel layouts)
# ----------------------------------------------------------------------------
def prepare_params(emb, wih1, whh1, bih1, bhh1, wih2, whh2, bih2, bhh2,
                   gamma, beta, wq, bq, wk, bk, wv, bv, wo, bo):
    L = NUM_LAYERS
    E = emb.shape[1]
    bf16 = jnp.bfloat16

    def fused_gate_weights(w):       # (L, 4E, E) PyTorch -> (L, E, 4E), gates i|f|g|o on lanes
        return jnp.transpose(w, (0, 2, 1)).astype(bf16)

    def fused_gate_bias(bih, bhh):   # (L, 4E) + (L, 4E) -> (L, 1, 4E)
        return (bih + bhh).reshape(L, 1, 4 * E)

    d_scale = 1.0 / (E ** 0.5)       # fold SelfAttention 1/sqrt(d_model) into q
    return dict(
        emb=emb,
        wih1=fused_gate_weights(wih1), whh1=fused_gate_weights(whh1),
        b1=fused_gate_bias(bih1, bhh1),
        wih2=fused_gate_weights(wih2), whh2=fused_gate_weights(whh2),
        b2=fused_gate_bias(bih2, bhh2),
        gamma=gamma, beta=beta,
        wq_t=(wq.T * d_scale).astype(bf16), bq=bq * d_scale,
        wk_t=wk.T.astype(bf16), bk=bk,
        wv_t=wv.T.astype(bf16), bv=bv,
        wo_t=wo.T.astype(bf16), bo=bo,
    )


# ----------------------------------------------------------------------------
# Full forward pass
# ----------------------------------------------------------------------------
def seq2seq_tagging_forward(params, input_ids, tag_mask, tag_ids, tag_pad_idx):
    B, T = input_ids.shape
    E = params["emb"].shape[1]
    NT = params["wo_t"].shape[1]

    # Embedding lookup gathered directly into time-major flat (T*B, E) layout.
    x_flat = jnp.take(params["emb"], input_ids.T, axis=0).reshape(T * B, E)

    # Additive block mask: attention only within the same batch element
    # (row index = t*B + b in the time-major flattening).
    bidx = jnp.arange(T * B, dtype=jnp.int32) % B
    attn_bias = jnp.where(bidx[:, None] == bidx[None, :], 0.0, -1e30).astype(jnp.float32)

    mask_flat = tag_mask.T.reshape(T * B, 1).astype(jnp.float32)
    labels_flat = tag_ids.T.reshape(T * B, 1).astype(jnp.int32)

    # TODO(synk): pack_padded_sequence / pad_packed_sequence are treated as no-ops
    # (all lengths assumed == T); variable-length packing is not reproduced.
    prob_flat, nll, cnt = run_seq2seq(x_flat, params, attn_bias, mask_flat,
                                      labels_flat, tag_pad_idx, T, B)
    prob = prob_flat.reshape(T, B, NT).transpose(1, 0, 2)        # (B, T, NT)
    loss = nll[0, 0] / cnt[0, 0]        # CrossEntropyLoss mean over non-ignored
    return prob, loss


# ----------------------------------------------------------------------------
# Main
# ----------------------------------------------------------------------------
if __name__ == "__main__":
    B, T, E, V, NT, L = 2, 8, 32, 50, 8, NUM_LAYERS
    TAG_PAD = 0

    key = jax.random.PRNGKey(0)
    ks = jax.random.split(key, 24)

    def init(k, shape, scale=0.1):
        return (scale * jax.random.normal(k, shape)).astype(jnp.float32)

    # nn.Embedding(V, E, padding_idx=0)
    emb = init(ks[0], (V, E)).at[0].set(0.0)

    # encoder / decoder LSTMs: PyTorch layout W_ih: (4E, E), W_hh: (4E, E)
    wih1 = init(ks[1], (L, 4 * E, E)); whh1 = init(ks[2], (L, 4 * E, E))
    bih1 = init(ks[3], (L, 4 * E));    bhh1 = init(ks[4], (L, 4 * E))
    wih2 = init(ks[5], (L, 4 * E, E)); whh2 = init(ks[6], (L, 4 * E, E))
    bih2 = init(ks[7], (L, 4 * E));    bhh2 = init(ks[8], (L, 4 * E))

    # SelfAttention linears (nn.Linear weight layout (out, in)), LayerNorm, tag head
    wq = init(ks[9], (E, E));   bq = init(ks[10], (1, E))
    wk = init(ks[11], (E, E));  bk = init(ks[12], (1, E))
    wv = init(ks[13], (E, E));  bv = init(ks[14], (1, E))
    gamma = jnp.ones((1, E), jnp.float32)
    beta = jnp.zeros((1, E), jnp.float32)
    wo = init(ks[15], (NT, E)); bo = init(ks[16], (1, NT))

    params = prepare_params(emb, wih1, whh1, bih1, bhh1, wih2, whh2, bih2, bhh2,
                            gamma, beta, wq, bq, wk, bk, wv, bv, wo, bo)

    # batch: lengths treated as == T (enforce_sorted=True holds trivially)
    input_ids = jax.random.randint(ks[17], (B, T), 1, V).astype(jnp.int32)
    tag_mask = jnp.ones((B, T), jnp.float32).at[1, T - 2:].set(0.0)
    tag_ids = jax.random.randint(ks[18], (B, T), 1, NT).astype(jnp.int32)
    tag_ids = jnp.where(tag_mask > 0, tag_ids, TAG_PAD).astype(jnp.int32)

    prob, loss = seq2seq_tagging_forward(params, input_ids, tag_mask, tag_ids, TAG_PAD)
    jax.block_until_ready(prob)
    jax.block_until_ready(loss)

    assert prob.shape == (B, T, NT)
    assert bool(jnp.isfinite(loss))
    print("KERNEL_OK")
</pallas_src>

<mosaic_0001>
module attributes {stable_mosaic.version = 11 : i64} {
  func.func @seq2seq_kernel(%arg0: i32, %arg1: memref<16x32xf32, #tpu.memory_space<vmem>>, %arg2: memref<4x32x128xbf16, #tpu.memory_space<vmem>>, %arg3: memref<4x32x128xbf16, #tpu.memory_space<vmem>>, %arg4: memref<4x1x128xf32, #tpu.memory_space<vmem>>, %arg5: memref<4x32x128xbf16, #tpu.memory_space<vmem>>, %arg6: memref<4x32x128xbf16, #tpu.memory_space<vmem>>, %arg7: memref<4x1x128xf32, #tpu.memory_space<vmem>>, %arg8: memref<1x32xf32, #tpu.memory_space<vmem>>, %arg9: memref<1x32xf32, #tpu.memory_space<vmem>>, %arg10: memref<32x32xbf16, #tpu.memory_space<vmem>>, %arg11: memref<1x32xf32, #tpu.memory_space<vmem>>, %arg12: memref<32x32xbf16, #tpu.memory_space<vmem>>, %arg13: memref<1x32xf32, #tpu.memory_space<vmem>>, %arg14: memref<32x32xbf16, #tpu.memory_space<vmem>>, %arg15: memref<1x32xf32, #tpu.memory_space<vmem>>, %arg16: memref<32x8xbf16, #tpu.memory_space<vmem>>, %arg17: memref<1x8xf32, #tpu.memory_space<vmem>>, %arg18: memref<16x16xf32, #tpu.memory_space<vmem>>, %arg19: memref<16x1xf32, #tpu.memory_space<vmem>>, %arg20: memref<16x1xi32, #tpu.memory_space<vmem>>, %arg21: memref<16x8xf32, #tpu.memory_space<vmem>>, %arg22: memref<1x1xf32, #tpu.memory_space<vmem>>, %arg23: memref<1x1xf32, #tpu.memory_space<vmem>>, %arg24: memref<16x32xf32, #tpu.memory_space<vmem>>) attributes {dimension_semantics = [#tpu.dimension_semantics<arbitrary>], iteration_bounds = array<i64: 1>, scalar_prefetch = 0 : i64, scratch_operands = 1 : i64, tpu.core_type = #tpu.core_type<tc>, window_params = [{pipeline_mode = #tpu.pipeline_mode<synchronous>, transform_indices = @transform_0, window_bounds = array<i64: 16, 32>}, {pipeline_mode = #tpu.pipeline_mode<synchronous>, transform_indices = @transform_1, window_bounds = array<i64: 4, 32, 128>}, {pipeline_mode = #tpu.pipeline_mode<synchronous>, transform_indices = @transform_2, window_bounds = array<i64: 4, 32, 128>}, {pipeline_mode = #tpu.pipeline_mode<synchronous>, transform_indices = @transform_3, window_bounds = array<i64: 4, 1, 128>}, {pipeline_mode = #tpu.pipeline_mode<synchronous>, transform_indices = @transform_4, window_bounds = array<i64: 4, 32, 128>}, {pipeline_mode = #tpu.pipeline_mode<synchronous>, transform_indices = @transform_5, window_bounds = array<i64: 4, 32, 128>}, {pipeline_mode = #tpu.pipeline_mode<synchronous>, transform_indices = @transform_6, window_bounds = array<i64: 4, 1, 128>}, {pipeline_mode = #tpu.pipeline_mode<synchronous>, transform_indices = @transform_7, window_bounds = array<i64: 1, 32>}, {pipeline_mode = #tpu.pipeline_mode<synchronous>, transform_indices = @transform_8, window_bounds = array<i64: 1, 32>}, {pipeline_mode = #tpu.pipeline_mode<synchronous>, transform_indices = @transform_9, window_bounds = array<i64: 32, 32>}, {pipeline_mode = #tpu.pipeline_mode<synchronous>, transform_indices = @transform_10, window_bounds = array<i64: 1, 32>}, {pipeline_mode = #tpu.pipeline_mode<synchronous>, transform_indices = @transform_11, window_bounds = array<i64: 32, 32>}, {pipeline_mode = #tpu.pipeline_mode<synchronous>, transform_indices = @transform_12, window_bounds = array<i64: 1, 32>}, {pipeline_mode = #tpu.pipeline_mode<synchronous>, transform_indices = @transform_13, window_bounds = array<i64: 32, 32>}, {pipeline_mode = #tpu.pipeline_mode<synchronous>, transform_indices = @transform_14, window_bounds = array<i64: 1, 32>}, {pipeline_mode = #tpu.pipeline_mode<synchronous>, transform_indices = @transform_15, window_bounds = array<i64: 32, 8>}, {pipeline_mode = #tpu.pipeline_mode<synchronous>, transform_indices = @transform_16, window_bounds = array<i64: 1, 8>}, {pipeline_mode = #tpu.pipeline_mode<synchronous>, transform_indices = @transform_17, window_bounds = array<i64: 16, 16>}, {pipeline_mode = #tpu.pipeline_mode<synchronous>, transform_indices = @transform_18, window_bounds = array<i64: 16, 1>}, {pipeline_mode = #tpu.pipeline_mode<synchronous>, transform_indices = @transform_19, window_bounds = array<i64: 16, 1>}, {pipeline_mode = #tpu.pipeline_mode<synchronous>, transform_indices = @transform_20, window_bounds = array<i64: 16, 8>}, {pipeline_mode = #tpu.pipeline_mode<synchronous>, transform_indices = @transform_21, window_bounds = array<i64: 1, 1>}, {pipeline_mode = #tpu.pipeline_mode<synchronous>, transform_indices = @transform_22, window_bounds = array<i64: 1, 1>}]} {
    %c0 = arith.constant 0 : index
    %c0_0 = arith.constant 0 : index
    %c0_1 = arith.constant 0 : index
    %0 = vector.load %arg2[%c0, %c0_0, %c0_1] : memref<4x32x128xbf16, #tpu.memory_space<vmem>>, vector<1x32x128xbf16>
    %1 = vector.shape_cast %0 : vector<1x32x128xbf16> to vector<32x128xbf16>
    %c1 = arith.constant 1 : index
    %c0_2 = arith.constant 0 : index
    %c0_3 = arith.constant 0 : index
    %2 = vector.load %arg2[%c1, %c0_2, %c0_3] : memref<4x32x128xbf16, #tpu.memory_space<vmem>>, vector<1x32x128xbf16>
    %3 = vector.shape_cast %2 : vector<1x32x128xbf16> to vector<32x128xbf16>
    %c2 = arith.constant 2 : index
    %c0_4 = arith.constant 0 : index
    %c0_5 = arith.constant 0 : index
    %4 = vector.load %arg2[%c2, %c0_4, %c0_5] : memref<4x32x128xbf16, #tpu.memory_space<vmem>>, vector<1x32x128xbf16>
    %5 = vector.shape_cast %4 : vector<1x32x128xbf16> to vector<32x128xbf16>
    %c3 = arith.constant 3 : index
    %c0_6 = arith.constant 0 : index
    %c0_7 = arith.constant 0 : index
    %6 = vector.load %arg2[%c3, %c0_6, %c0_7] : memref<4x32x128xbf16, #tpu.memory_space<vmem>>, vector<1x32x128xbf16>
    %7 = vector.shape_cast %6 : vector<1x32x128xbf16> to vector<32x128xbf16>
    %c0_8 = arith.constant 0 : index
    %c0_9 = arith.constant 0 : index
    %c0_10 = arith.constant 0 : index
    %8 = vector.load %arg3[%c0_8, %c0_9, %c0_10] : memref<4x32x128xbf16, #tpu.memory_space<vmem>>, vector<1x32x128xbf16>
    %9 = vector.shape_cast %8 : vector<1x32x128xbf16> to vector<32x128xbf16>
    %c1_11 = arith.constant 1 : index
    %c0_12 = arith.constant 0 : index
    %c0_13 = arith.constant 0 : index
    %10 = vector.load %arg3[%c1_11, %c0_12, %c0_13] : memref<4x32x128xbf16, #tpu.memory_space<vmem>>, vector<1x32x128xbf16>
    %11 = vector.shape_cast %10 : vector<1x32x128xbf16> to vector<32x128xbf16>
    %c2_14 = arith.constant 2 : index
    %c0_15 = arith.constant 0 : index
    %c0_16 = arith.constant 0 : index
    %12 = vector.load %arg3[%c2_14, %c0_15, %c0_16] : memref<4x32x128xbf16, #tpu.memory_space<vmem>>, vector<1x32x128xbf16>
    %13 = vector.shape_cast %12 : vector<1x32x128xbf16> to vector<32x128xbf16>
    %c3_17 = arith.constant 3 : index
    %c0_18 = arith.constant 0 : index
    %c0_19 = arith.constant 0 : index
    %14 = vector.load %arg3[%c3_17, %c0_18, %c0_19] : memref<4x32x128xbf16, #tpu.memory_space<vmem>>, vector<1x32x128xbf16>
    %15 = vector.shape_cast %14 : vector<1x32x128xbf16> to vector<32x128xbf16>
    %c0_20 = arith.constant 0 : index
    %c0_21 = arith.constant 0 : index
    %c0_22 = arith.constant 0 : index
    %16 = vector.load %arg4[%c0_20, %c0_21, %c0_22] : memref<4x1x128xf32, #tpu.memory_space<vmem>>, vector<1x1x128xf32>
    %17 = vector.shape_cast %16 : vector<1x1x128xf32> to vector<1x128xf32>
    %c1_23 = arith.constant 1 : index
    %c0_24 = arith.constant 0 : index
    %c0_25 = arith.constant 0 : index
    %18 = vector.load %arg4[%c1_23, %c0_24, %c0_25] : memref<4x1x128xf32, #tpu.memory_space<vmem>>, vector<1x1x128xf32>
    %19 = vector.shape_cast %18 : vector<1x1x128xf32> to vector<1x128xf32>
    %c2_26 = arith.constant 2 : index
    %c0_27 = arith.constant 0 : index
    %c0_28 = arith.constant 0 : index
    %20 = vector.load %arg4[%c2_26, %c0_27, %c0_28] : memref<4x1x128xf32, #tpu.memory_space<vmem>>, vector<1x1x128xf32>
    %21 = vector.shape_cast %20 : vector<1x1x128xf32> to vector<1x128xf32>
    %c3_29 = arith.constant 3 : index
    %c0_30 = arith.constant 0 : index
    %c0_31 = arith.constant 0 : index
    %22 = vector.load %arg4[%c3_29, %c0_30, %c0_31] : memref<4x1x128xf32, #tpu.memory_space<vmem>>, vector<1x1x128xf32>
    %23 = vector.shape_cast %22 : vector<1x1x128xf32> to vector<1x128xf32>
    %c0_32 = arith.constant 0 : index
    %c0_33 = arith.constant 0 : index
    %c0_34 = arith.constant 0 : index
    %24 = vector.load %arg5[%c0_32, %c0_33, %c0_34] : memref<4x32x128xbf16, #tpu.memory_space<vmem>>, vector<1x32x128xbf16>
    %25 = vector.shape_cast %24 : vector<1x32x128xbf16> to vector<32x128xbf16>
    %c1_35 = arith.constant 1 : index
    %c0_36 = arith.constant 0 : index
    %c0_37 = arith.constant 0 : index
    %26 = vector.load %arg5[%c1_35, %c0_36, %c0_37] : memref<4x32x128xbf16, #tpu.memory_space<vmem>>, vector<1x32x128xbf16>
    %27 = vector.shape_cast %26 : vector<1x32x128xbf16> to vector<32x128xbf16>
    %c2_38 = arith.constant 2 : index
    %c0_39 = arith.constant 0 : index
    %c0_40 = arith.constant 0 : index
    %28 = vector.load %arg5[%c2_38, %c0_39, %c0_40] : memref<4x32x128xbf16, #tpu.memory_space<vmem>>, vector<1x32x128xbf16>
    %29 = vector.shape_cast %28 : vector<1x32x128xbf16> to vector<32x128xbf16>
    %c3_41 = arith.constant 3 : index
    %c0_42 = arith.constant 0 : index
    %c0_43 = arith.constant 0 : index
    %30 = vector.load %arg5[%c3_41, %c0_42, %c0_43] : memref<4x32x128xbf16, #tpu.memory_space<vmem>>, vector<1x32x128xbf16>
    %31 = vector.shape_cast %30 : vector<1x32x128xbf16> to vector<32x128xbf16>
    %c0_44 = arith.constant 0 : index
    %c0_45 = arith.constant 0 : index
    %c0_46 = arith.constant 0 : index
    %32 = vector.load %arg6[%c0_44, %c0_45, %c0_46] : memref<4x32x128xbf16, #tpu.memory_space<vmem>>, vector<1x32x128xbf16>
    %33 = vector.shape_cast %32 : vector<1x32x128xbf16> to vector<32x128xbf16>
    %c1_47 = arith.constant 1 : index
    %c0_48 = arith.constant 0 : index
    %c0_49 = arith.constant 0 : index
    %34 = vector.load %arg6[%c1_47, %c0_48, %c0_49] : memref<4x32x128xbf16, #tpu.memory_space<vmem>>, vector<1x32x128xbf16>
    %35 = vector.shape_cast %34 : vector<1x32x128xbf16> to vector<32x128xbf16>
    %c2_50 = arith.constant 2 : index
    %c0_51 = arith.constant 0 : index
    %c0_52 = arith.constant 0 : index
    %36 = vector.load %arg6[%c2_50, %c0_51, %c0_52] : memref<4x32x128xbf16, #tpu.memory_space<vmem>>, vector<1x32x128xbf16>
    %37 = vector.shape_cast %36 : vector<1x32x128xbf16> to vector<32x128xbf16>
    %c3_53 = arith.constant 3 : index
    %c0_54 = arith.constant 0 : index
    %c0_55 = arith.constant 0 : index
    %38 = vector.load %arg6[%c3_53, %c0_54, %c0_55] : memref<4x32x128xbf16, #tpu.memory_space<vmem>>, vector<1x32x128xbf16>
    %39 = vector.shape_cast %38 : vector<1x32x128xbf16> to vector<32x128xbf16>
    %c0_56 = arith.constant 0 : index
    %c0_57 = arith.constant 0 : index
    %c0_58 = arith.constant 0 : index
    %40 = vector.load %arg7[%c0_56, %c0_57, %c0_58] : memref<4x1x128xf32, #tpu.memory_space<vmem>>, vector<1x1x128xf32>
    %41 = vector.shape_cast %40 : vector<1x1x128xf32> to vector<1x128xf32>
    %c1_59 = arith.constant 1 : index
    %c0_60 = arith.constant 0 : index
    %c0_61 = arith.constant 0 : index
    %42 = vector.load %arg7[%c1_59, %c0_60, %c0_61] : memref<4x1x128xf32, #tpu.memory_space<vmem>>, vector<1x1x128xf32>
    %43 = vector.shape_cast %42 : vector<1x1x128xf32> to vector<1x128xf32>
    %c2_62 = arith.constant 2 : index
    %c0_63 = arith.constant 0 : index
    %c0_64 = arith.constant 0 : index
    %44 = vector.load %arg7[%c2_62, %c0_63, %c0_64] : memref<4x1x128xf32, #tpu.memory_space<vmem>>, vector<1x1x128xf32>
    %45 = vector.shape_cast %44 : vector<1x1x128xf32> to vector<1x128xf32>
    %c3_65 = arith.constant 3 : index
    %c0_66 = arith.constant 0 : index
    %c0_67 = arith.constant 0 : index
    %46 = vector.load %arg7[%c3_65, %c0_66, %c0_67] : memref<4x1x128xf32, #tpu.memory_space<vmem>>, vector<1x1x128xf32>
    %47 = vector.shape_cast %46 : vector<1x1x128xf32> to vector<1x128xf32>
    %c0_68 = arith.constant 0 : index
    %c0_69 = arith.constant 0 : index
    %48 = vector.load %arg1[%c0_68, %c0_69] : memref<16x32xf32, #tpu.memory_space<vmem>>, vector<16x32xf32>
    %49 = arith.truncf %48 : vector<16x32xf32> to vector<16x32xbf16>
    %cst = arith.constant dense<0.000000e+00> : vector<16x128xf32>
    %50 = tpu.matmul %49, %1, %cst {dimension_numbers = #tpu.dot_dimension_numbers<[1], [0], [0], [1], [0, 0, 1, 1], [], []>} : vector<16x32xbf16>, vector<32x128xbf16>, vector<16x128xf32> -> vector<16x128xf32>
    %cst_70 = arith.constant 0.000000e+00 : f32
    %51 = vector.broadcast %cst_70 : f32 to vector<2x32xf32>
    %52 = vector.extract_strided_slice %50 {offsets = [0, 0], sizes = [2, 128], strides = [1, 1]} : vector<16x128xf32> to vector<2x128xf32>
    %53 = arith.truncf %51 : vector<2x32xf32> to vector<2x32xbf16>
    %cst_71 = arith.constant dense<0.000000e+00> : vector<2x128xf32>
    %54 = tpu.matmul %53, %9, %cst_71 {dimension_numbers = #tpu.dot_dimension_numbers<[1], [0], [0], [1], [0, 0, 1, 1], [], []>} : vector<2x32xbf16>, vector<32x128xbf16>, vector<2x128xf32> -> vector<2x128xf32>
    %55 = arith.addf %52, %54 : vector<2x128xf32>
    %56 = vector.broadcast %17 : vector<1x128xf32> to vector<2x128xf32>
    %57 = arith.addf %55, %56 : vector<2x128xf32>
    %58 = arith.negf %57 : vector<2x128xf32>
    %59 = math.exp %58 : vector<2x128xf32>
    %cst_72 = arith.constant 1.000000e+00 : f32
    %60 = vector.broadcast %cst_72 : f32 to vector<2x128xf32>
    %61 = arith.addf %60, %59 : vector<2x128xf32>
    %62 = arith.divf %60, %61 : vector<2x128xf32>
    %63 = math.tanh %57 : vector<2x128xf32>
    %64 = vector.extract_strided_slice %62 {offsets = [0, 0], sizes = [2, 32], strides = [1, 1]} : vector<2x128xf32> to vector<2x32xf32>
    %65 = vector.extract_strided_slice %62 {offsets = [0, 32], sizes = [2, 32], strides = [1, 1]} : vector<2x128xf32> to vector<2x32xf32>
    %66 = vector.extract_strided_slice %63 {offsets = [0, 64], sizes = [2, 32], strides = [1, 1]} : vector<2x128xf32> to vector<2x32xf32>
    %67 = vector.extract_strided_slice %62 {offsets = [0, 96], sizes = [2, 32], strides = [1, 1]} : vector<2x128xf32> to vector<2x32xf32>
    %68 = arith.mulf %65, %51 : vector<2x32xf32>
    %69 = arith.mulf %64, %66 : vector<2x32xf32>
    %70 = arith.addf %68, %69 : vector<2x32xf32>
    %71 = math.tanh %70 : vector<2x32xf32>
    %72 = arith.mulf %67, %71 : vector<2x32xf32>
    %73 = arith.truncf %72 : vector<2x32xf32> to vector<2x32xbf16>
    %cst_73 = arith.constant dense<0.000000e+00> : vector<2x128xf32>
    %74 = tpu.matmul %73, %3, %cst_73 {dimension_numbers = #tpu.dot_dimension_numbers<[1], [0], [0], [1], [0, 0, 1, 1], [], []>} : vector<2x32xbf16>, vector<32x128xbf16>, vector<2x128xf32> -> vector<2x128xf32>
    %75 = arith.truncf %51 : vector<2x32xf32> to vector<2x32xbf16>
    %cst_74 = arith.constant dense<0.000000e+00> : vector<2x128xf32>
    %76 = tpu.matmul %75, %11, %cst_74 {dimension_numbers = #tpu.dot_dimension_numbers<[1], [0], [0], [1], [0, 0, 1, 1], [], []>} : vector<2x32xbf16>, vector<32x128xbf16>, vector<2x128xf32> -> vector<2x128xf32>
    %77 = arith.addf %74, %76 : vector<2x128xf32>
    %78 = vector.broadcast %19 : vector<1x128xf32> to vector<2x128xf32>
    %79 = arith.addf %77, %78 : vector<2x128xf32>
    %80 = arith.negf %79 : vector<2x128xf32>
    %81 = math.exp %80 : vector<2x128xf32>
    %cst_75 = arith.constant 1.000000e+00 : f32
    %82 = vector.broadcast %cst_75 : f32 to vector<2x128xf32>
    %83 = arith.addf %82, %81 : vector<2x128xf32>
    %84 = arith.divf %82, %83 : vector<2x128xf32>
    %85 = math.tanh %79 : vector<2x128xf32>
    %86 = vector.extract_strided_slice %84 {offsets = [0, 0], sizes = [2, 32], strides = [1, 1]} : vector<2x128xf32> to vector<2x32xf32>
    %87 = vector.extract_strided_slice %84 {offsets = [0, 32], sizes = [2, 32], strides = [1, 1]} : vector<2x128xf32> to vector<2x32xf32>
    %88 = vector.extract_strided_slice %85 {offsets = [0, 64], sizes = [2, 32], strides = [1, 1]} : vector<2x128xf32> to vector<2x32xf32>
    %89 = vector.extract_strided_slice %84 {offsets = [0, 96], sizes = [2, 32], strides = [1, 1]} : vector<2x128xf32> to vector<2x32xf32>
    %90 = arith.mulf %87, %51 : vector<2x32xf32>
    %91 = arith.mulf %86, %88 : vector<2x32xf32>
    %92 = arith.addf %90, %91 : vector<2x32xf32>
    %93 = math.tanh %92 : vector<2x32xf32>
    %94 = arith.mulf %89, %93 : vector<2x32xf32>
    %95 = arith.truncf %94 : vector<2x32xf32> to vector<2x32xbf16>
    %cst_76 = arith.constant dense<0.000000e+00> : vector<2x128xf32>
    %96 = tpu.matmul %95, %5, %cst_76 {dimension_numbers = #tpu.dot_dimension_numbers<[1], [0], [0], [1], [0, 0, 1, 1], [], []>} : vector<2x32xbf16>, vector<32x128xbf16>, vector<2x128xf32> -> vector<2x128xf32>
    %97 = arith.truncf %51 : vector<2x32xf32> to vector<2x32xbf16>
    %cst_77 = arith.constant dense<0.000000e+00> : vector<2x128xf32>
    %98 = tpu.matmul %97, %13, %cst_77 {dimension_numbers = #tpu.dot_dimension_numbers<[1], [0], [0], [1], [0, 0, 1, 1], [], []>} : vector<2x32xbf16>, vector<32x128xbf16>, vector<2x128xf32> -> vector<2x128xf32>
    %99 = arith.addf %96, %98 : vector<2x128xf32>
    %100 = vector.broadcast %21 : vector<1x128xf32> to vector<2x128xf32>
    %101 = arith.addf %99, %100 : vector<2x128xf32>
    %102 = arith.negf %101 : vector<2x128xf32>
    %103 = math.exp %102 : vector<2x128xf32>
    %cst_78 = arith.constant 1.000000e+00 : f32
    %104 = vector.broadcast %cst_78 : f32 to vector<2x128xf32>
    %105 = arith.addf %104, %103 : vector<2x128xf32>
    %106 = arith.divf %104, %105 : vector<2x128xf32>
    %107 = math.tanh %101 : vector<2x128xf32>
    %108 = vector.extract_strided_slice %106 {offsets = [0, 0], sizes = [2, 32], strides = [1, 1]} : vector<2x128xf32> to vector<2x32xf32>
    %109 = vector.extract_strided_slice %106 {offsets = [0, 32], sizes = [2, 32], strides = [1, 1]} : vector<2x128xf32> to vector<2x32xf32>
    %110 = vector.extract_strided_slice %107 {offsets = [0, 64], sizes = [2, 32], strides = [1, 1]} : vector<2x128xf32> to vector<2x32xf32>
    %111 = vector.extract_strided_slice %106 {offsets = [0, 96], sizes = [2, 32], strides = [1, 1]} : vector<2x128xf32> to vector<2x32xf32>
    %112 = arith.mulf %109, %51 : vector<2x32xf32>
    %113 = arith.mulf %108, %110 : vector<2x32xf32>
    %114 = arith.addf %112, %113 : vector<2x32xf32>
    %115 = math.tanh %114 : vector<2x32xf32>
    %116 = arith.mulf %111, %115 : vector<2x32xf32>
    %117 = arith.truncf %116 : vector<2x32xf32> to vector<2x32xbf16>
    %cst_79 = arith.constant dense<0.000000e+00> : vector<2x128xf32>
    %118 = tpu.matmul %117, %7, %cst_79 {dimension_numbers = #tpu.dot_dimension_numbers<[1], [0], [0], [1], [0, 0, 1, 1], [], []>} : vector<2x32xbf16>, vector<32x128xbf16>, vector<2x128xf32> -> vector<2x128xf32>
    %119 = arith.truncf %51 : vector<2x32xf32> to vector<2x32xbf16>
    %cst_80 = arith.constant dense<0.000000e+00> : vector<2x128xf32>
    %120 = tpu.matmul %119, %15, %cst_80 {dimension_numbers = #tpu.dot_dimension_numbers<[1], [0], [0], [1], [0, 0, 1, 1], [], []>} : vector<2x32xbf16>, vector<32x128xbf16>, vector<2x128xf32> -> vector<2x128xf32>
    %121 = arith.addf %118, %120 : vector<2x128xf32>
    %122 = vector.broadcast %23 : vector<1x128xf32> to vector<2x128xf32>
    %123 = arith.addf %121, %122 : vector<2x128xf32>
    %124 = arith.negf %123 : vector<2x128xf32>
    %125 = math.exp %124 : vector<2x128xf32>
    %cst_81 = arith.constant 1.000000e+00 : f32
    %126 = vector.broadcast %cst_81 : f32 to vector<2x128xf32>
    %127 = arith.addf %126, %125 : vector<2x128xf32>
    %128 = arith.divf %126, %127 : vector<2x128xf32>
    %129 = math.tanh %123 : vector<2x128xf32>
    %130 = vector.extract_strided_slice %128 {offsets = [0, 0], sizes = [2, 32], strides = [1, 1]} : vector<2x128xf32> to vector<2x32xf32>
    %131 = vector.extract_strided_slice %128 {offsets = [0, 32], sizes = [2, 32], strides = [1, 1]} : vector<2x128xf32> to vector<2x32xf32>
    %132 = vector.extract_strided_slice %129 {offsets = [0, 64], sizes = [2, 32], strides = [1, 1]} : vector<2x128xf32> to vector<2x32xf32>
    %133 = vector.extract_strided_slice %128 {offsets = [0, 96], sizes = [2, 32], strides = [1, 1]} : vector<2x128xf32> to vector<2x32xf32>
    %134 = arith.mulf %131, %51 : vector<2x32xf32>
    %135 = arith.mulf %130, %132 : vector<2x32xf32>
    %136 = arith.addf %134, %135 : vector<2x32xf32>
    %137 = math.tanh %136 : vector<2x32xf32>
    %138 = arith.mulf %133, %137 : vector<2x32xf32>
    %139 = vector.extract_strided_slice %50 {offsets = [2, 0], sizes = [2, 128], strides = [1, 1]} : vector<16x128xf32> to vector<2x128xf32>
    %140 = arith.truncf %72 : vector<2x32xf32> to vector<2x32xbf16>
    %cst_82 = arith.constant dense<0.000000e+00> : vector<2x128xf32>
    %141 = tpu.matmul %140, %9, %cst_82 {dimension_numbers = #tpu.dot_dimension_numbers<[1], [0], [0], [1], [0, 0, 1, 1], [], []>} : vector<2x32xbf16>, vector<32x128xbf16>, vector<2x128xf32> -> vector<2x128xf32>
    %142 = arith.addf %139, %141 : vector<2x128xf32>
    %143 = vector.broadcast %17 : vector<1x128xf32> to vector<2x128xf32>
    %144 = arith.addf %142, %143 : vector<2x128xf32>
    %145 = arith.negf %144 : vector<2x128xf32>
    %146 = math.exp %145 : vector<2x128xf32>
    %cst_83 = arith.constant 1.000000e+00 : f32
    %147 = vector.broadcast %cst_83 : f32 to vector<2x128xf32>
    %148 = arith.addf %147, %146 : vector<2x128xf32>
    %149 = arith.divf %147, %148 : vector<2x128xf32>
    %150 = math.tanh %144 : vector<2x128xf32>
    %151 = vector.extract_strided_slice %149 {offsets = [0, 0], sizes = [2, 32], strides = [1, 1]} : vector<2x128xf32> to vector<2x32xf32>
    %152 = vector.extract_strided_slice %149 {offsets = [0, 32], sizes = [2, 32], strides = [1, 1]} : vector<2x128xf32> to vector<2x32xf32>
    %153 = vector.extract_strided_slice %150 {offsets = [0, 64], sizes = [2, 32], strides = [1, 1]} : vector<2x128xf32> to vector<2x32xf32>
    %154 = vector.extract_strided_slice %149 {offsets = [0, 96], sizes = [2, 32], strides = [1, 1]} : vector<2x128xf32> to vector<2x32xf32>
    %155 = arith.mulf %152, %70 : vector<2x32xf32>
    %156 = arith.mulf %151, %153 : vector<2x32xf32>
    %157 = arith.addf %155, %156 : vector<2x32xf32>
    %158 = math.tanh %157 : vector<2x32xf32>
    %159 = arith.mulf %154, %158 : vector<2x32xf32>
    %160 = arith.truncf %159 : vector<2x32xf32> to vector<2x32xbf16>
    %cst_84 = arith.constant dense<0.000000e+00> : vector<2x128xf32>
    %161 = tpu.matmul %160, %3, %cst_84 {dimension_numbers = #tpu.dot_dimension_numbers<[1], [0], [0], [1], [0, 0, 1, 1], [], []>} : vector<2x32xbf16>, vector<32x128xbf16>, vector<2x128xf32> -> vector<2x128xf32>
    %162 = arith.truncf %94 : vector<2x32xf32> to vector<2x32xbf16>
    %cst_85 = arith.constant dense<0.000000e+00> : vector<2x128xf32>
    %163 = tpu.matmul %162, %11, %cst_85 {dimension_numbers = #tpu.dot_dimension_numbers<[1], [0], [0], [1], [0, 0, 1, 1], [], []>} : vector<2x32xbf16>, vector<32x128xbf16>, vector<2x128xf32> -> vector<2x128xf32>
    %164 = arith.addf %161, %163 : vector<2x128xf32>
    %165 = vector.broadcast %19 : vector<1x128xf32> to vector<2x128xf32>
    %166 = arith.addf %164, %165 : vector<2x128xf32>
    %167 = arith.negf %166 : vector<2x128xf32>
    %168 = math.exp %167 : vector<2x128xf32>
    %cst_86 = arith.constant 1.000000e+00 : f32
    %169 = vector.broadcast %cst_86 : f32 to vector<2x128xf32>
    %170 = arith.addf %169, %168 : vector<2x128xf32>
    %171 = arith.divf %169, %170 : vector<2x128xf32>
    %172 = math.tanh %166 : vector<2x128xf32>
    %173 = vector.extract_strided_slice %171 {offsets = [0, 0], sizes = [2, 32], strides = [1, 1]} : vector<2x128xf32> to vector<2x32xf32>
    %174 = vector.extract_strided_slice %171 {offsets = [0, 32], sizes = [2, 32], strides = [1, 1]} : vector<2x128xf32> to vector<2x32xf32>
    %175 = vector.extract_strided_slice %172 {offsets = [0, 64], sizes = [2, 32], strides = [1, 1]} : vector<2x128xf32> to vector<2x32xf32>
    %176 = vector.extract_strided_slice %171 {offsets = [0, 96], sizes = [2, 32], strides = [1, 1]} : vector<2x128xf32> to vector<2x32xf32>
    %177 = arith.mulf %174, %92 : vector<2x32xf32>
    %178 = arith.mulf %173, %175 : vector<2x32xf32>
    %179 = arith.addf %177, %178 : vector<2x32xf32>
    %180 = math.tanh %179 : vector<2x32xf32>
    %181 = arith.mulf %176, %180 : vector<2x32xf32>
    %182 = arith.truncf %181 : vector<2x32xf32> to vector<2x32xbf16>
    %cst_87 = arith.constant dense<0.000000e+00> : vector<2x128xf32>
    %183 = tpu.matmul %182, %5, %cst_87 {dimension_numbers = #tpu.dot_dimension_numbers<[1], [0], [0], [1], [0, 0, 1, 1], [], []>} : vector<2x32xbf16>, vector<32x128xbf16>, vector<2x128xf32> -> vector<2x128xf32>
    %184 = arith.truncf %116 : vector<2x32xf32> to vector<2x32xbf16>
    %cst_88 = arith.constant dense<0.000000e+00> : vector<2x128xf32>
    %185 = tpu.matmul %184, %13, %cst_88 {dimension_numbers = #tpu.dot_dimension_numbers<[1], [0], [0], [1], [0, 0, 1, 1], [], []>} : vector<2x32xbf16>, vector<32x128xbf16>, vector<2x128xf32> -> vector<2x128xf32>
    %186 = arith.addf %183, %185 : vector<2x128xf32>
    %187 = vector.broadcast %21 : vector<1x128xf32> to vector<2x128xf32>
    %188 = arith.addf %186, %187 : vector<2x128xf32>
    %189 = arith.negf %188 : vector<2x128xf32>
    %190 = math.exp %189 : vector<2x128xf32>
    %cst_89 = arith.constant 1.000000e+00 : f32
    %191 = vector.broadcast %cst_89 : f32 to vector<2x128xf32>
    %192 = arith.addf %191, %190 : vector<2x128xf32>
    %193 = arith.divf %191, %192 : vector<2x128xf32>
    %194 = math.tanh %188 : vector<2x128xf32>
    %195 = vector.extract_strided_slice %193 {offsets = [0, 0], sizes = [2, 32], strides = [1, 1]} : vector<2x128xf32> to vector<2x32xf32>
    %196 = vector.extract_strided_slice %193 {offsets = [0, 32], sizes = [2, 32], strides = [1, 1]} : vector<2x128xf32> to vector<2x32xf32>
    %197 = vector.extract_strided_slice %194 {offsets = [0, 64], sizes = [2, 32], strides = [1, 1]} : vector<2x128xf32> to vector<2x32xf32>
    %198 = vector.extract_strided_slice %193 {offsets = [0, 96], sizes = [2, 32], strides = [1, 1]} : vector<2x128xf32> to vector<2x32xf32>
    %199 = arith.mulf %196, %114 : vector<2x32xf32>
    %200 = arith.mulf %195, %197 : vector<2x32xf32>
    %201 = arith.addf %199, %200 : vector<2x32xf32>
    %202 = math.tanh %201 : vector<2x32xf32>
    %203 = arith.mulf %198, %202 : vector<2x32xf32>
    %204 = arith.truncf %203 : vector<2x32xf32> to vector<2x32xbf16>
    %cst_90 = arith.constant dense<0.000000e+00> : vector<2x128xf32>
    %205 = tpu.matmul %204, %7, %cst_90 {dimension_numbers = #tpu.dot_dimension_numbers<[1], [0], [0], [1], [0, 0, 1, 1], [], []>} : vector<2x32xbf16>, vector<32x128xbf16>, vector<2x128xf32> -> vector<2x128xf32>
    %206 = arith.truncf %138 : vector<2x32xf32> to vector<2x32xbf16>
    %cst_91 = arith.constant dense<0.000000e+00> : vector<2x128xf32>
    %207 = tpu.matmul %206, %15, %cst_91 {dimension_numbers = #tpu.dot_dimension_numbers<[1], [0], [0], [1], [0, 0, 1, 1], [], []>} : vector<2x32xbf16>, vector<32x128xbf16>, vector<2x128xf32> -> vector<2x128xf32>
    %208 = arith.addf %205, %207 : vector<2x128xf32>
    %209 = vector.broadcast %23 : vector<1x128xf32> to vector<2x128xf32>
    %210 = arith.addf %208, %209 : vector<2x128xf32>
    %211 = arith.negf %210 : vector<2x128xf32>
    %212 = math.exp %211 : vector<2x128xf32>
    %cst_92 = arith.constant 1.000000e+00 : f32
    %213 = vector.broadcast %cst_92 : f32 to vector<2x128xf32>
    %214 = arith.addf %213, %212 : vector<2x128xf32>
    %215 = arith.divf %213, %214 : vector<2x128xf32>
    %216 = math.tanh %210 : vector<2x128xf32>
    %217 = vector.extract_strided_slice %215 {offsets = [0, 0], sizes = [2, 32], strides = [1, 1]} : vector<2x128xf32> to vector<2x32xf32>
    %218 = vector.extract_strided_slice %215 {offsets = [0, 32], sizes = [2, 32], strides = [1, 1]} : vector<2x128xf32> to vector<2x32xf32>
    %219 = vector.extract_strided_slice %216 {offsets = [0, 64], sizes = [2, 32], strides = [1, 1]} : vector<2x128xf32> to vector<2x32xf32>
    %220 = vector.extract_strided_slice %215 {offsets = [0, 96], sizes = [2, 32], strides = [1, 1]} : vector<2x128xf32> to vector<2x32xf32>
    %221 = arith.mulf %218, %136 : vector<2x32xf32>
    %222 = arith.mulf %217, %219 : vector<2x32xf32>
    %223 = arith.addf %221, %222 : vector<2x32xf32>
    %224 = math.tanh %223 : vector<2x32xf32>
    %225 = arith.mulf %220, %224 : vector<2x32xf32>
    %226 = vector.extract_strided_slice %50 {offsets = [4, 0], sizes = [2, 128], strides = [1, 1]} : vector<16x128xf32> to vector<2x128xf32>
    %227 = arith.truncf %159 : vector<2x32xf32> to vector<2x32xbf16>
    %cst_93 = arith.constant dense<0.000000e+00> : vector<2x128xf32>
    %228 = tpu.matmul %227, %9, %cst_93 {dimension_numbers = #tpu.dot_dimension_numbers<[1], [0], [0], [1], [0, 0, 1, 1], [], []>} : vector<2x32xbf16>, vector<32x128xbf16>, vector<2x128xf32> -> vector<2x128xf32>
    %229 = arith.addf %226, %228 : vector<2x128xf32>
    %230 = vector.broadcast %17 : vector<1x128xf32> to vector<2x128xf32>
    %231 = arith.addf %229, %230 : vector<2x128xf32>
    %232 = arith.negf %231 : vector<2x128xf32>
    %233 = math.exp %232 : vector<2x128xf32>
    %cst_94 = arith.constant 1.000000e+00 : f32
    %234 = vector.broadcast %cst_94 : f32 to vector<2x128xf32>
    %235 = arith.addf %234, %233 : vector<2x128xf32>
    %236 = arith.divf %234, %235 : vector<2x128xf32>
    %237 = math.tanh %231 : vector<2x128xf32>
    %238 = vector.extract_strided_slice %236 {offsets = [0, 0], sizes = [2, 32], strides = [1, 1]} : vector<2x128xf32> to vector<2x32xf32>
    %239 = vector.extract_strided_slice %236 {offsets = [0, 32], sizes = [2, 32], strides = [1, 1]} : vector<2x128xf32> to vector<2x32xf32>
    %240 = vector.extract_strided_slice %237 {offsets = [0, 64], sizes = [2, 32], strides = [1, 1]} : vector<2x128xf32> to vector<2x32xf32>
    %241 = vector.extract_strided_slice %236 {offsets = [0, 96], sizes = [2, 32], strides = [1, 1]} : vector<2x128xf32> to vector<2x32xf32>
    %242 = arith.mulf %239, %157 : vector<2x32xf32>
    %243 = arith.mulf %238, %240 : vector<2x32xf32>
    %244 = arith.addf %242, %243 : vector<2x32xf32>
    %245 = math.tanh %244 : vector<2x32xf32>
    %246 = arith.mulf %241, %245 : vector<2x32xf32>
    %247 = arith.truncf %246 : vector<2x32xf32> to vector<2x32xbf16>
    %cst_95 = arith.constant dense<0.000000e+00> : vector<2x128xf32>
    %248 = tpu.matmul %247, %3, %cst_95 {dimension_numbers = #tpu.dot_dimension_numbers<[1], [0], [0], [1], [0, 0, 1, 1], [], []>} : vector<2x32xbf16>, vector<32x128xbf16>, vector<2x128xf32> -> vector<2x128xf32>
    %249 = arith.truncf %181 : vector<2x32xf32> to vector<2x32xbf16>
    %cst_96 = arith.constant dense<0.000000e+00> : vector<2x128xf32>
    %250 = tpu.matmul %249, %11, %cst_96 {dimension_numbers = #tpu.dot_dimension_numbers<[1], [0], [0], [1], [0, 0, 1, 1], [], []>} : vector<2x32xbf16>, vector<32x128xbf16>, vector<2x128xf32> -> vector<2x128xf32>
    %251 = arith.addf %248, %250 : vector<2x128xf32>
    %252 = vector.broadcast %19 : vector<1x128xf32> to vector<2x128xf32>
    %253 = arith.addf %251, %252 : vector<2x128xf32>
    %254 = arith.negf %253 : vector<2x128xf32>
    %255 = math.exp %254 : vector<2x128xf32>
    %cst_97 = arith.constant 1.000000e+00 : f32
    %256 = vector.broadcast %cst_97 : f32 to vector<2x128xf32>
    %257 = arith.addf %256, %255 : vector<2x128xf32>
    %258 = arith.divf %256, %257 : vector<2x128xf32>
    %259 = math.tanh %253 : vector<2x128xf32>
    %260 = vector.extract_strided_slice %258 {offsets = [0, 0], sizes = [2, 32], strides = [1, 1]} : vector<2x128xf32> to vector<2x32xf32>
    %261 = vector.extract_strided_slice %258 {offsets = [0, 32], sizes = [2, 32], strides = [1, 1]} : vector<2x128xf32> to vector<2x32xf32>
    %262 = vector.extract_strided_slice %259 {offsets = [0, 64], sizes = [2, 32], strides = [1, 1]} : vector<2x128xf32> to vector<2x32xf32>
    %263 = vector.extract_strided_slice %258 {offsets = [0, 96], sizes = [2, 32], strides = [1, 1]} : vector<2x128xf32> to vector<2x32xf32>
    %264 = arith.mulf %261, %179 : vector<2x32xf32>
    %265 = arith.mulf %260, %262 : vector<2x32xf32>
    %266 = arith.addf %264, %265 : vector<2x32xf32>
    %267 = math.tanh %266 : vector<2x32xf32>
    %268 = arith.mulf %263, %267 : vector<2x32xf32>
    %269 = arith.truncf %268 : vector<2x32xf32> to vector<2x32xbf16>
    %cst_98 = arith.constant dense<0.000000e+00> : vector<2x128xf32>
    %270 = tpu.matmul %269, %5, %cst_98 {dimension_numbers = #tpu.dot_dimension_numbers<[1], [0], [0], [1], [0, 0, 1, 1], [], []>} : vector<2x32xbf16>, vector<32x128xbf16>, vector<2x128xf32> -> vector<2x128xf32>
    %271 = arith.truncf %203 : vector<2x32xf32> to vector<2x32xbf16>
    %cst_99 = arith.constant dense<0.000000e+00> : vector<2x128xf32>
    %272 = tpu.matmul %271, %13, %cst_99 {dimension_numbers = #tpu.dot_dimension_numbers<[1], [0], [0], [1], [0, 0, 1, 1], [], []>} : vector<2x32xbf16>, vector<32x128xbf16>, vector<2x128xf32> -> vector<2x128xf32>
    %273 = arith.addf %270, %272 : vector<2x128xf32>
    %274 = vector.broadcast %21 : vector<1x128xf32> to vector<2x128xf32>
    %275 = arith.addf %273, %274 : vector<2x128xf32>
    %276 = arith.negf %275 : vector<2x128xf32>
    %277 = math.exp %276 : vector<2x128xf32>
    %cst_100 = arith.constant 1.000000e+00 : f32
    %278 = vector.broadcast %cst_100 : f32 to vector<2x128xf32>
    %279 = arith.addf %278, %277 : vector<2x128xf32>
    %280 = arith.divf %278, %279 : vector<2x128xf32>
    %281 = math.tanh %275 : vector<2x128xf32>
    %282 = vector.extract_strided_slice %280 {offsets = [0, 0], sizes = [2, 32], strides = [1, 1]} : vector<2x128xf32> to vector<2x32xf32>
    %283 = vector.extract_strided_slice %280 {offsets = [0, 32], sizes = [2, 32], strides = [1, 1]} : vector<2x128xf32> to vector<2x32xf32>
    %284 = vector.extract_strided_slice %281 {offsets = [0, 64], sizes = [2, 32], strides = [1, 1]} : vector<2x128xf32> to vector<2x32xf32>
    %285 = vector.extract_strided_slice %280 {offsets = [0, 96], sizes = [2, 32], strides = [1, 1]} : vector<2x128xf32> to vector<2x32xf32>
    %286 = arith.mulf %283, %201 : vector<2x32xf32>
    %287 = arith.mulf %282, %284 : vector<2x32xf32>
    %288 = arith.addf %286, %287 : vector<2x32xf32>
    %289 = math.tanh %288 : vector<2x32xf32>
    %290 = arith.mulf %285, %289 : vector<2x32xf32>
    %291 = arith.truncf %290 : vector<2x32xf32> to vector<2x32xbf16>
    %cst_101 = arith.constant dense<0.000000e+00> : vector<2x128xf32>
    %292 = tpu.matmul %291, %7, %cst_101 {dimension_numbers = #tpu.dot_dimension_numbers<[1], [0], [0], [1], [0, 0, 1, 1], [], []>} : vector<2x32xbf16>, vector<32x128xbf16>, vector<2x128xf32> -> vector<2x128xf32>
    %293 = arith.truncf %225 : vector<2x32xf32> to vector<2x32xbf16>
    %cst_102 = arith.constant dense<0.000000e+00> : vector<2x128xf32>
    %294 = tpu.matmul %293, %15, %cst_102 {dimension_numbers = #tpu.dot_dimension_numbers<[1], [0], [0], [1], [0, 0, 1, 1], [], []>} : vector<2x32xbf16>, vector<32x128xbf16>, vector<2x128xf32> -> vector<2x128xf32>
    %295 = arith.addf %292, %294 : vector<2x128xf32>
    %296 = vector.broadcast %23 : vector<1x128xf32> to vector<2x128xf32>
    %297 = arith.addf %295, %296 : vector<2x128xf32>
    %298 = arith.negf %297 : vector<2x128xf32>
    %299 = math.exp %298 : vector<2x128xf32>
    %cst_103 = arith.constant 1.000000e+00 : f32
    %300 = vector.broadcast %cst_103 : f32 to vector<2x128xf32>
    %301 = arith.addf %300, %299 : vector<2x128xf32>
    %302 = arith.divf %300, %301 : vector<2x128xf32>
    %303 = math.tanh %297 : vector<2x128xf32>
    %304 = vector.extract_strided_slice %302 {offsets = [0, 0], sizes = [2, 32], strides = [1, 1]} : vector<2x128xf32> to vector<2x32xf32>
    %305 = vector.extract_strided_slice %302 {offsets = [0, 32], sizes = [2, 32], strides = [1, 1]} : vector<2x128xf32> to vector<2x32xf32>
    %306 = vector.extract_strided_slice %303 {offsets = [0, 64], sizes = [2, 32], strides = [1, 1]} : vector<2x128xf32> to vector<2x32xf32>
    %307 = vector.extract_strided_slice %302 {offsets = [0, 96], sizes = [2, 32], strides = [1, 1]} : vector<2x128xf32> to vector<2x32xf32>
    %308 = arith.mulf %305, %223 : vector<2x32xf32>
    %309 = arith.mulf %304, %306 : vector<2x32xf32>
    %310 = arith.addf %308, %309 : vector<2x32xf32>
    %311 = math.tanh %310 : vector<2x32xf32>
    %312 = arith.mulf %307, %311 : vector<2x32xf32>
    %313 = vector.extract_strided_slice %50 {offsets = [6, 0], sizes = [2, 128], strides = [1, 1]} : vector<16x128xf32> to vector<2x128xf32>
    %314 = arith.truncf %246 : vector<2x32xf32> to vector<2x32xbf16>
    %cst_104 = arith.constant dense<0.000000e+00> : vector<2x128xf32>
    %315 = tpu.matmul %314, %9, %cst_104 {dimension_numbers = #tpu.dot_dimension_numbers<[1], [0], [0], [1], [0, 0, 1, 1], [], []>} : vector<2x32xbf16>, vector<32x128xbf16>, vector<2x128xf32> -> vector<2x128xf32>
    %316 = arith.addf %313, %315 : vector<2x128xf32>
    %317 = vector.broadcast %17 : vector<1x128xf32> to vector<2x128xf32>
    %318 = arith.addf %316, %317 : vector<2x128xf32>
    %319 = arith.negf %318 : vector<2x128xf32>
    %320 = math.exp %319 : vector<2x128xf32>
    %cst_105 = arith.constant 1.000000e+00 : f32
    %321 = vector.broadcast %cst_105 : f32 to vector<2x128xf32>
    %322 = arith.addf %321, %320 : vector<2x128xf32>
    %323 = arith.divf %321, %322 : vector<2x128xf32>
    %324 = math.tanh %318 : vector<2x128xf32>
    %325 = vector.extract_strided_slice %323 {offsets = [0, 0], sizes = [2, 32], strides = [1, 1]} : vector<2x128xf32> to vector<2x32xf32>
    %326 = vector.extract_strided_slice %323 {offsets = [0, 32], sizes = [2, 32], strides = [1, 1]} : vector<2x128xf32> to vector<2x32xf32>
    %327 = vector.extract_strided_slice %324 {offsets = [0, 64], sizes = [2, 32], strides = [1, 1]} : vector<2x128xf32> to vector<2x32xf32>
    %328 = vector.extract_strided_slice %323 {offsets = [0, 96], sizes = [2, 32], strides = [1, 1]} : vector<2x128xf32> to vector<2x32xf32>
    %329 = arith.mulf %326, %244 : vector<2x32xf32>
    %330 = arith.mulf %325, %327 : vector<2x32xf32>
    %331 = arith.addf %329, %330 : vector<2x32xf32>
    %332 = math.tanh %331 : vector<2x32xf32>
    %333 = arith.mulf %328, %332 : vector<2x32xf32>
    %334 = arith.truncf %333 : vector<2x32xf32> to vector<2x32xbf16>
    %cst_106 = arith.constant dense<0.000000e+00> : vector<2x128xf32>
    %335 = tpu.matmul %334, %3, %cst_106 {dimension_numbers = #tpu.dot_dimension_numbers<[1], [0], [0], [1], [0, 0, 1, 1], [], []>} : vector<2x32xbf16>, vector<32x128xbf16>, vector<2x128xf32> -> vector<2x128xf32>
    %336 = arith.truncf %268 : vector<2x32xf32> to vector<2x32xbf16>
    %cst_107 = arith.constant dense<0.000000e+00> : vector<2x128xf32>
    %337 = tpu.matmul %336, %11, %cst_107 {dimension_numbers = #tpu.dot_dimension_numbers<[1], [0], [0], [1], [0, 0, 1, 1], [], []>} : vector<2x32xbf16>, vector<32x128xbf16>, vector<2x128xf32> -> vector<2x128xf32>
    %338 = arith.addf %335, %337 : vector<2x128xf32>
    %339 = vector.broadcast %19 : vector<1x128xf32> to vector<2x128xf32>
    %340 = arith.addf %338, %339 : vector<2x128xf32>
    %341 = arith.negf %340 : vector<2x128xf32>
    %342 = math.exp %341 : vector<2x128xf32>
    %cst_108 = arith.constant 1.000000e+00 : f32
    %343 = vector.broadcast %cst_108 : f32 to vector<2x128xf32>
    %344 = arith.addf %343, %342 : vector<2x128xf32>
    %345 = arith.divf %343, %344 : vector<2x128xf32>
    %346 = math.tanh %340 : vector<2x128xf32>
    %347 = vector.extract_strided_slice %345 {offsets = [0, 0], sizes = [2, 32], strides = [1, 1]} : vector<2x128xf32> to vector<2x32xf32>
    %348 = vector.extract_strided_slice %345 {offsets = [0, 32], sizes = [2, 32], strides = [1, 1]} : vector<2x128xf32> to vector<2x32xf32>
    %349 = vector.extract_strided_slice %346 {offsets = [0, 64], sizes = [2, 32], strides = [1, 1]} : vector<2x128xf32> to vector<2x32xf32>
    %350 = vector.extract_strided_slice %345 {offsets = [0, 96], sizes = [2, 32], strides = [1, 1]} : vector<2x128xf32> to vector<2x32xf32>
    %351 = arith.mulf %348, %266 : vector<2x32xf32>
    %352 = arith.mulf %347, %349 : vector<2x32xf32>
    %353 = arith.addf %351, %352 : vector<2x32xf32>
    %354 = math.tanh %353 : vector<2x32xf32>
    %355 = arith.mulf %350, %354 : vector<2x32xf32>
    %356 = arith.truncf %355 : vector<2x32xf32> to vector<2x32xbf16>
    %cst_109 = arith.constant dense<0.000000e+00> : vector<2x128xf32>
    %357 = tpu.matmul %356, %5, %cst_109 {dimension_numbers = #tpu.dot_dimension_numbers<[1], [0], [0], [1], [0, 0, 1, 1], [], []>} : vector<2x32xbf16>, vector<32x128xbf16>, vector<2x128xf32> -> vector<2x128xf32>
    %358 = arith.truncf %290 : vector<2x32xf32> to vector<2x32xbf16>
    %cst_110 = arith.constant dense<0.000000e+00> : vector<2x128xf32>
    %359 = tpu.matmul %358, %13, %cst_110 {dimension_numbers = #tpu.dot_dimension_numbers<[1], [0], [0], [1], [0, 0, 1, 1], [], []>} : vector<2x32xbf16>, vector<32x128xbf16>, vector<2x128xf32> -> vector<2x128xf32>
    %360 = arith.addf %357, %359 : vector<2x128xf32>
    %361 = vector.broadcast %21 : vector<1x128xf32> to vector<2x128xf32>
    %362 = arith.addf %360, %361 : vector<2x128xf32>
    %363 = arith.negf %362 : vector<2x128xf32>
    %364 = math.exp %363 : vector<2x128xf32>
    %cst_111 = arith.constant 1.000000e+00 : f32
    %365 = vector.broadcast %cst_111 : f32 to vector<2x128xf32>
    %366 = arith.addf %365, %364 : vector<2x128xf32>
    %367 = arith.divf %365, %366 : vector<2x128xf32>
    %368 = math.tanh %362 : vector<2x128xf32>
    %369 = vector.extract_strided_slice %367 {offsets = [0, 0], sizes = [2, 32], strides = [1, 1]} : vector<2x128xf32> to vector<2x32xf32>
    %370 = vector.extract_strided_slice %367 {offsets = [0, 32], sizes = [2, 32], strides = [1, 1]} : vector<2x128xf32> to vector<2x32xf32>
    %371 = vector.extract_strided_slice %368 {offsets = [0, 64], sizes = [2, 32], strides = [1, 1]} : vector<2x128xf32> to vector<2x32xf32>
    %372 = vector.extract_strided_slice %367 {offsets = [0, 96], sizes = [2, 32], strides = [1, 1]} : vector<2x128xf32> to vector<2x32xf32>
    %373 = arith.mulf %370, %288 : vector<2x32xf32>
    %374 = arith.mulf %369, %371 : vector<2x32xf32>
    %375 = arith.addf %373, %374 : vector<2x32xf32>
    %376 = math.tanh %375 : vector<2x32xf32>
    %377 = arith.mulf %372, %376 : vector<2x32xf32>
    %378 = arith.truncf %377 : vector<2x32xf32> to vector<2x32xbf16>
    %cst_112 = arith.constant dense<0.000000e+00> : vector<2x128xf32>
    %379 = tpu.matmul %378, %7, %cst_112 {dimension_numbers = #tpu.dot_dimension_numbers<[1], [0], [0], [1], [0, 0, 1, 1], [], []>} : vector<2x32xbf16>, vector<32x128xbf16>, vector<2x128xf32> -> vector<2x128xf32>
    %380 = arith.truncf %312 : vector<2x32xf32> to vector<2x32xbf16>
    %cst_113 = arith.constant dense<0.000000e+00> : vector<2x128xf32>
    %381 = tpu.matmul %380, %15, %cst_113 {dimension_numbers = #tpu.dot_dimension_numbers<[1], [0], [0], [1], [0, 0, 1, 1], [], []>} : vector<2x32xbf16>, vector<32x128xbf16>, vector<2x128xf32> -> vector<2x128xf32>
    %382 = arith.addf %379, %381 : vector<2x128xf32>
    %383 = vector.broadcast %23 : vector<1x128xf32> to vector<2x128xf32>
    %384 = arith.addf %382, %383 : vector<2x128xf32>
    %385 = arith.negf %384 : vector<2x128xf32>
    %386 = math.exp %385 : vector<2x128xf32>
    %cst_114 = arith.constant 1.000000e+00 : f32
    %387 = vector.broadcast %cst_114 : f32 to vector<2x128xf32>
    %388 = arith.addf %387, %386 : vector<2x128xf32>
    %389 = arith.divf %387, %388 : vector<2x128xf32>
    %390 = math.tanh %384 : vector<2x128xf32>
    %391 = vector.extract_strided_slice %389 {offsets = [0, 0], sizes = [2, 32], strides = [1, 1]} : vector<2x128xf32> to vector<2x32xf32>
    %392 = vector.extract_strided_slice %389 {offsets = [0, 32], sizes = [2, 32], strides = [1, 1]} : vector<2x128xf32> to vector<2x32xf32>
    %393 = vector.extract_strided_slice %390 {offsets = [0, 64], sizes = [2, 32], strides = [1, 1]} : vector<2x128xf32> to vector<2x32xf32>
    %394 = vector.extract_strided_slice %389 {offsets = [0, 96], sizes = [2, 32], strides = [1, 1]} : vector<2x128xf32> to vector<2x32xf32>
    %395 = arith.mulf %392, %310 : vector<2x32xf32>
    %396 = arith.mulf %391, %393 : vector<2x32xf32>
    %397 = arith.addf %395, %396 : vector<2x32xf32>
    %398 = math.tanh %397 : vector<2x32xf32>
    %399 = arith.mulf %394, %398 : vector<2x32xf32>
    %400 = vector.extract_strided_slice %50 {offsets = [8, 0], sizes = [2, 128], strides = [1, 1]} : vector<16x128xf32> to vector<2x128xf32>
    %401 = arith.truncf %333 : vector<2x32xf32> to vector<2x32xbf16>
    %cst_115 = arith.constant dense<0.000000e+00> : vector<2x128xf32>
    %402 = tpu.matmul %401, %9, %cst_115 {dimension_numbers = #tpu.dot_dimension_numbers<[1], [0], [0], [1], [0, 0, 1, 1], [], []>} : vector<2x32xbf16>, vector<32x128xbf16>, vector<2x128xf32> -> vector<2x128xf32>
    %403 = arith.addf %400, %402 : vector<2x128xf32>
    %404 = vector.broadcast %17 : vector<1x128xf32> to vector<2x128xf32>
    %405 = arith.addf %403, %404 : vector<2x128xf32>
    %406 = arith.negf %405 : vector<2x128xf32>
    %407 = math.exp %406 : vector<2x128xf32>
    %cst_116 = arith.constant 1.000000e+00 : f32
    %408 = vector.broadcast %cst_116 : f32 to vector<2x128xf32>
    %409 = arith.addf %408, %407 : vector<2x128xf32>
    %410 = arith.divf %408, %409 : vector<2x128xf32>
    %411 = math.tanh %405 : vector<2x128xf32>
    %412 = vector.extract_strided_slice %410 {offsets = [0, 0], sizes = [2, 32], strides = [1, 1]} : vector<2x128xf32> to vector<2x32xf32>
    %413 = vector.extract_strided_slice %410 {offsets = [0, 32], sizes = [2, 32], strides = [1, 1]} : vector<2x128xf32> to vector<2x32xf32>
    %414 = vector.extract_strided_slice %411 {offsets = [0, 64], sizes = [2, 32], strides = [1, 1]} : vector<2x128xf32> to vector<2x32xf32>
    %415 = vector.extract_strided_slice %410 {offsets = [0, 96], sizes = [2, 32], strides = [1, 1]} : vector<2x128xf32> to vector<2x32xf32>
    %416 = arith.mulf %413, %331 : vector<2x32xf32>
    %417 = arith.mulf %412, %414 : vector<2x32xf32>
    %418 = arith.addf %416, %417 : vector<2x32xf32>
    %419 = math.tanh %418 : vector<2x32xf32>
    %420 = arith.mulf %415, %419 : vector<2x32xf32>
    %421 = arith.truncf %420 : vector<2x32xf32> to vector<2x32xbf16>
    %cst_117 = arith.constant dense<0.000000e+00> : vector<2x128xf32>
    %422 = tpu.matmul %421, %3, %cst_117 {dimension_numbers = #tpu.dot_dimension_numbers<[1], [0], [0], [1], [0, 0, 1, 1], [], []>} : vector<2x32xbf16>, vector<32x128xbf16>, vector<2x128xf32> -> vector<2x128xf32>
    %423 = arith.truncf %355 : vector<2x32xf32> to vector<2x32xbf16>
    %cst_118 = arith.constant dense<0.000000e+00> : vector<2x128xf32>
    %424 = tpu.matmul %423, %11, %cst_118 {dimension_numbers = #tpu.dot_dimension_numbers<[1], [0], [0], [1], [0, 0, 1, 1], [], []>} : vector<2x32xbf16>, vector<32x128xbf16>, vector<2x128xf32> -> vector<2x128xf32>
    %425 = arith.addf %422, %424 : vector<2x128xf32>
    %426 = vector.broadcast %19 : vector<1x128xf32> to vector<2x128xf32>
    %427 = arith.addf %425, %426 : vector<2x128xf32>
    %428 = arith.negf %427 : vector<2x128xf32>
    %429 = math.exp %428 : vector<2x128xf32>
    %cst_119 = arith.constant 1.000000e+00 : f32
    %430 = vector.broadcast %cst_119 : f32 to vector<2x128xf32>
    %431 = arith.addf %430, %429 : vector<2x128xf32>
    %432 = arith.divf %430, %431 : vector<2x128xf32>
    %433 = math.tanh %427 : vector<2x128xf32>
    %434 = vector.extract_strided_slice %432 {offsets = [0, 0], sizes = [2, 32], strides = [1, 1]} : vector<2x128xf32> to vector<2x32xf32>
    %435 = vector.extract_strided_slice %432 {offsets = [0, 32], sizes = [2, 32], strides = [1, 1]} : vector<2x128xf32> to vector<2x32xf32>
    %436 = vector.extract_strided_slice %433 {offsets = [0, 64], sizes = [2, 32], strides = [1, 1]} : vector<2x128xf32> to vector<2x32xf32>
    %437 = vector.extract_strided_slice %432 {offsets = [0, 96], sizes = [2, 32], strides = [1, 1]} : vector<2x128xf32> to vector<2x32xf32>
    %438 = arith.mulf %435, %353 : vector<2x32xf32>
    %439 = arith.mulf %434, %436 : vector<2x32xf32>
    %440 = arith.addf %438, %439 : vector<2x32xf32>
    %441 = math.tanh %440 : vector<2x32xf32>
    %442 = arith.mulf %437, %441 : vector<2x32xf32>
    %443 = arith.truncf %442 : vector<2x32xf32> to vector<2x32xbf16>
    %cst_120 = arith.constant dense<0.000000e+00> : vector<2x128xf32>
    %444 = tpu.matmul %443, %5, %cst_120 {dimension_numbers = #tpu.dot_dimension_numbers<[1], [0], [0], [1], [0, 0, 1, 1], [], []>} : vector<2x32xbf16>, vector<32x128xbf16>, vector<2x128xf32> -> vector<2x128xf32>
    %445 = arith.truncf %377 : vector<2x32xf32> to vector<2x32xbf16>
    %cst_121 = arith.constant dense<0.000000e+00> : vector<2x128xf32>
    %446 = tpu.matmul %445, %13, %cst_121 {dimension_numbers = #tpu.dot_dimension_numbers<[1], [0], [0], [1], [0, 0, 1, 1], [], []>} : vector<2x32xbf16>, vector<32x128xbf16>, vector<2x128xf32> -> vector<2x128xf32>
    %447 = arith.addf %444, %446 : vector<2x128xf32>
    %448 = vector.broadcast %21 : vector<1x128xf32> to vector<2x128xf32>
    %449 = arith.addf %447, %448 : vector<2x128xf32>
    %450 = arith.negf %449 : vector<2x128xf32>
    %451 = math.exp %450 : vector<2x128xf32>
    %cst_122 = arith.constant 1.000000e+00 : f32
    %452 = vector.broadcast %cst_122 : f32 to vector<2x128xf32>
    %453 = arith.addf %452, %451 : vector<2x128xf32>
    %454 = arith.divf %452, %453 : vector<2x128xf32>
    %455 = math.tanh %449 : vector<2x128xf32>
    %456 = vector.extract_strided_slice %454 {offsets = [0, 0], sizes = [2, 32], strides = [1, 1]} : vector<2x128xf32> to vector<2x32xf32>
    %457 = vector.extract_strided_slice %454 {offsets = [0, 32], sizes = [2, 32], strides = [1, 1]} : vector<2x128xf32> to vector<2x32xf32>
    %458 = vector.extract_strided_slice %455 {offsets = [0, 64], sizes = [2, 32], strides = [1, 1]} : vector<2x128xf32> to vector<2x32xf32>
    %459 = vector.extract_strided_slice %454 {offsets = [0, 96], sizes = [2, 32], strides = [1, 1]} : vector<2x128xf32> to vector<2x32xf32>
    %460 = arith.mulf %457, %375 : vector<2x32xf32>
    %461 = arith.mulf %456, %458 : vector<2x32xf32>
    %462 = arith.addf %460, %461 : vector<2x32xf32>
    %463 = math.tanh %462 : vector<2x32xf32>
    %464 = arith.mulf %459, %463 : vector<2x32xf32>
    %465 = arith.truncf %464 : vector<2x32xf32> to vector<2x32xbf16>
    %cst_123 = arith.constant dense<0.000000e+00> : vector<2x128xf32>
    %466 = tpu.matmul %465, %7, %cst_123 {dimension_numbers = #tpu.dot_dimension_numbers<[1], [0], [0], [1], [0, 0, 1, 1], [], []>} : vector<2x32xbf16>, vector<32x128xbf16>, vector<2x128xf32> -> vector<2x128xf32>
    %467 = arith.truncf %399 : vector<2x32xf32> to vector<2x32xbf16>
    %cst_124 = arith.constant dense<0.000000e+00> : vector<2x128xf32>
    %468 = tpu.matmul %467, %15, %cst_124 {dimension_numbers = #tpu.dot_dimension_numbers<[1], [0], [0], [1], [0, 0, 1, 1], [], []>} : vector<2x32xbf16>, vector<32x128xbf16>, vector<2x128xf32> -> vector<2x128xf32>
    %469 = arith.addf %466, %468 : vector<2x128xf32>
    %470 = vector.broadcast %23 : vector<1x128xf32> to vector<2x128xf32>
    %471 = arith.addf %469, %470 : vector<2x128xf32>
    %472 = arith.negf %471 : vector<2x128xf32>
    %473 = math.exp %472 : vector<2x128xf32>
    %cst_125 = arith.constant 1.000000e+00 : f32
    %474 = vector.broadcast %cst_125 : f32 to vector<2x128xf32>
    %475 = arith.addf %474, %473 : vector<2x128xf32>
    %476 = arith.divf %474, %475 : vector<2x128xf32>
    %477 = math.tanh %471 : vector<2x128xf32>
    %478 = vector.extract_strided_slice %476 {offsets = [0, 0], sizes = [2, 32], strides = [1, 1]} : vector<2x128xf32> to vector<2x32xf32>
    %479 = vector.extract_strided_slice %476 {offsets = [0, 32], sizes = [2, 32], strides = [1, 1]} : vector<2x128xf32> to vector<2x32xf32>
    %480 = vector.extract_strided_slice %477 {offsets = [0, 64], sizes = [2, 32], strides = [1, 1]} : vector<2x128xf32> to vector<2x32xf32>
    %481 = vector.extract_strided_slice %476 {offsets = [0, 96], sizes = [2, 32], strides = [1, 1]} : vector<2x128xf32> to vector<2x32xf32>
    %482 = arith.mulf %479, %397 : vector<2x32xf32>
    %483 = arith.mulf %478, %480 : vector<2x32xf32>
    %484 = arith.addf %482, %483 : vector<2x32xf32>
    %485 = math.tanh %484 : vector<2x32xf32>
    %486 = arith.mulf %481, %485 : vector<2x32xf32>
    %487 = vector.extract_strided_slice %50 {offsets = [10, 0], sizes = [2, 128], strides = [1, 1]} : vector<16x128xf32> to vector<2x128xf32>
    %488 = arith.truncf %420 : vector<2x32xf32> to vector<2x32xbf16>
    %cst_126 = arith.constant dense<0.000000e+00> : vector<2x128xf32>
    %489 = tpu.matmul %488, %9, %cst_126 {dimension_numbers = #tpu.dot_dimension_numbers<[1], [0], [0], [1], [0, 0, 1, 1], [], []>} : vector<2x32xbf16>, vector<32x128xbf16>, vector<2x128xf32> -> vector<2x128xf32>
    %490 = arith.addf %487, %489 : vector<2x128xf32>
    %491 = vector.broadcast %17 : vector<1x128xf32> to vector<2x128xf32>
    %492 = arith.addf %490, %491 : vector<2x128xf32>
    %493 = arith.negf %492 : vector<2x128xf32>
    %494 = math.exp %493 : vector<2x128xf32>
    %cst_127 = arith.constant 1.000000e+00 : f32
    %495 = vector.broadcast %cst_127 : f32 to vector<2x128xf32>
    %496 = arith.addf %495, %494 : vector<2x128xf32>
    %497 = arith.divf %495, %496 : vector<2x128xf32>
    %498 = math.tanh %492 : vector<2x128xf32>
    %499 = vector.extract_strided_slice %497 {offsets = [0, 0], sizes = [2, 32], strides = [1, 1]} : vector<2x128xf32> to vector<2x32xf32>
    %500 = vector.extract_strided_slice %497 {offsets = [0, 32], sizes = [2, 32], strides = [1, 1]} : vector<2x128xf32> to vector<2x32xf32>
    %501 = vector.extract_strided_slice %498 {offsets = [0, 64], sizes = [2, 32], strides = [1, 1]} : vector<2x128xf32> to vector<2x32xf32>
    %502 = vector.extract_strided_slice %497 {offsets = [0, 96], sizes = [2, 32], strides = [1, 1]} : vector<2x128xf32> to vector<2x32xf32>
    %503 = arith.mulf %500, %418 : vector<2x32xf32>
    %504 = arith.mulf %499, %501 : vector<2x32xf32>
    %505 = arith.addf %503, %504 : vector<2x32xf32>
    %506 = math.tanh %505 : vector<2x32xf32>
    %507 = arith.mulf %502, %506 : vector<2x32xf32>
    %508 = arith.truncf %507 : vector<2x32xf32> to vector<2x32xbf16>
    %cst_128 = arith.constant dense<0.000000e+00> : vector<2x128xf32>
    %509 = tpu.matmul %508, %3, %cst_128 {dimension_numbers = #tpu.dot_dimension_numbers<[1], [0], [0], [1], [0, 0, 1, 1], [], []>} : vector<2x32xbf16>, vector<32x128xbf16>, vector<2x128xf32> -> vector<2x128xf32>
    %510 = arith.truncf %442 : vector<2x32xf32> to vector<2x32xbf16>
    %cst_129 = arith.constant dense<0.000000e+00> : vector<2x128xf32>
    %511 = tpu.matmul %510, %11, %cst_129 {dimension_numbers = #tpu.dot_dimension_numbers<[1], [0], [0], [1], [0, 0, 1, 1], [], []>} : vector<2x32xbf16>, vector<32x128xbf16>, vector<2x128xf32> -> vector<2x128xf32>
    %512 = arith.addf %509, %511 : vector<2x128xf32>
    %513 = vector.broadcast %19 : vector<1x128xf32> to vector<2x128xf32>
    %514 = arith.addf %512, %513 : vector<2x128xf32>
    %515 = arith.negf %514 : vector<2x128xf32>
    %516 = math.exp %515 : vector<2x128xf32>
    %cst_130 = arith.constant 1.000000e+00 : f32
    %517 = vector.broadcast %cst_130 : f32 to vector<2x128xf32>
    %518 = arith.addf %517, %516 : vector<2x128xf32>
    %519 = arith.divf %517, %518 : vector<2x128xf32>
    %520 = math.tanh %514 : vector<2x128xf32>
    %521 = vector.extract_strided_slice %519 {offsets = [0, 0], sizes = [2, 32], strides = [1, 1]} : vector<2x128xf32> to vector<2x32xf32>
    %522 = vector.extract_strided_slice %519 {offsets = [0, 32], sizes = [2, 32], strides = [1, 1]} : vector<2x128xf32> to vector<2x32xf32>
    %523 = vector.extract_strided_slice %520 {offsets = [0, 64], sizes = [2, 32], strides = [1, 1]} : vector<2x128xf32> to vector<2x32xf32>
    %524 = vector.extract_strided_slice %519 {offsets = [0, 96], sizes = [2, 32], strides = [1, 1]} : vector<2x128xf32> to vector<2x32xf32>
    %525 = arith.mulf %522, %440 : vector<2x32xf32>
    %526 = arith.mulf %521, %523 : vector<2x32xf32>
    %527 = arith.addf %525, %526 : vector<2x32xf32>
    %528 = math.tanh %527 : vector<2x32xf32>
    %529 = arith.mulf %524, %528 : vector<2x32xf32>
    %530 = arith.truncf %529 : vector<2x32xf32> to vector<2x32xbf16>
    %cst_131 = arith.constant dense<0.000000e+00> : vector<2x128xf32>
    %531 = tpu.matmul %530, %5, %cst_131 {dimension_numbers = #tpu.dot_dimension_numbers<[1], [0], [0], [1], [0, 0, 1, 1], [], []>} : vector<2x32xbf16>, vector<32x128xbf16>, vector<2x128xf32> -> vector<2x128xf32>
    %532 = arith.truncf %464 : vector<2x32xf32> to vector<2x32xbf16>
    %cst_132 = arith.constant dense<0.000000e+00> : vector<2x128xf32>
    %533 = tpu.matmul %532, %13, %cst_132 {dimension_numbers = #tpu.dot_dimension_numbers<[1], [0], [0], [1], [0, 0, 1, 1], [], []>} : vector<2x32xbf16>, vector<32x128xbf16>, vector<2x128xf32> -> vector<2x128xf32>
    %534 = arith.addf %531, %533 : vector<2x128xf32>
    %535 = vector.broadcast %21 : vector<1x128xf32> to vector<2x128xf32>
    %536 = arith.addf %534, %535 : vector<2x128xf32>
    %537 = arith.negf %536 : vector<2x128xf32>
    %538 = math.exp %537 : vector<2x128xf32>
    %cst_133 = arith.constant 1.000000e+00 : f32
    %539 = vector.broadcast %cst_133 : f32 to vector<2x128xf32>
    %540 = arith.addf %539, %538 : vector<2x128xf32>
    %541 = arith.divf %539, %540 : vector<2x128xf32>
    %542 = math.tanh %536 : vector<2x128xf32>
    %543 = vector.extract_strided_slice %541 {offsets = [0, 0], sizes = [2, 32], strides = [1, 1]} : vector<2x128xf32> to vector<2x32xf32>
    %544 = vector.extract_strided_slice %541 {offsets = [0, 32], sizes = [2, 32], strides = [1, 1]} : vector<2x128xf32> to vector<2x32xf32>
    %545 = vector.extract_strided_slice %542 {offsets = [0, 64], sizes = [2, 32], strides = [1, 1]} : vector<2x128xf32> to vector<2x32xf32>
    %546 = vector.extract_strided_slice %541 {offsets = [0, 96], sizes = [2, 32], strides = [1, 1]} : vector<2x128xf32> to vector<2x32xf32>
    %547 = arith.mulf %544, %462 : vector<2x32xf32>
    %548 = arith.mulf %543, %545 : vector<2x32xf32>
    %549 = arith.addf %547, %548 : vector<2x32xf32>
    %550 = math.tanh %549 : vector<2x32xf32>
    %551 = arith.mulf %546, %550 : vector<2x32xf32>
    %552 = arith.truncf %551 : vector<2x32xf32> to vector<2x32xbf16>
    %cst_134 = arith.constant dense<0.000000e+00> : vector<2x128xf32>
    %553 = tpu.matmul %552, %7, %cst_134 {dimension_numbers = #tpu.dot_dimension_numbers<[1], [0], [0], [1], [0, 0, 1, 1], [], []>} : vector<2x32xbf16>, vector<32x128xbf16>, vector<2x128xf32> -> vector<2x128xf32>
    %554 = arith.truncf %486 : vector<2x32xf32> to vector<2x32xbf16>
    %cst_135 = arith.constant dense<0.000000e+00> : vector<2x128xf32>
    %555 = tpu.matmul %554, %15, %cst_135 {dimension_numbers = #tpu.dot_dimension_numbers<[1], [0], [0], [1], [0, 0, 1, 1], [], []>} : vector<2x32xbf16>, vector<32x128xbf16>, vector<2x128xf32> -> vector<2x128xf32>
    %556 = arith.addf %553, %555 : vector<2x128xf32>
    %557 = vector.broadcast %23 : vector<1x128xf32> to vector<2x128xf32>
    %558 = arith.addf %556, %557 : vector<2x128xf32>
    %559 = arith.negf %558 : vector<2x128xf32>
    %560 = math.exp %559 : vector<2x128xf32>
    %cst_136 = arith.constant 1.000000e+00 : f32
    %561 = vector.broadcast %cst_136 : f32 to vector<2x128xf32>
    %562 = arith.addf %561, %560 : vector<2x128xf32>
    %563 = arith.divf %561, %562 : vector<2x128xf32>
    %564 = math.tanh %558 : vector<2x128xf32>
    %565 = vector.extract_strided_slice %563 {offsets = [0, 0], sizes = [2, 32], strides = [1, 1]} : vector<2x128xf32> to vector<2x32xf32>
    %566 = vector.extract_strided_slice %563 {offsets = [0, 32], sizes = [2, 32], strides = [1, 1]} : vector<2x128xf32> to vector<2x32xf32>
    %567 = vector.extract_strided_slice %564 {offsets = [0, 64], sizes = [2, 32], strides = [1, 1]} : vector<2x128xf32> to vector<2x32xf32>
    %568 = vector.extract_strided_slice %563 {offsets = [0, 96], sizes = [2, 32], strides = [1, 1]} : vector<2x128xf32> to vector<2x32xf32>
    %569 = arith.mulf %566, %484 : vector<2x32xf32>
    %570 = arith.mulf %565, %567 : vector<2x32xf32>
    %571 = arith.addf %569, %570 : vector<2x32xf32>
    %572 = math.tanh %571 : vector<2x32xf32>
    %573 = arith.mulf %568, %572 : vector<2x32xf32>
    %574 = vector.extract_strided_slice %50 {offsets = [12, 0], sizes = [2, 128], strides = [1, 1]} : vector<16x128xf32> to vector<2x128xf32>
    %575 = arith.truncf %507 : vector<2x32xf32> to vector<2x32xbf16>
    %cst_137 = arith.constant dense<0.000000e+00> : vector<2x128xf32>
    %576 = tpu.matmul %575, %9, %cst_137 {dimension_numbers = #tpu.dot_dimension_numbers<[1], [0], [0], [1], [0, 0, 1, 1], [], []>} : vector<2x32xbf16>, vector<32x128xbf16>, vector<2x128xf32> -> vector<2x128xf32>
    %577 = arith.addf %574, %576 : vector<2x128xf32>
    %578 = vector.broadcast %17 : vector<1x128xf32> to vector<2x128xf32>
    %579 = arith.addf %577, %578 : vector<2x128xf32>
    %580 = arith.negf %579 : vector<2x128xf32>
    %581 = math.exp %580 : vector<2x128xf32>
    %cst_138 = arith.constant 1.000000e+00 : f32
    %582 = vector.broadcast %cst_138 : f32 to vector<2x128xf32>
    %583 = arith.addf %582, %581 : vector<2x128xf32>
    %584 = arith.divf %582, %583 : vector<2x128xf32>
    %585 = math.tanh %579 : vector<2x128xf32>
    %586 = vector.extract_strided_slice %584 {offsets = [0, 0], sizes = [2, 32], strides = [1, 1]} : vector<2x128xf32> to vector<2x32xf32>
    %587 = vector.extract_strided_slice %584 {offsets = [0, 32], sizes = [2, 32], strides = [1, 1]} : vector<2x128xf32> to vector<2x32xf32>
    %588 = vector.extract_strided_slice %585 {offsets = [0, 64], sizes = [2, 32], strides = [1, 1]} : vector<2x128xf32> to vector<2x32xf32>
    %589 = vector.extract_strided_slice %584 {offsets = [0, 96], sizes = [2, 32], strides = [1, 1]} : vector<2x128xf32> to vector<2x32xf32>
    %590 = arith.mulf %587, %505 : vector<2x32xf32>
    %591 = arith.mulf %586, %588 : vector<2x32xf32>
    %592 = arith.addf %590, %591 : vector<2x32xf32>
    %593 = math.tanh %592 : vector<2x32xf32>
    %594 = arith.mulf %589, %593 : vector<2x32xf32>
    %595 = arith.truncf %594 : vector<2x32xf32> to vector<2x32xbf16>
    %cst_139 = arith.constant dense<0.000000e+00> : vector<2x128xf32>
    %596 = tpu.matmul %595, %3, %cst_139 {dimension_numbers = #tpu.dot_dimension_numbers<[1], [0], [0], [1], [0, 0, 1, 1], [], []>} : vector<2x32xbf16>, vector<32x128xbf16>, vector<2x128xf32> -> vector<2x128xf32>
    %597 = arith.truncf %529 : vector<2x32xf32> to vector<2x32xbf16>
    %cst_140 = arith.constant dense<0.000000e+00> : vector<2x128xf32>
    %598 = tpu.matmul %597, %11, %cst_140 {dimension_numbers = #tpu.dot_dimension_numbers<[1], [0], [0], [1], [0, 0, 1, 1], [], []>} : vector<2x32xbf16>, vector<32x128xbf16>, vector<2x128xf32> -> vector<2x128xf32>
    %599 = arith.addf %596, %598 : vector<2x128xf32>
    %600 = vector.broadcast %19 : vector<1x128xf32> to vector<2x128xf32>
    %601 = arith.addf %599, %600 : vector<2x128xf32>
    %602 = arith.negf %601 : vector<2x128xf32>
    %603 = math.exp %602 : vector<2x128xf32>
    %cst_141 = arith.constant 1.000000e+00 : f32
    %604 = vector.broadcast %cst_141 : f32 to vector<2x128xf32>
    %605 = arith.addf %604, %603 : vector<2x128xf32>
    %606 = arith.divf %604, %605 : vector<2x128xf32>
    %607 = math.tanh %601 : vector<2x128xf32>
    %608 = vector.extract_strided_slice %606 {offsets = [0, 0], sizes = [2, 32], strides = [1, 1]} : vector<2x128xf32> to vector<2x32xf32>
    %609 = vector.extract_strided_slice %606 {offsets = [0, 32], sizes = [2, 32], strides = [1, 1]} : vector<2x128xf32> to vector<2x32xf32>
    %610 = vector.extract_strided_slice %607 {offsets = [0, 64], sizes = [2, 32], strides = [1, 1]} : vector<2x128xf32> to vector<2x32xf32>
    %611 = vector.extract_strided_slice %606 {offsets = [0, 96], sizes = [2, 32], strides = [1, 1]} : vector<2x128xf32> to vector<2x32xf32>
    %612 = arith.mulf %609, %527 : vector<2x32xf32>
    %613 = arith.mulf %608, %610 : vector<2x32xf32>
    %614 = arith.addf %612, %613 : vector<2x32xf32>
    %615 = math.tanh %614 : vector<2x32xf32>
    %616 = arith.mulf %611, %615 : vector<2x32xf32>
    %617 = arith.truncf %616 : vector<2x32xf32> to vector<2x32xbf16>
    %cst_142 = arith.constant dense<0.000000e+00> : vector<2x128xf32>
    %618 = tpu.matmul %617, %5, %cst_142 {dimension_numbers = #tpu.dot_dimension_numbers<[1], [0], [0], [1], [0, 0, 1, 1], [], []>} : vector<2x32xbf16>, vector<32x128xbf16>, vector<2x128xf32> -> vector<2x128xf32>
    %619 = arith.truncf %551 : vector<2x32xf32> to vector<2x32xbf16>
    %cst_143 = arith.constant dense<0.000000e+00> : vector<2x128xf32>
    %620 = tpu.matmul %619, %13, %cst_143 {dimension_numbers = #tpu.dot_dimension_numbers<[1], [0], [0], [1], [0, 0, 1, 1], [], []>} : vector<2x32xbf16>, vector<32x128xbf16>, vector<2x128xf32> -> vector<2x128xf32>
    %621 = arith.addf %618, %620 : vector<2x128xf32>
    %622 = vector.broadcast %21 : vector<1x128xf32> to vector<2x128xf32>
    %623 = arith.addf %621, %622 : vector<2x128xf32>
    %624 = arith.negf %623 : vector<2x128xf32>
    %625 = math.exp %624 : vector<2x128xf32>
    %cst_144 = arith.constant 1.000000e+00 : f32
    %626 = vector.broadcast %cst_144 : f32 to vector<2x128xf32>
    %627 = arith.addf %626, %625 : vector<2x128xf32>
    %628 = arith.divf %626, %627 : vector<2x128xf32>
    %629 = math.tanh %623 : vector<2x128xf32>
    %630 = vector.extract_strided_slice %628 {offsets = [0, 0], sizes = [2, 32], strides = [1, 1]} : vector<2x128xf32> to vector<2x32xf32>
    %631 = vector.extract_strided_slice %628 {offsets = [0, 32], sizes = [2, 32], strides = [1, 1]} : vector<2x128xf32> to vector<2x32xf32>
    %632 = vector.extract_strided_slice %629 {offsets = [0, 64], sizes = [2, 32], strides = [1, 1]} : vector<2x128xf32> to vector<2x32xf32>
    %633 = vector.extract_strided_slice %628 {offsets = [0, 96], sizes = [2, 32], strides = [1, 1]} : vector<2x128xf32> to vector<2x32xf32>
    %634 = arith.mulf %631, %549 : vector<2x32xf32>
    %635 = arith.mulf %630, %632 : vector<2x32xf32>
    %636 = arith.addf %634, %635 : vector<2x32xf32>
    %637 = math.tanh %636 : vector<2x32xf32>
    %638 = arith.mulf %633, %637 : vector<2x32xf32>
    %639 = arith.truncf %638 : vector<2x32xf32> to vector<2x32xbf16>
    %cst_145 = arith.constant dense<0.000000e+00> : vector<2x128xf32>
    %640 = tpu.matmul %639, %7, %cst_145 {dimension_numbers = #tpu.dot_dimension_numbers<[1], [0], [0], [1], [0, 0, 1, 1], [], []>} : vector<2x32xbf16>, vector<32x128xbf16>, vector<2x128xf32> -> vector<2x128xf32>
    %641 = arith.truncf %573 : vector<2x32xf32> to vector<2x32xbf16>
    %cst_146 = arith.constant dense<0.000000e+00> : vector<2x128xf32>
    %642 = tpu.matmul %641, %15, %cst_146 {dimension_numbers = #tpu.dot_dimension_numbers<[1], [0], [0], [1], [0, 0, 1, 1], [], []>} : vector<2x32xbf16>, vector<32x128xbf16>, vector<2x128xf32> -> vector<2x128xf32>
    %643 = arith.addf %640, %642 : vector<2x128xf32>
    %644 = vector.broadcast %23 : vector<1x128xf32> to vector<2x128xf32>
    %645 = arith.addf %643, %644 : vector<2x128xf32>
    %646 = arith.negf %645 : vector<2x128xf32>
    %647 = math.exp %646 : vector<2x128xf32>
    %cst_147 = arith.constant 1.000000e+00 : f32
    %648 = vector.broadcast %cst_147 : f32 to vector<2x128xf32>
    %649 = arith.addf %648, %647 : vector<2x128xf32>
    %650 = arith.divf %648, %649 : vector<2x128xf32>
    %651 = math.tanh %645 : vector<2x128xf32>
    %652 = vector.extract_strided_slice %650 {offsets = [0, 0], sizes = [2, 32], strides = [1, 1]} : vector<2x128xf32> to vector<2x32xf32>
    %653 = vector.extract_strided_slice %650 {offsets = [0, 32], sizes = [2, 32], strides = [1, 1]} : vector<2x128xf32> to vector<2x32xf32>
    %654 = vector.extract_strided_slice %651 {offsets = [0, 64], sizes = [2, 32], strides = [1, 1]} : vector<2x128xf32> to vector<2x32xf32>
    %655 = vector.extract_strided_slice %650 {offsets = [0, 96], sizes = [2, 32], strides = [1, 1]} : vector<2x128xf32> to vector<2x32xf32>
    %656 = arith.mulf %653, %571 : vector<2x32xf32>
    %657 = arith.mulf %652, %654 : vector<2x32xf32>
    %658 = arith.addf %656, %657 : vector<2x32xf32>
    %659 = math.tanh %658 : vector<2x32xf32>
    %660 = arith.mulf %655, %659 : vector<2x32xf32>
    %661 = vector.extract_strided_slice %50 {offsets = [14, 0], sizes = [2, 128], strides = [1, 1]} : vector<16x128xf32> to vector<2x128xf32>
    %662 = arith.truncf %594 : vector<2x32xf32> to vector<2x32xbf16>
    %cst_148 = arith.constant dense<0.000000e+00> : vector<2x128xf32>
    %663 = tpu.matmul %662, %9, %cst_148 {dimension_numbers = #tpu.dot_dimension_numbers<[1], [0], [0], [1], [0, 0, 1, 1], [], []>} : vector<2x32xbf16>, vector<32x128xbf16>, vector<2x128xf32> -> vector<2x128xf32>
    %664 = arith.addf %661, %663 : vector<2x128xf32>
    %665 = vector.broadcast %17 : vector<1x128xf32> to vector<2x128xf32>
    %666 = arith.addf %664, %665 : vector<2x128xf32>
    %667 = arith.negf %666 : vector<2x128xf32>
    %668 = math.exp %667 : vector<2x128xf32>
    %cst_149 = arith.constant 1.000000e+00 : f32
    %669 = vector.broadcast %cst_149 : f32 to vector<2x128xf32>
    %670 = arith.addf %669, %668 : vector<2x128xf32>
    %671 = arith.divf %669, %670 : vector<2x128xf32>
    %672 = math.tanh %666 : vector<2x128xf32>
    %673 = vector.extract_strided_slice %671 {offsets = [0, 0], sizes = [2, 32], strides = [1, 1]} : vector<2x128xf32> to vector<2x32xf32>
    %674 = vector.extract_strided_slice %671 {offsets = [0, 32], sizes = [2, 32], strides = [1, 1]} : vector<2x128xf32> to vector<2x32xf32>
    %675 = vector.extract_strided_slice %672 {offsets = [0, 64], sizes = [2, 32], strides = [1, 1]} : vector<2x128xf32> to vector<2x32xf32>
    %676 = vector.extract_strided_slice %671 {offsets = [0, 96], sizes = [2, 32], strides = [1, 1]} : vector<2x128xf32> to vector<2x32xf32>
    %677 = arith.mulf %674, %592 : vector<2x32xf32>
    %678 = arith.mulf %673, %675 : vector<2x32xf32>
    %679 = arith.addf %677, %678 : vector<2x32xf32>
    %680 = math.tanh %679 : vector<2x32xf32>
    %681 = arith.mulf %676, %680 : vector<2x32xf32>
    %682 = arith.truncf %681 : vector<2x32xf32> to vector<2x32xbf16>
    %cst_150 = arith.constant dense<0.000000e+00> : vector<2x128xf32>
    %683 = tpu.matmul %682, %3, %cst_150 {dimension_numbers = #tpu.dot_dimension_numbers<[1], [0], [0], [1], [0, 0, 1, 1], [], []>} : vector<2x32xbf16>, vector<32x128xbf16>, vector<2x128xf32> -> vector<2x128xf32>
    %684 = arith.truncf %616 : vector<2x32xf32> to vector<2x32xbf16>
    %cst_151 = arith.constant dense<0.000000e+00> : vector<2x128xf32>
    %685 = tpu.matmul %684, %11, %cst_151 {dimension_numbers = #tpu.dot_dimension_numbers<[1], [0], [0], [1], [0, 0, 1, 1], [], []>} : vector<2x32xbf16>, vector<32x128xbf16>, vector<2x128xf32> -> vector<2x128xf32>
    %686 = arith.addf %683, %685 : vector<2x128xf32>
    %687 = vector.broadcast %19 : vector<1x128xf32> to vector<2x128xf32>
    %688 = arith.addf %686, %687 : vector<2x128xf32>
    %689 = arith.negf %688 : vector<2x128xf32>
    %690 = math.exp %689 : vector<2x128xf32>
    %cst_152 = arith.constant 1.000000e+00 : f32
    %691 = vector.broadcast %cst_152 : f32 to vector<2x128xf32>
    %692 = arith.addf %691, %690 : vector<2x128xf32>
    %693 = arith.divf %691, %692 : vector<2x128xf32>
    %694 = math.tanh %688 : vector<2x128xf32>
    %695 = vector.extract_strided_slice %693 {offsets = [0, 0], sizes = [2, 32], strides = [1, 1]} : vector<2x128xf32> to vector<2x32xf32>
    %696 = vector.extract_strided_slice %693 {offsets = [0, 32], sizes = [2, 32], strides = [1, 1]} : vector<2x128xf32> to vector<2x32xf32>
    %697 = vector.extract_strided_slice %694 {offsets = [0, 64], sizes = [2, 32], strides = [1, 1]} : vector<2x128xf32> to vector<2x32xf32>
    %698 = vector.extract_strided_slice %693 {offsets = [0, 96], sizes = [2, 32], strides = [1, 1]} : vector<2x128xf32> to vector<2x32xf32>
    %699 = arith.mulf %696, %614 : vector<2x32xf32>
    %700 = arith.mulf %695, %697 : vector<2x32xf32>
    %701 = arith.addf %699, %700 : vector<2x32xf32>
    %702 = math.tanh %701 : vector<2x32xf32>
    %703 = arith.mulf %698, %702 : vector<2x32xf32>
    %704 = arith.truncf %703 : vector<2x32xf32> to vector<2x32xbf16>
    %cst_153 = arith.constant dense<0.000000e+00> : vector<2x128xf32>
    %705 = tpu.matmul %704, %5, %cst_153 {dimension_numbers = #tpu.dot_dimension_numbers<[1], [0], [0], [1], [0, 0, 1, 1], [], []>} : vector<2x32xbf16>, vector<32x128xbf16>, vector<2x128xf32> -> vector<2x128xf32>
    %706 = arith.truncf %638 : vector<2x32xf32> to vector<2x32xbf16>
    %cst_154 = arith.constant dense<0.000000e+00> : vector<2x128xf32>
    %707 = tpu.matmul %706, %13, %cst_154 {dimension_numbers = #tpu.dot_dimension_numbers<[1], [0], [0], [1], [0, 0, 1, 1], [], []>} : vector<2x32xbf16>, vector<32x128xbf16>, vector<2x128xf32> -> vector<2x128xf32>
    %708 = arith.addf %705, %707 : vector<2x128xf32>
    %709 = vector.broadcast %21 : vector<1x128xf32> to vector<2x128xf32>
    %710 = arith.addf %708, %709 : vector<2x128xf32>
    %711 = arith.negf %710 : vector<2x128xf32>
    %712 = math.exp %711 : vector<2x128xf32>
    %cst_155 = arith.constant 1.000000e+00 : f32
    %713 = vector.broadcast %cst_155 : f32 to vector<2x128xf32>
    %714 = arith.addf %713, %712 : vector<2x128xf32>
    %715 = arith.divf %713, %714 : vector<2x128xf32>
    %716 = math.tanh %710 : vector<2x128xf32>
    %717 = vector.extract_strided_slice %715 {offsets = [0, 0], sizes = [2, 32], strides = [1, 1]} : vector<2x128xf32> to vector<2x32xf32>
    %718 = vector.extract_strided_slice %715 {offsets = [0, 32], sizes = [2, 32], strides = [1, 1]} : vector<2x128xf32> to vector<2x32xf32>
    %719 = vector.extract_strided_slice %716 {offsets = [0, 64], sizes = [2, 32], strides = [1, 1]} : vector<2x128xf32> to vector<2x32xf32>
    %720 = vector.extract_strided_slice %715 {offsets = [0, 96], sizes = [2, 32], strides = [1, 1]} : vector<2x128xf32> to vector<2x32xf32>
    %721 = arith.mulf %718, %636 : vector<2x32xf32>
    %722 = arith.mulf %717, %719 : vector<2x32xf32>
    %723 = arith.addf %721, %722 : vector<2x32xf32>
    %724 = math.tanh %723 : vector<2x32xf32>
    %725 = arith.mulf %720, %724 : vector<2x32xf32>
    %726 = arith.truncf %725 : vector<2x32xf32> to vector<2x32xbf16>
    %cst_156 = arith.constant dense<0.000000e+00> : vector<2x128xf32>
    %727 = tpu.matmul %726, %7, %cst_156 {dimension_numbers = #tpu.dot_dimension_numbers<[1], [0], [0], [1], [0, 0, 1, 1], [], []>} : vector<2x32xbf16>, vector<32x128xbf16>, vector<2x128xf32> -> vector<2x128xf32>
    %728 = arith.truncf %660 : vector<2x32xf32> to vector<2x32xbf16>
    %cst_157 = arith.constant dense<0.000000e+00> : vector<2x128xf32>
    %729 = tpu.matmul %728, %15, %cst_157 {dimension_numbers = #tpu.dot_dimension_numbers<[1], [0], [0], [1], [0, 0, 1, 1], [], []>} : vector<2x32xbf16>, vector<32x128xbf16>, vector<2x128xf32> -> vector<2x128xf32>
    %730 = arith.addf %727, %729 : vector<2x128xf32>
    %731 = vector.broadcast %23 : vector<1x128xf32> to vector<2x128xf32>
    %732 = arith.addf %730, %731 : vector<2x128xf32>
    %733 = arith.negf %732 : vector<2x128xf32>
    %734 = math.exp %733 : vector<2x128xf32>
    %cst_158 = arith.constant 1.000000e+00 : f32
    %735 = vector.broadcast %cst_158 : f32 to vector<2x128xf32>
    %736 = arith.addf %735, %734 : vector<2x128xf32>
    %737 = arith.divf %735, %736 : vector<2x128xf32>
    %738 = math.tanh %732 : vector<2x128xf32>
    %739 = vector.extract_strided_slice %737 {offsets = [0, 0], sizes = [2, 32], strides = [1, 1]} : vector<2x128xf32> to vector<2x32xf32>
    %740 = vector.extract_strided_slice %737 {offsets = [0, 32], sizes = [2, 32], strides = [1, 1]} : vector<2x128xf32> to vector<2x32xf32>
    %741 = vector.extract_strided_slice %738 {offsets = [0, 64], sizes = [2, 32], strides = [1, 1]} : vector<2x128xf32> to vector<2x32xf32>
    %742 = vector.extract_strided_slice %737 {offsets = [0, 96], sizes = [2, 32], strides = [1, 1]} : vector<2x128xf32> to vector<2x32xf32>
    %743 = arith.mulf %740, %658 : vector<2x32xf32>
    %744 = arith.mulf %739, %741 : vector<2x32xf32>
    %745 = arith.addf %743, %744 : vector<2x32xf32>
    %746 = math.tanh %745 : vector<2x32xf32>
    %747 = arith.mulf %742, %746 : vector<2x32xf32>
    %748 = arith.truncf %747 : vector<2x32xf32> to vector<2x32xbf16>
    %cst_159 = arith.constant dense<0.000000e+00> : vector<2x128xf32>
    %749 = tpu.matmul %748, %25, %cst_159 {dimension_numbers = #tpu.dot_dimension_numbers<[1], [0], [0], [1], [0, 0, 1, 1], [], []>} : vector<2x32xbf16>, vector<32x128xbf16>, vector<2x128xf32> -> vector<2x128xf32>
    %750 = arith.truncf %681 : vector<2x32xf32> to vector<2x32xbf16>
    %cst_160 = arith.constant dense<0.000000e+00> : vector<2x128xf32>
    %751 = tpu.matmul %750, %33, %cst_160 {dimension_numbers = #tpu.dot_dimension_numbers<[1], [0], [0], [1], [0, 0, 1, 1], [], []>} : vector<2x32xbf16>, vector<32x128xbf16>, vector<2x128xf32> -> vector<2x128xf32>
    %752 = arith.addf %749, %751 : vector<2x128xf32>
    %753 = vector.broadcast %41 : vector<1x128xf32> to vector<2x128xf32>
    %754 = arith.addf %752, %753 : vector<2x128xf32>
    %755 = arith.negf %754 : vector<2x128xf32>
    %756 = math.exp %755 : vector<2x128xf32>
    %cst_161 = arith.constant 1.000000e+00 : f32
    %757 = vector.broadcast %cst_161 : f32 to vector<2x128xf32>
    %758 = arith.addf %757, %756 : vector<2x128xf32>
    %759 = arith.divf %757, %758 : vector<2x128xf32>
    %760 = math.tanh %754 : vector<2x128xf32>
    %761 = vector.extract_strided_slice %759 {offsets = [0, 0], sizes = [2, 32], strides = [1, 1]} : vector<2x128xf32> to vector<2x32xf32>
    %762 = vector.extract_strided_slice %759 {offsets = [0, 32], sizes = [2, 32], strides = [1, 1]} : vector<2x128xf32> to vector<2x32xf32>
    %763 = vector.extract_strided_slice %760 {offsets = [0, 64], sizes = [2, 32], strides = [1, 1]} : vector<2x128xf32> to vector<2x32xf32>
    %764 = vector.extract_strided_slice %759 {offsets = [0, 96], sizes = [2, 32], strides = [1, 1]} : vector<2x128xf32> to vector<2x32xf32>
    %765 = arith.mulf %762, %679 : vector<2x32xf32>
    %766 = arith.mulf %761, %763 : vector<2x32xf32>
    %767 = arith.addf %765, %766 : vector<2x32xf32>
    %768 = math.tanh %767 : vector<2x32xf32>
    %769 = arith.mulf %764, %768 : vector<2x32xf32>
    %770 = arith.truncf %769 : vector<2x32xf32> to vector<2x32xbf16>
    %cst_162 = arith.constant dense<0.000000e+00> : vector<2x128xf32>
    %771 = tpu.matmul %770, %27, %cst_162 {dimension_numbers = #tpu.dot_dimension_numbers<[1], [0], [0], [1], [0, 0, 1, 1], [], []>} : vector<2x32xbf16>, vector<32x128xbf16>, vector<2x128xf32> -> vector<2x128xf32>
    %772 = arith.truncf %703 : vector<2x32xf32> to vector<2x32xbf16>
    %cst_163 = arith.constant dense<0.000000e+00> : vector<2x128xf32>
    %773 = tpu.matmul %772, %35, %cst_163 {dimension_numbers = #tpu.dot_dimension_numbers<[1], [0], [0], [1], [0, 0, 1, 1], [], []>} : vector<2x32xbf16>, vector<32x128xbf16>, vector<2x128xf32> -> vector<2x128xf32>
    %774 = arith.addf %771, %773 : vector<2x128xf32>
    %775 = vector.broadcast %43 : vector<1x128xf32> to vector<2x128xf32>
    %776 = arith.addf %774, %775 : vector<2x128xf32>
    %777 = arith.negf %776 : vector<2x128xf32>
    %778 = math.exp %777 : vector<2x128xf32>
    %cst_164 = arith.constant 1.000000e+00 : f32
    %779 = vector.broadcast %cst_164 : f32 to vector<2x128xf32>
    %780 = arith.addf %779, %778 : vector<2x128xf32>
    %781 = arith.divf %779, %780 : vector<2x128xf32>
    %782 = math.tanh %776 : vector<2x128xf32>
    %783 = vector.extract_strided_slice %781 {offsets = [0, 0], sizes = [2, 32], strides = [1, 1]} : vector<2x128xf32> to vector<2x32xf32>
    %784 = vector.extract_strided_slice %781 {offsets = [0, 32], sizes = [2, 32], strides = [1, 1]} : vector<2x128xf32> to vector<2x32xf32>
    %785 = vector.extract_strided_slice %782 {offsets = [0, 64], sizes = [2, 32], strides = [1, 1]} : vector<2x128xf32> to vector<2x32xf32>
    %786 = vector.extract_strided_slice %781 {offsets = [0, 96], sizes = [2, 32], strides = [1, 1]} : vector<2x128xf32> to vector<2x32xf32>
    %787 = arith.mulf %784, %701 : vector<2x32xf32>
    %788 = arith.mulf %783, %785 : vector<2x32xf32>
    %789 = arith.addf %787, %788 : vector<2x32xf32>
    %790 = math.tanh %789 : vector<2x32xf32>
    %791 = arith.mulf %786, %790 : vector<2x32xf32>
    %792 = arith.truncf %791 : vector<2x32xf32> to vector<2x32xbf16>
    %cst_165 = arith.constant dense<0.000000e+00> : vector<2x128xf32>
    %793 = tpu.matmul %792, %29, %cst_165 {dimension_numbers = #tpu.dot_dimension_numbers<[1], [0], [0], [1], [0, 0, 1, 1], [], []>} : vector<2x32xbf16>, vector<32x128xbf16>, vector<2x128xf32> -> vector<2x128xf32>
    %794 = arith.truncf %725 : vector<2x32xf32> to vector<2x32xbf16>
    %cst_166 = arith.constant dense<0.000000e+00> : vector<2x128xf32>
    %795 = tpu.matmul %794, %37, %cst_166 {dimension_numbers = #tpu.dot_dimension_numbers<[1], [0], [0], [1], [0, 0, 1, 1], [], []>} : vector<2x32xbf16>, vector<32x128xbf16>, vector<2x128xf32> -> vector<2x128xf32>
    %796 = arith.addf %793, %795 : vector<2x128xf32>
    %797 = vector.broadcast %45 : vector<1x128xf32> to vector<2x128xf32>
    %798 = arith.addf %796, %797 : vector<2x128xf32>
    %799 = arith.negf %798 : vector<2x128xf32>
    %800 = math.exp %799 : vector<2x128xf32>
    %cst_167 = arith.constant 1.000000e+00 : f32
    %801 = vector.broadcast %cst_167 : f32 to vector<2x128xf32>
    %802 = arith.addf %801, %800 : vector<2x128xf32>
    %803 = arith.divf %801, %802 : vector<2x128xf32>
    %804 = math.tanh %798 : vector<2x128xf32>
    %805 = vector.extract_strided_slice %803 {offsets = [0, 0], sizes = [2, 32], strides = [1, 1]} : vector<2x128xf32> to vector<2x32xf32>
    %806 = vector.extract_strided_slice %803 {offsets = [0, 32], sizes = [2, 32], strides = [1, 1]} : vector<2x128xf32> to vector<2x32xf32>
    %807 = vector.extract_strided_slice %804 {offsets = [0, 64], sizes = [2, 32], strides = [1, 1]} : vector<2x128xf32> to vector<2x32xf32>
    %808 = vector.extract_strided_slice %803 {offsets = [0, 96], sizes = [2, 32], strides = [1, 1]} : vector<2x128xf32> to vector<2x32xf32>
    %809 = arith.mulf %806, %723 : vector<2x32xf32>
    %810 = arith.mulf %805, %807 : vector<2x32xf32>
    %811 = arith.addf %809, %810 : vector<2x32xf32>
    %812 = math.tanh %811 : vector<2x32xf32>
    %813 = arith.mulf %808, %812 : vector<2x32xf32>
    %814 = arith.truncf %813 : vector<2x32xf32> to vector<2x32xbf16>
    %cst_168 = arith.constant dense<0.000000e+00> : vector<2x128xf32>
    %815 = tpu.matmul %814, %31, %cst_168 {dimension_numbers = #tpu.dot_dimension_numbers<[1], [0], [0], [1], [0, 0, 1, 1], [], []>} : vector<2x32xbf16>, vector<32x128xbf16>, vector<2x128xf32> -> vector<2x128xf32>
    %816 = arith.truncf %747 : vector<2x32xf32> to vector<2x32xbf16>
    %cst_169 = arith.constant dense<0.000000e+00> : vector<2x128xf32>
    %817 = tpu.matmul %816, %39, %cst_169 {dimension_numbers = #tpu.dot_dimension_numbers<[1], [0], [0], [1], [0, 0, 1, 1], [], []>} : vector<2x32xbf16>, vector<32x128xbf16>, vector<2x128xf32> -> vector<2x128xf32>
    %818 = arith.addf %815, %817 : vector<2x128xf32>
    %819 = vector.broadcast %47 : vector<1x128xf32> to vector<2x128xf32>
    %820 = arith.addf %818, %819 : vector<2x128xf32>
    %821 = arith.negf %820 : vector<2x128xf32>
    %822 = math.exp %821 : vector<2x128xf32>
    %cst_170 = arith.constant 1.000000e+00 : f32
    %823 = vector.broadcast %cst_170 : f32 to vector<2x128xf32>
    %824 = arith.addf %823, %822 : vector<2x128xf32>
    %825 = arith.divf %823, %824 : vector<2x128xf32>
    %826 = math.tanh %820 : vector<2x128xf32>
    %827 = vector.extract_strided_slice %825 {offsets = [0, 0], sizes = [2, 32], strides = [1, 1]} : vector<2x128xf32> to vector<2x32xf32>
    %828 = vector.extract_strided_slice %825 {offsets = [0, 32], sizes = [2, 32], strides = [1, 1]} : vector<2x128xf32> to vector<2x32xf32>
    %829 = vector.extract_strided_slice %826 {offsets = [0, 64], sizes = [2, 32], strides = [1, 1]} : vector<2x128xf32> to vector<2x32xf32>
    %830 = vector.extract_strided_slice %825 {offsets = [0, 96], sizes = [2, 32], strides = [1, 1]} : vector<2x128xf32> to vector<2x32xf32>
    %831 = arith.mulf %828, %745 : vector<2x32xf32>
    %832 = arith.mulf %827, %829 : vector<2x32xf32>
    %833 = arith.addf %831, %832 : vector<2x32xf32>
    %834 = math.tanh %833 : vector<2x32xf32>
    %835 = arith.mulf %830, %834 : vector<2x32xf32>
    %c0_171 = arith.constant 0 : index
    %c0_172 = arith.constant 0 : index
    %836 = vector.load %arg24[%c0_171, %c0_172] : memref<16x32xf32, #tpu.memory_space<vmem>>, vector<2x32xf32>
    tpu.vector_store %arg24[%c0_171, %c0_172], %835 {strides = array<i32>} : memref<16x32xf32, #tpu.memory_space<vmem>>, vector<2x32xf32>,
    %837 = arith.truncf %835 : vector<2x32xf32> to vector<2x32xbf16>
    %cst_173 = arith.constant dense<0.000000e+00> : vector<2x128xf32>
    %838 = tpu.matmul %837, %25, %cst_173 {dimension_numbers = #tpu.dot_dimension_numbers<[1], [0], [0], [1], [0, 0, 1, 1], [], []>} : vector<2x32xbf16>, vector<32x128xbf16>, vector<2x128xf32> -> vector<2x128xf32>
    %839 = arith.truncf %769 : vector<2x32xf32> to vector<2x32xbf16>
    %cst_174 = arith.constant dense<0.000000e+00> : vector<2x128xf32>
    %840 = tpu.matmul %839, %33, %cst_174 {dimension_numbers = #tpu.dot_dimension_numbers<[1], [0], [0], [1], [0, 0, 1, 1], [], []>} : vector<2x32xbf16>, vector<32x128xbf16>, vector<2x128xf32> -> vector<2x128xf32>
    %841 = arith.addf %838, %840 : vector<2x128xf32>
    %842 = vector.broadcast %41 : vector<1x128xf32> to vector<2x128xf32>
    %843 = arith.addf %841, %842 : vector<2x128xf32>
    %844 = arith.negf %843 : vector<2x128xf32>
    %845 = math.exp %844 : vector<2x128xf32>
    %cst_175 = arith.constant 1.000000e+00 : f32
    %846 = vector.broadcast %cst_175 : f32 to vector<2x128xf32>
    %847 = arith.addf %846, %845 : vector<2x128xf32>
    %848 = arith.divf %846, %847 : vector<2x128xf32>
    %849 = math.tanh %843 : vector<2x128xf32>
    %850 = vector.extract_strided_slice %848 {offsets = [0, 0], sizes = [2, 32], strides = [1, 1]} : vector<2x128xf32> to vector<2x32xf32>
    %851 = vector.extract_strided_slice %848 {offsets = [0, 32], sizes = [2, 32], strides = [1, 1]} : vector<2x128xf32> to vector<2x32xf32>
    %852 = vector.extract_strided_slice %849 {offsets = [0, 64], sizes = [2, 32], strides = [1, 1]} : vector<2x128xf32> to vector<2x32xf32>
    %853 = vector.extract_strided_slice %848 {offsets = [0, 96], sizes = [2, 32], strides = [1, 1]} : vector<2x128xf32> to vector<2x32xf32>
    %854 = arith.mulf %851, %767 : vector<2x32xf32>
    %855 = arith.mulf %850, %852 : vector<2x32xf32>
    %856 = arith.addf %854, %855 : vector<2x32xf32>
    %857 = math.tanh %856 : vector<2x32xf32>
    %858 = arith.mulf %853, %857 : vector<2x32xf32>
    %859 = arith.truncf %858 : vector<2x32xf32> to vector<2x32xbf16>
    %cst_176 = arith.constant dense<0.000000e+00> : vector<2x128xf32>
    %860 = tpu.matmul %859, %27, %cst_176 {dimension_numbers = #tpu.dot_dimension_numbers<[1], [0], [0], [1], [0, 0, 1, 1], [], []>} : vector<2x32xbf16>, vector<32x128xbf16>, vector<2x128xf32> -> vector<2x128xf32>
    %861 = arith.truncf %791 : vector<2x32xf32> to vector<2x32xbf16>
    %cst_177 = arith.constant dense<0.000000e+00> : vector<2x128xf32>
    %862 = tpu.matmul %861, %35, %cst_177 {dimension_numbers = #tpu.dot_dimension_numbers<[1], [0], [0], [1], [0, 0, 1, 1], [], []>} : vector<2x32xbf16>, vector<32x128xbf16>, vector<2x128xf32> -> vector<2x128xf32>
    %863 = arith.addf %860, %862 : vector<2x128xf32>
    %864 = vector.broadcast %43 : vector<1x128xf32> to vector<2x128xf32>
    %865 = arith.addf %863, %864 : vector<2x128xf32>
    %866 = arith.negf %865 : vector<2x128xf32>
    %867 = math.exp %866 : vector<2x128xf32>
    %cst_178 = arith.constant 1.000000e+00 : f32
    %868 = vector.broadcast %cst_178 : f32 to vector<2x128xf32>
    %869 = arith.addf %868, %867 : vector<2x128xf32>
    %870 = arith.divf %868, %869 : vector<2x128xf32>
    %871 = math.tanh %865 : vector<2x128xf32>
    %872 = vector.extract_strided_slice %870 {offsets = [0, 0], sizes = [2, 32], strides = [1, 1]} : vector<2x128xf32> to vector<2x32xf32>
    %873 = vector.extract_strided_slice %870 {offsets = [0, 32], sizes = [2, 32], strides = [1, 1]} : vector<2x128xf32> to vector<2x32xf32>
    %874 = vector.extract_strided_slice %871 {offsets = [0, 64], sizes = [2, 32], strides = [1, 1]} : vector<2x128xf32> to vector<2x32xf32>
    %875 = vector.extract_strided_slice %870 {offsets = [0, 96], sizes = [2, 32], strides = [1, 1]} : vector<2x128xf32> to vector<2x32xf32>
    %876 = arith.mulf %873, %789 : vector<2x32xf32>
    %877 = arith.mulf %872, %874 : vector<2x32xf32>
    %878 = arith.addf %876, %877 : vector<2x32xf32>
    %879 = math.tanh %878 : vector<2x32xf32>
    %880 = arith.mulf %875, %879 : vector<2x32xf32>
    %881 = arith.truncf %880 : vector<2x32xf32> to vector<2x32xbf16>
    %cst_179 = arith.constant dense<0.000000e+00> : vector<2x128xf32>
    %882 = tpu.matmul %881, %29, %cst_179 {dimension_numbers = #tpu.dot_dimension_numbers<[1], [0], [0], [1], [0, 0, 1, 1], [], []>} : vector<2x32xbf16>, vector<32x128xbf16>, vector<2x128xf32> -> vector<2x128xf32>
    %883 = arith.truncf %813 : vector<2x32xf32> to vector<2x32xbf16>
    %cst_180 = arith.constant dense<0.000000e+00> : vector<2x128xf32>
    %884 = tpu.matmul %883, %37, %cst_180 {dimension_numbers = #tpu.dot_dimension_numbers<[1], [0], [0], [1], [0, 0, 1, 1], [], []>} : vector<2x32xbf16>, vector<32x128xbf16>, vector<2x128xf32> -> vector<2x128xf32>
    %885 = arith.addf %882, %884 : vector<2x128xf32>
    %886 = vector.broadcast %45 : vector<1x128xf32> to vector<2x128xf32>
    %887 = arith.addf %885, %886 : vector<2x128xf32>
    %888 = arith.negf %887 : vector<2x128xf32>
    %889 = math.exp %888 : vector<2x128xf32>
    %cst_181 = arith.constant 1.000000e+00 : f32
    %890 = vector.broadcast %cst_181 : f32 to vector<2x128xf32>
    %891 = arith.addf %890, %889 : vector<2x128xf32>
    %892 = arith.divf %890, %891 : vector<2x128xf32>
    %893 = math.tanh %887 : vector<2x128xf32>
    %894 = vector.extract_strided_slice %892 {offsets = [0, 0], sizes = [2, 32], strides = [1, 1]} : vector<2x128xf32> to vector<2x32xf32>
    %895 = vector.extract_strided_slice %892 {offsets = [0, 32], sizes = [2, 32], strides = [1, 1]} : vector<2x128xf32> to vector<2x32xf32>
    %896 = vector.extract_strided_slice %893 {offsets = [0, 64], sizes = [2, 32], strides = [1, 1]} : vector<2x128xf32> to vector<2x32xf32>
    %897 = vector.extract_strided_slice %892 {offsets = [0, 96], sizes = [2, 32], strides = [1, 1]} : vector<2x128xf32> to vector<2x32xf32>
    %898 = arith.mulf %895, %811 : vector<2x32xf32>
    %899 = arith.mulf %894, %896 : vector<2x32xf32>
    %900 = arith.addf %898, %899 : vector<2x32xf32>
    %901 = math.tanh %900 : vector<2x32xf32>
    %902 = arith.mulf %897, %901 : vector<2x32xf32>
    %903 = arith.truncf %902 : vector<2x32xf32> to vector<2x32xbf16>
    %cst_182 = arith.constant dense<0.000000e+00> : vector<2x128xf32>
    %904 = tpu.matmul %903, %31, %cst_182 {dimension_numbers = #tpu.dot_dimension_numbers<[1], [0], [0], [1], [0, 0, 1, 1], [], []>} : vector<2x32xbf16>, vector<32x128xbf16>, vector<2x128xf32> -> vector<2x128xf32>
    %905 = arith.truncf %835 : vector<2x32xf32> to vector<2x32xbf16>
    %cst_183 = arith.constant dense<0.000000e+00> : vector<2x128xf32>
    %906 = tpu.matmul %905, %39, %cst_183 {dimension_numbers = #tpu.dot_dimension_numbers<[1], [0], [0], [1], [0, 0, 1, 1], [], []>} : vector<2x32xbf16>, vector<32x128xbf16>, vector<2x128xf32> -> vector<2x128xf32>
    %907 = arith.addf %904, %906 : vector<2x128xf32>
    %908 = vector.broadcast %47 : vector<1x128xf32> to vector<2x128xf32>
    %909 = arith.addf %907, %908 : vector<2x128xf32>
    %910 = arith.negf %909 : vector<2x128xf32>
    %911 = math.exp %910 : vector<2x128xf32>
    %cst_184 = arith.constant 1.000000e+00 : f32
    %912 = vector.broadcast %cst_184 : f32 to vector<2x128xf32>
    %913 = arith.addf %912, %911 : vector<2x128xf32>
    %914 = arith.divf %912, %913 : vector<2x128xf32>
    %915 = math.tanh %909 : vector<2x128xf32>
    %916 = vector.extract_strided_slice %914 {offsets = [0, 0], sizes = [2, 32], strides = [1, 1]} : vector<2x128xf32> to vector<2x32xf32>
    %917 = vector.extract_strided_slice %914 {offsets = [0, 32], sizes = [2, 32], strides = [1, 1]} : vector<2x128xf32> to vector<2x32xf32>
    %918 = vector.extract_strided_slice %915 {offsets = [0, 64], sizes = [2, 32], strides = [1, 1]} : vector<2x128xf32> to vector<2x32xf32>
    %919 = vector.extract_strided_slice %914 {offsets = [0, 96], sizes = [2, 32], strides = [1, 1]} : vector<2x128xf32> to vector<2x32xf32>
    %920 = arith.mulf %917, %833 : vector<2x32xf32>
    %921 = arith.mulf %916, %918 : vector<2x32xf32>
    %922 = arith.addf %920, %921 : vector<2x32xf32>
    %923 = math.tanh %922 : vector<2x32xf32>
    %924 = arith.mulf %919, %923 : vector<2x32xf32>
    %c2_185 = arith.constant 2 : index
    %c0_186 = arith.constant 0 : index
    %925 = vector.load %arg24[%c2_185, %c0_186] : memref<16x32xf32, #tpu.memory_space<vmem>>, vector<2x32xf32>
    tpu.vector_store %arg24[%c2_185, %c0_186], %924 {strides = array<i32>} : memref<16x32xf32, #tpu.memory_space<vmem>>, vector<2x32xf32>,
    %926 = arith.truncf %924 : vector<2x32xf32> to vector<2x32xbf16>
    %cst_187 = arith.constant dense<0.000000e+00> : vector<2x128xf32>
    %927 = tpu.matmul %926, %25, %cst_187 {dimension_numbers = #tpu.dot_dimension_numbers<[1], [0], [0], [1], [0, 0, 1, 1], [], []>} : vector<2x32xbf16>, vector<32x128xbf16>, vector<2x128xf32> -> vector<2x128xf32>
    %928 = arith.truncf %858 : vector<2x32xf32> to vector<2x32xbf16>
    %cst_188 = arith.constant dense<0.000000e+00> : vector<2x128xf32>
    %929 = tpu.matmul %928, %33, %cst_188 {dimension_numbers = #tpu.dot_dimension_numbers<[1], [0], [0], [1], [0, 0, 1, 1], [], []>} : vector<2x32xbf16>, vector<32x128xbf16>, vector<2x128xf32> -> vector<2x128xf32>
    %930 = arith.addf %927, %929 : vector<2x128xf32>
    %931 = vector.broadcast %41 : vector<1x128xf32> to vector<2x128xf32>
    %932 = arith.addf %930, %931 : vector<2x128xf32>
    %933 = arith.negf %932 : vector<2x128xf32>
    %934 = math.exp %933 : vector<2x128xf32>
    %cst_189 = arith.constant 1.000000e+00 : f32
    %935 = vector.broadcast %cst_189 : f32 to vector<2x128xf32>
    %936 = arith.addf %935, %934 : vector<2x128xf32>
    %937 = arith.divf %935, %936 : vector<2x128xf32>
    %938 = math.tanh %932 : vector<2x128xf32>
    %939 = vector.extract_strided_slice %937 {offsets = [0, 0], sizes = [2, 32], strides = [1, 1]} : vector<2x128xf32> to vector<2x32xf32>
    %940 = vector.extract_strided_slice %937 {offsets = [0, 32], sizes = [2, 32], strides = [1, 1]} : vector<2x128xf32> to vector<2x32xf32>
    %941 = vector.extract_strided_slice %938 {offsets = [0, 64], sizes = [2, 32], strides = [1, 1]} : vector<2x128xf32> to vector<2x32xf32>
    %942 = vector.extract_strided_slice %937 {offsets = [0, 96], sizes = [2, 32], strides = [1, 1]} : vector<2x128xf32> to vector<2x32xf32>
    %943 = arith.mulf %940, %856 : vector<2x32xf32>
    %944 = arith.mulf %939, %941 : vector<2x32xf32>
    %945 = arith.addf %943, %944 : vector<2x32xf32>
    %946 = math.tanh %945 : vector<2x32xf32>
    %947 = arith.mulf %942, %946 : vector<2x32xf32>
    %948 = arith.truncf %947 : vector<2x32xf32> to vector<2x32xbf16>
    %cst_190 = arith.constant dense<0.000000e+00> : vector<2x128xf32>
    %949 = tpu.matmul %948, %27, %cst_190 {dimension_numbers = #tpu.dot_dimension_numbers<[1], [0], [0], [1], [0, 0, 1, 1], [], []>} : vector<2x32xbf16>, vector<32x128xbf16>, vector<2x128xf32> -> vector<2x128xf32>
    %950 = arith.truncf %880 : vector<2x32xf32> to vector<2x32xbf16>
    %cst_191 = arith.constant dense<0.000000e+00> : vector<2x128xf32>
    %951 = tpu.matmul %950, %35, %cst_191 {dimension_numbers = #tpu.dot_dimension_numbers<[1], [0], [0], [1], [0, 0, 1, 1], [], []>} : vector<2x32xbf16>, vector<32x128xbf16>, vector<2x128xf32> -> vector<2x128xf32>
    %952 = arith.addf %949, %951 : vector<2x128xf32>
    %953 = vector.broadcast %43 : vector<1x128xf32> to vector<2x128xf32>
    %954 = arith.addf %952, %953 : vector<2x128xf32>
    %955 = arith.negf %954 : vector<2x128xf32>
    %956 = math.exp %955 : vector<2x128xf32>
    %cst_192 = arith.constant 1.000000e+00 : f32
    %957 = vector.broadcast %cst_192 : f32 to vector<2x128xf32>
    %958 = arith.addf %957, %956 : vector<2x128xf32>
    %959 = arith.divf %957, %958 : vector<2x128xf32>
    %960 = math.tanh %954 : vector<2x128xf32>
    %961 = vector.extract_strided_slice %959 {offsets = [0, 0], sizes = [2, 32], strides = [1, 1]} : vector<2x128xf32> to vector<2x32xf32>
    %962 = vector.extract_strided_slice %959 {offsets = [0, 32], sizes = [2, 32], strides = [1, 1]} : vector<2x128xf32> to vector<2x32xf32>
    %963 = vector.extract_strided_slice %960 {offsets = [0, 64], sizes = [2, 32], strides = [1, 1]} : vector<2x128xf32> to vector<2x32xf32>
    %964 = vector.extract_strided_slice %959 {offsets = [0, 96], sizes = [2, 32], strides = [1, 1]} : vector<2x128xf32> to vector<2x32xf32>
    %965 = arith.mulf %962, %878 : vector<2x32xf32>
    %966 = arith.mulf %961, %963 : vector<2x32xf32>
    %967 = arith.addf %965, %966 : vector<2x32xf32>
    %968 = math.tanh %967 : vector<2x32xf32>
    %969 = arith.mulf %964, %968 : vector<2x32xf32>
    %970 = arith.truncf %969 : vector<2x32xf32> to vector<2x32xbf16>
    %cst_193 = arith.constant dense<0.000000e+00> : vector<2x128xf32>
    %971 = tpu.matmul %970, %29, %cst_193 {dimension_numbers = #tpu.dot_dimension_numbers<[1], [0], [0], [1], [0, 0, 1, 1], [], []>} : vector<2x32xbf16>, vector<32x128xbf16>, vector<2x128xf32> -> vector<2x128xf32>
    %972 = arith.truncf %902 : vector<2x32xf32> to vector<2x32xbf16>
    %cst_194 = arith.constant dense<0.000000e+00> : vector<2x128xf32>
    %973 = tpu.matmul %972, %37, %cst_194 {dimension_numbers = #tpu.dot_dimension_numbers<[1], [0], [0], [1], [0, 0, 1, 1], [], []>} : vector<2x32xbf16>, vector<32x128xbf16>, vector<2x128xf32> -> vector<2x128xf32>
    %974 = arith.addf %971, %973 : vector<2x128xf32>
    %975 = vector.broadcast %45 : vector<1x128xf32> to vector<2x128xf32>
    %976 = arith.addf %974, %975 : vector<2x128xf32>
    %977 = arith.negf %976 : vector<2x128xf32>
    %978 = math.exp %977 : vector<2x128xf32>
    %cst_195 = arith.constant 1.000000e+00 : f32
    %979 = vector.broadcast %cst_195 : f32 to vector<2x128xf32>
    %980 = arith.addf %979, %978 : vector<2x128xf32>
    %981 = arith.divf %979, %980 : vector<2x128xf32>
    %982 = math.tanh %976 : vector<2x128xf32>
    %983 = vector.extract_strided_slice %981 {offsets = [0, 0], sizes = [2, 32], strides = [1, 1]} : vector<2x128xf32> to vector<2x32xf32>
    %984 = vector.extract_strided_slice %981 {offsets = [0, 32], sizes = [2, 32], strides = [1, 1]} : vector<2x128xf32> to vector<2x32xf32>
    %985 = vector.extract_strided_slice %982 {offsets = [0, 64], sizes = [2, 32], strides = [1, 1]} : vector<2x128xf32> to vector<2x32xf32>
    %986 = vector.extract_strided_slice %981 {offsets = [0, 96], sizes = [2, 32], strides = [1, 1]} : vector<2x128xf32> to vector<2x32xf32>
    %987 = arith.mulf %984, %900 : vector<2x32xf32>
    %988 = arith.mulf %983, %985 : vector<2x32xf32>
    %989 = arith.addf %987, %988 : vector<2x32xf32>
    %990 = math.tanh %989 : vector<2x32xf32>
    %991 = arith.mulf %986, %990 : vector<2x32xf32>
    %992 = arith.truncf %991 : vector<2x32xf32> to vector<2x32xbf16>
    %cst_196 = arith.constant dense<0.000000e+00> : vector<2x128xf32>
    %993 = tpu.matmul %992, %31, %cst_196 {dimension_numbers = #tpu.dot_dimension_numbers<[1], [0], [0], [1], [0, 0, 1, 1], [], []>} : vector<2x32xbf16>, vector<32x128xbf16>, vector<2x128xf32> -> vector<2x128xf32>
    %994 = arith.truncf %924 : vector<2x32xf32> to vector<2x32xbf16>
    %cst_197 = arith.constant dense<0.000000e+00> : vector<2x128xf32>
    %995 = tpu.matmul %994, %39, %cst_197 {dimension_numbers = #tpu.dot_dimension_numbers<[1], [0], [0], [1], [0, 0, 1, 1], [], []>} : vector<2x32xbf16>, vector<32x128xbf16>, vector<2x128xf32> -> vector<2x128xf32>
    %996 = arith.addf %993, %995 : vector<2x128xf32>
    %997 = vector.broadcast %47 : vector<1x128xf32> to vector<2x128xf32>
    %998 = arith.addf %996, %997 : vector<2x128xf32>
    %999 = arith.negf %998 : vector<2x128xf32>
    %1000 = math.exp %999 : vector<2x128xf32>
    %cst_198 = arith.constant 1.000000e+00 : f32
    %1001 = vector.broadcast %cst_198 : f32 to vector<2x128xf32>
    %1002 = arith.addf %1001, %1000 : vector<2x128xf32>
    %1003 = arith.divf %1001, %1002 : vector<2x128xf32>
    %1004 = math.tanh %998 : vector<2x128xf32>
    %1005 = vector.extract_strided_slice %1003 {offsets = [0, 0], sizes = [2, 32], strides = [1, 1]} : vector<2x128xf32> to vector<2x32xf32>
    %1006 = vector.extract_strided_slice %1003 {offsets = [0, 32], sizes = [2, 32], strides = [1, 1]} : vector<2x128xf32> to vector<2x32xf32>
    %1007 = vector.extract_strided_slice %1004 {offsets = [0, 64], sizes = [2, 32], strides = [1, 1]} : vector<2x128xf32> to vector<2x32xf32>
    %1008 = vector.extract_strided_slice %1003 {offsets = [0, 96], sizes = [2, 32], strides = [1, 1]} : vector<2x128xf32> to vector<2x32xf32>
    %1009 = arith.mulf %1006, %922 : vector<2x32xf32>
    %1010 = arith.mulf %1005, %1007 : vector<2x32xf32>
    %1011 = arith.addf %1009, %1010 : vector<2x32xf32>
    %1012 = math.tanh %1011 : vector<2x32xf32>
    %1013 = arith.mulf %1008, %1012 : vector<2x32xf32>
    %c4 = arith.constant 4 : index
    %c0_199 = arith.constant 0 : index
    %1014 = vector.load %arg24[%c4, %c0_199] : memref<16x32xf32, #tpu.memory_space<vmem>>, vector<2x32xf32>
    tpu.vector_store %arg24[%c4, %c0_199], %1013 {strides = array<i32>} : memref<16x32xf32, #tpu.memory_space<vmem>>, vector<2x32xf32>,
    %1015 = arith.truncf %1013 : vector<2x32xf32> to vector<2x32xbf16>
    %cst_200 = arith.constant dense<0.000000e+00> : vector<2x128xf32>
    %1016 = tpu.matmul %1015, %25, %cst_200 {dimension_numbers = #tpu.dot_dimension_numbers<[1], [0], [0], [1], [0, 0, 1, 1], [], []>} : vector<2x32xbf16>, vector<32x128xbf16>, vector<2x128xf32> -> vector<2x128xf32>
    %1017 = arith.truncf %947 : vector<2x32xf32> to vector<2x32xbf16>
    %cst_201 = arith.constant dense<0.000000e+00> : vector<2x128xf32>
    %1018 = tpu.matmul %1017, %33, %cst_201 {dimension_numbers = #tpu.dot_dimension_numbers<[1], [0], [0], [1], [0, 0, 1, 1], [], []>} : vector<2x32xbf16>, vector<32x128xbf16>, vector<2x128xf32> -> vector<2x128xf32>
    %1019 = arith.addf %1016, %1018 : vector<2x128xf32>
    %1020 = vector.broadcast %41 : vector<1x128xf32> to vector<2x128xf32>
    %1021 = arith.addf %1019, %1020 : vector<2x128xf32>
    %1022 = arith.negf %1021 : vector<2x128xf32>
    %1023 = math.exp %1022 : vector<2x128xf32>
    %cst_202 = arith.constant 1.000000e+00 : f32
    %1024 = vector.broadcast %cst_202 : f32 to vector<2x128xf32>
    %1025 = arith.addf %1024, %1023 : vector<2x128xf32>
    %1026 = arith.divf %1024, %1025 : vector<2x128xf32>
    %1027 = math.tanh %1021 : vector<2x128xf32>
    %1028 = vector.extract_strided_slice %1026 {offsets = [0, 0], sizes = [2, 32], strides = [1, 1]} : vector<2x128xf32> to vector<2x32xf32>
    %1029 = vector.extract_strided_slice %1026 {offsets = [0, 32], sizes = [2, 32], strides = [1, 1]} : vector<2x128xf32> to vector<2x32xf32>
    %1030 = vector.extract_strided_slice %1027 {offsets = [0, 64], sizes = [2, 32], strides = [1, 1]} : vector<2x128xf32> to vector<2x32xf32>
    %1031 = vector.extract_strided_slice %1026 {offsets = [0, 96], sizes = [2, 32], strides = [1, 1]} : vector<2x128xf32> to vector<2x32xf32>
    %1032 = arith.mulf %1029, %945 : vector<2x32xf32>
    %1033 = arith.mulf %1028, %1030 : vector<2x32xf32>
    %1034 = arith.addf %1032, %1033 : vector<2x32xf32>
    %1035 = math.tanh %1034 : vector<2x32xf32>
    %1036 = arith.mulf %1031, %1035 : vector<2x32xf32>
    %1037 = arith.truncf %1036 : vector<2x32xf32> to vector<2x32xbf16>
    %cst_203 = arith.constant dense<0.000000e+00> : vector<2x128xf32>
    %1038 = tpu.matmul %1037, %27, %cst_203 {dimension_numbers = #tpu.dot_dimension_numbers<[1], [0], [0], [1], [0, 0, 1, 1], [], []>} : vector<2x32xbf16>, vector<32x128xbf16>, vector<2x128xf32> -> vector<2x128xf32>
    %1039 = arith.truncf %969 : vector<2x32xf32> to vector<2x32xbf16>
    %cst_204 = arith.constant dense<0.000000e+00> : vector<2x128xf32>
    %1040 = tpu.matmul %1039, %35, %cst_204 {dimension_numbers = #tpu.dot_dimension_numbers<[1], [0], [0], [1], [0, 0, 1, 1], [], []>} : vector<2x32xbf16>, vector<32x128xbf16>, vector<2x128xf32> -> vector<2x128xf32>
    %1041 = arith.addf %1038, %1040 : vector<2x128xf32>
    %1042 = vector.broadcast %43 : vector<1x128xf32> to vector<2x128xf32>
    %1043 = arith.addf %1041, %1042 : vector<2x128xf32>
    %1044 = arith.negf %1043 : vector<2x128xf32>
    %1045 = math.exp %1044 : vector<2x128xf32>
    %cst_205 = arith.constant 1.000000e+00 : f32
    %1046 = vector.broadcast %cst_205 : f32 to vector<2x128xf32>
    %1047 = arith.addf %1046, %1045 : vector<2x128xf32>
    %1048 = arith.divf %1046, %1047 : vector<2x128xf32>
    %1049 = math.tanh %1043 : vector<2x128xf32>
    %1050 = vector.extract_strided_slice %1048 {offsets = [0, 0], sizes = [2, 32], strides = [1, 1]} : vector<2x128xf32> to vector<2x32xf32>
    %1051 = vector.extract_strided_slice %1048 {offsets = [0, 32], sizes = [2, 32], strides = [1, 1]} : vector<2x128xf32> to vector<2x32xf32>
    %1052 = vector.extract_strided_slice %1049 {offsets = [0, 64], sizes = [2, 32], strides = [1, 1]} : vector<2x128xf32> to vector<2x32xf32>
    %1053 = vector.extract_strided_slice %1048 {offsets = [0, 96], sizes = [2, 32], strides = [1, 1]} : vector<2x128xf32> to vector<2x32xf32>
    %1054 = arith.mulf %1051, %967 : vector<2x32xf32>
    %1055 = arith.mulf %1050, %1052 : vector<2x32xf32>
    %1056 = arith.addf %1054, %1055 : vector<2x32xf32>
    %1057 = math.tanh %1056 : vector<2x32xf32>
    %1058 = arith.mulf %1053, %1057 : vector<2x32xf32>
    %1059 = arith.truncf %1058 : vector<2x32xf32> to vector<2x32xbf16>
    %cst_206 = arith.constant dense<0.000000e+00> : vector<2x128xf32>
    %1060 = tpu.matmul %1059, %29, %cst_206 {dimension_numbers = #tpu.dot_dimension_numbers<[1], [0], [0], [1], [0, 0, 1, 1], [], []>} : vector<2x32xbf16>, vector<32x128xbf16>, vector<2x128xf32> -> vector<2x128xf32>
    %1061 = arith.truncf %991 : vector<2x32xf32> to vector<2x32xbf16>
    %cst_207 = arith.constant dense<0.000000e+00> : vector<2x128xf32>
    %1062 = tpu.matmul %1061, %37, %cst_207 {dimension_numbers = #tpu.dot_dimension_numbers<[1], [0], [0], [1], [0, 0, 1, 1], [], []>} : vector<2x32xbf16>, vector<32x128xbf16>, vector<2x128xf32> -> vector<2x128xf32>
    %1063 = arith.addf %1060, %1062 : vector<2x128xf32>
    %1064 = vector.broadcast %45 : vector<1x128xf32> to vector<2x128xf32>
    %1065 = arith.addf %1063, %1064 : vector<2x128xf32>
    %1066 = arith.negf %1065 : vector<2x128xf32>
    %1067 = math.exp %1066 : vector<2x128xf32>
    %cst_208 = arith.constant 1.000000e+00 : f32
    %1068 = vector.broadcast %cst_208 : f32 to vector<2x128xf32>
    %1069 = arith.addf %1068, %1067 : vector<2x128xf32>
    %1070 = arith.divf %1068, %1069 : vector<2x128xf32>
    %1071 = math.tanh %1065 : vector<2x128xf32>
    %1072 = vector.extract_strided_slice %1070 {offsets = [0, 0], sizes = [2, 32], strides = [1, 1]} : vector<2x128xf32> to vector<2x32xf32>
    %1073 = vector.extract_strided_slice %1070 {offsets = [0, 32], sizes = [2, 32], strides = [1, 1]} : vector<2x128xf32> to vector<2x32xf32>
    %1074 = vector.extract_strided_slice %1071 {offsets = [0, 64], sizes = [2, 32], strides = [1, 1]} : vector<2x128xf32> to vector<2x32xf32>
    %1075 = vector.extract_strided_slice %1070 {offsets = [0, 96], sizes = [2, 32], strides = [1, 1]} : vector<2x128xf32> to vector<2x32xf32>
    %1076 = arith.mulf %1073, %989 : vector<2x32xf32>
    %1077 = arith.mulf %1072, %1074 : vector<2x32xf32>
    %1078 = arith.addf %1076, %1077 : vector<2x32xf32>
    %1079 = math.tanh %1078 : vector<2x32xf32>
    %1080 = arith.mulf %1075, %1079 : vector<2x32xf32>
    %1081 = arith.truncf %1080 : vector<2x32xf32> to vector<2x32xbf16>
    %cst_209 = arith.constant dense<0.000000e+00> : vector<2x128xf32>
    %1082 = tpu.matmul %1081, %31, %cst_209 {dimension_numbers = #tpu.dot_dimension_numbers<[1], [0], [0], [1], [0, 0, 1, 1], [], []>} : vector<2x32xbf16>, vector<32x128xbf16>, vector<2x128xf32> -> vector<2x128xf32>
    %1083 = arith.truncf %1013 : vector<2x32xf32> to vector<2x32xbf16>
    %cst_210 = arith.constant dense<0.000000e+00> : vector<2x128xf32>
    %1084 = tpu.matmul %1083, %39, %cst_210 {dimension_numbers = #tpu.dot_dimension_numbers<[1], [0], [0], [1], [0, 0, 1, 1], [], []>} : vector<2x32xbf16>, vector<32x128xbf16>, vector<2x128xf32> -> vector<2x128xf32>
    %1085 = arith.addf %1082, %1084 : vector<2x128xf32>
    %1086 = vector.broadcast %47 : vector<1x128xf32> to vector<2x128xf32>
    %1087 = arith.addf %1085, %1086 : vector<2x128xf32>
    %1088 = arith.negf %1087 : vector<2x128xf32>
    %1089 = math.exp %1088 : vector<2x128xf32>
    %cst_211 = arith.constant 1.000000e+00 : f32
    %1090 = vector.broadcast %cst_211 : f32 to vector<2x128xf32>
    %1091 = arith.addf %1090, %1089 : vector<2x128xf32>
    %1092 = arith.divf %1090, %1091 : vector<2x128xf32>
    %1093 = math.tanh %1087 : vector<2x128xf32>
    %1094 = vector.extract_strided_slice %1092 {offsets = [0, 0], sizes = [2, 32], strides = [1, 1]} : vector<2x128xf32> to vector<2x32xf32>
    %1095 = vector.extract_strided_slice %1092 {offsets = [0, 32], sizes = [2, 32], strides = [1, 1]} : vector<2x128xf32> to vector<2x32xf32>
    %1096 = vector.extract_strided_slice %1093 {offsets = [0, 64], sizes = [2, 32], strides = [1, 1]} : vector<2x128xf32> to vector<2x32xf32>
    %1097 = vector.extract_strided_slice %1092 {offsets = [0, 96], sizes = [2, 32], strides = [1, 1]} : vector<2x128xf32> to vector<2x32xf32>
    %1098 = arith.mulf %1095, %1011 : vector<2x32xf32>
    %1099 = arith.mulf %1094, %1096 : vector<2x32xf32>
    %1100 = arith.addf %1098, %1099 : vector<2x32xf32>
    %1101 = math.tanh %1100 : vector<2x32xf32>
    %1102 = arith.mulf %1097, %1101 : vector<2x32xf32>
    %c6 = arith.constant 6 : index
    %c0_212 = arith.constant 0 : index
    %1103 = vector.load %arg24[%c6, %c0_212] : memref<16x32xf32, #tpu.memory_space<vmem>>, vector<2x32xf32>
    tpu.vector_store %arg24[%c6, %c0_212], %1102 {strides = array<i32>} : memref<16x32xf32, #tpu.memory_space<vmem>>, vector<2x32xf32>,
    %1104 = arith.truncf %1102 : vector<2x32xf32> to vector<2x32xbf16>
    %cst_213 = arith.constant dense<0.000000e+00> : vector<2x128xf32>
    %1105 = tpu.matmul %1104, %25, %cst_213 {dimension_numbers = #tpu.dot_dimension_numbers<[1], [0], [0], [1], [0, 0, 1, 1], [], []>} : vector<2x32xbf16>, vector<32x128xbf16>, vector<2x128xf32> -> vector<2x128xf32>
    %1106 = arith.truncf %1036 : vector<2x32xf32> to vector<2x32xbf16>
    %cst_214 = arith.constant dense<0.000000e+00> : vector<2x128xf32>
    %1107 = tpu.matmul %1106, %33, %cst_214 {dimension_numbers = #tpu.dot_dimension_numbers<[1], [0], [0], [1], [0, 0, 1, 1], [], []>} : vector<2x32xbf16>, vector<32x128xbf16>, vector<2x128xf32> -> vector<2x128xf32>
    %1108 = arith.addf %1105, %1107 : vector<2x128xf32>
    %1109 = vector.broadcast %41 : vector<1x128xf32> to vector<2x128xf32>
    %1110 = arith.addf %1108, %1109 : vector<2x128xf32>
    %1111 = arith.negf %1110 : vector<2x128xf32>
    %1112 = math.exp %1111 : vector<2x128xf32>
    %cst_215 = arith.constant 1.000000e+00 : f32
    %1113 = vector.broadcast %cst_215 : f32 to vector<2x128xf32>
    %1114 = arith.addf %1113, %1112 : vector<2x128xf32>
    %1115 = arith.divf %1113, %1114 : vector<2x128xf32>
    %1116 = math.tanh %1110 : vector<2x128xf32>
    %1117 = vector.extract_strided_slice %1115 {offsets = [0, 0], sizes = [2, 32], strides = [1, 1]} : vector<2x128xf32> to vector<2x32xf32>
    %1118 = vector.extract_strided_slice %1115 {offsets = [0, 32], sizes = [2, 32], strides = [1, 1]} : vector<2x128xf32> to vector<2x32xf32>
    %1119 = vector.extract_strided_slice %1116 {offsets = [0, 64], sizes = [2, 32], strides = [1, 1]} : vector<2x128xf32> to vector<2x32xf32>
    %1120 = vector.extract_strided_slice %1115 {offsets = [0, 96], sizes = [2, 32], strides = [1, 1]} : vector<2x128xf32> to vector<2x32xf32>
    %1121 = arith.mulf %1118, %1034 : vector<2x32xf32>
    %1122 = arith.mulf %1117, %1119 : vector<2x32xf32>
    %1123 = arith.addf %1121, %1122 : vector<2x32xf32>
    %1124 = math.tanh %1123 : vector<2x32xf32>
    %1125 = arith.mulf %1120, %1124 : vector<2x32xf32>
    %1126 = arith.truncf %1125 : vector<2x32xf32> to vector<2x32xbf16>
    %cst_216 = arith.constant dense<0.000000e+00> : vector<2x128xf32>
    %1127 = tpu.matmul %1126, %27, %cst_216 {dimension_numbers = #tpu.dot_dimension_numbers<[1], [0], [0], [1], [0, 0, 1, 1], [], []>} : vector<2x32xbf16>, vector<32x128xbf16>, vector<2x128xf32> -> vector<2x128xf32>
    %1128 = arith.truncf %1058 : vector<2x32xf32> to vector<2x32xbf16>
    %cst_217 = arith.constant dense<0.000000e+00> : vector<2x128xf32>
    %1129 = tpu.matmul %1128, %35, %cst_217 {dimension_numbers = #tpu.dot_dimension_numbers<[1], [0], [0], [1], [0, 0, 1, 1], [], []>} : vector<2x32xbf16>, vector<32x128xbf16>, vector<2x128xf32> -> vector<2x128xf32>
    %1130 = arith.addf %1127, %1129 : vector<2x128xf32>
    %1131 = vector.broadcast %43 : vector<1x128xf32> to vector<2x128xf32>
    %1132 = arith.addf %1130, %1131 : vector<2x128xf32>
    %1133 = arith.negf %1132 : vector<2x128xf32>
    %1134 = math.exp %1133 : vector<2x128xf32>
    %cst_218 = arith.constant 1.000000e+00 : f32
    %1135 = vector.broadcast %cst_218 : f32 to vector<2x128xf32>
    %1136 = arith.addf %1135, %1134 : vector<2x128xf32>
    %1137 = arith.divf %1135, %1136 : vector<2x128xf32>
    %1138 = math.tanh %1132 : vector<2x128xf32>
    %1139 = vector.extract_strided_slice %1137 {offsets = [0, 0], sizes = [2, 32], strides = [1, 1]} : vector<2x128xf32> to vector<2x32xf32>
    %1140 = vector.extract_strided_slice %1137 {offsets = [0, 32], sizes = [2, 32], strides = [1, 1]} : vector<2x128xf32> to vector<2x32xf32>
    %1141 = vector.extract_strided_slice %1138 {offsets = [0, 64], sizes = [2, 32], strides = [1, 1]} : vector<2x128xf32> to vector<2x32xf32>
    %1142 = vector.extract_strided_slice %1137 {offsets = [0, 96], sizes = [2, 32], strides = [1, 1]} : vector<2x128xf32> to vector<2x32xf32>
    %1143 = arith.mulf %1140, %1056 : vector<2x32xf32>
    %1144 = arith.mulf %1139, %1141 : vector<2x32xf32>
    %1145 = arith.addf %1143, %1144 : vector<2x32xf32>
    %1146 = math.tanh %1145 : vector<2x32xf32>
    %1147 = arith.mulf %1142, %1146 : vector<2x32xf32>
    %1148 = arith.truncf %1147 : vector<2x32xf32> to vector<2x32xbf16>
    %cst_219 = arith.constant dense<0.000000e+00> : vector<2x128xf32>
    %1149 = tpu.matmul %1148, %29, %cst_219 {dimension_numbers = #tpu.dot_dimension_numbers<[1], [0], [0], [1], [0, 0, 1, 1], [], []>} : vector<2x32xbf16>, vector<32x128xbf16>, vector<2x128xf32> -> vector<2x128xf32>
    %1150 = arith.truncf %1080 : vector<2x32xf32> to vector<2x32xbf16>
    %cst_220 = arith.constant dense<0.000000e+00> : vector<2x128xf32>
    %1151 = tpu.matmul %1150, %37, %cst_220 {dimension_numbers = #tpu.dot_dimension_numbers<[1], [0], [0], [1], [0, 0, 1, 1], [], []>} : vector<2x32xbf16>, vector<32x128xbf16>, vector<2x128xf32> -> vector<2x128xf32>
    %1152 = arith.addf %1149, %1151 : vector<2x128xf32>
    %1153 = vector.broadcast %45 : vector<1x128xf32> to vector<2x128xf32>
    %1154 = arith.addf %1152, %1153 : vector<2x128xf32>
    %1155 = arith.negf %1154 : vector<2x128xf32>
    %1156 = math.exp %1155 : vector<2x128xf32>
    %cst_221 = arith.constant 1.000000e+00 : f32
    %1157 = vector.broadcast %cst_221 : f32 to vector<2x128xf32>
    %1158 = arith.addf %1157, %1156 : vector<2x128xf32>
    %1159 = arith.divf %1157, %1158 : vector<2x128xf32>
    %1160 = math.tanh %1154 : vector<2x128xf32>
    %1161 = vector.extract_strided_slice %1159 {offsets = [0, 0], sizes = [2, 32], strides = [1, 1]} : vector<2x128xf32> to vector<2x32xf32>
    %1162 = vector.extract_strided_slice %1159 {offsets = [0, 32], sizes = [2, 32], strides = [1, 1]} : vector<2x128xf32> to vector<2x32xf32>
    %1163 = vector.extract_strided_slice %1160 {offsets = [0, 64], sizes = [2, 32], strides = [1, 1]} : vector<2x128xf32> to vector<2x32xf32>
    %1164 = vector.extract_strided_slice %1159 {offsets = [0, 96], sizes = [2, 32], strides = [1, 1]} : vector<2x128xf32> to vector<2x32xf32>
    %1165 = arith.mulf %1162, %1078 : vector<2x32xf32>
    %1166 = arith.mulf %1161, %1163 : vector<2x32xf32>
    %1167 = arith.addf %1165, %1166 : vector<2x32xf32>
    %1168 = math.tanh %1167 : vector<2x32xf32>
    %1169 = arith.mulf %1164, %1168 : vector<2x32xf32>
    %1170 = arith.truncf %1169 : vector<2x32xf32> to vector<2x32xbf16>
    %cst_222 = arith.constant dense<0.000000e+00> : vector<2x128xf32>
    %1171 = tpu.matmul %1170, %31, %cst_222 {dimension_numbers = #tpu.dot_dimension_numbers<[1], [0], [0], [1], [0, 0, 1, 1], [], []>} : vector<2x32xbf16>, vector<32x128xbf16>, vector<2x128xf32> -> vector<2x128xf32>
    %1172 = arith.truncf %1102 : vector<2x32xf32> to vector<2x32xbf16>
    %cst_223 = arith.constant dense<0.000000e+00> : vector<2x128xf32>
    %1173 = tpu.matmul %1172, %39, %cst_223 {dimension_numbers = #tpu.dot_dimension_numbers<[1], [0], [0], [1], [0, 0, 1, 1], [], []>} : vector<2x32xbf16>, vector<32x128xbf16>, vector<2x128xf32> -> vector<2x128xf32>
    %1174 = arith.addf %1171, %1173 : vector<2x128xf32>
    %1175 = vector.broadcast %47 : vector<1x128xf32> to vector<2x128xf32>
    %1176 = arith.addf %1174, %1175 : vector<2x128xf32>
    %1177 = arith.negf %1176 : vector<2x128xf32>
    %1178 = math.exp %1177 : vector<2x128xf32>
    %cst_224 = arith.constant 1.000000e+00 : f32
    %1179 = vector.broadcast %cst_224 : f32 to vector<2x128xf32>
    %1180 = arith.addf %1179, %1178 : vector<2x128xf32>
    %1181 = arith.divf %1179, %1180 : vector<2x128xf32>
    %1182 = math.tanh %1176 : vector<2x128xf32>
    %1183 = vector.extract_strided_slice %1181 {offsets = [0, 0], sizes = [2, 32], strides = [1, 1]} : vector<2x128xf32> to vector<2x32xf32>
    %1184 = vector.extract_strided_slice %1181 {offsets = [0, 32], sizes = [2, 32], strides = [1, 1]} : vector<2x128xf32> to vector<2x32xf32>
    %1185 = vector.extract_strided_slice %1182 {offsets = [0, 64], sizes = [2, 32], strides = [1, 1]} : vector<2x128xf32> to vector<2x32xf32>
    %1186 = vector.extract_strided_slice %1181 {offsets = [0, 96], sizes = [2, 32], strides = [1, 1]} : vector<2x128xf32> to vector<2x32xf32>
    %1187 = arith.mulf %1184, %1100 : vector<2x32xf32>
    %1188 = arith.mulf %1183, %1185 : vector<2x32xf32>
    %1189 = arith.addf %1187, %1188 : vector<2x32xf32>
    %1190 = math.tanh %1189 : vector<2x32xf32>
    %1191 = arith.mulf %1186, %1190 : vector<2x32xf32>
    %c8 = arith.constant 8 : index
    %c0_225 = arith.constant 0 : index
    %1192 = vector.load %arg24[%c8, %c0_225] : memref<16x32xf32, #tpu.memory_space<vmem>>, vector<2x32xf32>
    tpu.vector_store %arg24[%c8, %c0_225], %1191 {strides = array<i32>} : memref<16x32xf32, #tpu.memory_space<vmem>>, vector<2x32xf32>,
    %1193 = arith.truncf %1191 : vector<2x32xf32> to vector<2x32xbf16>
    %cst_226 = arith.constant dense<0.000000e+00> : vector<2x128xf32>
    %1194 = tpu.matmul %1193, %25, %cst_226 {dimension_numbers = #tpu.dot_dimension_numbers<[1], [0], [0], [1], [0, 0, 1, 1], [], []>} : vector<2x32xbf16>, vector<32x128xbf16>, vector<2x128xf32> -> vector<2x128xf32>
    %1195 = arith.truncf %1125 : vector<2x32xf32> to vector<2x32xbf16>
    %cst_227 = arith.constant dense<0.000000e+00> : vector<2x128xf32>
    %1196 = tpu.matmul %1195, %33, %cst_227 {dimension_numbers = #tpu.dot_dimension_numbers<[1], [0], [0], [1], [0, 0, 1, 1], [], []>} : vector<2x32xbf16>, vector<32x128xbf16>, vector<2x128xf32> -> vector<2x128xf32>
    %1197 = arith.addf %1194, %1196 : vector<2x128xf32>
    %1198 = vector.broadcast %41 : vector<1x128xf32> to vector<2x128xf32>
    %1199 = arith.addf %1197, %1198 : vector<2x128xf32>
    %1200 = arith.negf %1199 : vector<2x128xf32>
    %1201 = math.exp %1200 : vector<2x128xf32>
    %cst_228 = arith.constant 1.000000e+00 : f32
    %1202 = vector.broadcast %cst_228 : f32 to vector<2x128xf32>
    %1203 = arith.addf %1202, %1201 : vector<2x128xf32>
    %1204 = arith.divf %1202, %1203 : vector<2x128xf32>
    %1205 = math.tanh %1199 : vector<2x128xf32>
    %1206 = vector.extract_strided_slice %1204 {offsets = [0, 0], sizes = [2, 32], strides = [1, 1]} : vector<2x128xf32> to vector<2x32xf32>
    %1207 = vector.extract_strided_slice %1204 {offsets = [0, 32], sizes = [2, 32], strides = [1, 1]} : vector<2x128xf32> to vector<2x32xf32>
    %1208 = vector.extract_strided_slice %1205 {offsets = [0, 64], sizes = [2, 32], strides = [1, 1]} : vector<2x128xf32> to vector<2x32xf32>
    %1209 = vector.extract_strided_slice %1204 {offsets = [0, 96], sizes = [2, 32], strides = [1, 1]} : vector<2x128xf32> to vector<2x32xf32>
    %1210 = arith.mulf %1207, %1123 : vector<2x32xf32>
    %1211 = arith.mulf %1206, %1208 : vector<2x32xf32>
    %1212 = arith.addf %1210, %1211 : vector<2x32xf32>
    %1213 = math.tanh %1212 : vector<2x32xf32>
    %1214 = arith.mulf %1209, %1213 : vector<2x32xf32>
    %1215 = arith.truncf %1214 : vector<2x32xf32> to vector<2x32xbf16>
    %cst_229 = arith.constant dense<0.000000e+00> : vector<2x128xf32>
    %1216 = tpu.matmul %1215, %27, %cst_229 {dimension_numbers = #tpu.dot_dimension_numbers<[1], [0], [0], [1], [0, 0, 1, 1], [], []>} : vector<2x32xbf16>, vector<32x128xbf16>, vector<2x128xf32> -> vector<2x128xf32>
    %1217 = arith.truncf %1147 : vector<2x32xf32> to vector<2x32xbf16>
    %cst_230 = arith.constant dense<0.000000e+00> : vector<2x128xf32>
    %1218 = tpu.matmul %1217, %35, %cst_230 {dimension_numbers = #tpu.dot_dimension_numbers<[1], [0], [0], [1], [0, 0, 1, 1], [], []>} : vector<2x32xbf16>, vector<32x128xbf16>, vector<2x128xf32> -> vector<2x128xf32>
    %1219 = arith.addf %1216, %1218 : vector<2x128xf32>
    %1220 = vector.broadcast %43 : vector<1x128xf32> to vector<2x128xf32>
    %1221 = arith.addf %1219, %1220 : vector<2x128xf32>
    %1222 = arith.negf %1221 : vector<2x128xf32>
    %1223 = math.exp %1222 : vector<2x128xf32>
    %cst_231 = arith.constant 1.000000e+00 : f32
    %1224 = vector.broadcast %cst_231 : f32 to vector<2x128xf32>
    %1225 = arith.addf %1224, %1223 : vector<2x128xf32>
    %1226 = arith.divf %1224, %1225 : vector<2x128xf32>
    %1227 = math.tanh %1221 : vector<2x128xf32>
    %1228 = vector.extract_strided_slice %1226 {offsets = [0, 0], sizes = [2, 32], strides = [1, 1]} : vector<2x128xf32> to vector<2x32xf32>
    %1229 = vector.extract_strided_slice %1226 {offsets = [0, 32], sizes = [2, 32], strides = [1, 1]} : vector<2x128xf32> to vector<2x32xf32>
    %1230 = vector.extract_strided_slice %1227 {offsets = [0, 64], sizes = [2, 32], strides = [1, 1]} : vector<2x128xf32> to vector<2x32xf32>
    %1231 = vector.extract_strided_slice %1226 {offsets = [0, 96], sizes = [2, 32], strides = [1, 1]} : vector<2x128xf32> to vector<2x32xf32>
    %1232 = arith.mulf %1229, %1145 : vector<2x32xf32>
    %1233 = arith.mulf %1228, %1230 : vector<2x32xf32>
    %1234 = arith.addf %1232, %1233 : vector<2x32xf32>
    %1235 = math.tanh %1234 : vector<2x32xf32>
    %1236 = arith.mulf %1231, %1235 : vector<2x32xf32>
    %1237 = arith.truncf %1236 : vector<2x32xf32> to vector<2x32xbf16>
    %cst_232 = arith.constant dense<0.000000e+00> : vector<2x128xf32>
    %1238 = tpu.matmul %1237, %29, %cst_232 {dimension_numbers = #tpu.dot_dimension_numbers<[1], [0], [0], [1], [0, 0, 1, 1], [], []>} : vector<2x32xbf16>, vector<32x128xbf16>, vector<2x128xf32> -> vector<2x128xf32>
    %1239 = arith.truncf %1169 : vector<2x32xf32> to vector<2x32xbf16>
    %cst_233 = arith.constant dense<0.000000e+00> : vector<2x128xf32>
    %1240 = tpu.matmul %1239, %37, %cst_233 {dimension_numbers = #tpu.dot_dimension_numbers<[1], [0], [0], [1], [0, 0, 1, 1], [], []>} : vector<2x32xbf16>, vector<32x128xbf16>, vector<2x128xf32> -> vector<2x128xf32>
    %1241 = arith.addf %1238, %1240 : vector<2x128xf32>
    %1242 = vector.broadcast %45 : vector<1x128xf32> to vector<2x128xf32>
    %1243 = arith.addf %1241, %1242 : vector<2x128xf32>
    %1244 = arith.negf %1243 : vector<2x128xf32>
    %1245 = math.exp %1244 : vector<2x128xf32>
    %cst_234 = arith.constant 1.000000e+00 : f32
    %1246 = vector.broadcast %cst_234 : f32 to vector<2x128xf32>
    %1247 = arith.addf %1246, %1245 : vector<2x128xf32>
    %1248 = arith.divf %1246, %1247 : vector<2x128xf32>
    %1249 = math.tanh %1243 : vector<2x128xf32>
    %1250 = vector.extract_strided_slice %1248 {offsets = [0, 0], sizes = [2, 32], strides = [1, 1]} : vector<2x128xf32> to vector<2x32xf32>
    %1251 = vector.extract_strided_slice %1248 {offsets = [0, 32], sizes = [2, 32], strides = [1, 1]} : vector<2x128xf32> to vector<2x32xf32>
    %1252 = vector.extract_strided_slice %1249 {offsets = [0, 64], sizes = [2, 32], strides = [1, 1]} : vector<2x128xf32> to vector<2x32xf32>
    %1253 = vector.extract_strided_slice %1248 {offsets = [0, 96], sizes = [2, 32], strides = [1, 1]} : vector<2x128xf32> to vector<2x32xf32>
    %1254 = arith.mulf %1251, %1167 : vector<2x32xf32>
    %1255 = arith.mulf %1250, %1252 : vector<2x32xf32>
    %1256 = arith.addf %1254, %1255 : vector<2x32xf32>
    %1257 = math.tanh %1256 : vector<2x32xf32>
    %1258 = arith.mulf %1253, %1257 : vector<2x32xf32>
    %1259 = arith.truncf %1258 : vector<2x32xf32> to vector<2x32xbf16>
    %cst_235 = arith.constant dense<0.000000e+00> : vector<2x128xf32>
    %1260 = tpu.matmul %1259, %31, %cst_235 {dimension_numbers = #tpu.dot_dimension_numbers<[1], [0], [0], [1], [0, 0, 1, 1], [], []>} : vector<2x32xbf16>, vector<32x128xbf16>, vector<2x128xf32> -> vector<2x128xf32>
    %1261 = arith.truncf %1191 : vector<2x32xf32> to vector<2x32xbf16>
    %cst_236 = arith.constant dense<0.000000e+00> : vector<2x128xf32>
    %1262 = tpu.matmul %1261, %39, %cst_236 {dimension_numbers = #tpu.dot_dimension_numbers<[1], [0], [0], [1], [0, 0, 1, 1], [], []>} : vector<2x32xbf16>, vector<32x128xbf16>, vector<2x128xf32> -> vector<2x128xf32>
    %1263 = arith.addf %1260, %1262 : vector<2x128xf32>
    %1264 = vector.broadcast %47 : vector<1x128xf32> to vector<2x128xf32>
    %1265 = arith.addf %1263, %1264 : vector<2x128xf32>
    %1266 = arith.negf %1265 : vector<2x128xf32>
    %1267 = math.exp %1266 : vector<2x128xf32>
    %cst_237 = arith.constant 1.000000e+00 : f32
    %1268 = vector.broadcast %cst_237 : f32 to vector<2x128xf32>
    %1269 = arith.addf %1268, %1267 : vector<2x128xf32>
    %1270 = arith.divf %1268, %1269 : vector<2x128xf32>
    %1271 = math.tanh %1265 : vector<2x128xf32>
    %1272 = vector.extract_strided_slice %1270 {offsets = [0, 0], sizes = [2, 32], strides = [1, 1]} : vector<2x128xf32> to vector<2x32xf32>
    %1273 = vector.extract_strided_slice %1270 {offsets = [0, 32], sizes = [2, 32], strides = [1, 1]} : vector<2x128xf32> to vector<2x32xf32>
    %1274 = vector.extract_strided_slice %1271 {offsets = [0, 64], sizes = [2, 32], strides = [1, 1]} : vector<2x128xf32> to vector<2x32xf32>
    %1275 = vector.extract_strided_slice %1270 {offsets = [0, 96], sizes = [2, 32], strides = [1, 1]} : vector<2x128xf32> to vector<2x32xf32>
    %1276 = arith.mulf %1273, %1189 : vector<2x32xf32>
    %1277 = arith.mulf %1272, %1274 : vector<2x32xf32>
    %1278 = arith.addf %1276, %1277 : vector<2x32xf32>
    %1279 = math.tanh %1278 : vector<2x32xf32>
    %1280 = arith.mulf %1275, %1279 : vector<2x32xf32>
    %c10 = arith.constant 10 : index
    %c0_238 = arith.constant 0 : index
    %1281 = vector.load %arg24[%c10, %c0_238] : memref<16x32xf32, #tpu.memory_space<vmem>>, vector<2x32xf32>
    tpu.vector_store %arg24[%c10, %c0_238], %1280 {strides = array<i32>} : memref<16x32xf32, #tpu.memory_space<vmem>>, vector<2x32xf32>,
    %1282 = arith.truncf %1280 : vector<2x32xf32> to vector<2x32xbf16>
    %cst_239 = arith.constant dense<0.000000e+00> : vector<2x128xf32>
    %1283 = tpu.matmul %1282, %25, %cst_239 {dimension_numbers = #tpu.dot_dimension_numbers<[1], [0], [0], [1], [0, 0, 1, 1], [], []>} : vector<2x32xbf16>, vector<32x128xbf16>, vector<2x128xf32> -> vector<2x128xf32>
    %1284 = arith.truncf %1214 : vector<2x32xf32> to vector<2x32xbf16>
    %cst_240 = arith.constant dense<0.000000e+00> : vector<2x128xf32>
    %1285 = tpu.matmul %1284, %33, %cst_240 {dimension_numbers = #tpu.dot_dimension_numbers<[1], [0], [0], [1], [0, 0, 1, 1], [], []>} : vector<2x32xbf16>, vector<32x128xbf16>, vector<2x128xf32> -> vector<2x128xf32>
    %1286 = arith.addf %1283, %1285 : vector<2x128xf32>
    %1287 = vector.broadcast %41 : vector<1x128xf32> to vector<2x128xf32>
    %1288 = arith.addf %1286, %1287 : vector<2x128xf32>
    %1289 = arith.negf %1288 : vector<2x128xf32>
    %1290 = math.exp %1289 : vector<2x128xf32>
    %cst_241 = arith.constant 1.000000e+00 : f32
    %1291 = vector.broadcast %cst_241 : f32 to vector<2x128xf32>
    %1292 = arith.addf %1291, %1290 : vector<2x128xf32>
    %1293 = arith.divf %1291, %1292 : vector<2x128xf32>
    %1294 = math.tanh %1288 : vector<2x128xf32>
    %1295 = vector.extract_strided_slice %1293 {offsets = [0, 0], sizes = [2, 32], strides = [1, 1]} : vector<2x128xf32> to vector<2x32xf32>
    %1296 = vector.extract_strided_slice %1293 {offsets = [0, 32], sizes = [2, 32], strides = [1, 1]} : vector<2x128xf32> to vector<2x32xf32>
    %1297 = vector.extract_strided_slice %1294 {offsets = [0, 64], sizes = [2, 32], strides = [1, 1]} : vector<2x128xf32> to vector<2x32xf32>
    %1298 = vector.extract_strided_slice %1293 {offsets = [0, 96], sizes = [2, 32], strides = [1, 1]} : vector<2x128xf32> to vector<2x32xf32>
    %1299 = arith.mulf %1296, %1212 : vector<2x32xf32>
    %1300 = arith.mulf %1295, %1297 : vector<2x32xf32>
    %1301 = arith.addf %1299, %1300 : vector<2x32xf32>
    %1302 = math.tanh %1301 : vector<2x32xf32>
    %1303 = arith.mulf %1298, %1302 : vector<2x32xf32>
    %1304 = arith.truncf %1303 : vector<2x32xf32> to vector<2x32xbf16>
    %cst_242 = arith.constant dense<0.000000e+00> : vector<2x128xf32>
    %1305 = tpu.matmul %1304, %27, %cst_242 {dimension_numbers = #tpu.dot_dimension_numbers<[1], [0], [0], [1], [0, 0, 1, 1], [], []>} : vector<2x32xbf16>, vector<32x128xbf16>, vector<2x128xf32> -> vector<2x128xf32>
    %1306 = arith.truncf %1236 : vector<2x32xf32> to vector<2x32xbf16>
    %cst_243 = arith.constant dense<0.000000e+00> : vector<2x128xf32>
    %1307 = tpu.matmul %1306, %35, %cst_243 {dimension_numbers = #tpu.dot_dimension_numbers<[1], [0], [0], [1], [0, 0, 1, 1], [], []>} : vector<2x32xbf16>, vector<32x128xbf16>, vector<2x128xf32> -> vector<2x128xf32>
    %1308 = arith.addf %1305, %1307 : vector<2x128xf32>
    %1309 = vector.broadcast %43 : vector<1x128xf32> to vector<2x128xf32>
    %1310 = arith.addf %1308, %1309 : vector<2x128xf32>
    %1311 = arith.negf %1310 : vector<2x128xf32>
    %1312 = math.exp %1311 : vector<2x128xf32>
    %cst_244 = arith.constant 1.000000e+00 : f32
    %1313 = vector.broadcast %cst_244 : f32 to vector<2x128xf32>
    %1314 = arith.addf %1313, %1312 : vector<2x128xf32>
    %1315 = arith.divf %1313, %1314 : vector<2x128xf32>
    %1316 = math.tanh %1310 : vector<2x128xf32>
    %1317 = vector.extract_strided_slice %1315 {offsets = [0, 0], sizes = [2, 32], strides = [1, 1]} : vector<2x128xf32> to vector<2x32xf32>
    %1318 = vector.extract_strided_slice %1315 {offsets = [0, 32], sizes = [2, 32], strides = [1, 1]} : vector<2x128xf32> to vector<2x32xf32>
    %1319 = vector.extract_strided_slice %1316 {offsets = [0, 64], sizes = [2, 32], strides = [1, 1]} : vector<2x128xf32> to vector<2x32xf32>
    %1320 = vector.extract_strided_slice %1315 {offsets = [0, 96], sizes = [2, 32], strides = [1, 1]} : vector<2x128xf32> to vector<2x32xf32>
    %1321 = arith.mulf %1318, %1234 : vector<2x32xf32>
    %1322 = arith.mulf %1317, %1319 : vector<2x32xf32>
    %1323 = arith.addf %1321, %1322 : vector<2x32xf32>
    %1324 = math.tanh %1323 : vector<2x32xf32>
    %1325 = arith.mulf %1320, %1324 : vector<2x32xf32>
    %1326 = arith.truncf %1325 : vector<2x32xf32> to vector<2x32xbf16>
    %cst_245 = arith.constant dense<0.000000e+00> : vector<2x128xf32>
    %1327 = tpu.matmul %1326, %29, %cst_245 {dimension_numbers = #tpu.dot_dimension_numbers<[1], [0], [0], [1], [0, 0, 1, 1], [], []>} : vector<2x32xbf16>, vector<32x128xbf16>, vector<2x128xf32> -> vector<2x128xf32>
    %1328 = arith.truncf %1258 : vector<2x32xf32> to vector<2x32xbf16>
    %cst_246 = arith.constant dense<0.000000e+00> : vector<2x128xf32>
    %1329 = tpu.matmul %1328, %37, %cst_246 {dimension_numbers = #tpu.dot_dimension_numbers<[1], [0], [0], [1], [0, 0, 1, 1], [], []>} : vector<2x32xbf16>, vector<32x128xbf16>, vector<2x128xf32> -> vector<2x128xf32>
    %1330 = arith.addf %1327, %1329 : vector<2x128xf32>
    %1331 = vector.broadcast %45 : vector<1x128xf32> to vector<2x128xf32>
    %1332 = arith.addf %1330, %1331 : vector<2x128xf32>
    %1333 = arith.negf %1332 : vector<2x128xf32>
    %1334 = math.exp %1333 : vector<2x128xf32>
    %cst_247 = arith.constant 1.000000e+00 : f32
    %1335 = vector.broadcast %cst_247 : f32 to vector<2x128xf32>
    %1336 = arith.addf %1335, %1334 : vector<2x128xf32>
    %1337 = arith.divf %1335, %1336 : vector<2x128xf32>
    %1338 = math.tanh %1332 : vector<2x128xf32>
    %1339 = vector.extract_strided_slice %1337 {offsets = [0, 0], sizes = [2, 32], strides = [1, 1]} : vector<2x128xf32> to vector<2x32xf32>
    %1340 = vector.extract_strided_slice %1337 {offsets = [0, 32], sizes = [2, 32], strides = [1, 1]} : vector<2x128xf32> to vector<2x32xf32>
    %1341 = vector.extract_strided_slice %1338 {offsets = [0, 64], sizes = [2, 32], strides = [1, 1]} : vector<2x128xf32> to vector<2x32xf32>
    %1342 = vector.extract_strided_slice %1337 {offsets = [0, 96], sizes = [2, 32], strides = [1, 1]} : vector<2x128xf32> to vector<2x32xf32>
    %1343 = arith.mulf %1340, %1256 : vector<2x32xf32>
    %1344 = arith.mulf %1339, %1341 : vector<2x32xf32>
    %1345 = arith.addf %1343, %1344 : vector<2x32xf32>
    %1346 = math.tanh %1345 : vector<2x32xf32>
    %1347 = arith.mulf %1342, %1346 : vector<2x32xf32>
    %1348 = arith.truncf %1347 : vector<2x32xf32> to vector<2x32xbf16>
    %cst_248 = arith.constant dense<0.000000e+00> : vector<2x128xf32>
    %1349 = tpu.matmul %1348, %31, %cst_248 {dimension_numbers = #tpu.dot_dimension_numbers<[1], [0], [0], [1], [0, 0, 1, 1], [], []>} : vector<2x32xbf16>, vector<32x128xbf16>, vector<2x128xf32> -> vector<2x128xf32>
    %1350 = arith.truncf %1280 : vector<2x32xf32> to vector<2x32xbf16>
    %cst_249 = arith.constant dense<0.000000e+00> : vector<2x128xf32>
    %1351 = tpu.matmul %1350, %39, %cst_249 {dimension_numbers = #tpu.dot_dimension_numbers<[1], [0], [0], [1], [0, 0, 1, 1], [], []>} : vector<2x32xbf16>, vector<32x128xbf16>, vector<2x128xf32> -> vector<2x128xf32>
    %1352 = arith.addf %1349, %1351 : vector<2x128xf32>
    %1353 = vector.broadcast %47 : vector<1x128xf32> to vector<2x128xf32>
    %1354 = arith.addf %1352, %1353 : vector<2x128xf32>
    %1355 = arith.negf %1354 : vector<2x128xf32>
    %1356 = math.exp %1355 : vector<2x128xf32>
    %cst_250 = arith.constant 1.000000e+00 : f32
    %1357 = vector.broadcast %cst_250 : f32 to vector<2x128xf32>
    %1358 = arith.addf %1357, %1356 : vector<2x128xf32>
    %1359 = arith.divf %1357, %1358 : vector<2x128xf32>
    %1360 = math.tanh %1354 : vector<2x128xf32>
    %1361 = vector.extract_strided_slice %1359 {offsets = [0, 0], sizes = [2, 32], strides = [1, 1]} : vector<2x128xf32> to vector<2x32xf32>
    %1362 = vector.extract_strided_slice %1359 {offsets = [0, 32], sizes = [2, 32], strides = [1, 1]} : vector<2x128xf32> to vector<2x32xf32>
    %1363 = vector.extract_strided_slice %1360 {offsets = [0, 64], sizes = [2, 32], strides = [1, 1]} : vector<2x128xf32> to vector<2x32xf32>
    %1364 = vector.extract_strided_slice %1359 {offsets = [0, 96], sizes = [2, 32], strides = [1, 1]} : vector<2x128xf32> to vector<2x32xf32>
    %1365 = arith.mulf %1362, %1278 : vector<2x32xf32>
    %1366 = arith.mulf %1361, %1363 : vector<2x32xf32>
    %1367 = arith.addf %1365, %1366 : vector<2x32xf32>
    %1368 = math.tanh %1367 : vector<2x32xf32>
    %1369 = arith.mulf %1364, %1368 : vector<2x32xf32>
    %c12 = arith.constant 12 : index
    %c0_251 = arith.constant 0 : index
    %1370 = vector.load %arg24[%c12, %c0_251] : memref<16x32xf32, #tpu.memory_space<vmem>>, vector<2x32xf32>
    tpu.vector_store %arg24[%c12, %c0_251], %1369 {strides = array<i32>} : memref<16x32xf32, #tpu.memory_space<vmem>>, vector<2x32xf32>,
    %1371 = arith.truncf %1369 : vector<2x32xf32> to vector<2x32xbf16>
    %cst_252 = arith.constant dense<0.000000e+00> : vector<2x128xf32>
    %1372 = tpu.matmul %1371, %25, %cst_252 {dimension_numbers = #tpu.dot_dimension_numbers<[1], [0], [0], [1], [0, 0, 1, 1], [], []>} : vector<2x32xbf16>, vector<32x128xbf16>, vector<2x128xf32> -> vector<2x128xf32>
    %1373 = arith.truncf %1303 : vector<2x32xf32> to vector<2x32xbf16>
    %cst_253 = arith.constant dense<0.000000e+00> : vector<2x128xf32>
    %1374 = tpu.matmul %1373, %33, %cst_253 {dimension_numbers = #tpu.dot_dimension_numbers<[1], [0], [0], [1], [0, 0, 1, 1], [], []>} : vector<2x32xbf16>, vector<32x128xbf16>, vector<2x128xf32> -> vector<2x128xf32>
    %1375 = arith.addf %1372, %1374 : vector<2x128xf32>
    %1376 = vector.broadcast %41 : vector<1x128xf32> to vector<2x128xf32>
    %1377 = arith.addf %1375, %1376 : vector<2x128xf32>
    %1378 = arith.negf %1377 : vector<2x128xf32>
    %1379 = math.exp %1378 : vector<2x128xf32>
    %cst_254 = arith.constant 1.000000e+00 : f32
    %1380 = vector.broadcast %cst_254 : f32 to vector<2x128xf32>
    %1381 = arith.addf %1380, %1379 : vector<2x128xf32>
    %1382 = arith.divf %1380, %1381 : vector<2x128xf32>
    %1383 = math.tanh %1377 : vector<2x128xf32>
    %1384 = vector.extract_strided_slice %1382 {offsets = [0, 0], sizes = [2, 32], strides = [1, 1]} : vector<2x128xf32> to vector<2x32xf32>
    %1385 = vector.extract_strided_slice %1382 {offsets = [0, 32], sizes = [2, 32], strides = [1, 1]} : vector<2x128xf32> to vector<2x32xf32>
    %1386 = vector.extract_strided_slice %1383 {offsets = [0, 64], sizes = [2, 32], strides = [1, 1]} : vector<2x128xf32> to vector<2x32xf32>
    %1387 = vector.extract_strided_slice %1382 {offsets = [0, 96], sizes = [2, 32], strides = [1, 1]} : vector<2x128xf32> to vector<2x32xf32>
    %1388 = arith.mulf %1385, %1301 : vector<2x32xf32>
    %1389 = arith.mulf %1384, %1386 : vector<2x32xf32>
    %1390 = arith.addf %1388, %1389 : vector<2x32xf32>
    %1391 = math.tanh %1390 : vector<2x32xf32>
    %1392 = arith.mulf %1387, %1391 : vector<2x32xf32>
    %1393 = arith.truncf %1392 : vector<2x32xf32> to vector<2x32xbf16>
    %cst_255 = arith.constant dense<0.000000e+00> : vector<2x128xf32>
    %1394 = tpu.matmul %1393, %27, %cst_255 {dimension_numbers = #tpu.dot_dimension_numbers<[1], [0], [0], [1], [0, 0, 1, 1], [], []>} : vector<2x32xbf16>, vector<32x128xbf16>, vector<2x128xf32> -> vector<2x128xf32>
    %1395 = arith.truncf %1325 : vector<2x32xf32> to vector<2x32xbf16>
    %cst_256 = arith.constant dense<0.000000e+00> : vector<2x128xf32>
    %1396 = tpu.matmul %1395, %35, %cst_256 {dimension_numbers = #tpu.dot_dimension_numbers<[1], [0], [0], [1], [0, 0, 1, 1], [], []>} : vector<2x32xbf16>, vector<32x128xbf16>, vector<2x128xf32> -> vector<2x128xf32>
    %1397 = arith.addf %1394, %1396 : vector<2x128xf32>
    %1398 = vector.broadcast %43 : vector<1x128xf32> to vector<2x128xf32>
    %1399 = arith.addf %1397, %1398 : vector<2x128xf32>
    %1400 = arith.negf %1399 : vector<2x128xf32>
    %1401 = math.exp %1400 : vector<2x128xf32>
    %cst_257 = arith.constant 1.000000e+00 : f32
    %1402 = vector.broadcast %cst_257 : f32 to vector<2x128xf32>
    %1403 = arith.addf %1402, %1401 : vector<2x128xf32>
    %1404 = arith.divf %1402, %1403 : vector<2x128xf32>
    %1405 = math.tanh %1399 : vector<2x128xf32>
    %1406 = vector.extract_strided_slice %1404 {offsets = [0, 0], sizes = [2, 32], strides = [1, 1]} : vector<2x128xf32> to vector<2x32xf32>
    %1407 = vector.extract_strided_slice %1404 {offsets = [0, 32], sizes = [2, 32], strides = [1, 1]} : vector<2x128xf32> to vector<2x32xf32>
    %1408 = vector.extract_strided_slice %1405 {offsets = [0, 64], sizes = [2, 32], strides = [1, 1]} : vector<2x128xf32> to vector<2x32xf32>
    %1409 = vector.extract_strided_slice %1404 {offsets = [0, 96], sizes = [2, 32], strides = [1, 1]} : vector<2x128xf32> to vector<2x32xf32>
    %1410 = arith.mulf %1407, %1323 : vector<2x32xf32>
    %1411 = arith.mulf %1406, %1408 : vector<2x32xf32>
    %1412 = arith.addf %1410, %1411 : vector<2x32xf32>
    %1413 = math.tanh %1412 : vector<2x32xf32>
    %1414 = arith.mulf %1409, %1413 : vector<2x32xf32>
    %1415 = arith.truncf %1414 : vector<2x32xf32> to vector<2x32xbf16>
    %cst_258 = arith.constant dense<0.000000e+00> : vector<2x128xf32>
    %1416 = tpu.matmul %1415, %29, %cst_258 {dimension_numbers = #tpu.dot_dimension_numbers<[1], [0], [0], [1], [0, 0, 1, 1], [], []>} : vector<2x32xbf16>, vector<32x128xbf16>, vector<2x128xf32> -> vector<2x128xf32>
    %1417 = arith.truncf %1347 : vector<2x32xf32> to vector<2x32xbf16>
    %cst_259 = arith.constant dense<0.000000e+00> : vector<2x128xf32>
    %1418 = tpu.matmul %1417, %37, %cst_259 {dimension_numbers = #tpu.dot_dimension_numbers<[1], [0], [0], [1], [0, 0, 1, 1], [], []>} : vector<2x32xbf16>, vector<32x128xbf16>, vector<2x128xf32> -> vector<2x128xf32>
    %1419 = arith.addf %1416, %1418 : vector<2x128xf32>
    %1420 = vector.broadcast %45 : vector<1x128xf32> to vector<2x128xf32>
    %1421 = arith.addf %1419, %1420 : vector<2x128xf32>
    %1422 = arith.negf %1421 : vector<2x128xf32>
    %1423 = math.exp %1422 : vector<2x128xf32>
    %cst_260 = arith.constant 1.000000e+00 : f32
    %1424 = vector.broadcast %cst_260 : f32 to vector<2x128xf32>
    %1425 = arith.addf %1424, %1423 : vector<2x128xf32>
    %1426 = arith.divf %1424, %1425 : vector<2x128xf32>
    %1427 = math.tanh %1421 : vector<2x128xf32>
    %1428 = vector.extract_strided_slice %1426 {offsets = [0, 0], sizes = [2, 32], strides = [1, 1]} : vector<2x128xf32> to vector<2x32xf32>
    %1429 = vector.extract_strided_slice %1426 {offsets = [0, 32], sizes = [2, 32], strides = [1, 1]} : vector<2x128xf32> to vector<2x32xf32>
    %1430 = vector.extract_strided_slice %1427 {offsets = [0, 64], sizes = [2, 32], strides = [1, 1]} : vector<2x128xf32> to vector<2x32xf32>
    %1431 = vector.extract_strided_slice %1426 {offsets = [0, 96], sizes = [2, 32], strides = [1, 1]} : vector<2x128xf32> to vector<2x32xf32>
    %1432 = arith.mulf %1429, %1345 : vector<2x32xf32>
    %1433 = arith.mulf %1428, %1430 : vector<2x32xf32>
    %1434 = arith.addf %1432, %1433 : vector<2x32xf32>
    %1435 = math.tanh %1434 : vector<2x32xf32>
    %1436 = arith.mulf %1431, %1435 : vector<2x32xf32>
    %1437 = arith.truncf %1436 : vector<2x32xf32> to vector<2x32xbf16>
    %cst_261 = arith.constant dense<0.000000e+00> : vector<2x128xf32>
    %1438 = tpu.matmul %1437, %31, %cst_261 {dimension_numbers = #tpu.dot_dimension_numbers<[1], [0], [0], [1], [0, 0, 1, 1], [], []>} : vector<2x32xbf16>, vector<32x128xbf16>, vector<2x128xf32> -> vector<2x128xf32>
    %1439 = arith.truncf %1369 : vector<2x32xf32> to vector<2x32xbf16>
    %cst_262 = arith.constant dense<0.000000e+00> : vector<2x128xf32>
    %1440 = tpu.matmul %1439, %39, %cst_262 {dimension_numbers = #tpu.dot_dimension_numbers<[1], [0], [0], [1], [0, 0, 1, 1], [], []>} : vector<2x32xbf16>, vector<32x128xbf16>, vector<2x128xf32> -> vector<2x128xf32>
    %1441 = arith.addf %1438, %1440 : vector<2x128xf32>
    %1442 = vector.broadcast %47 : vector<1x128xf32> to vector<2x128xf32>
    %1443 = arith.addf %1441, %1442 : vector<2x128xf32>
    %1444 = arith.negf %1443 : vector<2x128xf32>
    %1445 = math.exp %1444 : vector<2x128xf32>
    %cst_263 = arith.constant 1.000000e+00 : f32
    %1446 = vector.broadcast %cst_263 : f32 to vector<2x128xf32>
    %1447 = arith.addf %1446, %1445 : vector<2x128xf32>
    %1448 = arith.divf %1446, %1447 : vector<2x128xf32>
    %1449 = math.tanh %1443 : vector<2x128xf32>
    %1450 = vector.extract_strided_slice %1448 {offsets = [0, 0], sizes = [2, 32], strides = [1, 1]} : vector<2x128xf32> to vector<2x32xf32>
    %1451 = vector.extract_strided_slice %1448 {offsets = [0, 32], sizes = [2, 32], strides = [1, 1]} : vector<2x128xf32> to vector<2x32xf32>
    %1452 = vector.extract_strided_slice %1449 {offsets = [0, 64], sizes = [2, 32], strides = [1, 1]} : vector<2x128xf32> to vector<2x32xf32>
    %1453 = vector.extract_strided_slice %1448 {offsets = [0, 96], sizes = [2, 32], strides = [1, 1]} : vector<2x128xf32> to vector<2x32xf32>
    %1454 = arith.mulf %1451, %1367 : vector<2x32xf32>
    %1455 = arith.mulf %1450, %1452 : vector<2x32xf32>
    %1456 = arith.addf %1454, %1455 : vector<2x32xf32>
    %1457 = math.tanh %1456 : vector<2x32xf32>
    %1458 = arith.mulf %1453, %1457 : vector<2x32xf32>
    %c14 = arith.constant 14 : index
    %c0_264 = arith.constant 0 : index
    %1459 = vector.load %arg24[%c14, %c0_264] : memref<16x32xf32, #tpu.memory_space<vmem>>, vector<2x32xf32>
    tpu.vector_store %arg24[%c14, %c0_264], %1458 {strides = array<i32>} : memref<16x32xf32, #tpu.memory_space<vmem>>, vector<2x32xf32>,
    %c0_265 = arith.constant 0 : index
    %c0_266 = arith.constant 0 : index
    %1460 = vector.load %arg24[%c0_265, %c0_266] : memref<16x32xf32, #tpu.memory_space<vmem>>, vector<16x32xf32>
    %cst_267 = arith.constant dense<0.000000e+00> : vector<16xf32>
    %1461 = vector.multi_reduction <add>, %1460, %cst_267 [1] : vector<16x32xf32> to vector<16xf32>
    %1462 = vector.shape_cast %1461 : vector<16xf32> to vector<16x1xf32>
    %cst_268 = arith.constant 3.200000e+01 : f32
    %1463 = vector.broadcast %cst_268 : f32 to vector<16x1xf32>
    %1464 = arith.divf %1462, %1463 : vector<16x1xf32>
    %1465 = vector.broadcast %1464 : vector<16x1xf32> to vector<16x32xf32>
    %1466 = arith.subf %1460, %1465 : vector<16x32xf32>
    %1467 = arith.mulf %1466, %1466 : vector<16x32xf32>
    %cst_269 = arith.constant dense<0.000000e+00> : vector<16xf32>
    %1468 = vector.multi_reduction <add>, %1467, %cst_269 [1] : vector<16x32xf32> to vector<16xf32>
    %1469 = vector.shape_cast %1468 : vector<16xf32> to vector<16x1xf32>
    %cst_270 = arith.constant 3.200000e+01 : f32
    %1470 = vector.broadcast %cst_270 : f32 to vector<16x1xf32>
    %1471 = arith.divf %1469, %1470 : vector<16x1xf32>
    %1472 = vector.broadcast %1464 : vector<16x1xf32> to vector<16x32xf32>
    %1473 = arith.subf %1460, %1472 : vector<16x32xf32>
    %cst_271 = arith.constant 9.99999974E-6 : f32
    %1474 = vector.broadcast %cst_271 : f32 to vector<16x1xf32>
    %1475 = arith.addf %1471, %1474 : vector<16x1xf32>
    %1476 = math.rsqrt %1475 : vector<16x1xf32>
    %1477 = vector.broadcast %1476 : vector<16x1xf32> to vector<16x32xf32>
    %1478 = arith.mulf %1473, %1477 : vector<16x32xf32>
    %c0_272 = arith.constant 0 : index
    %c0_273 = arith.constant 0 : index
    %1479 = vector.load %arg8[%c0_272, %c0_273] : memref<1x32xf32, #tpu.memory_space<vmem>>, vector<1x32xf32>
    %1480 = vector.broadcast %1479 : vector<1x32xf32> to vector<16x32xf32>
    %1481 = arith.mulf %1478, %1480 : vector<16x32xf32>
    %c0_274 = arith.constant 0 : index
    %c0_275 = arith.constant 0 : index
    %1482 = vector.load %arg9[%c0_274, %c0_275] : memref<1x32xf32, #tpu.memory_space<vmem>>, vector<1x32xf32>
    %1483 = vector.broadcast %1482 : vector<1x32xf32> to vector<16x32xf32>
    %1484 = arith.addf %1481, %1483 : vector<16x32xf32>
    %1485 = arith.truncf %1484 : vector<16x32xf32> to vector<16x32xbf16>
    %c0_276 = arith.constant 0 : index
    %c0_277 = arith.constant 0 : index
    %1486 = vector.load %arg10[%c0_276, %c0_277] : memref<32x32xbf16, #tpu.memory_space<vmem>>, vector<32x32xbf16>
    %cst_278 = arith.constant dense<0.000000e+00> : vector<16x32xf32>
    %1487 = tpu.matmul %1485, %1486, %cst_278 {dimension_numbers = #tpu.dot_dimension_numbers<[1], [0], [0], [1], [0, 0, 1, 1], [], []>} : vector<16x32xbf16>, vector<32x32xbf16>, vector<16x32xf32> -> vector<16x32xf32>
    %c0_279 = arith.constant 0 : index
    %c0_280 = arith.constant 0 : index
    %1488 = vector.load %arg11[%c0_279, %c0_280] : memref<1x32xf32, #tpu.memory_space<vmem>>, vector<1x32xf32>
    %1489 = vector.broadcast %1488 : vector<1x32xf32> to vector<16x32xf32>
    %1490 = arith.addf %1487, %1489 : vector<16x32xf32>
    %c0_281 = arith.constant 0 : index
    %c0_282 = arith.constant 0 : index
    %1491 = vector.load %arg12[%c0_281, %c0_282] : memref<32x32xbf16, #tpu.memory_space<vmem>>, vector<32x32xbf16>
    %cst_283 = arith.constant dense<0.000000e+00> : vector<16x32xf32>
    %1492 = tpu.matmul %1485, %1491, %cst_283 {dimension_numbers = #tpu.dot_dimension_numbers<[1], [0], [0], [1], [0, 0, 1, 1], [], []>} : vector<16x32xbf16>, vector<32x32xbf16>, vector<16x32xf32> -> vector<16x32xf32>
    %c0_284 = arith.constant 0 : index
    %c0_285 = arith.constant 0 : index
    %1493 = vector.load %arg13[%c0_284, %c0_285] : memref<1x32xf32, #tpu.memory_space<vmem>>, vector<1x32xf32>
    %1494 = vector.broadcast %1493 : vector<1x32xf32> to vector<16x32xf32>
    %1495 = arith.addf %1492, %1494 : vector<16x32xf32>
    %c0_286 = arith.constant 0 : index
    %c0_287 = arith.constant 0 : index
    %1496 = vector.load %arg14[%c0_286, %c0_287] : memref<32x32xbf16, #tpu.memory_space<vmem>>, vector<32x32xbf16>
    %cst_288 = arith.constant dense<0.000000e+00> : vector<16x32xf32>
    %1497 = tpu.matmul %1485, %1496, %cst_288 {dimension_numbers = #tpu.dot_dimension_numbers<[1], [0], [0], [1], [0, 0, 1, 1], [], []>} : vector<16x32xbf16>, vector<32x32xbf16>, vector<16x32xf32> -> vector<16x32xf32>
    %c0_289 = arith.constant 0 : index
    %c0_290 = arith.constant 0 : index
    %1498 = vector.load %arg15[%c0_289, %c0_290] : memref<1x32xf32, #tpu.memory_space<vmem>>, vector<1x32xf32>
    %1499 = vector.broadcast %1498 : vector<1x32xf32> to vector<16x32xf32>
    %1500 = arith.addf %1497, %1499 : vector<16x32xf32>
    %1501 = arith.truncf %1490 : vector<16x32xf32> to vector<16x32xbf16>
    %1502 = arith.truncf %1495 : vector<16x32xf32> to vector<16x32xbf16>
    %cst_291 = arith.constant dense<0.000000e+00> : vector<16x16xf32>
    %1503 = tpu.matmul %1501, %1502, %cst_291 {dimension_numbers = #tpu.dot_dimension_numbers<[1], [1], [0], [0], [0, 0, 1, 0], [], []>} : vector<16x32xbf16>, vector<16x32xbf16>, vector<16x16xf32> -> vector<16x16xf32>
    %c0_292 = arith.constant 0 : index
    %c0_293 = arith.constant 0 : index
    %1504 = vector.load %arg18[%c0_292, %c0_293] : memref<16x16xf32, #tpu.memory_space<vmem>>, vector<16x16xf32>
    %1505 = arith.addf %1503, %1504 : vector<16x16xf32>
    %cst_294 = arith.constant dense<0xFF800000> : vector<16xf32>
    %1506 = vector.multi_reduction <maximumf>, %1505, %cst_294 [1] : vector<16x16xf32> to vector<16xf32>
    %1507 = vector.shape_cast %1506 : vector<16xf32> to vector<16x1xf32>
    %1508 = vector.broadcast %1507 : vector<16x1xf32> to vector<16x16xf32>
    %1509 = arith.subf %1505, %1508 : vector<16x16xf32>
    %1510 = math.exp %1509 : vector<16x16xf32>
    %cst_295 = arith.constant dense<0.000000e+00> : vector<16xf32>
    %1511 = vector.multi_reduction <add>, %1510, %cst_295 [1] : vector<16x16xf32> to vector<16xf32>
    %1512 = vector.shape_cast %1511 : vector<16xf32> to vector<16x1xf32>
    %1513 = tpu.reciprocal %1512 {approx = true} : vector<16x1xf32> -> vector<16x1xf32>
    %1514 = vector.broadcast %1513 : vector<16x1xf32> to vector<16x16xf32>
    %1515 = arith.mulf %1510, %1514 : vector<16x16xf32>
    %1516 = arith.truncf %1515 : vector<16x16xf32> to vector<16x16xbf16>
    %1517 = arith.truncf %1500 : vector<16x32xf32> to vector<16x32xbf16>
    %cst_296 = arith.constant dense<0.000000e+00> : vector<16x32xf32>
    %1518 = tpu.matmul %1516, %1517, %cst_296 {dimension_numbers = #tpu.dot_dimension_numbers<[1], [0], [0], [1], [0, 0, 1, 1], [], []>} : vector<16x16xbf16>, vector<16x32xbf16>, vector<16x32xf32> -> vector<16x32xf32>
    %1519 = arith.truncf %1518 : vector<16x32xf32> to vector<16x32xbf16>
    %c0_297 = arith.constant 0 : index
    %c0_298 = arith.constant 0 : index
    %1520 = vector.load %arg16[%c0_297, %c0_298] : memref<32x8xbf16, #tpu.memory_space<vmem>>, vector<32x8xbf16>
    %cst_299 = arith.constant dense<0.000000e+00> : vector<16x8xf32>
    %1521 = tpu.matmul %1519, %1520, %cst_299 {dimension_numbers = #tpu.dot_dimension_numbers<[1], [0], [0], [1], [0, 0, 1, 1], [], []>} : vector<16x32xbf16>, vector<32x8xbf16>, vector<16x8xf32> -> vector<16x8xf32>
    %c0_300 = arith.constant 0 : index
    %c0_301 = arith.constant 0 : index
    %1522 = vector.load %arg17[%c0_300, %c0_301] : memref<1x8xf32, #tpu.memory_space<vmem>>, vector<1x8xf32>
    %1523 = vector.broadcast %1522 : vector<1x8xf32> to vector<16x8xf32>
    %1524 = arith.addf %1521, %1523 : vector<16x8xf32>
    %c0_302 = arith.constant 0 : index
    %c0_303 = arith.constant 0 : index
    %1525 = vector.load %arg19[%c0_302, %c0_303] : memref<16x1xf32, #tpu.memory_space<vmem>>, vector<16x1xf32>
    %cst_304 = arith.constant 1.000000e+00 : f32
    %1526 = vector.broadcast %cst_304 : f32 to vector<16x1xf32>
    %1527 = arith.subf %1526, %1525 : vector<16x1xf32>
    %cst_305 = arith.constant -1.000000e+32 : f32
    %1528 = vector.broadcast %cst_305 : f32 to vector<16x1xf32>
    %1529 = arith.mulf %1527, %1528 : vector<16x1xf32>
    %1530 = vector.broadcast %1529 : vector<16x1xf32> to vector<16x8xf32>
    %1531 = arith.addf %1524, %1530 : vector<16x8xf32>
    %cst_306 = arith.constant dense<0xFF800000> : vector<16xf32>
    %1532 = vector.multi_reduction <maximumf>, %1531, %cst_306 [1] : vector<16x8xf32> to vector<16xf32>
    %1533 = vector.shape_cast %1532 : vector<16xf32> to vector<16x1xf32>
    %1534 = vector.broadcast %1533 : vector<16x1xf32> to vector<16x8xf32>
    %1535 = arith.subf %1531, %1534 : vector<16x8xf32>
    %1536 = math.exp %1535 : vector<16x8xf32>
    %cst_307 = arith.constant dense<0.000000e+00> : vector<16xf32>
    %1537 = vector.multi_reduction <add>, %1536, %cst_307 [1] : vector<16x8xf32> to vector<16xf32>
    %1538 = vector.shape_cast %1537 : vector<16xf32> to vector<16x1xf32>
    %1539 = vector.broadcast %1538 : vector<16x1xf32> to vector<16x8xf32>
    %1540 = arith.divf %1536, %1539 : vector<16x8xf32>
    %c0_308 = arith.constant 0 : index
    %c0_309 = arith.constant 0 : index
    %1541 = vector.load %arg21[%c0_308, %c0_309] : memref<16x8xf32, #tpu.memory_space<vmem>>, vector<16x8xf32>
    tpu.vector_store %arg21[%c0_308, %c0_309], %1540 {strides = array<i32>} : memref<16x8xf32, #tpu.memory_space<vmem>>, vector<16x8xf32>,
    %1542 = math.log %1538 : vector<16x1xf32>
    %1543 = arith.addf %1542, %1533 : vector<16x1xf32>
    %c0_310 = arith.constant 0 : index
    %c0_311 = arith.constant 0 : index
    %1544 = vector.load %arg20[%c0_310, %c0_311] : memref<16x1xi32, #tpu.memory_space<vmem>>, vector<16x1xi32>
    %1545 = tpu.iota {dimensions = array<i32: 1>} : vector<16x8xi32>
    %1546 = vector.broadcast %1544 : vector<16x1xi32> to vector<16x8xi32>
    %1547 = arith.cmpi eq, %1545, %1546 : vector<16x8xi32>
    %cst_312 = arith.constant 0.000000e+00 : f32
    %1548 = vector.broadcast %cst_312 : f32 to vector<16x8xf32>
    %1549 = arith.select %1547, %1531, %1548 : vector<16x8xi1>, vector<16x8xf32>
    %cst_313 = arith.constant dense<0.000000e+00> : vector<16xf32>
    %1550 = vector.multi_reduction <add>, %1549, %cst_313 [1] : vector<16x8xf32> to vector<16xf32>
    %1551 = vector.shape_cast %1550 : vector<16xf32> to vector<16x1xf32>
    %c0_i32 = arith.constant 0 : i32
    %1552 = vector.broadcast %c0_i32 : i32 to vector<16x1xi32>
    %1553 = arith.cmpi ne, %1544, %1552 : vector<16x1xi32>
    %1554 = arith.extui %1553 : vector<16x1xi1> to vector<16x1xi32>
    %1555 = arith.sitofp %1554 : vector<16x1xi32> to vector<16x1xf32>
    %1556 = arith.subf %1543, %1551 : vector<16x1xf32>
    %1557 = arith.mulf %1556, %1555 : vector<16x1xf32>
    %1558 = vector.shape_cast %1557 : vector<16x1xf32> to vector<1x16x1xf32>
    %cst_314 = arith.constant dense<0.000000e+00> : vector<1xf32>
    %1559 = vector.multi_reduction <add>, %1558, %cst_314 [1, 2] : vector<1x16x1xf32> to vector<1xf32>
    %1560 = vector.shape_cast %1559 : vector<1xf32> to vector<1x1x1xf32>
    %1561 = vector.extract %1560[0, 0, 0] : f32 from vector<1x1x1xf32>
    %1562 = vector.broadcast %1561 : f32 to vector<1x1xf32>
    %c0_315 = arith.constant 0 : index
    %c0_316 = arith.constant 0 : index
    %1563 = vector.load %arg22[%c0_315, %c0_316] : memref<1x1xf32, #tpu.memory_space<vmem>>, vector<1x1xf32>
    tpu.vector_store %arg22[%c0_315, %c0_316], %1562 {strides = array<i32>} : memref<1x1xf32, #tpu.memory_space<vmem>>, vector<1x1xf32>,
    %1564 = vector.shape_cast %1555 : vector<16x1xf32> to vector<1x16x1xf32>
    %cst_317 = arith.constant dense<0.000000e+00> : vector<1xf32>
    %1565 = vector.multi_reduction <add>, %1564, %cst_317 [1, 2] : vector<1x16x1xf32> to vector<1xf32>
    %1566 = vector.shape_cast %1565 : vector<1xf32> to vector<1x1x1xf32>
    %1567 = vector.extract %1566[0, 0, 0] : f32 from vector<1x1x1xf32>
    %1568 = vector.broadcast %1567 : f32 to vector<1x1xf32>
    %c0_318 = arith.constant 0 : index
    %c0_319 = arith.constant 0 : index
    %1569 = vector.load %arg23[%c0_318, %c0_319] : memref<1x1xf32, #tpu.memory_space<vmem>>, vector<1x1xf32>
    tpu.vector_store %arg23[%c0_318, %c0_319], %1568 {strides = array<i32>} : memref<1x1xf32, #tpu.memory_space<vmem>>, vector<1x1xf32>,
    return
  }
  func.func @transform_0(%arg0: i32) -> (i32, i32) {
    %c0_i32 = arith.constant 0 : i32
    %c0_i32_0 = arith.constant 0 : i32
    %c0_i32_1 = arith.constant 0 : i32
    return %c0_i32, %c0_i32_0 : i32, i32
  }
  func.func @transform_1(%arg0: i32) -> (i32, i32, i32) {
    %c0_i32 = arith.constant 0 : i32
    %c0_i32_0 = arith.constant 0 : i32
    %c0_i32_1 = arith.constant 0 : i32
    %c0_i32_2 = arith.constant 0 : i32
    return %c0_i32, %c0_i32_0, %c0_i32_1 : i32, i32, i32
  }
  func.func @transform_2(%arg0: i32) -> (i32, i32, i32) {
    %c0_i32 = arith.constant 0 : i32
    %c0_i32_0 = arith.constant 0 : i32
    %c0_i32_1 = arith.constant 0 : i32
    %c0_i32_2 = arith.constant 0 : i32
    return %c0_i32, %c0_i32_0, %c0_i32_1 : i32, i32, i32
  }
  func.func @transform_3(%arg0: i32) -> (i32, i32, i32) {
    %c0_i32 = arith.constant 0 : i32
    %c0_i32_0 = arith.constant 0 : i32
    %c0_i32_1 = arith.constant 0 : i32
    %c0_i32_2 = arith.constant 0 : i32
    return %c0_i32, %c0_i32_0, %c0_i32_1 : i32, i32, i32
  }
  func.func @transform_4(%arg0: i32) -> (i32, i32, i32) {
    %c0_i32 = arith.constant 0 : i32
    %c0_i32_0 = arith.constant 0 : i32
    %c0_i32_1 = arith.constant 0 : i32
    %c0_i32_2 = arith.constant 0 : i32
    return %c0_i32, %c0_i32_0, %c0_i32_1 : i32, i32, i32
  }
  func.func @transform_5(%arg0: i32) -> (i32, i32, i32) {
    %c0_i32 = arith.constant 0 : i32
    %c0_i32_0 = arith.constant 0 : i32
    %c0_i32_1 = arith.constant 0 : i32
    %c0_i32_2 = arith.constant 0 : i32
    return %c0_i32, %c0_i32_0, %c0_i32_1 : i32, i32, i32
  }
  func.func @transform_6(%arg0: i32) -> (i32, i32, i32) {
    %c0_i32 = arith.constant 0 : i32
    %c0_i32_0 = arith.constant 0 : i32
    %c0_i32_1 = arith.constant 0 : i32
    %c0_i32_2 = arith.constant 0 : i32
    return %c0_i32, %c0_i32_0, %c0_i32_1 : i32, i32, i32
  }
  func.func @transform_7(%arg0: i32) -> (i32, i32) {
    %c0_i32 = arith.constant 0 : i32
    %c0_i32_0 = arith.constant 0 : i32
    %c0_i32_1 = arith.constant 0 : i32
    return %c0_i32, %c0_i32_0 : i32, i32
  }
  func.func @transform_8(%arg0: i32) -> (i32, i32) {
    %c0_i32 = arith.constant 0 : i32
    %c0_i32_0 = arith.constant 0 : i32
    %c0_i32_1 = arith.constant 0 : i32
    return %c0_i32, %c0_i32_0 : i32, i32
  }
  func.func @transform_9(%arg0: i32) -> (i32, i32) {
    %c0_i32 = arith.constant 0 : i32
    %c0_i32_0 = arith.constant 0 : i32
    %c0_i32_1 = arith.constant 0 : i32
    return %c0_i32, %c0_i32_0 : i32, i32
  }
  func.func @transform_10(%arg0: i32) -> (i32, i32) {
    %c0_i32 = arith.constant 0 : i32
    %c0_i32_0 = arith.constant 0 : i32
    %c0_i32_1 = arith.constant 0 : i32
    return %c0_i32, %c0_i32_0 : i32, i32
  }
  func.func @transform_11(%arg0: i32) -> (i32, i32) {
    %c0_i32 = arith.constant 0 : i32
    %c0_i32_0 = arith.constant 0 : i32
    %c0_i32_1 = arith.constant 0 : i32
    return %c0_i32, %c0_i32_0 : i32, i32
  }
  func.func @transform_12(%arg0: i32) -> (i32, i32) {
    %c0_i32 = arith.constant 0 : i32
    %c0_i32_0 = arith.constant 0 : i32
    %c0_i32_1 = arith.constant 0 : i32
    return %c0_i32, %c0_i32_0 : i32, i32
  }
  func.func @transform_13(%arg0: i32) -> (i32, i32) {
    %c0_i32 = arith.constant 0 : i32
    %c0_i32_0 = arith.constant 0 : i32
    %c0_i32_1 = arith.constant 0 : i32
    return %c0_i32, %c0_i32_0 : i32, i32
  }
  func.func @transform_14(%arg0: i32) -> (i32, i32) {
    %c0_i32 = arith.constant 0 : i32
    %c0_i32_0 = arith.constant 0 : i32
    %c0_i32_1 = arith.constant 0 : i32
    return %c0_i32, %c0_i32_0 : i32, i32
  }
  func.func @transform_15(%arg0: i32) -> (i32, i32) {
    %c0_i32 = arith.constant 0 : i32
    %c0_i32_0 = arith.constant 0 : i32
    %c0_i32_1 = arith.constant 0 : i32
    return %c0_i32, %c0_i32_0 : i32, i32
  }
  func.func @transform_16(%arg0: i32) -> (i32, i32) {
    %c0_i32 = arith.constant 0 : i32
    %c0_i32_0 = arith.constant 0 : i32
    %c0_i32_1 = arith.constant 0 : i32
    return %c0_i32, %c0_i32_0 : i32, i32
  }
  func.func @transform_17(%arg0: i32) -> (i32, i32) {
    %c0_i32 = arith.constant 0 : i32
    %c0_i32_0 = arith.constant 0 : i32
    %c0_i32_1 = arith.constant 0 : i32
    return %c0_i32, %c0_i32_0 : i32, i32
  }
  func.func @transform_18(%arg0: i32) -> (i32, i32) {
    %c0_i32 = arith.constant 0 : i32
    %c0_i32_0 = arith.constant 0 : i32
    %c0_i32_1 = arith.constant 0 : i32
    return %c0_i32, %c0_i32_0 : i32, i32
  }
  func.func @transform_19(%arg0: i32) -> (i32, i32) {
    %c0_i32 = arith.constant 0 : i32
    %c0_i32_0 = arith.constant 0 : i32
    %c0_i32_1 = arith.constant 0 : i32
    return %c0_i32, %c0_i32_0 : i32, i32
  }
  func.func @transform_20(%arg0: i32) -> (i32, i32) {
    %c0_i32 = arith.constant 0 : i32
    %c0_i32_0 = arith.constant 0 : i32
    %c0_i32_1 = arith.constant 0 : i32
    return %c0_i32, %c0_i32_0 : i32, i32
  }
  func.func @transform_21(%arg0: i32) -> (i32, i32) {
    %c0_i32 = arith.constant 0 : i32
    %c0_i32_0 = arith.constant 0 : i32
    %c0_i32_1 = arith.constant 0 : i32
    return %c0_i32, %c0_i32_0 : i32, i32
  }
  func.func @transform_22(%arg0: i32) -> (i32, i32) {
    %c0_i32 = arith.constant 0 : i32
    %c0_i32_0 = arith.constant 0 : i32
    %c0_i32_1 = arith.constant 0 : i32
    return %c0_i32, %c0_i32_0 : i32, i32
  }
}

</mosaic_0001>

<bundles_post_ra>
// kernel: tpu_custom_call.1
= control target key start
LH: loop header
LB: loop body
LE: loop exit
PB: predicated region body
PF: predicated region fallthrough
CT: control target
= control target key end

     0   :  { %s13086_s0 = inlined_call_operand.hbm [shape: f32[16,32], index: 0, kind: input, shape index: {}]   ;;  %s13087_s1 = inlined_call_operand.hbm [shape: bf16[4,32,128], index: 1, kind: input, shape index: {}]   ;;  %s13088_s2 = inlined_call_operand.hbm [shape: bf16[4,32,128], index: 2, kind: input, shape index: {}]   ;;  %s13089_s3 = inlined_call_operand.hbm [shape: f32[4,1,128], index: 3, kind: input, shape index: {}]   ;;  %s13090_s4 = inlined_call_operand.vmem [shape: bf16[4,32,128], index: 4, kind: input, shape index: {}]   ;;  %s13091_s5 = inlined_call_operand.hbm [shape: bf16[4,32,128], index: 5, kind: input, shape index: {}]   ;;  %s13092_s6 = inlined_call_operand.hbm [shape: f32[4,1,128], index: 6, kind: input, shape index: {}]   ;;  %s13093_s7 = inlined_call_operand.hbm [shape: f32[1,32], index: 7, kind: input, shape index: {}]   ;;  %s13094_s8 = inlined_call_operand.vmem [shape: f32[1,32], index: 8, kind: input, shape index: {}]   ;;  %s13095_s9 = inlined_call_operand.vmem [shape: bf16[32,32], index: 9, kind: input, shape index: {}]   ;;  %s13096_s10 = inlined_call_operand.vmem [shape: f32[1,32], index: 10, kind: input, shape index: {}]   ;;  %s13097_s11 = inlined_call_operand.hbm [shape: bf16[32,32], index: 11, kind: input, shape index: {}]   ;;  %s13098_s12 = inlined_call_operand.hbm [shape: f32[1,32], index: 12, kind: input, shape index: {}]   ;;  %s13099_s13 = inlined_call_operand.vmem [shape: bf16[32,32], index: 13, kind: input, shape index: {}]   ;;  %s13100_s14 = inlined_call_operand.hbm [shape: f32[1,32], index: 14, kind: input, shape index: {}]   ;;  %s13101_s15 = inlined_call_operand.vmem [shape: bf16[32,8], index: 15, kind: input, shape index: {}]   ;;  %s13102_s16 = inlined_call_operand.hbm [shape: f32[1,8], index: 16, kind: input, shape index: {}]   ;;  %s13103_s17 = inlined_call_operand.vmem [shape: f32[16,16], index: 17, kind: input, shape index: {}]   ;;  %s13104_s18 = inlined_call_operand.vmem [shape: f32[16,1], index: 18, kind: input, shape index: {}]   ;;  %s13105_s19 = inlined_call_operand.vmem [shape: s32[16,1], index: 19, kind: input, shape index: {}]   ;;  %s13106_s20 = inlined_call_operand.vmem [shape: f32[16,8], index: 20, kind: output, shape index: {0}]   ;;  %s13107_s21 = inlined_call_operand.hbm [shape: f32[1,1], index: 21, kind: output, shape index: {1}]   ;;  %s13108_s22 = inlined_call_operand.hbm [shape: f32[1,1], index: 22, kind: output, shape index: {2}]  }
   0x1   :  { %13123 = sst [smem:[#allocation32_spill]] %s13086_s0 }
   0x2   :  { %13124 = sst [smem:[#allocation33_spill]] %s13087_s1 }
   0x3   :  { %13125 = sst [smem:[#allocation34_spill]] %s13088_s2 }
   0x4   :  { %13126 = sst [smem:[#allocation35_spill]] %s13089_s3 }
   0x5   :  { %13127 = sst [smem:[#allocation36_spill]] %s13090_s4 }
   0x6   :  { %13128 = sst [smem:[#allocation37_spill]] %s13091_s5 }
   0x7   :  { %13129 = sst [smem:[#allocation38_spill]] %s13092_s6 }
   0x8   :  { %13130 = sst [smem:[#allocation39_spill]] %s13106_s20 }
   0x9   :  { %13131 = sst [smem:[#allocation40_spill]] %s13107_s21 }
   0xa   :  { %13132 = sst [smem:[#allocation41_spill]] %s13108_s22 }
   0xb   :  { %28 = vsyncpa [#allocation4], 0 }
   0xc   :  { %29 = vsyncpa [#allocation7], 0 }
   0xd   :  { %30 = vsyncpa [#allocation10], 0 }
   0xe   :  { %31 = vsyncpa [#allocation13], 0 }
   0xf   :  { %32 = vsyncpa [#allocation16], 0 }
  0x10   :  { %33 = vsyncpa [#allocation19], 0 }
  0x11   :  { %34 = vsyncpa [#allocation5], 0 }
  0x12   :  { %35 = vsyncpa [#allocation23], 0  ;;  %s10735_s3 = smov [#allocation6]   ;;  %s13133_s4 = sld [smem:[#allocation33_spill]] }
  0x13   :  { %s53_s28 = sshll.u32 %s10735_s3, 4  ;;  %s54_s28 = int_to_ptr.vmem [resolvable:$true] %s53_s28 }
  0x18   :  { %s10433_s0 = scalar_lea.hbm %s13133_s4, 1024 }
  0x19   :  { %p10434_p0 = scmp.ne.s32.totalorder %s13133_s4, %s10433_s0  ;;  %p10437_p1 = scmp.lt.u32.totalorder %s10433_s0, %s13133_s4 }
  0x1b   :  { %p10439_p2 = pnand %p10437_p1, %p10434_p0 }
  0x1d   :  { %10442 = shalt.err (!%p10439_p2)
}
  0x1e   :  { %s10443_s6 = scalar_lea.vmem %s54_s28, 1024  ;;  %p10448_p4 = scmp.lt.s32.totalorder %s54_s28, %s54_s28 }
  0x1f   :  { %p10444_p3 = scmp.ne.s32.totalorder %s54_s28, %s10443_s6  ;;  %p10449_p5 = scmp.lt.s32.totalorder %s10443_s6, %s10443_s6 }
  0x21   :  { %p10450_p6 = por %p10449_p5, %p10448_p4 }
  0x23   :  { %p10451_p7 = pnand %p10450_p6, %p10444_p3 }
  0x25   :  { %10454 = shalt.err (!%p10451_p7)
}
  0x26   :  { %s13118_s25 = smov 64   ;;  %s13120_s26 = smov 4  }
  0x27   :  { %59 = dma.hbm_to_vmem [thread:$0]  %s13133_s4, 1024, %s54_s28, [#allocation7], %s13118_s25, %s13118_s25, %s13120_s26  }
  0x28   :  { %s10738_s3 = smov [#allocation9]   ;;  %s13134_s23 = sld [smem:[#allocation35_spill]] }
  0x29   :  { %s77_s29 = sshll.u32 %s10738_s3, 4  ;;  %s78_s29 = int_to_ptr.vmem [resolvable:$true] %s77_s29 }
  0x2e   :  { %s10455_s1 = scalar_lea.hbm %s13134_s23, 64 }
  0x2f   :  { %p10456_p8 = scmp.ne.s32.totalorder %s13134_s23, %s10455_s1  ;;  %p10459_p9 = scmp.lt.u32.totalorder %s10455_s1, %s13134_s23 }
  0x31   :  { %p10461_p10 = pnand %p10459_p9, %p10456_p8 }
  0x33   :  { %10464 = shalt.err (!%p10461_p10)
}
  0x34   :  { %s10465_s21 = scalar_lea.vmem %s78_s29, 64  ;;  %p10470_p12 = scmp.lt.s32.totalorder %s78_s29, %s78_s29 }
  0x35   :  { %p10466_p11 = scmp.ne.s32.totalorder %s78_s29, %s10465_s21  ;;  %p10471_p13 = scmp.lt.s32.totalorder %s10465_s21, %s10465_s21 }
  0x37   :  { %p10472_p0 = por %p10471_p13, %p10470_p12 }
  0x39   :  { %p10473_p1 = pnand %p10472_p0, %p10466_p11 }
  0x3b   :  { %10476 = shalt.err (!%p10473_p1)
}
  0x3c   :  { %s10739_s28 = smov 16   ;;  %s10740_s4 = smov 1  }
  0x3d   :  { %83 = dma.hbm_to_vmem [thread:$0]  %s13134_s23, 64, %s78_s29, [#allocation10], %s10739_s28, %s10739_s28, %s10740_s4  }
  0x3e   :  { %s10741_s3 = smov [#allocation12]   ;;  %s10742_s0 = smov [#allocation15]  }
  0x3f   :  { %s103_s30 = sshll.u32 %s10741_s3, 4  ;;  %s131_s22 = sshll.u32 %s10742_s0, 4  ;;  %s104_s30 = int_to_ptr.vmem [resolvable:$true] %s103_s30  ;;  %s10900_s22 = int_to_ptr.vmem [resolvable:$true] %s131_s22 }
  0x40   :  { %s13135_s24 = sld [smem:[#allocation38_spill]] }
  0x46   :  { %s10477_s21 = scalar_lea.hbm %s13135_s24, 64 }
  0x47   :  { %p10478_p2 = scmp.ne.s32.totalorder %s13135_s24, %s10477_s21  ;;  %p10481_p3 = scmp.lt.u32.totalorder %s10477_s21, %s13135_s24 }
  0x49   :  { %p10483_p4 = pnand %p10481_p3, %p10478_p2 }
  0x4b   :  { %10486 = shalt.err (!%p10483_p4)
}
  0x4c   :  { %s10487_s29 = scalar_lea.vmem %s104_s30, 64  ;;  %p10492_p6 = scmp.lt.s32.totalorder %s104_s30, %s104_s30 }
  0x4d   :  { %p10488_p5 = scmp.ne.s32.totalorder %s104_s30, %s10487_s29  ;;  %p10493_p7 = scmp.lt.s32.totalorder %s10487_s29, %s10487_s29 }
  0x4f   :  { %p10494_p8 = por %p10493_p7, %p10492_p6 }
  0x51   :  { %p10495_p9 = pnand %p10494_p8, %p10488_p5 }
  0x53   :  { %10498 = shalt.err (!%p10495_p9)
}
  0x54   :  { %109 = dma.hbm_to_vmem [thread:$0]  %s13135_s24, 64, %s104_s30, [#allocation13], %s10739_s28, %s10739_s28, %s10740_s4  }
  0x55   :  { %s10499_s3 = scalar_lea.hbm %s13097_s11, 256 }
  0x56   :  { %p10500_p10 = scmp.ne.s32.totalorder %s13097_s11, %s10499_s3  ;;  %p10503_p11 = scmp.lt.u32.totalorder %s10499_s3, %s13097_s11 }
  0x58   :  { %p10505_p12 = pnand %p10503_p11, %p10500_p10 }
  0x5a   :  { %10508 = shalt.err (!%p10505_p12)
}
  0x5b   :  { %s10509_s5 = scalar_lea.vmem %s10900_s22, 256  ;;  %p10514_p0 = scmp.lt.s32.totalorder %s10900_s22, %s10900_s22 }
  0x5c   :  { %p10510_p13 = scmp.ne.s32.totalorder %s10900_s22, %s10509_s5  ;;  %p10515_p1 = scmp.lt.s32.totalorder %s10509_s5, %s10509_s5 }
  0x5e   :  { %p10516_p2 = por %p10515_p1, %p10514_p0 }
  0x60   :  { %p10517_p3 = pnand %p10516_p2, %p10510_p13 }
  0x62   :  { %10520 = shalt.err (!%p10517_p3)
}
  0x63   :  { %s13136_s28 = smov 4   ;;  %s13137_s4 = smov 64  }
  0x64   :  { %137 = dma.hbm_to_vmem [thread:$0]  %s13097_s11, 256, %s10900_s22, [#allocation16], %s13137_s4, %s13137_s4, %s13136_s28  }
  0x65   :  { %s10743_s21 = smov [#allocation18]   ;;  %s10744_s29 = smov [#allocation3]  }
  0x66   :  { %s156_s6 = sshll.u32 %s10743_s21, 4  ;;  %s41_s23 = sshll.u32 %s10744_s29, 4  ;;  %s157_s6 = int_to_ptr.vmem [resolvable:$true] %s156_s6  ;;  %s10934_s23 = int_to_ptr.vmem [resolvable:$true] %s41_s23 }
  0x67   :  { %s10521_s25 = scalar_lea.hbm %s13100_s14, 16 }
  0x68   :  { %p10522_p4 = scmp.ne.s32.totalorder %s13100_s14, %s10521_s25  ;;  %p10525_p5 = scmp.lt.u32.totalorder %s10521_s25, %s13100_s14 }
  0x6a   :  { %p10527_p6 = pnand %p10525_p5, %p10522_p4 }
  0x6c   :  { %10530 = shalt.err (!%p10527_p6)
}
  0x6d   :  { %s10531_s11 = scalar_lea.vmem %s157_s6, 16  ;;  %s10535_s22 = scalar_lea.vmem %s157_s6, 32 }
  0x6e   :  { %p10532_p7 = scmp.ne.s32.totalorder %s157_s6, %s10531_s11  ;;  %p10536_p8 = scmp.lt.s32.totalorder %s157_s6, %s157_s6 }
  0x6f   :  { %p10537_p9 = scmp.lt.s32.totalorder %s10535_s22, %s10531_s11 }
  0x71   :  { %p10538_p10 = por %p10537_p9, %p10536_p8 }
  0x73   :  { %p10539_p11 = pnand %p10538_p10, %p10532_p7 }
  0x75   :  { %10542 = shalt.err (!%p10539_p11)
}
  0x76   :  { %159 = dma.hbm_to_vmem [thread:$0]  %s13100_s14, 16, %s157_s6, [#allocation19]  }
  0x77   :  { %s13138_s21 = sld [smem:[#allocation32_spill]] }
  0x7d   :  { %s10543_s29 = scalar_lea.hbm %s13138_s21, 256 }
  0x7e   :  { %p10544_p12 = scmp.ne.s32.totalorder %s13138_s21, %s10543_s29  ;;  %p10547_p13 = scmp.lt.u32.totalorder %s10543_s29, %s13138_s21 }
  0x80   :  { %p10549_p0 = pnand %p10547_p13, %p10544_p12 }
  0x82   :  { %10552 = shalt.err (!%p10549_p0)
}
  0x83   :  { %s10553_s0 = scalar_lea.vmem %s10934_s23, 256  ;;  %p10558_p2 = scmp.lt.s32.totalorder %s10934_s23, %s10934_s23 }
  0x84   :  { %p10554_p1 = scmp.ne.s32.totalorder %s10934_s23, %s10553_s0  ;;  %p10559_p3 = scmp.lt.s32.totalorder %s10553_s0, %s10553_s0 }
  0x86   :  { %p10560_p4 = por %p10559_p3, %p10558_p2 }
  0x88   :  { %p10561_p5 = pnand %p10560_p4, %p10554_p1 }
  0x8a   :  { %10564 = shalt.err (!%p10561_p5)
}
  0x8b   :  { %s10745_s14 = smov 128   ;;  %s10746_s6 = smov 8  }
  0x8c   :  { %47 = dma.hbm_to_vmem [thread:$0]  %s13138_s21, 256, %s10934_s23, [#allocation4], %s10745_s14, %s10745_s14, %s10746_s6  }
  0x8d   :  { %s10747_s11 = smov [#allocation8]   ;;  %s10748_s1 = smov [#allocation11]  }
  0x8e   :  { %s65_s22 = sshll.u32 %s10747_s11, 4  ;;  %s91_s5 = sshll.u32 %s10748_s1, 4  ;;  %s66_s22 = int_to_ptr.vmem [resolvable:$true] %s65_s22  ;;  %s10965_s5 = int_to_ptr.vmem [resolvable:$true] %s91_s5 }
  0x8f   :  { %s13139_s29 = sld [smem:[#allocation34_spill]] }
  0x95   :  { %s10565_s2 = scalar_lea.hbm %s13139_s29, 1024 }
  0x96   :  { %p10566_p6 = scmp.ne.s32.totalorder %s13139_s29, %s10565_s2  ;;  %p10569_p7 = scmp.lt.u32.totalorder %s10565_s2, %s13139_s29 }
  0x98   :  { %p10571_p8 = pnand %p10569_p7, %p10566_p6 }
  0x9a   :  { %10574 = shalt.err (!%p10571_p8)
}
  0x9b   :  { %s10575_s23 = scalar_lea.vmem %s66_s22, 1024  ;;  %p10580_p10 = scmp.lt.s32.totalorder %s66_s22, %s66_s22 }
  0x9c   :  { %p10576_p9 = scmp.ne.s32.totalorder %s66_s22, %s10575_s23  ;;  %p10581_p11 = scmp.lt.s32.totalorder %s10575_s23, %s10575_s23 }
  0x9e   :  { %p10582_p12 = por %p10581_p11, %p10580_p10 }
  0xa0   :  { %p10583_p13 = pnand %p10582_p12, %p10576_p9 }
  0xa2   :  { %10586 = shalt.err (!%p10583_p13)
}
  0xa3   :  { %71 = dma.hbm_to_vmem [thread:$0]  %s13139_s29, 1024, %s66_s22, [#allocation7], %s13137_s4, %s13137_s4, %s13136_s28  }
  0xa4   :  { %s13140_s26 = sld [smem:[#allocation37_spill]] }
  0xaa   :  { %s10587_s11 = scalar_lea.hbm %s13140_s26, 1024 }
  0xab   :  { %p10588_p0 = scmp.ne.s32.totalorder %s13140_s26, %s10587_s11  ;;  %p10591_p1 = scmp.lt.u32.totalorder %s10587_s11, %s13140_s26 }
  0xad   :  { %p10593_p2 = pnand %p10591_p1, %p10588_p0 }
  0xaf   :  { %10596 = shalt.err (!%p10593_p2)
}
  0xb0   :  { %s10597_s27 = scalar_lea.vmem %s10965_s5, 1024  ;;  %p10602_p4 = scmp.lt.s32.totalorder %s10965_s5, %s10965_s5 }
  0xb1   :  { %p10598_p3 = scmp.ne.s32.totalorder %s10965_s5, %s10597_s27  ;;  %p10603_p5 = scmp.lt.s32.totalorder %s10597_s27, %s10597_s27 }
  0xb3   :  { %p10604_p6 = por %p10603_p5, %p10602_p4 }
  0xb5   :  { %p10605_p7 = pnand %p10604_p6, %p10598_p3 }
  0xb7   :  { %10608 = shalt.err (!%p10605_p7)
}
  0xb8   :  { %97 = dma.hbm_to_vmem [thread:$0]  %s13140_s26, 1024, %s10965_s5, [#allocation10], %s13137_s4, %s13137_s4, %s13136_s28  }
  0xb9   :  { %s10749_s25 = smov [#allocation14]   ;;  %s10750_s0 = smov [#allocation17]  }
  0xba   :  { %s116_s3 = sshll.u32 %s10749_s25, 4  ;;  %s144_s23 = sshll.u32 %s10750_s0, 4  ;;  %s117_s3 = int_to_ptr.vmem [resolvable:$true] %s116_s3  ;;  %s145_s23 = int_to_ptr.vmem [resolvable:$true] %s144_s23 }
  0xbb   :  { %s10609_s6 = scalar_lea.hbm %s13093_s7, 16 }
  0xbc   :  { %p10610_p8 = scmp.ne.s32.totalorder %s13093_s7, %s10609_s6  ;;  %p10613_p9 = scmp.lt.u32.totalorder %s10609_s6, %s13093_s7 }
  0xbe   :  { %p10615_p10 = pnand %p10613_p9, %p10610_p8 }
  0xc0   :  { %10618 = shalt.err (!%p10615_p10)
}
  0xc1   :  { %s10619_s28 = scalar_lea.vmem %s117_s3, 16  ;;  %s10623_s5 = scalar_lea.vmem %s117_s3, 32 }
  0xc2   :  { %p10620_p11 = scmp.ne.s32.totalorder %s117_s3, %s10619_s28  ;;  %p10624_p12 = scmp.lt.s32.totalorder %s117_s3, %s117_s3 }
  0xc3   :  { %p10625_p13 = scmp.lt.s32.totalorder %s10623_s5, %s10619_s28 }
  0xc5   :  { %p10626_p0 = por %p10625_p13, %p10624_p12 }
  0xc7   :  { %p10627_p1 = pnand %p10626_p0, %p10620_p11 }
  0xc9   :  { %10630 = shalt.err (!%p10627_p1)
}
  0xca   :  { %119 = dma.hbm_to_vmem [thread:$0]  %s13093_s7, 16, %s117_s3, [#allocation13]  }
  0xcb   :  { %s10631_s22 = scalar_lea.hbm %s13098_s12, 16 }
  0xcc   :  { %p10632_p2 = scmp.ne.s32.totalorder %s13098_s12, %s10631_s22  ;;  %p10635_p3 = scmp.lt.u32.totalorder %s10631_s22, %s13098_s12 }
  0xce   :  { %p10637_p4 = pnand %p10635_p3, %p10632_p2 }
  0xd0   :  { %10640 = shalt.err (!%p10637_p4)
}
  0xd1   :  { %s10641_s14 = scalar_lea.vmem %s145_s23, 16  ;;  %s10645_s6 = scalar_lea.vmem %s145_s23, 32 }
  0xd2   :  { %p10642_p5 = scmp.ne.s32.totalorder %s145_s23, %s10641_s14  ;;  %p10646_p6 = scmp.lt.s32.totalorder %s145_s23, %s145_s23 }
  0xd3   :  { %p10647_p7 = scmp.lt.s32.totalorder %s10645_s6, %s10641_s14 }
  0xd5   :  { %p10648_p8 = por %p10647_p7, %p10646_p6 }
  0xd7   :  { %p10649_p9 = pnand %p10648_p8, %p10642_p5 }
  0xd9   :  { %10652 = shalt.err (!%p10649_p9)
}
  0xda   :  { %147 = dma.hbm_to_vmem [thread:$0]  %s13098_s12, 16, %s145_s23, [#allocation16]  }
  0xdb   :  { %s10751_s20 = smov [#allocation20]   ;;  %s10653_s28 = scalar_lea.hbm %s13102_s16, 16 }
  0xdc   :  { %s168_s11 = sshll.u32 %s10751_s20, 4  ;;  %p10654_p10 = scmp.ne.s32.totalorder %s13102_s16, %s10653_s28  ;;  %s169_s11 = int_to_ptr.vmem [resolvable:$true] %s168_s11 }
  0xdd   :  { %p10657_p11 = scmp.lt.u32.totalorder %s10653_s28, %s13102_s16 }
  0xdf   :  { %p10659_p12 = pnand %p10657_p11, %p10654_p10 }
  0xe1   :  { %10662 = shalt.err (!%p10659_p12)
}
  0xe2   :  { %s10663_s27 = scalar_lea.vmem %s169_s11, 16  ;;  %s10667_s12 = scalar_lea.vmem %s169_s11, 32 }
  0xe3   :  { %p10664_p13 = scmp.ne.s32.totalorder %s169_s11, %s10663_s27  ;;  %p10668_p0 = scmp.lt.s32.totalorder %s169_s11, %s169_s11 }
  0xe4   :  { %p10669_p1 = scmp.lt.s32.totalorder %s10667_s12, %s10663_s27 }
  0xe6   :  { %p10670_p2 = por %p10669_p1, %p10668_p0 }
  0xe8   :  { %p10671_p3 = pnand %p10670_p2, %p10664_p13 }
  0xea   :  { %10674 = shalt.err (!%p10671_p3)
}
  0xeb   :  { %171 = dma.hbm_to_vmem [thread:$0]  %s13102_s16, 16, %s169_s11, [#allocation19]  }
  0xec   :  { %10719 = dma.done.wait [#allocation4], 256  }
  0xed   :  { %10720 = vsyncadd [#allocation4], 4294967040 }
  0xee   :  { %10721 = dma.done.wait [#allocation7], 2048  }
  0xef   :  { %10722 = vsyncadd [#allocation7], 4294965248 }
  0xf0   :  { %10723 = dma.done.wait [#allocation10], 1088  }
  0xf1   :  { %10724 = vsyncadd [#allocation10], 4294966208 }
  0xf2   :  { %10725 = dma.done.wait [#allocation13], 80  }
  0xf3   :  { %10726 = vsyncadd [#allocation13], 4294967216 }
  0xf4   :  { %10727 = dma.done.wait [#allocation16], 272  }
  0xf5   :  { %10728 = vsyncadd [#allocation16], 4294967024 }
  0xf6   :  { %10729 = dma.done.wait [#allocation19], 32  }
  0xf7   :  { %10730 = vsyncadd [#allocation19], 4294967264  ;;  %v10752_v0 = vmov 0.0   ;;  %vm10753_vm0 = vmmov 0   ;;  %v10754_v1 = vmov 0   ;;  %v9784_v2 = vld [vmem:[#allocation6] sm:$0xff]  }
  0xf8   :  { %8743 = vmatprep.subr.bf16.mxu0 %v10752_v0  ;;  %8751 = vmatprep.subr.bf16.mxu1 %v10752_v0  ;;  %v11046_v3 = vld [vmem:[#allocation8] sm:$0xff]   ;;  %v9786_v4 = vld [vmem:[#allocation6 + $0x8] sm:$0xff]   ;;  %v302_v6 = vld [vmem:[#allocation3] sm:$0xff]  ;;  %vm317_vm1 = vcmask 261120   ;;  %s10755_s16 = smov 32   ;;  %s13141_s0 = sld [smem:[#allocation36_spill]] }
  0xf9   :  { %8747 = vmatprep.mubr.msk.bf16.mxu0 %vm10753_vm0, %v10752_v0  ;;  %8755 = vmatprep.mubr.msk.bf16.mxu1 %vm10753_vm0, %v10752_v0  ;;  %v11050_v5 = vld [vmem:[#allocation8 + $0x8] sm:$0xff]   ;;  %v303_v7 = vld [vmem:[#allocation3 + $0x8] sm:$0xff]  ;;  %v11064_v10 = vld [vmem:[#allocation9] ss:$0 sm:$0xff]  ;;  %vm4358_vm2 = vcmask 254976   ;;  %vm7825_vm3 = vcmask 130048  }
  0xfa   :  { %9782 = vset.pattern.permute.xlu0 %v10754_v1  ;;  %9783 = vset.pattern.permute.xlu1 %v10754_v1  ;;  %v304_v8 = vpack.c.bf16 %v303_v7, %v302_v6  ;;  %v11075_v30 = vld [vmem:[#allocation8 + $0x10] sm:$0xff]   ;;  %v11078_v31 = vld [vmem:[#allocation8 + $0x18] sm:$0xff]   ;;  %v11088_v34 = vld [vmem:[#allocation8 + $0x20] sm:$0xff]   ;;  %vm7980_vm4 = vcmask 64512   ;;  %s13142_s20 = sld [smem:[#allocation39_spill]]  ;;  %vm8041_vm9 = vcmask 7168  }
  0xfb   :  { %8744 = vmatpush3.bf16.msra.mxu0 %v9784_v2  ;;  %8752 = vmatpush3.bf16.msra.mxu1 %v11046_v3  ;;  %v11080_v32 = vld [vmem:[#allocation6 + $0x10] sm:$0xff]   ;;  %v11084_v33 = vld [vmem:[#allocation6 + $0x18] sm:$0xff]   ;;  %v11095_v36 = vld [vmem:[#allocation8 + $0x28] sm:$0xff]   ;;  %vm8055_vm10 = vcmask 0   ;;  %s10757_s1 = smov [#allocation22]  }
  0xfc   :  { %8745 = vmatprep.subr.bf16.mxu0 %v10752_v0  ;;  %8753 = vmatprep.subr.bf16.mxu1 %v10752_v0  ;;  %v11102_v37 = vld [vmem:[#allocation8 + $0x30] sm:$0xff]   ;;  %v11107_v38 = vld [vmem:[#allocation8 + $0x38] sm:$0xff]   ;;  %v11136_v55 = vld [vmem:[#allocation9 + $0x1] ss:$0 sm:$0xff]  ;;  %s8089_s30 = sshll.u32 %s10757_s1, 4  ;;  %s8090_s30 = int_to_ptr.vmem [resolvable:$true] %s8089_s30 }
  0xff   :  { %8746 = vmatpush3.bf16.msra.mxu0 %v9786_v4  ;;  %8754 = vmatpush3.bf16.msra.mxu1 %v11050_v5 }
 0x100   :  { %8759 = vmatprep.subr.bf16.mxu0 %v10752_v0  ;;  %8767 = vmatprep.subr.bf16.mxu1 %v10752_v0 }
 0x102   :  { %8748 = vmatmul.mubr.msk.bf16.vlgmr.msra.gmra.mrb[0].mxu0 %vm317_vm1, %v304_v8  ;;  %8756 = vmatmul.mubr.bf16.vlgmr.msra.gmra.mrb[0].mxu1 %v10754_v1 }
 0x103   :  { %8763 = vmatprep.mubr.msk.bf16.mxu0 %vm10753_vm0, %v10752_v0  ;;  %8771 = vmatprep.mubr.msk.bf16.mxu1 %vm10753_vm0, %v10752_v0 }
 0x104   :  { %8760 = vmatpush3.bf16.msra.mxu0 %v11075_v30  ;;  %8768 = vmatpush3.bf16.msra.mxu1 %v11080_v32 }
 0x105   :  { %8761 = vmatprep.subr.bf16.mxu0 %v10752_v0  ;;  %8769 = vmatprep.subr.bf16.mxu1 %v10752_v0 }
 0x108   :  { %8762 = vmatpush3.bf16.msra.mxu0 %v11078_v31  ;;  %8770 = vmatpush3.bf16.msra.mxu1 %v11084_v33 }
 0x109   :  { %8775 = vmatprep.subr.bf16.mxu0 %v10752_v0  ;;  %8783 = vmatprep.subr.bf16.mxu1 %v10752_v0 }
 0x10b   :  { %8764 = vmatmul.mubr.bf16.vlgmr.msra.gmra.mrb[4].mxu0 %v10754_v1 }
 0x10c   :  { %8776 = vmatpush3.bf16.msra.mxu0 %v11088_v34  ;;  %8779 = vmatprep.mubr.msk.bf16.mxu0 %vm10753_vm0, %v10752_v0 }
 0x10d   :  { %8777 = vmatprep.subr.bf16.mxu0 %v10752_v0 }
 0x110   :  { %8778 = vmatpush3.bf16.msra.mxu0 %v11095_v36 }
 0x111   :  { %8791 = vmatprep.subr.bf16.mxu0 %v10752_v0 }
 0x113   :  { %8780 = vmatmul.mubr.bf16.vlgmr.msra.gmra.mrb[8].mxu0 %v10754_v1 }
 0x114   :  { %8792 = vmatpush3.bf16.msra.mxu0 %v11102_v37  ;;  %8795 = vmatprep.mubr.msk.bf16.mxu0 %vm10753_vm0, %v10752_v0 }
 0x115   :  { %8793 = vmatprep.subr.bf16.mxu0 %v10752_v0 }
 0x118   :  { %8794 = vmatpush3.bf16.msra.mxu0 %v11107_v38 }
 0x119   :  { %8807 = vmatprep.subr.bf16.mxu0 %v10752_v0 }
 0x11b   :  { %8796 = vmatmul.mubr.bf16.vlgmr.msra.gmra.mrb[12].mxu0 %v10754_v1 }
 0x11c   :  { %8808 = vmatpush3.bf16.msra.mxu0 %v11046_v3  ;;  %8811 = vmatprep.mubr.msk.bf16.mxu0 %vm10753_vm0, %v10752_v0 }
 0x11d   :  { %8809 = vmatprep.subr.bf16.mxu0 %v10752_v0 }
 0x120   :  { %8810 = vmatpush3.bf16.msra.mxu0 %v11050_v5 }
 0x121   :  { %8823 = vmatprep.subr.bf16.mxu0 %v10752_v0 }
 0x1d5   :  { %v11062_v9 = vpop.f32.mrb[0].mxu0  ;;  %v411_v11 = vpop.f32.mrb[0].mxu1 }
 0x1d6   :  { %v8749_v12 = vpop.f32.mrb[1].mxu0  ;;  %v417_v13 = vadd.f32 %v411_v11, %v11062_v9  ;;  %v8757_v14 = vpop.f32.mrb[1].mxu1 }
 0x1d7   :  { %v11067_v15 = vpop.f32.mrb[2].mxu0  ;;  %v414_v16 = vpop.f32.mrb[2].mxu1 }
 0x1d8   :  { %v8750_v17 = vpop.f32.mrb[3].mxu0  ;;  %v424_v18 = vadd.f32 %v11064_v10, %v417_v13  ;;  %v8758_v19 = vpop.f32.mrb[3].mxu1 }
 0x1da   :  { %9824 = vtanh.f32 %v424_v18  ;;  %v8127_v21 = vmul.f32 -1.442695, %v424_v18 }
 0x1dc   :  { %9826 = vpow2.f32 %v8127_v21  ;;  %v11148_v21 = vld [vmem:[#allocation6 + $0x28] sm:$0xff]  }
 0x1de   :  { %v496_v42 = vpop.f32.mrb[4].mxu0 }
 0x1df   :  { %v8765_v43 = vpop.f32.mrb[5].mxu0 }
 0x1e0   :  { %v499_v44 = vpop.f32.mrb[6].mxu0 }
 0x1e1   :  { %v8766_v45 = vpop.f32.mrb[7].mxu0 }
 0x1e4   :  { %v9825_v20 = vpop.eup %9824 }
 0x1e5   :  { %434 = vrot.lane.b32.xlu0 %v9825_v20, %s13137_s4  ;;  %v11145_v20 = vld [vmem:[#allocation6 + $0x20] sm:$0xff]  }
 0x1e6   :  { %v9827_v22 = vpop.eup %9826  ;;  %v11122_v46 = vpop.f32.mrb[8].mxu0 }
 0x1e7   :  { %v428_v23 = vadd.f32 1.0, %v9827_v22  ;;  %v8781_v47 = vpop.f32.mrb[9].mxu0 }
 0x1e8   :  { %v641_v48 = vpop.f32.mrb[10].mxu0 }
 0x1e9   :  { %9828 = vrcp.f32 %v428_v23  ;;  %v8782_v49 = vpop.f32.mrb[11].mxu0 }
 0x1ee   :  { %v11124_v50 = vpop.f32.mrb[12].mxu0 }
 0x1ef   :  { %v8797_v51 = vpop.f32.mrb[13].mxu0 }
 0x1f0   :  { %v783_v52 = vpop.f32.mrb[14].mxu0  ;;  %v11169_v51 = vld [vmem:[#allocation9 + $0x2] ss:$0 sm:$0xff] }
 0x1f1   :  { %v8798_v53 = vpop.f32.mrb[15].mxu0 }
 0x1f3   :  { %v9829_v24 = vpop.eup %9828 }
 0x1f4   :  { %v432_v27 = vmul.f32 0.0, %v9829_v24 }
 0x257   :  { %v435_v25 = vpop.permute.xlu0 %434 }
 0x258   :  { %v437_v26 = vmul.f32 %v9829_v24, %v435_v25 }
 0x25a   :  { %439 = vrot.lane.b32.xlu0 %v437_v26, %s10755_s16 }
 0x2cc   :  { %v440_v28 = vpop.permute.xlu0 %439 }
 0x2cd   :  { %v11072_v29 = vadd.f32 %v440_v28, %v432_v27 }
 0x2cf   :  { %9830 = vtanh.f32 %v11072_v29  ;;  %v928_v44 = vrot.slane %v11072_v29, 6 }
 0x2d9   :  { %v9831_v35 = vpop.eup %9830 }
 0x2da   :  { %445 = vrot.lane.b32.xlu1 %v9831_v35, %s13137_s4 }
 0x34c   :  { %v446_v39 = vpop.permute.xlu1 %445 }
 0x34d   :  { %v448_v40 = vmul.f32 %v9829_v24, %v446_v39 }
 0x34f   :  { %v449_v41 = vpack.c.bf16 %v448_v40, %v448_v40 }
 0x351   :  { %503 = vrot.lane.b32.xlu1 %v449_v41, %s10755_s16 }
 0x3c3   :  { %v504_v54 = vpop.permute.xlu1 %503 }
 0x3c4   :  { %8772 = vmatmul.mubr.msk.bf16.vlgmr.msra.gmra.mrb[4].mxu1 %vm317_vm1, %v504_v54  ;;  %8812 = vmatmul.mubr.msk.bf16.vlgmr.msra.gmra.mrb[16].mxu0 %vm317_vm1, %v504_v54 }
 0x3c5   :  { %8787 = vmatprep.mubr.msk.bf16.mxu1 %vm10753_vm0, %v10752_v0  ;;  %8824 = vmatpush3.bf16.msra.mxu0 %v11080_v32 }
 0x3c6   :  { %8825 = vmatprep.subr.bf16.mxu0 %v10752_v0  ;;  %8827 = vmatprep.mubr.msk.bf16.mxu0 %vm10753_vm0, %v10752_v0 }
 0x3c7   :  { %8784 = vmatpush3.bf16.msra.mxu1 %v11145_v20 }
 0x3c8   :  { %8785 = vmatprep.subr.bf16.mxu1 %v10752_v0 }
 0x3c9   :  { %8826 = vmatpush3.bf16.msra.mxu0 %v11084_v33 }
 0x3ca   :  { %8839 = vmatprep.subr.bf16.mxu0 %v10752_v0 }
 0x3cb   :  { %8786 = vmatpush3.bf16.msra.mxu1 %v11148_v21 }
 0x3cc   :  { %8799 = vmatprep.subr.bf16.mxu1 %v10752_v0 }
 0x497   :  { %v554_v56 = vpop.f32.mrb[4].mxu1  ;;  %v909_v57 = vpop.f32.mrb[16].mxu0 }
 0x498   :  { %v555_v58 = vadd.f32 %v554_v56, %v496_v42  ;;  %v916_v59 = vrot.slane %v909_v57, 6  ;;  %v8773_v60 = vpop.f32.mrb[5].mxu1  ;;  %v8813_v61 = vpop.f32.mrb[17].mxu0 }
 0x499   :  { %v557_v62 = vpop.f32.mrb[6].mxu1  ;;  %v912_v63 = vpop.f32.mrb[18].mxu0 }
 0x49a   :  { %v566_v1 = vadd.f32 %v11136_v55, %v555_v58  ;;  %v918_v2 = vadd.f32 %v916_v59, %v11062_v9  ;;  %v8774_v4 = vpop.f32.mrb[7].mxu1  ;;  %v8814_v6 = vpop.f32.mrb[19].mxu0 }
 0x49c   :  { %9832 = vtanh.f32 %v566_v1  ;;  %v8134_v8 = vmul.f32 -1.442695, %v566_v1  ;;  %v919_v23 = vadd.f32 %v11064_v10, %v918_v2 }
 0x49e   :  { %9834 = vpow2.f32 %v8134_v8  ;;  %v8150_v28 = vmul.f32 -1.442695, %v919_v23 }
 0x4a6   :  { %v9833_v7 = vpop.eup %9832 }
 0x4a7   :  { %576 = vrot.lane.b32.xlu0 %v9833_v7, %s13137_s4 }
 0x4a8   :  { %v9835_v11 = vpop.eup %9834 }
 0x4a9   :  { %v570_v12 = vadd.f32 1.0, %v9835_v11 }
 0x4ab   :  { %9836 = vrcp.f32 %v570_v12 }
 0x4b5   :  { %v9837_v13 = vpop.eup %9836 }
 0x4b6   :  { %v574_v17 = vmul.f32 0.0, %v9837_v13 }
 0x519   :  { %v577_v14 = vpop.permute.xlu0 %576 }
 0x51a   :  { %v579_v16 = vmul.f32 %v9837_v13, %v577_v14  ;;  %v11192_v14 = vld [vmem:[#allocation6 + $0x38] sm:$0xff]  }
 0x51c   :  { %581 = vrot.lane.b32.xlu1 %v579_v16, %s10755_s16 }
 0x58e   :  { %v582_v18 = vpop.permute.xlu1 %581 }
 0x58f   :  { %v11142_v19 = vadd.f32 %v582_v18, %v574_v17 }
 0x591   :  { %9838 = vtanh.f32 %v11142_v19 }
 0x592   :  { %9840 = vtanh.f32 %v919_v23 }
 0x593   :  { %9842 = vpow2.f32 %v8150_v28  ;;  %v11221_v28 = vld [vmem:[#allocation9 + $0x3] ss:$0 sm:$0xff] }
 0x59b   :  { %v9839_v22 = vpop.eup %9838 }
 0x59c   :  { %587 = vrot.lane.b32.xlu0 %v9839_v22, %s13137_s4  ;;  %v9841_v27 = vpop.eup %9840 }
 0x59d   :  { %v9843_v35 = vpop.eup %9842 }
 0x59e   :  { %v923_v39 = vadd.f32 1.0, %v9843_v35 }
 0x5a0   :  { %9844 = vrcp.f32 %v923_v39 }
 0x5aa   :  { %v9845_v41 = vpop.eup %9844 }
 0x5ab   :  { %v930_v45 = vmul.f32 %v9845_v41, %v928_v44 }
 0x60e   :  { %v588_v24 = vpop.permute.xlu0 %587 }
 0x60f   :  { %v590_v25 = vmul.f32 %v9837_v13, %v588_v24  ;;  %v11189_v13 = vld [vmem:[#allocation6 + $0x30] sm:$0xff]  }
 0x611   :  { %v591_v26 = vpack.c.bf16 %v590_v25, %v590_v25 }
 0x613   :  { %645 = vrot.lane.b32.xlu1 %v591_v26, %s10755_s16 }
 0x617   :  { %932 = vrot.lane.b32.xlu1 %v9841_v27, %s13137_s4 }
 0x685   :  { %v11157_v40 = vpop.permute.xlu1 %645 }
 0x686   :  { %8788 = vmatmul.mubr.msk.bf16.vlgmr.msra.gmra.mrb[8].mxu1 %vm317_vm1, %v11157_v40 }
 0x687   :  { %8803 = vmatprep.mubr.msk.bf16.mxu1 %vm10753_vm0, %v10752_v0  ;;  %8800 = vmatpush3.bf16.msra.mxu1 %v11189_v13 }
 0x688   :  { %8801 = vmatprep.subr.bf16.mxu1 %v10752_v0 }
 0x689   :  { %v933_v42 = vpop.permute.xlu1 %932 }
 0x68a   :  { %v935_v43 = vmul.f32 %v9845_v41, %v933_v42 }
 0x68b   :  { %8802 = vmatpush3.bf16.msra.mxu1 %v11192_v14 }
 0x68c   :  { %937 = vrot.lane.b32.xlu1 %v935_v43, %s10755_s16  ;;  %8815 = vmatprep.subr.bf16.mxu1 %v10752_v0 }
 0x6fe   :  { %v938_v47 = vpop.permute.xlu1 %937 }
 0x6ff   :  { %v11165_v48 = vadd.f32 %v938_v47, %v930_v45 }
 0x701   :  { %9846 = vtanh.f32 %v11165_v48 }
 0x70b   :  { %v9847_v49 = vpop.eup %9846 }
 0x70c   :  { %943 = vrot.lane.b32.xlu1 %v9847_v49, %s13137_s4 }
 0x759   :  { %v696_v52 = vpop.f32.mrb[8].mxu1 }
 0x75a   :  { %v697_v53 = vadd.f32 %v696_v52, %v11122_v46  ;;  %v8789_v54 = vpop.f32.mrb[9].mxu1 }
 0x75b   :  { %v699_v56 = vpop.f32.mrb[10].mxu1 }
 0x75c   :  { %v708_v57 = vadd.f32 %v11169_v51, %v697_v53  ;;  %v8790_v58 = vpop.f32.mrb[11].mxu1 }
 0x75e   :  { %9848 = vtanh.f32 %v708_v57  ;;  %v8141_v63 = vmul.f32 -1.442695, %v708_v57 }
 0x760   :  { %9850 = vpow2.f32 %v8141_v63 }
 0x768   :  { %v9849_v29 = vpop.eup %9848 }
 0x769   :  { %718 = vrot.lane.b32.xlu0 %v9849_v29, %s13137_s4 }
 0x76a   :  { %v9851_v1 = vpop.eup %9850 }
 0x76b   :  { %v712_v2 = vadd.f32 1.0, %v9851_v1 }
 0x76d   :  { %9852 = vrcp.f32 %v712_v2 }
 0x777   :  { %v9853_v46 = vpop.eup %9852 }
 0x778   :  { %v716_v8 = vmul.f32 0.0, %v9853_v46 }
 0x77e   :  { %v944_v59 = vpop.permute.xlu1 %943 }
 0x77f   :  { %v946_v60 = vmul.f32 %v9845_v41, %v944_v59 }
 0x781   :  { %v947_v61 = vpack.c.bf16 %v946_v60, %v946_v60 }
 0x783   :  { %v989_v62 = vrot.slane %v947_v61, 1 }
 0x785   :  { %990 = vrot.lane.b32.xlu1 %v989_v62, %s10755_s16 }
 0x7db   :  { %v719_v4 = vpop.permute.xlu0 %718 }
 0x7dc   :  { %v721_v6 = vmul.f32 %v9853_v46, %v719_v4 }
 0x7de   :  { %723 = vrot.lane.b32.xlu0 %v721_v6, %s10755_s16 }
 0x7f7   :  { %v11176_v7 = vpop.permute.xlu1 %990 }
 0x7f8   :  { %8828 = vmatmul.mubr.msk.bf16.vlgmr.msra.gmra.mrb[20].mxu0 %vm317_vm1, %v11176_v7 }
 0x7f9   :  { %8840 = vmatpush3.bf16.msra.mxu0 %v11145_v20  ;;  %8843 = vmatprep.mubr.msk.bf16.mxu0 %vm10753_vm0, %v10752_v0 }
 0x7fa   :  { %8841 = vmatprep.subr.bf16.mxu0 %v10752_v0 }
 0x7fd   :  { %8842 = vmatpush3.bf16.msra.mxu0 %v11148_v21 }
 0x7fe   :  { %8855 = vmatprep.subr.bf16.mxu0 %v10752_v0 }
 0x850   :  { %v724_v11 = vpop.permute.xlu0 %723 }
 0x851   :  { %v11186_v12 = vadd.f32 %v724_v11, %v716_v8 }
 0x853   :  { %9854 = vtanh.f32 %v11186_v12 }
 0x85d   :  { %v9855_v16 = vpop.eup %9854 }
 0x85e   :  { %729 = vrot.lane.b32.xlu0 %v9855_v16, %s13137_s4 }
 0x8cb   :  { %v1029_v17 = vpop.f32.mrb[20].mxu0 }
 0x8cc   :  { %v8829_v18 = vpop.f32.mrb[21].mxu0 }
 0x8cd   :  { %v1032_v22 = vpop.f32.mrb[22].mxu0 }
 0x8ce   :  { %v8830_v23 = vpop.f32.mrb[23].mxu0 }
 0x8d0   :  { %v730_v24 = vpop.permute.xlu0 %729 }
 0x8d1   :  { %v732_v25 = vmul.f32 %v9853_v46, %v730_v24 }
 0x8d3   :  { %v733_v26 = vpack.c.bf16 %v732_v25, %v732_v25 }
 0x8d5   :  { %787 = vrot.lane.b32.xlu0 %v733_v26, %s10755_s16 }
 0x947   :  { %v788_v27 = vpop.permute.xlu0 %787 }
 0x948   :  { %8804 = vmatmul.mubr.msk.bf16.vlgmr.msra.gmra.mrb[12].mxu1 %vm317_vm1, %v788_v27 }
 0x949   :  { %8816 = vmatpush3.bf16.msra.mxu1 %v11075_v30  ;;  %8819 = vmatprep.mubr.msk.bf16.mxu1 %vm10753_vm0, %v10752_v0 }
 0x94a   :  { %8817 = vmatprep.subr.bf16.mxu1 %v10752_v0 }
 0x94d   :  { %8818 = vmatpush3.bf16.msra.mxu1 %v11078_v31 }
 0x94e   :  { %8831 = vmatprep.subr.bf16.mxu1 %v10752_v0 }
 0x950   :  { %8820 = vmatmul.mubr.msk.bf16.vlgmr.msra.gmra.mrb[16].mxu1 %vm317_vm1, %v11157_v40 }
 0x951   :  { %8832 = vmatpush3.bf16.msra.mxu1 %v11088_v34  ;;  %8835 = vmatprep.mubr.msk.bf16.mxu1 %vm10753_vm0, %v10752_v0 }
 0x952   :  { %8833 = vmatprep.subr.bf16.mxu1 %v10752_v0 }
 0x955   :  { %8834 = vmatpush3.bf16.msra.mxu1 %v11095_v36 }
 0x956   :  { %8847 = vmatprep.subr.bf16.mxu1 %v10752_v0 }
 0x958   :  { %8836 = vmatmul.mubr.msk.bf16.vlgmr.msra.gmra.mrb[20].mxu1 %vm317_vm1, %v788_v27 }
 0x959   :  { %8848 = vmatpush3.bf16.msra.mxu1 %v11102_v37  ;;  %8851 = vmatprep.mubr.msk.bf16.mxu1 %vm10753_vm0, %v10752_v0 }
 0x95a   :  { %8849 = vmatprep.subr.bf16.mxu1 %v10752_v0 }
 0x95d   :  { %8850 = vmatpush3.bf16.msra.mxu1 %v11107_v38 }
 0x95e   :  { %8863 = vmatprep.subr.bf16.mxu1 %v10752_v0 }
 0xa1b   :  { %v838_v35 = vpop.f32.mrb[12].mxu1 }
 0xa1c   :  { %v839_v39 = vadd.f32 %v838_v35, %v11124_v50  ;;  %v8805_v40 = vpop.f32.mrb[13].mxu1 }
 0xa1d   :  { %v841_v41 = vpop.f32.mrb[14].mxu1 }
 0xa1e   :  { %v850_v42 = vadd.f32 %v11221_v28, %v839_v39  ;;  %v8806_v43 = vpop.f32.mrb[15].mxu1 }
 0xa20   :  { %9856 = vtanh.f32 %v850_v42  ;;  %v8148_v59 = vmul.f32 -1.442695, %v850_v42 }
 0xa23   :  { %v982_v44 = vpop.f32.mrb[16].mxu1 }
 0xa24   :  { %v1030_v45 = vadd.f32 %v1029_v17, %v982_v44  ;;  %v8821_v47 = vpop.f32.mrb[17].mxu1 }
 0xa25   :  { %v985_v49 = vpop.f32.mrb[18].mxu1 }
 0xa26   :  { %v1035_v52 = vadd.f32 %v11136_v55, %v1030_v45  ;;  %v8822_v53 = vpop.f32.mrb[19].mxu1 }
 0xa28   :  { %9858 = vtanh.f32 %v1035_v52  ;;  %v8153_v60 = vmul.f32 -1.442695, %v1035_v52 }
 0xa29   :  { %9860 = vpow2.f32 %v8148_v59 }
 0xa2a   :  { %v9857_v54 = vpop.eup %9856  ;;  %9862 = vpow2.f32 %v8153_v60 }
 0xa2b   :  { %v11226_v56 = vpop.f32.mrb[20].mxu1  ;;  %860 = vrot.lane.b32.xlu0 %v9857_v54, %s13137_s4 }
 0xa2c   :  { %v8837_v50 = vpop.f32.mrb[21].mxu1 }
 0xa2d   :  { %v1098_v57 = vpop.f32.mrb[22].mxu1 }
 0xa2e   :  { %v8838_v58 = vpop.f32.mrb[23].mxu1 }
 0xa32   :  { %v9859_v29 = vpop.eup %9858 }
 0xa33   :  { %1045 = vrot.lane.b32.xlu1 %v9859_v29, %s13137_s4  ;;  %v9861_v61 = vpop.eup %9860 }
 0xa34   :  { %v854_v62 = vadd.f32 1.0, %v9861_v61  ;;  %v9863_v63 = vpop.eup %9862 }
 0xa35   :  { %v1039_v1 = vadd.f32 1.0, %v9863_v63 }
 0xa36   :  { %9864 = vrcp.f32 %v854_v62 }
 0xa37   :  { %9866 = vrcp.f32 %v1039_v1 }
 0xa40   :  { %v9865_v2 = vpop.eup %9864 }
 0xa41   :  { %v9867_v6 = vpop.eup %9866  ;;  %v858_v16 = vmul.f32 0.0, %v9865_v2 }
 0xa42   :  { %v1043_v22 = vmul.f32 %v9867_v6, %v11142_v19 }
 0xa9d   :  { %v861_v46 = vpop.permute.xlu0 %860 }
 0xa9e   :  { %v863_v4 = vmul.f32 %v9865_v2, %v861_v46 }
 0xaa0   :  { %865 = vrot.lane.b32.xlu0 %v863_v4, %s10755_s16 }
 0xaa5   :  { %v1046_v8 = vpop.permute.xlu1 %1045 }
 0xaa6   :  { %v1048_v11 = vmul.f32 %v9867_v6, %v1046_v8 }
 0xaa8   :  { %1050 = vrot.lane.b32.xlu1 %v1048_v11, %s10755_s16 }
 0xb12   :  { %v866_v17 = vpop.permute.xlu0 %865 }
 0xb13   :  { %v11232_v18 = vadd.f32 %v866_v17, %v858_v16 }
 0xb15   :  { %9868 = vtanh.f32 %v11232_v18 }
 0xb1a   :  { %v1051_v23 = vpop.permute.xlu1 %1050 }
 0xb1b   :  { %v11236_v24 = vadd.f32 %v1051_v23, %v1043_v22 }
 0xb1d   :  { %9870 = vtanh.f32 %v11236_v24 }
 0xb1f   :  { %v9869_v25 = vpop.eup %9868 }
 0xb20   :  { %871 = vrot.lane.b32.xlu0 %v9869_v25, %s13137_s4 }
 0xb27   :  { %v9871_v26 = vpop.eup %9870 }
 0xb28   :  { %1056 = vrot.lane.b32.xlu1 %v9871_v26, %s13137_s4  ;;  %v1344_v26 = vrot.slane %v11165_v48, 6 }
 0xb92   :  { %v872_v27 = vpop.permute.xlu0 %871 }
 0xb93   :  { %v874_v35 = vmul.f32 %v9865_v2, %v872_v27 }
 0xb95   :  { %v1173_v39 = vpack.c.bf16 %v874_v35, %v874_v35 }
 0xb97   :  { %1175 = vrot.lane.b32.xlu0 %v1173_v39, %s10755_s16 }
 0xb9a   :  { %v1057_v40 = vpop.permute.xlu1 %1056 }
 0xb9b   :  { %v1059_v41 = vmul.f32 %v9867_v6, %v1057_v40 }
 0xb9d   :  { %v1060_v42 = vpack.c.bf16 %v1059_v41, %v1059_v41 }
 0xb9f   :  { %1102 = vrot.lane.b32.xlu1 %v1060_v42, %s10755_s16 }
 0xc09   :  { %v1176_v19 = vpop.permute.xlu0 %1175 }
 0xc0a   :  { %8852 = vmatmul.mubr.msk.bf16.vlgmr.msra.gmra.mrb[24].mxu1 %vm317_vm1, %v1176_v19 }
 0xc0b   :  { %8864 = vmatpush3.bf16.msra.mxu1 %v11046_v3  ;;  %8867 = vmatprep.mubr.msk.bf16.mxu1 %vm10753_vm0, %v10752_v0 }
 0xc0c   :  { %8865 = vmatprep.subr.bf16.mxu1 %v10752_v0 }
 0xc0f   :  { %8866 = vmatpush3.bf16.msra.mxu1 %v11050_v5 }
 0xc10   :  { %8879 = vmatprep.subr.bf16.mxu1 %v10752_v0 }
 0xc11   :  { %v11250_v43 = vpop.permute.xlu1 %1102 }
 0xc12   :  { %8844 = vmatmul.mubr.msk.bf16.vlgmr.msra.gmra.mrb[24].mxu0 %vm317_vm1, %v11250_v43  ;;  %8868 = vmatmul.mubr.msk.bf16.vlgmr.msra.gmra.mrb[28].mxu1 %vm317_vm1, %v11176_v7 }
 0xc13   :  { %8856 = vmatpush3.bf16.msra.mxu0 %v11189_v13  ;;  %8880 = vmatpush3.bf16.msra.mxu1 %v11080_v32 }
 0xc14   :  { %8857 = vmatprep.subr.bf16.mxu0 %v10752_v0  ;;  %8859 = vmatprep.mubr.msk.bf16.mxu0 %vm10753_vm0, %v10752_v0 }
 0xc15   :  { %8881 = vmatprep.subr.bf16.mxu1 %v10752_v0  ;;  %8883 = vmatprep.mubr.msk.bf16.mxu1 %vm10753_vm0, %v10752_v0 }
 0xc17   :  { %8858 = vmatpush3.bf16.msra.mxu0 %v11192_v14  ;;  %8882 = vmatpush3.bf16.msra.mxu1 %v11084_v33 }
 0xc18   :  { %8871 = vmatprep.subr.bf16.mxu0 %v10752_v0  ;;  %8895 = vmatprep.subr.bf16.mxu1 %v10752_v0 }
 0xcdd   :  { %v11268_v3 = vpop.f32.mrb[24].mxu1 }
 0xcde   :  { %v8853_v5 = vpop.f32.mrb[25].mxu1 }
 0xcdf   :  { %v1217_v7 = vpop.f32.mrb[26].mxu1 }
 0xce0   :  { %v8854_v44 = vpop.f32.mrb[27].mxu1 }
 0xce5   :  { %v1141_v45 = vpop.f32.mrb[24].mxu0  ;;  %v1325_v47 = vpop.f32.mrb[28].mxu1 }
 0xce6   :  { %v1142_v49 = vadd.f32 %v1141_v45, %v11226_v56  ;;  %v1332_v52 = vrot.slane %v1325_v47, 4  ;;  %v8845_v53 = vpop.f32.mrb[25].mxu0  ;;  %v8869_v54 = vpop.f32.mrb[29].mxu1 }
 0xce7   :  { %v1144_v50 = vpop.f32.mrb[26].mxu0  ;;  %v1328_v57 = vpop.f32.mrb[30].mxu1 }
 0xce8   :  { %v1147_v58 = vadd.f32 %v11169_v51, %v1142_v49  ;;  %v1334_v29 = vadd.f32 %v1332_v52, %v11062_v9  ;;  %v8846_v59 = vpop.f32.mrb[27].mxu0  ;;  %v8870_v60 = vpop.f32.mrb[31].mxu1 }
 0xcea   :  { %9872 = vtanh.f32 %v1147_v58  ;;  %v1335_v61 = vadd.f32 %v11064_v10, %v1334_v29  ;;  %v8156_v56 = vmul.f32 -1.442695, %v1147_v58 }
 0xcec   :  { %9874 = vtanh.f32 %v1335_v61  ;;  %v8161_v1 = vmul.f32 -1.442695, %v1335_v61 }
 0xced   :  { %9876 = vpow2.f32 %v8156_v56 }
 0xcee   :  { %9878 = vpow2.f32 %v8161_v1 }
 0xcf4   :  { %v9873_v62 = vpop.eup %9872 }
 0xcf5   :  { %1157 = vrot.lane.b32.xlu0 %v9873_v62, %s13137_s4 }
 0xcf6   :  { %v9875_v63 = vpop.eup %9874 }
 0xcf7   :  { %1348 = vrot.lane.b32.xlu1 %v9875_v63, %s13137_s4  ;;  %v9877_v2 = vpop.eup %9876 }
 0xcf8   :  { %v9879_v46 = vpop.eup %9878  ;;  %v1151_v4 = vadd.f32 1.0, %v9877_v2 }
 0xcf9   :  { %v1339_v6 = vadd.f32 1.0, %v9879_v46 }
 0xcfa   :  { %9880 = vrcp.f32 %v1151_v4 }
 0xcfb   :  { %9882 = vrcp.f32 %v1339_v6 }
 0xd04   :  { %v9881_v8 = vpop.eup %9880 }
 0xd05   :  { %v9883_v17 = vpop.eup %9882  ;;  %v1155_v25 = vmul.f32 %v9881_v8, %v11186_v12 }
 0xd06   :  { %v1346_v39 = vmul.f32 %v9883_v17, %v1344_v26 }
 0xd67   :  { %v1158_v11 = vpop.permute.xlu0 %1157 }
 0xd68   :  { %v1160_v16 = vmul.f32 %v9881_v8, %v1158_v11 }
 0xd69   :  { %v1349_v22 = vpop.permute.xlu1 %1348 }
 0xd6a   :  { %1162 = vrot.lane.b32.xlu0 %v1160_v16, %s10755_s16  ;;  %v1351_v23 = vmul.f32 %v9883_v17, %v1349_v22 }
 0xd6c   :  { %1353 = vrot.lane.b32.xlu1 %v1351_v23, %s10755_s16 }
 0xddc   :  { %v1163_v27 = vpop.permute.xlu0 %1162 }
 0xddd   :  { %v11280_v35 = vadd.f32 %v1163_v27, %v1155_v25 }
 0xdde   :  { %v1354_v40 = vpop.permute.xlu1 %1353 }
 0xddf   :  { %9884 = vtanh.f32 %v11280_v35  ;;  %v11283_v41 = vadd.f32 %v1354_v40, %v1346_v39 }
 0xde1   :  { %9886 = vtanh.f32 %v11283_v41 }
 0xde9   :  { %v9885_v42 = vpop.eup %9884 }
 0xdea   :  { %1168 = vrot.lane.b32.xlu0 %v9885_v42, %s13137_s4 }
 0xdeb   :  { %v9887_v19 = vpop.eup %9886 }
 0xdec   :  { %1359 = vrot.lane.b32.xlu1 %v9887_v19, %s13137_s4 }
 0xe5c   :  { %v1169_v12 = vpop.permute.xlu0 %1168 }
 0xe5d   :  { %v1171_v5 = vmul.f32 %v9881_v8, %v1169_v12 }
 0xe5e   :  { %v1360_v7 = vpop.permute.xlu1 %1359 }
 0xe5f   :  { %v1172_v48 = vpack.c.bf16 %v1171_v5, %v1171_v5  ;;  %v1362_v44 = vmul.f32 %v9883_v17, %v1360_v7 }
 0xe61   :  { %1221 = vrot.lane.b32.xlu0 %v1172_v48, %s10755_s16  ;;  %v1363_v45 = vpack.c.bf16 %v1362_v44, %v1362_v44 }
 0xe63   :  { %v1405_v47 = vrot.slane %v1363_v45, 2 }
 0xe65   :  { %1406 = vrot.lane.b32.xlu1 %v1405_v47, %s10755_s16 }
 0xed3   :  { %v1222_v49 = vpop.permute.xlu0 %1221 }
 0xed4   :  { %8860 = vmatmul.mubr.msk.bf16.vlgmr.msra.gmra.mrb[28].mxu0 %vm317_vm1, %v1222_v49 }
 0xed5   :  { %8872 = vmatpush3.bf16.msra.mxu0 %v11075_v30  ;;  %8875 = vmatprep.mubr.msk.bf16.mxu0 %vm10753_vm0, %v10752_v0 }
 0xed6   :  { %8873 = vmatprep.subr.bf16.mxu0 %v10752_v0 }
 0xed7   :  { %v11295_v52 = vpop.permute.xlu1 %1406 }
 0xed8   :  { %8884 = vmatmul.mubr.msk.bf16.vlgmr.msra.gmra.mrb[32].mxu1 %vm317_vm1, %v11295_v52 }
 0xed9   :  { %8874 = vmatpush3.bf16.msra.mxu0 %v11078_v31  ;;  %8896 = vmatpush3.bf16.msra.mxu1 %v11145_v20 }
 0xeda   :  { %8887 = vmatprep.subr.bf16.mxu0 %v10752_v0  ;;  %8897 = vmatprep.subr.bf16.mxu1 %v10752_v0 }
 0xedb   :  { %8899 = vmatprep.mubr.msk.bf16.mxu1 %vm10753_vm0, %v10752_v0 }
 0xedc   :  { %8876 = vmatmul.mubr.msk.bf16.vlgmr.msra.gmra.mrb[32].mxu0 %vm317_vm1, %v11250_v43 }
 0xedd   :  { %8888 = vmatpush3.bf16.msra.mxu0 %v11088_v34  ;;  %8891 = vmatprep.mubr.msk.bf16.mxu0 %vm10753_vm0, %v10752_v0 }
 0xede   :  { %8889 = vmatprep.subr.bf16.mxu0 %v10752_v0  ;;  %8898 = vmatpush3.bf16.msra.mxu1 %v11148_v21 }
 0xedf   :  { %8911 = vmatprep.subr.bf16.mxu1 %v10752_v0 }
 0xee1   :  { %8890 = vmatpush3.bf16.msra.mxu0 %v11095_v36 }
 0xee2   :  { %8903 = vmatprep.subr.bf16.mxu0 %v10752_v0 }
 0xee4   :  { %8892 = vmatmul.mubr.msk.bf16.vlgmr.msra.gmra.mrb[36].mxu0 %vm317_vm1, %v1222_v49 }
 0xee5   :  { %8904 = vmatpush3.bf16.msra.mxu0 %v11102_v37  ;;  %8907 = vmatprep.mubr.msk.bf16.mxu0 %vm10753_vm0, %v10752_v0 }
 0xee6   :  { %8905 = vmatprep.subr.bf16.mxu0 %v10752_v0 }
 0xee9   :  { %8906 = vmatpush3.bf16.msra.mxu0 %v11107_v38 }
 0xeea   :  { %8919 = vmatprep.subr.bf16.mxu0 %v10752_v0 }
 0xfa7   :  { %v1260_v30 = vpop.f32.mrb[28].mxu0 }
 0xfa8   :  { %v1261_v31 = vadd.f32 %v1260_v30, %v11268_v3  ;;  %v8861_v34 = vpop.f32.mrb[29].mxu0 }
 0xfa9   :  { %v1263_v36 = vpop.f32.mrb[30].mxu0  ;;  %v11344_v34 = vld [vmem:[#allocation8] sm:$0xff]  }
 0xfaa   :  { %v1266_v43 = vadd.f32 %v11221_v28, %v1261_v31  ;;  %v8862_v53 = vpop.f32.mrb[31].mxu0  ;;  %v11350_v36 = vld [vmem:[#allocation8 + $0x8] sm:$0xff]  }
 0xfab   :  { %v1445_v54 = vpop.f32.mrb[32].mxu1 }
 0xfac   :  { %9888 = vtanh.f32 %v1266_v43  ;;  %v8885_v37 = vpop.f32.mrb[33].mxu1  ;;  %v8159_v4 = vmul.f32 -1.442695, %v1266_v43 }
 0xfad   :  { %v1448_v50 = vpop.f32.mrb[34].mxu1 }
 0xfae   :  { %v8886_v57 = vpop.f32.mrb[35].mxu1 }
 0xfaf   :  { %v1398_v58 = vpop.f32.mrb[32].mxu0 }
 0xfb0   :  { %v1446_v29 = vadd.f32 %v1445_v54, %v1398_v58  ;;  %v8877_v59 = vpop.f32.mrb[33].mxu0 }
 0xfb1   :  { %v1401_v60 = vpop.f32.mrb[34].mxu0 }
 0xfb2   :  { %v1451_v61 = vadd.f32 %v11136_v55, %v1446_v29  ;;  %v8878_v62 = vpop.f32.mrb[35].mxu0 }
 0xfb4   :  { %9890 = vtanh.f32 %v1451_v61  ;;  %v8164_v6 = vmul.f32 -1.442695, %v1451_v61 }
 0xfb5   :  { %9892 = vpow2.f32 %v8159_v4 }
 0xfb6   :  { %v9889_v63 = vpop.eup %9888  ;;  %9894 = vpow2.f32 %v8164_v6 }
 0xfb7   :  { %1276 = vrot.lane.b32.xlu0 %v9889_v63, %s13137_s4  ;;  %v11326_v3 = vpop.f32.mrb[36].mxu0 }
 0xfb8   :  { %v8893_v56 = vpop.f32.mrb[37].mxu0 }
 0xfb9   :  { %v1514_v1 = vpop.f32.mrb[38].mxu0 }
 0xfba   :  { %v8894_v2 = vpop.f32.mrb[39].mxu0 }
 0xfbe   :  { %v9891_v46 = vpop.eup %9890 }
 0xfbf   :  { %1461 = vrot.lane.b32.xlu1 %v9891_v46, %s13137_s4  ;;  %v9893_v8 = vpop.eup %9892 }
 0xfc0   :  { %v1270_v11 = vadd.f32 1.0, %v9893_v8  ;;  %v9895_v16 = vpop.eup %9894 }
 0xfc1   :  { %v1455_v17 = vadd.f32 1.0, %v9895_v16 }
 0xfc2   :  { %9896 = vrcp.f32 %v1270_v11 }
 0xfc3   :  { %9898 = vrcp.f32 %v1455_v17 }
 0xfcc   :  { %v9897_v22 = vpop.eup %9896 }
 0xfcd   :  { %v9899_v26 = vpop.eup %9898  ;;  %v1274_v40 = vmul.f32 %v9897_v22, %v11232_v18 }
 0xfce   :  { %v1459_v12 = vmul.f32 %v9899_v26, %v11236_v24 }
0x1029   :  { %v1277_v23 = vpop.permute.xlu0 %1276 }
0x102a   :  { %v1279_v25 = vmul.f32 %v9897_v22, %v1277_v23 }
0x102c   :  { %1281 = vrot.lane.b32.xlu0 %v1279_v25, %s10755_s16 }
0x1031   :  { %v1462_v27 = vpop.permute.xlu1 %1461 }
0x1032   :  { %v1464_v39 = vmul.f32 %v9899_v26, %v1462_v27  ;;  %v1760_v27 = vrot.slane %v11283_v41, 6 }
0x1034   :  { %1466 = vrot.lane.b32.xlu1 %v1464_v39, %s10755_s16 }
0x109e   :  { %v1282_v42 = vpop.permute.xlu0 %1281 }
0x109f   :  { %v11332_v19 = vadd.f32 %v1282_v42, %v1274_v40 }
0x10a1   :  { %9900 = vtanh.f32 %v11332_v19 }
0x10a6   :  { %v1467_v5 = vpop.permute.xlu1 %1466 }
0x10a7   :  { %v11336_v48 = vadd.f32 %v1467_v5, %v1459_v12 }
0x10a9   :  { %9902 = vtanh.f32 %v11336_v48 }
0x10ab   :  { %v9901_v7 = vpop.eup %9900 }
0x10ac   :  { %1287 = vrot.lane.b32.xlu0 %v9901_v7, %s13137_s4 }
0x10b3   :  { %v9903_v44 = vpop.eup %9902 }
0x10b4   :  { %1472 = vrot.lane.b32.xlu1 %v9903_v44, %s13137_s4 }
0x111e   :  { %v1288_v45 = vpop.permute.xlu0 %1287 }
0x111f   :  { %v1290_v18 = vmul.f32 %v9897_v22, %v1288_v45 }
0x1121   :  { %v1589_v47 = vpack.c.bf16 %v1290_v18, %v1290_v18 }
0x1123   :  { %1591 = vrot.lane.b32.xlu0 %v1589_v47, %s10755_s16 }
0x1126   :  { %v1473_v49 = vpop.permute.xlu1 %1472 }
0x1127   :  { %v1475_v30 = vmul.f32 %v9899_v26, %v1473_v49 }
0x1129   :  { %v1476_v31 = vpack.c.bf16 %v1475_v30, %v1475_v30 }
0x112b   :  { %1518 = vrot.lane.b32.xlu1 %v1476_v31, %s10755_s16 }
0x1195   :  { %v1592_v24 = vpop.permute.xlu0 %1591 }
0x1196   :  { %8908 = vmatmul.mubr.msk.bf16.vlgmr.msra.gmra.mrb[40].mxu0 %vm317_vm1, %v1592_v24  ;;  %v11395_v24 = vld [vmem:[#allocation8 + $0x10] sm:$0xff]  }
0x1197   :  { %8920 = vmatpush3.bf16.msra.mxu0 %v11344_v34  ;;  %8923 = vmatprep.mubr.msk.bf16.mxu0 %vm10753_vm0, %v10752_v0 }
0x1198   :  { %8921 = vmatprep.subr.bf16.mxu0 %v10752_v0 }
0x119b   :  { %8922 = vmatpush3.bf16.msra.mxu0 %v11350_v36 }
0x119c   :  { %8935 = vmatprep.subr.bf16.mxu0 %v10752_v0 }
0x119d   :  { %v11354_v43 = vpop.permute.xlu1 %1518 }
0x119e   :  { %8900 = vmatmul.mubr.msk.bf16.vlgmr.msra.gmra.mrb[36].mxu1 %vm317_vm1, %v11354_v43  ;;  %8924 = vmatmul.mubr.msk.bf16.vlgmr.msra.gmra.mrb[44].mxu0 %vm317_vm1, %v11295_v52 }
0x119f   :  { %8912 = vmatpush3.bf16.msra.mxu1 %v11189_v13  ;;  %8936 = vmatpush3.bf16.msra.mxu0 %v11080_v32 }
0x11a0   :  { %8913 = vmatprep.subr.bf16.mxu1 %v10752_v0  ;;  %8915 = vmatprep.mubr.msk.bf16.mxu1 %vm10753_vm0, %v10752_v0 }
0x11a1   :  { %8937 = vmatprep.subr.bf16.mxu0 %v10752_v0  ;;  %8939 = vmatprep.mubr.msk.bf16.mxu0 %vm10753_vm0, %v10752_v0 }
0x11a3   :  { %8914 = vmatpush3.bf16.msra.mxu1 %v11192_v14  ;;  %8938 = vmatpush3.bf16.msra.mxu0 %v11084_v33 }
0x11a4   :  { %8927 = vmatprep.subr.bf16.mxu1 %v10752_v0  ;;  %8951 = vmatprep.subr.bf16.mxu0 %v10752_v0 }
0x1269   :  { %v11372_v52 = vpop.f32.mrb[40].mxu0 }
0x126a   :  { %v8909_v32 = vpop.f32.mrb[41].mxu0 }
0x126b   :  { %v1633_v53 = vpop.f32.mrb[42].mxu0 }
0x126c   :  { %v8910_v54 = vpop.f32.mrb[43].mxu0  ;;  %v11405_v53 = vld [vmem:[#allocation8 + $0x18] sm:$0xff]  }
0x126d   :  { %v11415_v54 = vld [vmem:[#allocation8 + $0x20] sm:$0xff]  }
0x1271   :  { %v1557_v37 = vpop.f32.mrb[36].mxu1  ;;  %v1741_v50 = vpop.f32.mrb[44].mxu0 }
0x1272   :  { %v1558_v57 = vadd.f32 %v1557_v37, %v11326_v3  ;;  %v1748_v58 = vrot.slane %v1741_v50, 2  ;;  %v8901_v29 = vpop.f32.mrb[37].mxu1  ;;  %v8925_v59 = vpop.f32.mrb[45].mxu0 }
0x1273   :  { %v1560_v60 = vpop.f32.mrb[38].mxu1  ;;  %v1744_v61 = vpop.f32.mrb[46].mxu0 }
0x1274   :  { %v1563_v33 = vadd.f32 %v11169_v51, %v1558_v57  ;;  %v1750_v62 = vadd.f32 %v1748_v58, %v11062_v9  ;;  %v8902_v63 = vpop.f32.mrb[39].mxu1  ;;  %v8926_v56 = vpop.f32.mrb[47].mxu0 }
0x1276   :  { %9904 = vtanh.f32 %v1563_v33  ;;  %v1751_v1 = vadd.f32 %v11064_v10, %v1750_v62  ;;  %v8167_v3 = vmul.f32 -1.442695, %v1563_v33 }
0x1278   :  { %9906 = vtanh.f32 %v1751_v1  ;;  %v8172_v4 = vmul.f32 -1.442695, %v1751_v1 }
0x1279   :  { %9908 = vpow2.f32 %v8167_v3 }
0x127a   :  { %9910 = vpow2.f32 %v8172_v4 }
0x1280   :  { %v9905_v2 = vpop.eup %9904 }
0x1281   :  { %1573 = vrot.lane.b32.xlu0 %v9905_v2, %s13137_s4 }
0x1282   :  { %v9907_v46 = vpop.eup %9906 }
0x1283   :  { %1764 = vrot.lane.b32.xlu1 %v9907_v46, %s13137_s4  ;;  %v9909_v6 = vpop.eup %9908 }
0x1284   :  { %v9911_v8 = vpop.eup %9910  ;;  %v1567_v11 = vadd.f32 1.0, %v9909_v6 }
0x1285   :  { %v1755_v9 = vadd.f32 1.0, %v9911_v8 }
0x1286   :  { %9912 = vrcp.f32 %v1567_v11 }
0x1287   :  { %9914 = vrcp.f32 %v1755_v9 }
0x1290   :  { %v9913_v16 = vpop.eup %9912 }
0x1291   :  { %v9915_v22 = vpop.eup %9914  ;;  %v1571_v26 = vmul.f32 %v9913_v16, %v11280_v35 }
0x1292   :  { %v1762_v42 = vmul.f32 %v9915_v22, %v1760_v27 }
0x12f3   :  { %v1574_v17 = vpop.permute.xlu0 %1573 }
0x12f4   :  { %v1576_v10 = vmul.f32 %v9913_v16, %v1574_v17 }
0x12f5   :  { %v1765_v23 = vpop.permute.xlu1 %1764 }
0x12f6   :  { %1578 = vrot.lane.b32.xlu0 %v1576_v10, %s10755_s16  ;;  %v1767_v25 = vmul.f32 %v9915_v22, %v1765_v23 }
0x12f8   :  { %1769 = vrot.lane.b32.xlu1 %v1767_v25, %s10755_s16 }
0x1368   :  { %v1579_v39 = vpop.permute.xlu0 %1578 }
0x1369   :  { %v11384_v40 = vadd.f32 %v1579_v39, %v1571_v26 }
0x136a   :  { %v1770_v12 = vpop.permute.xlu1 %1769 }
0x136b   :  { %9916 = vtanh.f32 %v11384_v40  ;;  %v11387_v5 = vadd.f32 %v1770_v12, %v1762_v42 }
0x136d   :  { %9918 = vtanh.f32 %v11387_v5 }
0x1375   :  { %v9917_v7 = vpop.eup %9916 }
0x1376   :  { %1584 = vrot.lane.b32.xlu0 %v9917_v7, %s13137_s4 }
0x1377   :  { %v9919_v44 = vpop.eup %9918 }
0x1378   :  { %1775 = vrot.lane.b32.xlu1 %v9919_v44, %s13137_s4 }
0x13e8   :  { %v1585_v35 = vpop.permute.xlu0 %1584 }
0x13e9   :  { %v1587_v45 = vmul.f32 %v9913_v16, %v1585_v35 }
0x13ea   :  { %v1776_v18 = vpop.permute.xlu1 %1775 }
0x13eb   :  { %v1588_v41 = vpack.c.bf16 %v1587_v45, %v1587_v45  ;;  %v1778_v47 = vmul.f32 %v9915_v22, %v1776_v18 }
0x13ed   :  { %1637 = vrot.lane.b32.xlu0 %v1588_v41, %s10755_s16  ;;  %v1779_v49 = vpack.c.bf16 %v1778_v47, %v1778_v47 }
0x13ef   :  { %v1821_v30 = vrot.slane %v1779_v49, 3 }
0x13f1   :  { %1822 = vrot.lane.b32.xlu1 %v1821_v30, %s10755_s16 }
0x145f   :  { %v1638_v31 = vpop.permute.xlu0 %1637 }
0x1460   :  { %8916 = vmatmul.mubr.msk.bf16.vlgmr.msra.gmra.mrb[40].mxu1 %vm317_vm1, %v1638_v31 }
0x1461   :  { %8928 = vmatpush3.bf16.msra.mxu1 %v11395_v24  ;;  %8931 = vmatprep.mubr.msk.bf16.mxu1 %vm10753_vm0, %v10752_v0 }
0x1462   :  { %8929 = vmatprep.subr.bf16.mxu1 %v10752_v0 }
0x1463   :  { %v11401_v32 = vpop.permute.xlu1 %1822 }
0x1464   :  { %8940 = vmatmul.mubr.msk.bf16.vlgmr.msra.gmra.mrb[48].mxu0 %vm317_vm1, %v11401_v32 }
0x1465   :  { %8930 = vmatpush3.bf16.msra.mxu1 %v11405_v53  ;;  %8952 = vmatpush3.bf16.msra.mxu0 %v11145_v20  ;;  %v11423_v20 = vld [vmem:[#allocation8 + $0x28] sm:$0xff]  }
0x1466   :  { %8943 = vmatprep.subr.bf16.mxu1 %v10752_v0  ;;  %8953 = vmatprep.subr.bf16.mxu0 %v10752_v0 }
0x1467   :  { %8955 = vmatprep.mubr.msk.bf16.mxu0 %vm10753_vm0, %v10752_v0 }
0x1468   :  { %8932 = vmatmul.mubr.msk.bf16.vlgmr.msra.gmra.mrb[44].mxu1 %vm317_vm1, %v11354_v43  ;;  %v11428_v43 = vld [vmem:[#allocation8 + $0x30] sm:$0xff]  }
0x1469   :  { %8944 = vmatpush3.bf16.msra.mxu1 %v11415_v54  ;;  %8947 = vmatprep.mubr.msk.bf16.mxu1 %vm10753_vm0, %v10752_v0 }
0x146a   :  { %8945 = vmatprep.subr.bf16.mxu1 %v10752_v0  ;;  %8954 = vmatpush3.bf16.msra.mxu0 %v11148_v21 }
0x146b   :  { %8967 = vmatprep.subr.bf16.mxu0 %v10752_v0 }
0x146d   :  { %8946 = vmatpush3.bf16.msra.mxu1 %v11423_v20 }
0x146e   :  { %8959 = vmatprep.subr.bf16.mxu1 %v10752_v0 }
0x1470   :  { %8948 = vmatmul.mubr.msk.bf16.vlgmr.msra.gmra.mrb[48].mxu1 %vm317_vm1, %v1638_v31 }
0x1471   :  { %8960 = vmatpush3.bf16.msra.mxu1 %v11428_v43  ;;  %8963 = vmatprep.mubr.msk.bf16.mxu1 %vm10753_vm0, %v10752_v0 }
0x1472   :  { %8961 = vmatprep.subr.bf16.mxu1 %v10752_v0 }
0x1475   :  { %8962 = vmatpush3.bf16.msra.mxu1 %v11107_v38 }
0x1476   :  { %8975 = vmatprep.subr.bf16.mxu1 %v10752_v0 }
0x1533   :  { %v1676_v21 = vpop.f32.mrb[40].mxu1 }
0x1534   :  { %v1677_v37 = vadd.f32 %v1676_v21, %v11372_v52  ;;  %v8917_v50 = vpop.f32.mrb[41].mxu1 }
0x1535   :  { %v1679_v57 = vpop.f32.mrb[42].mxu1  ;;  %v11481_v50 = vld [vmem:[#allocation6 + $0x18] sm:$0xff]  }
0x1536   :  { %v1682_v58 = vadd.f32 %v11221_v28, %v1677_v37  ;;  %v8918_v29 = vpop.f32.mrb[43].mxu1  ;;  %v11471_v37 = vld [vmem:[#allocation6 + $0x10] sm:$0xff]  }
0x1537   :  { %v1861_v59 = vpop.f32.mrb[48].mxu0 }
0x1538   :  { %9920 = vtanh.f32 %v1682_v58  ;;  %v8941_v60 = vpop.f32.mrb[49].mxu0  ;;  %v8170_v8 = vmul.f32 -1.442695, %v1682_v58 }
0x1539   :  { %v1864_v61 = vpop.f32.mrb[50].mxu0 }
0x153a   :  { %v8942_v33 = vpop.f32.mrb[51].mxu0 }
0x153b   :  { %v1814_v62 = vpop.f32.mrb[44].mxu1 }
0x153c   :  { %v1862_v63 = vadd.f32 %v1861_v59, %v1814_v62  ;;  %v8933_v56 = vpop.f32.mrb[45].mxu1 }
0x153d   :  { %v1817_v1 = vpop.f32.mrb[46].mxu1 }
0x153e   :  { %v1867_v38 = vadd.f32 %v11136_v55, %v1862_v63  ;;  %v8934_v2 = vpop.f32.mrb[47].mxu1  ;;  %v11491_v1 = vld [vmem:[#allocation9] ss:$0 sm:$0xff] }
0x1540   :  { %9922 = vtanh.f32 %v1867_v38  ;;  %v8175_v11 = vmul.f32 -1.442695, %v1867_v38 }
0x1541   :  { %9924 = vpow2.f32 %v8170_v8 }
0x1542   :  { %v9921_v46 = vpop.eup %9920  ;;  %9926 = vpow2.f32 %v8175_v11 }
0x1543   :  { %v11439_v52 = vpop.f32.mrb[48].mxu1  ;;  %1692 = vrot.lane.b32.xlu0 %v9921_v46, %s13137_s4 }
0x1544   :  { %v8949_v28 = vpop.f32.mrb[49].mxu1 }
0x1545   :  { %v1930_v3 = vpop.f32.mrb[50].mxu1 }
0x1546   :  { %v8950_v4 = vpop.f32.mrb[51].mxu1 }
0x154a   :  { %v9923_v6 = vpop.eup %9922 }
0x154b   :  { %1877 = vrot.lane.b32.xlu1 %v9923_v6, %s13137_s4  ;;  %v9925_v9 = vpop.eup %9924 }
0x154c   :  { %v1686_v16 = vadd.f32 1.0, %v9925_v9  ;;  %v9927_v55 = vpop.eup %9926 }
0x154d   :  { %v1871_v17 = vadd.f32 1.0, %v9927_v55 }
0x154e   :  { %9928 = vrcp.f32 %v1686_v16 }
0x154f   :  { %9930 = vrcp.f32 %v1871_v17 }
0x1558   :  { %v9929_v10 = vpop.eup %9928 }
0x1559   :  { %v9931_v25 = vpop.eup %9930  ;;  %v1690_v39 = vmul.f32 %v9929_v10, %v11332_v19 }
0x155a   :  { %v1875_v7 = vmul.f32 %v9931_v25, %v11336_v48 }
0x15b5   :  { %v1693_v22 = vpop.permute.xlu0 %1692 }
0x15b6   :  { %v1695_v23 = vmul.f32 %v9929_v10, %v1693_v22 }
0x15b8   :  { %1697 = vrot.lane.b32.xlu0 %v1695_v23, %s10755_s16  ;;  %v2173_v23 = vrot.slane %v11387_v5, 6 }
0x15bd   :  { %v1878_v26 = vpop.permute.xlu1 %1877 }
0x15be   :  { %v1880_v27 = vmul.f32 %v9931_v25, %v1878_v26 }
0x15c0   :  { %1882 = vrot.lane.b32.xlu1 %v1880_v27, %s10755_s16 }
0x162a   :  { %v1698_v42 = vpop.permute.xlu0 %1697 }
0x162b   :  { %v11446_v12 = vadd.f32 %v1698_v42, %v1690_v39 }
0x162d   :  { %9932 = vtanh.f32 %v11446_v12 }
0x1632   :  { %v1883_v44 = vpop.permute.xlu1 %1882 }
0x1633   :  { %v11450_v35 = vadd.f32 %v1883_v44, %v1875_v7 }
0x1635   :  { %9934 = vtanh.f32 %v11450_v35 }
0x1637   :  { %v9933_v45 = vpop.eup %9932 }
0x1638   :  { %1703 = vrot.lane.b32.xlu0 %v9933_v45, %s13137_s4 }
0x163f   :  { %v9935_v41 = vpop.eup %9934 }
0x1640   :  { %1888 = vrot.lane.b32.xlu1 %v9935_v41, %s13137_s4 }
0x16aa   :  { %v1704_v18 = vpop.permute.xlu0 %1703 }
0x16ab   :  { %v1706_v19 = vmul.f32 %v9929_v10, %v1704_v18 }
0x16ad   :  { %v2005_v47 = vpack.c.bf16 %v1706_v19, %v1706_v19 }
0x16af   :  { %2007 = vrot.lane.b32.xlu1 %v2005_v47, %s10755_s16 }
0x16b2   :  { %v1889_v49 = vpop.permute.xlu1 %1888 }
0x16b3   :  { %v1891_v30 = vmul.f32 %v9931_v25, %v1889_v49 }
0x16b5   :  { %v1892_v31 = vpack.c.bf16 %v1891_v30, %v1891_v30 }
0x16b7   :  { %1934 = vrot.lane.b32.xlu0 %v1892_v31, %s10755_s16  ;;  %v11519_v31 = vld [vmem:[#allocation6 + $0x20] sm:$0xff]  }
0x1721   :  { %v2008_v48 = vpop.permute.xlu1 %2007 }
0x1722   :  { %8964 = vmatmul.mubr.msk.bf16.vlgmr.msra.gmra.mrb[52].mxu1 %vm317_vm1, %v2008_v48  ;;  %v11527_v48 = vld [vmem:[#allocation6 + $0x28] sm:$0xff]  }
0x1723   :  { %8976 = vmatpush3.bf16.msra.mxu1 %v11344_v34  ;;  %8979 = vmatprep.mubr.msk.bf16.mxu1 %vm10753_vm0, %v10752_v0 }
0x1724   :  { %8977 = vmatprep.subr.bf16.mxu1 %v10752_v0 }
0x1727   :  { %8978 = vmatpush3.bf16.msra.mxu1 %v11350_v36 }
0x1728   :  { %8991 = vmatprep.subr.bf16.mxu1 %v10752_v0 }
0x1729   :  { %v11464_v21 = vpop.permute.xlu0 %1934 }
0x172a   :  { %8956 = vmatmul.mubr.msk.bf16.vlgmr.msra.gmra.mrb[52].mxu0 %vm317_vm1, %v11464_v21  ;;  %8980 = vmatmul.mubr.msk.bf16.vlgmr.msra.gmra.mrb[56].mxu1 %vm317_vm1, %v11401_v32 }
0x172b   :  { %8968 = vmatpush3.bf16.msra.mxu0 %v11189_v13  ;;  %8992 = vmatpush3.bf16.msra.mxu1 %v11471_v37 }
0x172c   :  { %8969 = vmatprep.subr.bf16.mxu0 %v10752_v0  ;;  %8993 = vmatprep.subr.bf16.mxu1 %v10752_v0 }
0x172d   :  { %8971 = vmatprep.mubr.msk.bf16.mxu0 %vm10753_vm0, %v10752_v0  ;;  %8995 = vmatprep.mubr.msk.bf16.mxu1 %vm10753_vm0, %v10752_v0 }
0x172f   :  { %8970 = vmatpush3.bf16.msra.mxu0 %v11192_v14  ;;  %8994 = vmatpush3.bf16.msra.mxu1 %v11481_v50 }
0x1730   :  { %8983 = vmatprep.subr.bf16.mxu0 %v10752_v0  ;;  %9007 = vmatprep.subr.bf16.mxu1 %v10752_v0 }
0x17f5   :  { %v11486_v13 = vpop.f32.mrb[52].mxu1 }
0x17f6   :  { %v8965_v32 = vpop.f32.mrb[53].mxu1 }
0x17f7   :  { %v2049_v57 = vpop.f32.mrb[54].mxu1 }
0x17f8   :  { %v8966_v58 = vpop.f32.mrb[55].mxu1 }
0x17fd   :  { %v1973_v29 = vpop.f32.mrb[52].mxu0  ;;  %v2157_v59 = vpop.f32.mrb[56].mxu1 }
0x17fe   :  { %v1974_v60 = vadd.f32 %v1973_v29, %v11439_v52  ;;  %v2163_v61 = vadd.f32 %v2157_v59, %v11067_v15  ;;  %v8957_v14 = vpop.f32.mrb[53].mxu0  ;;  %v8981_v33 = vpop.f32.mrb[57].mxu1 }
0x17ff   :  { %v1976_v62 = vpop.f32.mrb[54].mxu0  ;;  %v2160_v63 = vpop.f32.mrb[58].mxu1 }
0x1800   :  { %v1979_v56 = vadd.f32 %v11169_v51, %v1974_v60  ;;  %v2164_v38 = vadd.f32 %v11491_v1, %v2163_v61  ;;  %v8958_v2 = vpop.f32.mrb[55].mxu0  ;;  %v8982_v46 = vpop.f32.mrb[59].mxu1  ;;  %v11549_v61 = vld [vmem:[#allocation9 + $0x3] ss:$0 sm:$0xff] }
0x1802   :  { %9936 = vtanh.f32 %v1979_v56  ;;  %v8178_v52 = vmul.f32 -1.442695, %v1979_v56  ;;  %v8183_v4 = vmul.f32 -1.442695, %v2164_v38 }
0x1803   :  { %9938 = vtanh.f32 %v2164_v38 }
0x1804   :  { %9940 = vpow2.f32 %v8178_v52 }
0x1805   :  { %9942 = vpow2.f32 %v8183_v4 }
0x180c   :  { %v9937_v28 = vpop.eup %9936 }
0x180d   :  { %v9939_v3 = vpop.eup %9938  ;;  %1989 = vrot.lane.b32.xlu0 %v9937_v28, %s13137_s4  ;;  %v11552_v28 = vld [vmem:[#allocation9 + $0x1] ss:$0 sm:$0xff] }
0x180e   :  { %2177 = vrot.lane.b32.xlu1 %v9939_v3, %s13137_s4  ;;  %v9941_v6 = vpop.eup %9940 }
0x180f   :  { %v9943_v51 = vpop.eup %9942  ;;  %v1983_v8 = vadd.f32 1.0, %v9941_v6 }
0x1810   :  { %v2168_v11 = vadd.f32 1.0, %v9943_v51 }
0x1811   :  { %9944 = vrcp.f32 %v1983_v8 }
0x1812   :  { %9946 = vrcp.f32 %v2168_v11 }
0x181b   :  { %v9945_v9 = vpop.eup %9944 }
0x181c   :  { %v9947_v55 = vpop.eup %9946  ;;  %v1987_v25 = vmul.f32 %v9945_v9, %v11384_v40 }
0x181d   :  { %v2175_v26 = vmul.f32 %v9947_v55, %v2173_v23 }
0x187f   :  { %v1990_v16 = vpop.permute.xlu0 %1989 }
0x1880   :  { %v2178_v17 = vpop.permute.xlu1 %2177  ;;  %v1992_v10 = vmul.f32 %v9945_v9, %v1990_v16 }
0x1881   :  { %v2180_v22 = vmul.f32 %v9947_v55, %v2178_v17 }
0x1882   :  { %1994 = vrot.lane.b32.xlu0 %v1992_v10, %s10755_s16 }
0x1883   :  { %2182 = vrot.lane.b32.xlu1 %v2180_v22, %s10755_s16 }
0x18f4   :  { %v1995_v27 = vpop.permute.xlu0 %1994 }
0x18f5   :  { %v2183_v39 = vpop.permute.xlu1 %2182  ;;  %v11500_v42 = vadd.f32 %v1995_v27, %v1987_v25 }
0x18f6   :  { %v11502_v7 = vadd.f32 %v2183_v39, %v2175_v26 }
0x18f7   :  { %9948 = vtanh.f32 %v11500_v42 }
0x18f8   :  { %9950 = vtanh.f32 %v11502_v7 }
0x1901   :  { %v9949_v44 = vpop.eup %9948 }
0x1902   :  { %v9951_v45 = vpop.eup %9950  ;;  %2000 = vrot.lane.b32.xlu0 %v9949_v44, %s13137_s4 }
0x1903   :  { %2188 = vrot.lane.b32.xlu1 %v9951_v45, %s13137_s4 }
0x1974   :  { %v2001_v5 = vpop.permute.xlu0 %2000 }
0x1975   :  { %v2189_v41 = vpop.permute.xlu1 %2188  ;;  %v2003_v40 = vmul.f32 %v9945_v9, %v2001_v5 }
0x1976   :  { %v2191_v18 = vmul.f32 %v9947_v55, %v2189_v41 }
0x1977   :  { %v2004_v19 = vpack.c.bf16 %v2003_v40, %v2003_v40 }
0x1978   :  { %v2192_v47 = vpack.c.bf16 %v2191_v18, %v2191_v18 }
0x1979   :  { %2053 = vrot.lane.b32.xlu0 %v2004_v19, %s10755_s16 }
0x197a   :  { %2234 = vrot.lane.b32.xlu1 %v2192_v47, %s10755_s16 }
0x19eb   :  { %v2054_v49 = vpop.permute.xlu0 %2053 }
0x19ec   :  { %v11510_v30 = vpop.permute.xlu1 %2234  ;;  %8972 = vmatmul.mubr.msk.bf16.vlgmr.msra.gmra.mrb[56].mxu0 %vm317_vm1, %v2054_v49 }
0x19ed   :  { %8996 = vmatmul.mubr.msk.bf16.vlgmr.msra.gmra.mrb[60].mxu1 %vm317_vm1, %v11510_v30  ;;  %8984 = vmatpush3.bf16.msra.mxu0 %v11395_v24 }
0x19ee   :  { %8985 = vmatprep.subr.bf16.mxu0 %v10752_v0  ;;  %8987 = vmatprep.mubr.msk.bf16.mxu0 %vm10753_vm0, %v10752_v0 }
0x19ef   :  { %9008 = vmatpush3.bf16.msra.mxu1 %v11519_v31  ;;  %9011 = vmatprep.mubr.msk.bf16.mxu1 %vm10753_vm0, %v10752_v0 }
0x19f0   :  { %9009 = vmatprep.subr.bf16.mxu1 %v10752_v0 }
0x19f1   :  { %8986 = vmatpush3.bf16.msra.mxu0 %v11405_v53 }
0x19f2   :  { %8999 = vmatprep.subr.bf16.mxu0 %v10752_v0 }
0x19f3   :  { %9010 = vmatpush3.bf16.msra.mxu1 %v11527_v48 }
0x19f4   :  { %8988 = vmatmul.mubr.msk.bf16.vlgmr.msra.gmra.mrb[60].mxu0 %vm317_vm1, %v11464_v21  ;;  %9023 = vmatprep.subr.bf16.mxu1 %v10752_v0  ;;  %v11544_v21 = vld [vmem:[#allocation8 + $0x38] sm:$0xff]  }
0x19f5   :  { %9000 = vmatpush3.bf16.msra.mxu0 %v11415_v54  ;;  %9003 = vmatprep.mubr.msk.bf16.mxu0 %vm10753_vm0, %v10752_v0 }
0x19f6   :  { %9001 = vmatprep.subr.bf16.mxu0 %v10752_v0 }
0x19f9   :  { %9002 = vmatpush3.bf16.msra.mxu0 %v11423_v20 }
0x19fa   :  { %9015 = vmatprep.subr.bf16.mxu0 %v10752_v0 }
0x19fc   :  { %9004 = vmatmul.mubr.msk.bf16.vlgmr.msra.gmra.mrb[64].mxu0 %vm317_vm1, %v2054_v49 }
0x19fd   :  { %9016 = vmatpush3.bf16.msra.mxu0 %v11428_v43  ;;  %9019 = vmatprep.mubr.msk.bf16.mxu0 %vm10753_vm0, %v10752_v0 }
0x19fe   :  { %9017 = vmatprep.subr.bf16.mxu0 %v10752_v0 }
0x1a01   :  { %9018 = vmatpush3.bf16.msra.mxu0 %v11544_v21 }
0x1a02   :  { %9031 = vmatprep.subr.bf16.mxu0 %v10752_v0 }
0x1abf   :  { %v2092_v32 = vpop.f32.mrb[56].mxu0 }
0x1ac0   :  { %v2093_v57 = vadd.f32 %v2092_v32, %v11486_v13  ;;  %v2273_v58 = vpop.f32.mrb[60].mxu1  ;;  %v8973_v29 = vpop.f32.mrb[57].mxu0 }
0x1ac1   :  { %v8997_v59 = vpop.f32.mrb[61].mxu1  ;;  %v2095_v60 = vpop.f32.mrb[58].mxu0 }
0x1ac2   :  { %v2098_v14 = vadd.f32 %v11549_v61, %v2093_v57  ;;  %v2276_v33 = vpop.f32.mrb[62].mxu1  ;;  %v8974_v62 = vpop.f32.mrb[59].mxu0 }
0x1ac3   :  { %v8998_v63 = vpop.f32.mrb[63].mxu1 }
0x1ac4   :  { %9952 = vtanh.f32 %v2098_v14  ;;  %v8181_v9 = vmul.f32 -1.442695, %v2098_v14  ;;  %v11586_v14 = vld [vmem:[#allocation6 + $0x30] sm:$0xff]  }
0x1ac7   :  { %v2227_v56 = vpop.f32.mrb[60].mxu0 }
0x1ac8   :  { %v2274_v38 = vadd.f32 %v2273_v58, %v2227_v56  ;;  %v8989_v2 = vpop.f32.mrb[61].mxu0 }
0x1ac9   :  { %v2230_v46 = vpop.f32.mrb[62].mxu0 }
0x1aca   :  { %v2279_v13 = vadd.f32 %v11552_v28, %v2274_v38  ;;  %v8990_v3 = vpop.f32.mrb[63].mxu0 }
0x1acc   :  { %9954 = vtanh.f32 %v2279_v13  ;;  %v8186_v16 = vmul.f32 -1.442695, %v2279_v13 }
0x1acd   :  { %9956 = vpow2.f32 %v8181_v9 }
0x1ace   :  { %v9953_v52 = vpop.eup %9952  ;;  %9958 = vpow2.f32 %v8186_v16 }
0x1acf   :  { %2108 = vrot.lane.b32.xlu0 %v9953_v52, %s13137_s4  ;;  %v11556_v4 = vpop.f32.mrb[64].mxu0 }
0x1ad0   :  { %v9005_v6 = vpop.f32.mrb[65].mxu0 }
0x1ad1   :  { %v2342_v51 = vpop.f32.mrb[66].mxu0  ;;  %v11605_v6 = vld [vmem:[#allocation9 + $0x2] ss:$0 sm:$0xff] }
0x1ad2   :  { %v9006_v8 = vpop.f32.mrb[67].mxu0 }
0x1ad6   :  { %v9955_v11 = vpop.eup %9954 }
0x1ad7   :  { %2289 = vrot.lane.b32.xlu1 %v9955_v11, %s13137_s4  ;;  %v9957_v55 = vpop.eup %9956 }
0x1ad8   :  { %v2102_v17 = vadd.f32 1.0, %v9957_v55  ;;  %v9959_v10 = vpop.eup %9958 }
0x1ad9   :  { %v2283_v22 = vadd.f32 1.0, %v9959_v10 }
0x1ada   :  { %9960 = vrcp.f32 %v2102_v17 }
0x1adb   :  { %9962 = vrcp.f32 %v2283_v22 }
0x1ae4   :  { %v9961_v23 = vpop.eup %9960 }
0x1ae5   :  { %v9963_v27 = vpop.eup %9962  ;;  %v2106_v45 = vmul.f32 %v9961_v23, %v11446_v12 }
0x1ae6   :  { %v2287_v40 = vmul.f32 %v9963_v27, %v11450_v35 }
0x1b41   :  { %v2109_v25 = vpop.permute.xlu0 %2108 }
0x1b42   :  { %v2111_v26 = vmul.f32 %v9961_v23, %v2109_v25 }
0x1b44   :  { %2113 = vrot.lane.b32.xlu0 %v2111_v26, %s10755_s16 }
0x1b49   :  { %v2290_v39 = vpop.permute.xlu1 %2289 }
0x1b4a   :  { %v2292_v44 = vmul.f32 %v9963_v27, %v2290_v39 }
0x1b4c   :  { %2294 = vrot.lane.b32.xlu1 %v2292_v44, %s10755_s16 }
0x1bb6   :  { %v2114_v5 = vpop.permute.xlu0 %2113 }
0x1bb7   :  { %v11562_v41 = vadd.f32 %v2114_v5, %v2106_v45 }
0x1bb9   :  { %9964 = vtanh.f32 %v11562_v41 }
0x1bbe   :  { %v2295_v18 = vpop.permute.xlu1 %2294 }
0x1bbf   :  { %v11566_v19 = vadd.f32 %v2295_v18, %v2287_v40 }
0x1bc1   :  { %9966 = vtanh.f32 %v11566_v19 }
0x1bc3   :  { %v9965_v47 = vpop.eup %9964 }
0x1bc4   :  { %2119 = vrot.lane.b32.xlu0 %v9965_v47, %s13137_s4  ;;  %v2588_v47 = vrot.slane %v11502_v7, 6 }
0x1bcb   :  { %v9967_v49 = vpop.eup %9966 }
0x1bcc   :  { %2300 = vrot.lane.b32.xlu1 %v9967_v49, %s13137_s4 }
0x1c36   :  { %v2120_v32 = vpop.permute.xlu0 %2119 }
0x1c37   :  { %v2122_v12 = vmul.f32 %v9961_v23, %v2120_v32 }
0x1c39   :  { %v2417_v57 = vpack.c.bf16 %v2122_v12, %v2122_v12 }
0x1c3b   :  { %2419 = vrot.lane.b32.xlu0 %v2417_v57, %s10755_s16 }
0x1c3e   :  { %v2301_v58 = vpop.permute.xlu1 %2300 }
0x1c3f   :  { %v2303_v29 = vmul.f32 %v9963_v27, %v2301_v58 }
0x1c41   :  { %v2304_v59 = vpack.c.bf16 %v2303_v29, %v2303_v29 }
0x1c43   :  { %2346 = vrot.lane.b32.xlu1 %v2304_v59, %s10755_s16 }
0x1cad   :  { %v2420_v35 = vpop.permute.xlu0 %2419 }
0x1cae   :  { %9020 = vmatmul.mubr.msk.bf16.vlgmr.msra.gmra.mrb[68].mxu0 %vm317_vm1, %v2420_v35 }
0x1caf   :  { %9032 = vmatpush3.bf16.msra.mxu0 %v11344_v34  ;;  %9035 = vmatprep.mubr.msk.bf16.mxu0 %vm10753_vm0, %v10752_v0  ;;  %v11596_v34 = vld [vmem:[#allocation6 + $0x38] sm:$0xff]  }
0x1cb0   :  { %9033 = vmatprep.subr.bf16.mxu0 %v10752_v0 }
0x1cb3   :  { %9034 = vmatpush3.bf16.msra.mxu0 %v11350_v36 }
0x1cb4   :  { %9047 = vmatprep.subr.bf16.mxu0 %v10752_v0 }
0x1cb5   :  { %v11580_v60 = vpop.permute.xlu1 %2346 }
0x1cb6   :  { %9012 = vmatmul.mubr.msk.bf16.vlgmr.msra.gmra.mrb[64].mxu1 %vm317_vm1, %v11580_v60  ;;  %9036 = vmatmul.mubr.msk.bf16.vlgmr.msra.gmra.mrb[72].mxu0 %vm317_vm1, %v11510_v30 }
0x1cb7   :  { %9024 = vmatpush3.bf16.msra.mxu1 %v11586_v14  ;;  %9048 = vmatpush3.bf16.msra.mxu0 %v11471_v37 }
0x1cb8   :  { %9025 = vmatprep.subr.bf16.mxu1 %v10752_v0  ;;  %9027 = vmatprep.mubr.msk.bf16.mxu1 %vm10753_vm0, %v10752_v0 }
0x1cb9   :  { %9049 = vmatprep.subr.bf16.mxu0 %v10752_v0  ;;  %9051 = vmatprep.mubr.msk.bf16.mxu0 %vm10753_vm0, %v10752_v0 }
0x1cbb   :  { %9026 = vmatpush3.bf16.msra.mxu1 %v11596_v34  ;;  %9050 = vmatpush3.bf16.msra.mxu0 %v11481_v50 }
0x1cbc   :  { %9039 = vmatprep.subr.bf16.mxu1 %v10752_v0  ;;  %9063 = vmatprep.subr.bf16.mxu0 %v10752_v0 }
0x1d81   :  { %v11602_v36 = vpop.f32.mrb[68].mxu0 }
0x1d82   :  { %v9021_v30 = vpop.f32.mrb[69].mxu0 }
0x1d83   :  { %v2461_v33 = vpop.f32.mrb[70].mxu0 }
0x1d84   :  { %v9022_v62 = vpop.f32.mrb[71].mxu0 }
0x1d89   :  { %v2385_v63 = vpop.f32.mrb[64].mxu1  ;;  %v2569_v56 = vpop.f32.mrb[72].mxu0 }
0x1d8a   :  { %v2386_v38 = vadd.f32 %v2385_v63, %v11556_v4  ;;  %v2576_v2 = vrot.slane %v2569_v56, 6  ;;  %v9013_v46 = vpop.f32.mrb[65].mxu1  ;;  %v9037_v13 = vpop.f32.mrb[73].mxu0 }
0x1d8b   :  { %v2388_v3 = vpop.f32.mrb[66].mxu1  ;;  %v2572_v52 = vpop.f32.mrb[74].mxu0 }
0x1d8c   :  { %v2391_v51 = vadd.f32 %v11605_v6, %v2386_v38  ;;  %v2578_v8 = vadd.f32 %v2576_v2, %v11067_v15  ;;  %v9014_v11 = vpop.f32.mrb[67].mxu1  ;;  %v9038_v9 = vpop.f32.mrb[75].mxu0 }
0x1d8e   :  { %9968 = vtanh.f32 %v2391_v51  ;;  %v2579_v16 = vadd.f32 %v11491_v1, %v2578_v8  ;;  %v8189_v17 = vmul.f32 -1.442695, %v2391_v51 }
0x1d90   :  { %9970 = vtanh.f32 %v2579_v16  ;;  %v8194_v10 = vmul.f32 -1.442695, %v2579_v16 }
0x1d91   :  { %9972 = vpow2.f32 %v8189_v17 }
0x1d92   :  { %9974 = vpow2.f32 %v8194_v10 }
0x1d98   :  { %v9969_v55 = vpop.eup %9968 }
0x1d99   :  { %2401 = vrot.lane.b32.xlu0 %v9969_v55, %s13137_s4 }
0x1d9a   :  { %v9971_v4 = vpop.eup %9970 }
0x1d9b   :  { %2592 = vrot.lane.b32.xlu1 %v9971_v4, %s13137_s4  ;;  %v9973_v22 = vpop.eup %9972 }
0x1d9c   :  { %v9975_v23 = vpop.eup %9974  ;;  %v2395_v25 = vadd.f32 1.0, %v9973_v22 }
0x1d9d   :  { %v2583_v26 = vadd.f32 1.0, %v9975_v23 }
0x1d9e   :  { %9976 = vrcp.f32 %v2395_v25 }
0x1d9f   :  { %9978 = vrcp.f32 %v2583_v26 }
0x1da8   :  { %v9977_v27 = vpop.eup %9976 }
0x1da9   :  { %v9979_v45 = vpop.eup %9978  ;;  %v2399_v18 = vmul.f32 %v9977_v27, %v11500_v42 }
0x1daa   :  { %v2590_v12 = vmul.f32 %v9979_v45, %v2588_v47 }
0x1e0b   :  { %v2402_v39 = vpop.permute.xlu0 %2401 }
0x1e0c   :  { %v2404_v44 = vmul.f32 %v9977_v27, %v2402_v39 }
0x1e0d   :  { %v2593_v5 = vpop.permute.xlu1 %2592 }
0x1e0e   :  { %2406 = vrot.lane.b32.xlu0 %v2404_v44, %s10755_s16  ;;  %v2595_v40 = vmul.f32 %v9979_v45, %v2593_v5 }
0x1e10   :  { %2597 = vrot.lane.b32.xlu1 %v2595_v40, %s10755_s16 }
0x1e80   :  { %v2407_v49 = vpop.permute.xlu0 %2406 }
0x1e81   :  { %v11616_v32 = vadd.f32 %v2407_v49, %v2399_v18 }
0x1e82   :  { %v2598_v57 = vpop.permute.xlu1 %2597 }
0x1e83   :  { %9980 = vtanh.f32 %v11616_v32  ;;  %v11619_v58 = vadd.f32 %v2598_v57, %v2590_v12 }
0x1e85   :  { %9982 = vtanh.f32 %v11619_v58 }
0x1e8d   :  { %v9981_v29 = vpop.eup %9980 }
0x1e8e   :  { %2412 = vrot.lane.b32.xlu0 %v9981_v29, %s13137_s4 }
0x1e8f   :  { %v9983_v59 = vpop.eup %9982 }
0x1e90   :  { %2603 = vrot.lane.b32.xlu1 %v9983_v59, %s13137_s4 }
0x1f00   :  { %v2413_v42 = vpop.permute.xlu0 %2412 }
0x1f01   :  { %v2415_v35 = vmul.f32 %v9977_v27, %v2413_v42 }
0x1f02   :  { %v2604_v30 = vpop.permute.xlu1 %2603 }
0x1f03   :  { %v2416_v7 = vpack.c.bf16 %v2415_v35, %v2415_v35  ;;  %v2606_v33 = vmul.f32 %v9979_v45, %v2604_v30 }
0x1f05   :  { %2465 = vrot.lane.b32.xlu0 %v2416_v7, %s10755_s16  ;;  %v2607_v62 = vpack.c.bf16 %v2606_v33, %v2606_v33 }
0x1f07   :  { %v2649_v63 = vrot.slane %v2607_v62, 1 }
0x1f09   :  { %2650 = vrot.lane.b32.xlu1 %v2649_v63, %s10755_s16 }
0x1f77   :  { %v2466_v56 = vpop.permute.xlu0 %2465 }
0x1f78   :  { %9028 = vmatmul.mubr.msk.bf16.vlgmr.msra.gmra.mrb[68].mxu1 %vm317_vm1, %v2466_v56 }
0x1f79   :  { %9040 = vmatpush3.bf16.msra.mxu1 %v11395_v24  ;;  %9043 = vmatprep.mubr.msk.bf16.mxu1 %vm10753_vm0, %v10752_v0 }
0x1f7a   :  { %9041 = vmatprep.subr.bf16.mxu1 %v10752_v0 }
0x1f7b   :  { %v11631_v38 = vpop.permute.xlu1 %2650 }
0x1f7c   :  { %9052 = vmatmul.mubr.msk.bf16.vlgmr.msra.gmra.mrb[76].mxu0 %vm317_vm1, %v11631_v38 }
0x1f7d   :  { %9042 = vmatpush3.bf16.msra.mxu1 %v11405_v53  ;;  %9064 = vmatpush3.bf16.msra.mxu0 %v11519_v31 }
0x1f7e   :  { %9055 = vmatprep.subr.bf16.mxu1 %v10752_v0  ;;  %9065 = vmatprep.subr.bf16.mxu0 %v10752_v0 }
0x1f7f   :  { %9067 = vmatprep.mubr.msk.bf16.mxu0 %vm10753_vm0, %v10752_v0 }
0x1f80   :  { %9044 = vmatmul.mubr.msk.bf16.vlgmr.msra.gmra.mrb[72].mxu1 %vm317_vm1, %v11580_v60 }
0x1f81   :  { %9056 = vmatpush3.bf16.msra.mxu1 %v11415_v54  ;;  %9059 = vmatprep.mubr.msk.bf16.mxu1 %vm10753_vm0, %v10752_v0 }
0x1f82   :  { %9057 = vmatprep.subr.bf16.mxu1 %v10752_v0  ;;  %9066 = vmatpush3.bf16.msra.mxu0 %v11527_v48 }
0x1f83   :  { %9079 = vmatprep.subr.bf16.mxu0 %v10752_v0 }
0x1f85   :  { %9058 = vmatpush3.bf16.msra.mxu1 %v11423_v20 }
0x1f86   :  { %9071 = vmatprep.subr.bf16.mxu1 %v10752_v0 }
0x1f88   :  { %9060 = vmatmul.mubr.msk.bf16.vlgmr.msra.gmra.mrb[76].mxu1 %vm317_vm1, %v2466_v56 }
0x1f89   :  { %9072 = vmatpush3.bf16.msra.mxu1 %v11428_v43  ;;  %9075 = vmatprep.mubr.msk.bf16.mxu1 %vm10753_vm0, %v10752_v0 }
0x1f8a   :  { %9073 = vmatprep.subr.bf16.mxu1 %v10752_v0 }
0x1f8d   :  { %9074 = vmatpush3.bf16.msra.mxu1 %v11544_v21 }
0x1f8e   :  { %9087 = vmatprep.subr.bf16.mxu1 %v10752_v0 }
0x204b   :  { %v2504_v24 = vpop.f32.mrb[68].mxu1 }
0x204c   :  { %v2505_v53 = vadd.f32 %v2504_v24, %v11602_v36  ;;  %v9029_v54 = vpop.f32.mrb[69].mxu1 }
0x204d   :  { %v2507_v20 = vpop.f32.mrb[70].mxu1  ;;  %v11686_v54 = vld [vmem:[#allocation8 + $0x8] sm:$0xff]  }
0x204e   :  { %v2510_v60 = vadd.f32 %v11549_v61, %v2505_v53  ;;  %v9030_v2 = vpop.f32.mrb[71].mxu1  ;;  %v11680_v53 = vld [vmem:[#allocation8] sm:$0xff]  }
0x204f   :  { %v2689_v46 = vpop.f32.mrb[76].mxu0 }
0x2050   :  { %9984 = vtanh.f32 %v2510_v60  ;;  %v9053_v43 = vpop.f32.mrb[77].mxu0  ;;  %v8192_v23 = vmul.f32 -1.442695, %v2510_v60 }
0x2051   :  { %v2692_v13 = vpop.f32.mrb[78].mxu0 }
0x2052   :  { %v9054_v3 = vpop.f32.mrb[79].mxu0 }
0x2053   :  { %v2642_v52 = vpop.f32.mrb[72].mxu1 }
0x2054   :  { %v2690_v51 = vadd.f32 %v2689_v46, %v2642_v52  ;;  %v9045_v8 = vpop.f32.mrb[73].mxu1 }
0x2055   :  { %v2645_v11 = vpop.f32.mrb[74].mxu1 }
0x2056   :  { %v2695_v9 = vadd.f32 %v11552_v28, %v2690_v51  ;;  %v9046_v16 = vpop.f32.mrb[75].mxu1 }
0x2058   :  { %9986 = vtanh.f32 %v2695_v9  ;;  %v8197_v25 = vmul.f32 -1.442695, %v2695_v9 }
0x2059   :  { %9988 = vpow2.f32 %v8192_v23 }
0x205a   :  { %v9985_v55 = vpop.eup %9984  ;;  %9990 = vpow2.f32 %v8197_v25 }
0x205b   :  { %v11661_v36 = vpop.f32.mrb[76].mxu1  ;;  %2520 = vrot.lane.b32.xlu0 %v9985_v55, %s13137_s4 }
0x205c   :  { %v9061_v4 = vpop.f32.mrb[77].mxu1 }
0x205d   :  { %v2758_v17 = vpop.f32.mrb[78].mxu1 }
0x205e   :  { %v9062_v10 = vpop.f32.mrb[79].mxu1 }
0x2062   :  { %v9987_v22 = vpop.eup %9986 }
0x2063   :  { %2705 = vrot.lane.b32.xlu1 %v9987_v22, %s13137_s4  ;;  %v9989_v26 = vpop.eup %9988 }
0x2064   :  { %v2514_v27 = vadd.f32 1.0, %v9989_v26  ;;  %v9991_v39 = vpop.eup %9990 }
0x2065   :  { %v2699_v44 = vadd.f32 1.0, %v9991_v39 }
0x2066   :  { %9992 = vrcp.f32 %v2514_v27 }
0x2067   :  { %9994 = vrcp.f32 %v2699_v44 }
0x2070   :  { %v9993_v45 = vpop.eup %9992 }
0x2071   :  { %v9995_v18 = vpop.eup %9994  ;;  %v2518_v12 = vmul.f32 %v9993_v45, %v11562_v41 }
0x2072   :  { %v2703_v59 = vmul.f32 %v9995_v18, %v11566_v19 }
0x20cd   :  { %v2521_v5 = vpop.permute.xlu0 %2520 }
0x20ce   :  { %v2523_v40 = vmul.f32 %v9993_v45, %v2521_v5 }
0x20d0   :  { %2525 = vrot.lane.b32.xlu0 %v2523_v40, %s10755_s16 }
0x20d5   :  { %v2706_v47 = vpop.permute.xlu1 %2705 }
0x20d6   :  { %v2708_v49 = vmul.f32 %v9995_v18, %v2706_v47  ;;  %v3004_v47 = vrot.slane %v11619_v58, 6 }
0x20d8   :  { %2710 = vrot.lane.b32.xlu1 %v2708_v49, %s10755_s16 }
0x2142   :  { %v2526_v57 = vpop.permute.xlu0 %2525 }
0x2143   :  { %v11668_v29 = vadd.f32 %v2526_v57, %v2518_v12 }
0x2145   :  { %9996 = vtanh.f32 %v11668_v29 }
0x214a   :  { %v2711_v42 = vpop.permute.xlu1 %2710 }
0x214b   :  { %v11672_v35 = vadd.f32 %v2711_v42, %v2703_v59 }
0x214d   :  { %9998 = vtanh.f32 %v11672_v35 }
0x214f   :  { %v9997_v7 = vpop.eup %9996 }
0x2150   :  { %2531 = vrot.lane.b32.xlu0 %v9997_v7, %s13137_s4 }
0x2157   :  { %v9999_v30 = vpop.eup %9998 }
0x2158   :  { %2716 = vrot.lane.b32.xlu1 %v9999_v30, %s13137_s4 }
0x21c2   :  { %v2532_v33 = vpop.permute.xlu0 %2531 }
0x21c3   :  { %v2534_v41 = vmul.f32 %v9993_v45, %v2532_v33 }
0x21c5   :  { %v2833_v62 = vpack.c.bf16 %v2534_v41, %v2534_v41 }
0x21c7   :  { %2835 = vrot.lane.b32.xlu0 %v2833_v62, %s10755_s16 }
0x21ca   :  { %v2717_v63 = vpop.permute.xlu1 %2716 }
0x21cb   :  { %v2719_v56 = vmul.f32 %v9995_v18, %v2717_v63 }
0x21cd   :  { %v2720_v24 = vpack.c.bf16 %v2719_v56, %v2719_v56 }
0x21cf   :  { %2762 = vrot.lane.b32.xlu1 %v2720_v24, %s10755_s16 }
0x2239   :  { %v2836_v19 = vpop.permute.xlu0 %2835 }
0x223a   :  { %9076 = vmatmul.mubr.msk.bf16.vlgmr.msra.gmra.mrb[80].mxu1 %vm317_vm1, %v2836_v19  ;;  %v11731_v19 = vld [vmem:[#allocation8 + $0x10] sm:$0xff]  }
0x223b   :  { %9088 = vmatpush3.bf16.msra.mxu1 %v11680_v53  ;;  %9091 = vmatprep.mubr.msk.bf16.mxu1 %vm10753_vm0, %v10752_v0 }
0x223c   :  { %9089 = vmatprep.subr.bf16.mxu1 %v10752_v0 }
0x223f   :  { %9090 = vmatpush3.bf16.msra.mxu1 %v11686_v54 }
0x2240   :  { %9103 = vmatprep.subr.bf16.mxu1 %v10752_v0 }
0x2241   :  { %v11690_v20 = vpop.permute.xlu1 %2762 }
0x2242   :  { %9068 = vmatmul.mubr.msk.bf16.vlgmr.msra.gmra.mrb[80].mxu0 %vm317_vm1, %v11690_v20  ;;  %9092 = vmatmul.mubr.msk.bf16.vlgmr.msra.gmra.mrb[84].mxu1 %vm317_vm1, %v11631_v38 }
0x2243   :  { %9080 = vmatpush3.bf16.msra.mxu0 %v11586_v14  ;;  %9104 = vmatpush3.bf16.msra.mxu1 %v11471_v37 }
0x2244   :  { %9081 = vmatprep.subr.bf16.mxu0 %v10752_v0  ;;  %9083 = vmatprep.mubr.msk.bf16.mxu0 %vm10753_vm0, %v10752_v0 }
0x2245   :  { %9105 = vmatprep.subr.bf16.mxu1 %v10752_v0  ;;  %9107 = vmatprep.mubr.msk.bf16.mxu1 %vm10753_vm0, %v10752_v0 }
0x2247   :  { %9082 = vmatpush3.bf16.msra.mxu0 %v11596_v34  ;;  %9106 = vmatpush3.bf16.msra.mxu1 %v11481_v50 }
0x2248   :  { %9095 = vmatprep.subr.bf16.mxu0 %v10752_v0  ;;  %9119 = vmatprep.subr.bf16.mxu1 %v10752_v0 }
0x230d   :  { %v11708_v38 = vpop.f32.mrb[80].mxu1 }
0x230e   :  { %v9077_v37 = vpop.f32.mrb[81].mxu1 }
0x230f   :  { %v2877_v60 = vpop.f32.mrb[82].mxu1 }
0x2310   :  { %v9078_v2 = vpop.f32.mrb[83].mxu1  ;;  %v11741_v60 = vld [vmem:[#allocation8 + $0x18] sm:$0xff]  }
0x2311   :  { %v11751_v2 = vld [vmem:[#allocation8 + $0x20] sm:$0xff]  }
0x2315   :  { %v2801_v46 = vpop.f32.mrb[80].mxu0  ;;  %v2985_v43 = vpop.f32.mrb[84].mxu1 }
0x2316   :  { %v2802_v13 = vadd.f32 %v2801_v46, %v11661_v36  ;;  %v2992_v3 = vrot.slane %v2985_v43, 4  ;;  %v9069_v52 = vpop.f32.mrb[81].mxu0  ;;  %v9093_v51 = vpop.f32.mrb[85].mxu1 }
0x2317   :  { %v2804_v8 = vpop.f32.mrb[82].mxu0  ;;  %v2988_v11 = vpop.f32.mrb[86].mxu1 }
0x2318   :  { %v2807_v50 = vadd.f32 %v11605_v6, %v2802_v13  ;;  %v2994_v9 = vadd.f32 %v2992_v3, %v11067_v15  ;;  %v9070_v16 = vpop.f32.mrb[83].mxu0  ;;  %v9094_v55 = vpop.f32.mrb[87].mxu1 }
0x231a   :  { %10000 = vtanh.f32 %v2807_v50  ;;  %v2995_v4 = vadd.f32 %v11491_v1, %v2994_v9  ;;  %v8200_v36 = vmul.f32 -1.442695, %v2807_v50 }
0x231c   :  { %10002 = vtanh.f32 %v2995_v4  ;;  %v8205_v22 = vmul.f32 -1.442695, %v2995_v4 }
0x231d   :  { %10004 = vpow2.f32 %v8200_v36 }
0x231e   :  { %10006 = vpow2.f32 %v8205_v22 }
0x2324   :  { %v10001_v17 = vpop.eup %10000 }
0x2325   :  { %2817 = vrot.lane.b32.xlu0 %v10001_v17, %s13137_s4 }
0x2326   :  { %v10003_v10 = vpop.eup %10002 }
0x2327   :  { %3008 = vrot.lane.b32.xlu1 %v10003_v10, %s13137_s4  ;;  %v10005_v23 = vpop.eup %10004 }
0x2328   :  { %v10007_v25 = vpop.eup %10006  ;;  %v2811_v26 = vadd.f32 1.0, %v10005_v23 }
0x2329   :  { %v2999_v27 = vadd.f32 1.0, %v10007_v25 }
0x232a   :  { %10008 = vrcp.f32 %v2811_v26 }
0x232b   :  { %10010 = vrcp.f32 %v2999_v27 }
0x2334   :  { %v10009_v39 = vpop.eup %10008 }
0x2335   :  { %v10011_v45 = vpop.eup %10010  ;;  %v2815_v18 = vmul.f32 %v10009_v39, %v11616_v32 }
0x2336   :  { %v3006_v57 = vmul.f32 %v10011_v45, %v3004_v47 }
0x2397   :  { %v2818_v44 = vpop.permute.xlu0 %2817 }
0x2398   :  { %v2820_v1 = vmul.f32 %v10009_v39, %v2818_v44 }
0x2399   :  { %v3009_v5 = vpop.permute.xlu1 %3008 }
0x239a   :  { %2822 = vrot.lane.b32.xlu0 %v2820_v1, %s10755_s16  ;;  %v3011_v40 = vmul.f32 %v10011_v45, %v3009_v5 }
0x239c   :  { %3013 = vrot.lane.b32.xlu1 %v3011_v40, %s10755_s16 }
0x240c   :  { %v2823_v49 = vpop.permute.xlu0 %2822 }
0x240d   :  { %v11720_v12 = vadd.f32 %v2823_v49, %v2815_v18 }
0x240e   :  { %v3014_v59 = vpop.permute.xlu1 %3013 }
0x240f   :  { %10012 = vtanh.f32 %v11720_v12  ;;  %v11723_v42 = vadd.f32 %v3014_v59, %v3006_v57 }
0x2411   :  { %10014 = vtanh.f32 %v11723_v42 }
0x2419   :  { %v10013_v7 = vpop.eup %10012 }
0x241a   :  { %2828 = vrot.lane.b32.xlu0 %v10013_v7, %s13137_s4 }
0x241b   :  { %v10015_v30 = vpop.eup %10014 }
0x241c   :  { %3019 = vrot.lane.b32.xlu1 %v10015_v30, %s13137_s4 }
0x248c   :  { %v2829_v32 = vpop.permute.xlu0 %2828 }
0x248d   :  { %v2831_v33 = vmul.f32 %v10009_v39, %v2829_v32 }
0x248e   :  { %v3020_v41 = vpop.permute.xlu1 %3019 }
0x248f   :  { %v2832_v58 = vpack.c.bf16 %v2831_v33, %v2831_v33  ;;  %v3022_v62 = vmul.f32 %v10011_v45, %v3020_v41 }
0x2491   :  { %2881 = vrot.lane.b32.xlu0 %v2832_v58, %s10755_s16  ;;  %v3023_v63 = vpack.c.bf16 %v3022_v62, %v3022_v62 }
0x2493   :  { %v3065_v56 = vrot.slane %v3023_v63, 2 }
0x2495   :  { %3066 = vrot.lane.b32.xlu1 %v3065_v56, %s10755_s16 }
0x2503   :  { %v2882_v24 = vpop.permute.xlu0 %2881 }
0x2504   :  { %9084 = vmatmul.mubr.msk.bf16.vlgmr.msra.gmra.mrb[84].mxu0 %vm317_vm1, %v2882_v24 }
0x2505   :  { %9096 = vmatpush3.bf16.msra.mxu0 %v11731_v19  ;;  %9099 = vmatprep.mubr.msk.bf16.mxu0 %vm10753_vm0, %v10752_v0 }
0x2506   :  { %9097 = vmatprep.subr.bf16.mxu0 %v10752_v0 }
0x2507   :  { %v11737_v37 = vpop.permute.xlu1 %3066 }
0x2508   :  { %9108 = vmatmul.mubr.msk.bf16.vlgmr.msra.gmra.mrb[88].mxu1 %vm317_vm1, %v11737_v37 }
0x2509   :  { %9098 = vmatpush3.bf16.msra.mxu0 %v11741_v60  ;;  %9120 = vmatpush3.bf16.msra.mxu1 %v11519_v31  ;;  %v11759_v31 = vld [vmem:[#allocation8 + $0x28] sm:$0xff]  }
0x250a   :  { %9111 = vmatprep.subr.bf16.mxu0 %v10752_v0  ;;  %9121 = vmatprep.subr.bf16.mxu1 %v10752_v0 }
0x250b   :  { %9123 = vmatprep.mubr.msk.bf16.mxu1 %vm10753_vm0, %v10752_v0 }
0x250c   :  { %9100 = vmatmul.mubr.msk.bf16.vlgmr.msra.gmra.mrb[88].mxu0 %vm317_vm1, %v11690_v20  ;;  %v11764_v20 = vld [vmem:[#allocation8 + $0x30] sm:$0xff]  }
0x250d   :  { %9112 = vmatpush3.bf16.msra.mxu0 %v11751_v2  ;;  %9115 = vmatprep.mubr.msk.bf16.mxu0 %vm10753_vm0, %v10752_v0 }
0x250e   :  { %9113 = vmatprep.subr.bf16.mxu0 %v10752_v0  ;;  %9122 = vmatpush3.bf16.msra.mxu1 %v11527_v48 }
0x250f   :  { %9135 = vmatprep.subr.bf16.mxu1 %v10752_v0 }
0x2511   :  { %9114 = vmatpush3.bf16.msra.mxu0 %v11759_v31 }
0x2512   :  { %9127 = vmatprep.subr.bf16.mxu0 %v10752_v0 }
0x2514   :  { %9116 = vmatmul.mubr.msk.bf16.vlgmr.msra.gmra.mrb[92].mxu0 %vm317_vm1, %v2882_v24 }
0x2515   :  { %9128 = vmatpush3.bf16.msra.mxu0 %v11764_v20  ;;  %9131 = vmatprep.mubr.msk.bf16.mxu0 %vm10753_vm0, %v10752_v0 }
0x2516   :  { %9129 = vmatprep.subr.bf16.mxu0 %v10752_v0 }
0x2519   :  { %9130 = vmatpush3.bf16.msra.mxu0 %v11544_v21 }
0x251a   :  { %9143 = vmatprep.subr.bf16.mxu0 %v10752_v0 }
0x25d7   :  { %v2920_v48 = vpop.f32.mrb[84].mxu0 }
0x25d8   :  { %v2921_v46 = vadd.f32 %v2920_v48, %v11708_v38  ;;  %v9085_v43 = vpop.f32.mrb[85].mxu0 }
0x25d9   :  { %v2923_v13 = vpop.f32.mrb[86].mxu0 }
0x25da   :  { %v2926_v3 = vadd.f32 %v11549_v61, %v2921_v46  ;;  %v9086_v52 = vpop.f32.mrb[87].mxu0 }
0x25db   :  { %v3105_v51 = vpop.f32.mrb[88].mxu1 }
0x25dc   :  { %10016 = vtanh.f32 %v2926_v3  ;;  %v9109_v8 = vpop.f32.mrb[89].mxu1  ;;  %v8203_v25 = vmul.f32 -1.442695, %v2926_v3 }
0x25dd   :  { %v3108_v11 = vpop.f32.mrb[90].mxu1 }
0x25de   :  { %v9110_v50 = vpop.f32.mrb[91].mxu1 }
0x25df   :  { %v3058_v9 = vpop.f32.mrb[88].mxu0 }
0x25e0   :  { %v3106_v16 = vadd.f32 %v3105_v51, %v3058_v9  ;;  %v9101_v55 = vpop.f32.mrb[89].mxu0 }
0x25e1   :  { %v3061_v4 = vpop.f32.mrb[90].mxu0 }
0x25e2   :  { %v3111_v21 = vadd.f32 %v11552_v28, %v3106_v16  ;;  %v9102_v17 = vpop.f32.mrb[91].mxu0 }
0x25e4   :  { %10018 = vtanh.f32 %v3111_v21  ;;  %v8208_v26 = vmul.f32 -1.442695, %v3111_v21 }
0x25e5   :  { %10020 = vpow2.f32 %v8203_v25 }
0x25e6   :  { %v10017_v10 = vpop.eup %10016  ;;  %10022 = vpow2.f32 %v8208_v26 }
0x25e7   :  { %2936 = vrot.lane.b32.xlu0 %v10017_v10, %s13137_s4  ;;  %v11776_v38 = vpop.f32.mrb[92].mxu0  ;;  %v10387_v10 = vld [vmem:[#allocation9] ss:$0 sm:$0xff] }
0x25e8   :  { %v9117_v61 = vpop.f32.mrb[93].mxu0 }
0x25e9   :  { %v3174_v36 = vpop.f32.mrb[94].mxu0 }
0x25ea   :  { %v9118_v22 = vpop.f32.mrb[95].mxu0 }
0x25ee   :  { %v10019_v23 = vpop.eup %10018 }
0x25ef   :  { %3121 = vrot.lane.b32.xlu1 %v10019_v23, %s13137_s4  ;;  %v10021_v27 = vpop.eup %10020 }
0x25f0   :  { %v2930_v39 = vadd.f32 1.0, %v10021_v27  ;;  %v10023_v28 = vpop.eup %10022 }
0x25f1   :  { %v3115_v44 = vadd.f32 1.0, %v10023_v28 }
0x25f2   :  { %10024 = vrcp.f32 %v2930_v39 }
0x25f3   :  { %10026 = vrcp.f32 %v3115_v44 }
0x25fc   :  { %v10025_v1 = vpop.eup %10024 }
0x25fd   :  { %v10027_v40 = vpop.eup %10026  ;;  %v2934_v49 = vmul.f32 %v10025_v1, %v11668_v29 }
0x25fe   :  { %v3119_v7 = vmul.f32 %v10027_v40, %v11672_v35 }
0x2659   :  { %v2937_v45 = vpop.permute.xlu0 %2936 }
0x265a   :  { %v2939_v5 = vmul.f32 %v10025_v1, %v2937_v45 }
0x265c   :  { %2941 = vrot.lane.b32.xlu0 %v2939_v5, %s10755_s16 }
0x2661   :  { %v3122_v18 = vpop.permute.xlu1 %3121 }
0x2662   :  { %v3124_v47 = vmul.f32 %v10027_v40, %v3122_v18  ;;  %v3420_v18 = vrot.slane %v11723_v42, 6 }
0x2664   :  { %3126 = vrot.lane.b32.xlu1 %v3124_v47, %s10755_s16 }
0x26ce   :  { %v2942_v57 = vpop.permute.xlu0 %2941 }
0x26cf   :  { %v11782_v59 = vadd.f32 %v2942_v57, %v2934_v49 }
0x26d1   :  { %10028 = vtanh.f32 %v11782_v59 }
0x26d6   :  { %v3127_v30 = vpop.permute.xlu1 %3126 }
0x26d7   :  { %v11786_v32 = vadd.f32 %v3127_v30, %v3119_v7 }
0x26d9   :  { %10030 = vtanh.f32 %v11786_v32 }
0x26db   :  { %v10029_v33 = vpop.eup %10028 }
0x26dc   :  { %2947 = vrot.lane.b32.xlu0 %v10029_v33, %s13137_s4 }
0x26e3   :  { %v10031_v58 = vpop.eup %10030 }
0x26e4   :  { %3132 = vrot.lane.b32.xlu1 %v10031_v58, %s13137_s4 }
0x274e   :  { %v2948_v41 = vpop.permute.xlu0 %2947 }
0x274f   :  { %v2950_v29 = vmul.f32 %v10025_v1, %v2948_v41 }
0x2751   :  { %v3249_v62 = vpack.c.bf16 %v2950_v29, %v2950_v29 }
0x2753   :  { %3251 = vrot.lane.b32.xlu0 %v3249_v62, %s10755_s16 }
0x2756   :  { %v3133_v63 = vpop.permute.xlu1 %3132 }
0x2757   :  { %v3135_v56 = vmul.f32 %v10027_v40, %v3133_v63 }
0x2759   :  { %v3136_v24 = vpack.c.bf16 %v3135_v56, %v3135_v56 }
0x275b   :  { %3178 = vrot.lane.b32.xlu1 %v3136_v24, %s10755_s16 }
0x27c5   :  { %v3252_v35 = vpop.permute.xlu0 %3251 }
0x27c6   :  { %9132 = vmatmul.mubr.msk.bf16.vlgmr.msra.gmra.mrb[96].mxu0 %vm317_vm1, %v3252_v35 }
0x27c7   :  { %9144 = vmatpush3.bf16.msra.mxu0 %v11680_v53  ;;  %9147 = vmatprep.mubr.msk.bf16.mxu0 %vm10753_vm0, %v10752_v0  ;;  %v10385_v53 = vld [vmem:[#allocation6 + $0x10] sm:$0xff]  }
0x27c8   :  { %9145 = vmatprep.subr.bf16.mxu0 %v10752_v0 }
0x27cb   :  { %9146 = vmatpush3.bf16.msra.mxu0 %v11686_v54  ;;  %v10386_v54 = vld [vmem:[#allocation6 + $0x18] sm:$0xff]  }
0x27cc   :  { %9159 = vmatprep.subr.bf16.mxu0 %v10752_v0 }
0x27cd   :  { %v11800_v48 = vpop.permute.xlu1 %3178 }
0x27ce   :  { %9124 = vmatmul.mubr.msk.bf16.vlgmr.msra.gmra.mrb[92].mxu1 %vm317_vm1, %v11800_v48  ;;  %9148 = vmatmul.mubr.msk.bf16.vlgmr.msra.gmra.mrb[100].mxu0 %vm317_vm1, %v11737_v37 }
0x27cf   :  { %9136 = vmatpush3.bf16.msra.mxu1 %v11586_v14  ;;  %9160 = vmatpush3.bf16.msra.mxu0 %v10385_v53  ;;  %v10388_v53 = vld [vmem:[#allocation6 + $0x20] sm:$0xff]  }
0x27d0   :  { %9137 = vmatprep.subr.bf16.mxu1 %v10752_v0  ;;  %9139 = vmatprep.mubr.msk.bf16.mxu1 %vm10753_vm0, %v10752_v0 }
0x27d1   :  { %9161 = vmatprep.subr.bf16.mxu0 %v10752_v0  ;;  %9163 = vmatprep.mubr.msk.bf16.mxu0 %vm10753_vm0, %v10752_v0 }
0x27d3   :  { %9138 = vmatpush3.bf16.msra.mxu1 %v11596_v34  ;;  %9162 = vmatpush3.bf16.msra.mxu0 %v10386_v54 }
0x27d4   :  { %9151 = vmatprep.subr.bf16.mxu1 %v10752_v0  ;;  %9175 = vmatprep.subr.bf16.mxu0 %v10752_v0 }
0x2899   :  { %v11816_v37 = vpop.f32.mrb[96].mxu0 }
0x289a   :  { %v9133_v46 = vpop.f32.mrb[97].mxu0 }
0x289b   :  { %v3293_v43 = vpop.f32.mrb[98].mxu0 }
0x289c   :  { %v9134_v13 = vpop.f32.mrb[99].mxu0 }
0x28a1   :  { %v3217_v3 = vpop.f32.mrb[92].mxu1  ;;  %v3401_v52 = vpop.f32.mrb[100].mxu0 }
0x28a2   :  { %v3218_v51 = vadd.f32 %v3217_v3, %v11776_v38  ;;  %v3408_v8 = vrot.slane %v3401_v52, 2  ;;  %v9125_v11 = vpop.f32.mrb[93].mxu1  ;;  %v9149_v50 = vpop.f32.mrb[101].mxu0 }
0x28a3   :  { %v3220_v9 = vpop.f32.mrb[94].mxu1  ;;  %v3404_v16 = vpop.f32.mrb[102].mxu0  ;;  %v10391_v50 = vld [vmem:[#allocation9 + $0x1] ss:$0 sm:$0xff] }
0x28a4   :  { %v3223_v55 = vadd.f32 %v11605_v6, %v3218_v51  ;;  %v3410_v4 = vadd.f32 %v3408_v8, %v11067_v15  ;;  %v9126_v21 = vpop.f32.mrb[95].mxu1  ;;  %v9150_v17 = vpop.f32.mrb[103].mxu0 }
0x28a6   :  { %10032 = vtanh.f32 %v3223_v55  ;;  %v3411_v61 = vadd.f32 %v10387_v10, %v3410_v4  ;;  %v8211_v38 = vmul.f32 -1.442695, %v3223_v55 }
0x28a8   :  { %10034 = vtanh.f32 %v3411_v61  ;;  %v8216_v23 = vmul.f32 -1.442695, %v3411_v61 }
0x28a9   :  { %10036 = vpow2.f32 %v8211_v38 }
0x28aa   :  { %10038 = vpow2.f32 %v8216_v23 }
0x28b0   :  { %v10033_v36 = vpop.eup %10032 }
0x28b1   :  { %3233 = vrot.lane.b32.xlu0 %v10033_v36, %s13137_s4 }
0x28b2   :  { %v10035_v22 = vpop.eup %10034 }
0x28b3   :  { %3424 = vrot.lane.b32.xlu1 %v10035_v22, %s13137_s4  ;;  %v10037_v25 = vpop.eup %10036 }
0x28b4   :  { %v10039_v26 = vpop.eup %10038  ;;  %v3227_v27 = vadd.f32 1.0, %v10037_v25 }
0x28b5   :  { %v3415_v15 = vadd.f32 1.0, %v10039_v26 }
0x28b6   :  { %10040 = vrcp.f32 %v3227_v27 }
0x28b7   :  { %10042 = vrcp.f32 %v3415_v15  ;;  %v11872_v15 = vld [vmem:[#allocation9 + $0x3] ss:$0 sm:$0xff] }
0x28c0   :  { %v10041_v39 = vpop.eup %10040 }
0x28c1   :  { %v10043_v1 = vpop.eup %10042  ;;  %v3231_v40 = vmul.f32 %v10041_v39, %v11720_v12 }
0x28c2   :  { %v3422_v57 = vmul.f32 %v10043_v1, %v3420_v18 }
0x2923   :  { %v3234_v28 = vpop.permute.xlu0 %3233 }
0x2924   :  { %v3236_v44 = vmul.f32 %v10041_v39, %v3234_v28 }
0x2925   :  { %v3425_v45 = vpop.permute.xlu1 %3424 }
0x2926   :  { %3238 = vrot.lane.b32.xlu0 %v3236_v44, %s10755_s16  ;;  %v3427_v5 = vmul.f32 %v10043_v1, %v3425_v45 }
0x2928   :  { %3429 = vrot.lane.b32.xlu1 %v3427_v5, %s10755_s16 }
0x2998   :  { %v3239_v47 = vpop.permute.xlu0 %3238 }
0x2999   :  { %v11827_v49 = vadd.f32 %v3239_v47, %v3231_v40 }
0x299a   :  { %v3430_v7 = vpop.permute.xlu1 %3429 }
0x299b   :  { %10044 = vtanh.f32 %v11827_v49  ;;  %v11830_v30 = vadd.f32 %v3430_v7, %v3422_v57 }
0x299d   :  { %10046 = vtanh.f32 %v11830_v30 }
0x29a5   :  { %v10045_v33 = vpop.eup %10044 }
0x29a6   :  { %3244 = vrot.lane.b32.xlu0 %v10045_v33, %s13137_s4 }
0x29a7   :  { %v10047_v58 = vpop.eup %10046 }
0x29a8   :  { %3435 = vrot.lane.b32.xlu1 %v10047_v58, %s13137_s4 }
0x2a18   :  { %v3245_v12 = vpop.permute.xlu0 %3244 }
0x2a19   :  { %v3247_v41 = vmul.f32 %v10041_v39, %v3245_v12 }
0x2a1a   :  { %v3436_v29 = vpop.permute.xlu1 %3435 }
0x2a1b   :  { %v3248_v42 = vpack.c.bf16 %v3247_v41, %v3247_v41  ;;  %v3438_v62 = vmul.f32 %v10043_v1, %v3436_v29 }
0x2a1d   :  { %3297 = vrot.lane.b32.xlu0 %v3248_v42, %s10755_s16  ;;  %v3439_v63 = vpack.c.bf16 %v3438_v62, %v3438_v62 }
0x2a1f   :  { %v3481_v56 = vrot.slane %v3439_v63, 3 }
0x2a21   :  { %3482 = vrot.lane.b32.xlu1 %v3481_v56, %s10755_s16 }
0x2a8f   :  { %v3298_v24 = vpop.permute.xlu0 %3297 }
0x2a90   :  { %9140 = vmatmul.mubr.msk.bf16.vlgmr.msra.gmra.mrb[96].mxu1 %vm317_vm1, %v3298_v24 }
0x2a91   :  { %9152 = vmatpush3.bf16.msra.mxu1 %v11731_v19  ;;  %9155 = vmatprep.mubr.msk.bf16.mxu1 %vm10753_vm0, %v10752_v0  ;;  %v10389_v19 = vld [vmem:[#allocation6 + $0x28] sm:$0xff]  }
0x2a92   :  { %9153 = vmatprep.subr.bf16.mxu1 %v10752_v0 }
0x2a93   :  { %v11842_v35 = vpop.permute.xlu1 %3482 }
0x2a94   :  { %9164 = vmatmul.mubr.msk.bf16.vlgmr.msra.gmra.mrb[104].mxu0 %vm317_vm1, %v11842_v35 }
0x2a95   :  { %9154 = vmatpush3.bf16.msra.mxu1 %v11741_v60  ;;  %9176 = vmatpush3.bf16.msra.mxu0 %v10388_v53  ;;  %v10390_v60 = vld [vmem:[#allocation8 + $0x38] sm:$0xff]  }
0x2a96   :  { %9167 = vmatprep.subr.bf16.mxu1 %v10752_v0  ;;  %9177 = vmatprep.subr.bf16.mxu0 %v10752_v0 }
0x2a97   :  { %9179 = vmatprep.mubr.msk.bf16.mxu0 %vm10753_vm0, %v10752_v0 }
0x2a98   :  { %9156 = vmatmul.mubr.msk.bf16.vlgmr.msra.gmra.mrb[100].mxu1 %vm317_vm1, %v11800_v48 }
0x2a99   :  { %9168 = vmatpush3.bf16.msra.mxu1 %v11751_v2  ;;  %9171 = vmatprep.mubr.msk.bf16.mxu1 %vm10753_vm0, %v10752_v0 }
0x2a9a   :  { %9169 = vmatprep.subr.bf16.mxu1 %v10752_v0  ;;  %9178 = vmatpush3.bf16.msra.mxu0 %v10389_v19 }
0x2a9b   :  { %9191 = vmatprep.subr.bf16.mxu0 %v10752_v0 }
0x2a9d   :  { %9170 = vmatpush3.bf16.msra.mxu1 %v11759_v31 }
0x2a9e   :  { %9183 = vmatprep.subr.bf16.mxu1 %v10752_v0 }
0x2aa0   :  { %9172 = vmatmul.mubr.msk.bf16.vlgmr.msra.gmra.mrb[104].mxu1 %vm317_vm1, %v3298_v24 }
0x2aa1   :  { %9184 = vmatpush3.bf16.msra.mxu1 %v11764_v20  ;;  %9187 = vmatprep.mubr.msk.bf16.mxu1 %vm10753_vm0, %v10752_v0 }
0x2aa2   :  { %9185 = vmatprep.subr.bf16.mxu1 %v10752_v0 }
0x2aa5   :  { %9186 = vmatpush3.bf16.msra.mxu1 %v10390_v60 }
0x2aa6   :  { %9199 = vmatprep.subr.bf16.mxu1 %v10752_v0 }
0x2b63   :  { %v3336_v2 = vpop.f32.mrb[96].mxu1 }
0x2b64   :  { %v3337_v48 = vadd.f32 %v3336_v2, %v11816_v37  ;;  %v9141_v54 = vpop.f32.mrb[97].mxu1 }
0x2b65   :  { %v3339_v31 = vpop.f32.mrb[98].mxu1  ;;  %v11911_v54 = vld [vmem:[#allocation11 + $0x18] sm:$0xff]  }
0x2b66   :  { %v9142_v46 = vpop.f32.mrb[99].mxu1  ;;  %v3342_v39 = vadd.f32 %v11872_v15, %v3337_v48  ;;  %v11899_v48 = vld [vmem:[#allocation11 + $0x8] sm:$0xff]  }
0x2b67   :  { %v3521_v43 = vpop.f32.mrb[104].mxu0 }
0x2b68   :  { %v9165_v13 = vpop.f32.mrb[105].mxu0  ;;  %v8214_v1 = vmul.f32 -1.442695, %v3342_v39 }
0x2b69   :  { %v3524_v3 = vpop.f32.mrb[106].mxu0 }
0x2b6a   :  { %v9166_v52 = vpop.f32.mrb[107].mxu0 }
0x2b6b   :  { %v3474_v20 = vpop.f32.mrb[100].mxu1 }
0x2b6c   :  { %v3522_v51 = vadd.f32 %v3521_v43, %v3474_v20  ;;  %v9157_v8 = vpop.f32.mrb[101].mxu1 }
0x2b6d   :  { %v3477_v11 = vpop.f32.mrb[102].mxu1 }
0x2b6e   :  { %v3527_v9 = vadd.f32 %v10391_v50, %v3522_v51  ;;  %v9158_v16 = vpop.f32.mrb[103].mxu1 }
0x2b6f   :  { %v11926_v16 = vld [vmem:[#allocation11 + $0x20] sm:$0xff]  }
0x2b70   :  { %10048 = vtanh.f32 %v3527_v9  ;;  %v8219_v10 = vmul.f32 -1.442695, %v3527_v9 }
0x2b72   :  { %10050 = vpow2.f32 %v8219_v10 }
0x2b73   :  { %v3587_v55 = vpop.f32.mrb[104].mxu1 }
0x2b74   :  { %v9173_v4 = vpop.f32.mrb[105].mxu1 }
0x2b75   :  { %v3590_v21 = vpop.f32.mrb[106].mxu1 }
0x2b76   :  { %v9174_v17 = vpop.f32.mrb[107].mxu1 }
0x2b7a   :  { %v10049_v37 = vpop.eup %10048 }
0x2b7b   :  { %3537 = vrot.lane.b32.xlu0 %v10049_v37, %s13137_s4 }
0x2b7c   :  { %v10051_v61 = vpop.eup %10050 }
0x2b7d   :  { %v3531_v36 = vadd.f32 1.0, %v10051_v61 }
0x2b7f   :  { %10052 = vrcp.f32 %v3531_v36 }
0x2b89   :  { %v10053_v22 = vpop.eup %10052 }
0x2b8a   :  { %v3535_v25 = vmul.f32 %v10053_v22, %v11786_v32 }
0x2bed   :  { %v3538_v38 = vpop.permute.xlu0 %3537 }
0x2bee   :  { %v3540_v23 = vmul.f32 %v10053_v22, %v3538_v38 }
0x2bf0   :  { %3542 = vrot.lane.b32.xlu1 %v3540_v23, %s10755_s16 }
0x2c62   :  { %v3543_v26 = vpop.permute.xlu1 %3542 }
0x2c63   :  { %v11870_v27 = vadd.f32 %v3543_v26, %v3535_v25 }
0x2c65   :  { %10054 = vtanh.f32 %v11870_v27 }
0x2c66   :  { %10056 = vtanh.f32 %v3342_v39 }
0x2c67   :  { %10058 = vpow2.f32 %v8214_v1 }
0x2c6f   :  { %v10055_v28 = vpop.eup %10054 }
0x2c70   :  { %3548 = vrot.lane.b32.xlu0 %v10055_v28, %s13137_s4  ;;  %v10057_v44 = vpop.eup %10056 }
0x2c71   :  { %v10059_v45 = vpop.eup %10058 }
0x2c72   :  { %v3346_v32 = vadd.f32 1.0, %v10059_v45 }
0x2c74   :  { %3352 = vrot.lane.b32.xlu0 %v10057_v44, %s13137_s4  ;;  %10060 = vrcp.f32 %v3346_v32 }
0x2c7e   :  { %v10061_v47 = vpop.eup %10060 }
0x2c7f   :  { %v3350_v58 = vmul.f32 %v10061_v47, %v11782_v59 }
0x2ce2   :  { %v3549_v5 = vpop.permute.xlu0 %3548 }
0x2ce3   :  { %v3551_v40 = vmul.f32 %v10053_v22, %v3549_v5 }
0x2ce5   :  { %v3552_v18 = vpack.c.bf16 %v3551_v40, %v3551_v40 }
0x2ce6   :  { %v3353_v57 = vpop.permute.xlu0 %3352 }
0x2ce7   :  { %v3355_v7 = vmul.f32 %v10061_v47, %v3353_v57  ;;  %3594 = vrot.lane.b32.xlu1 %v3552_v18, %s10755_s16 }
0x2ce9   :  { %3357 = vrot.lane.b32.xlu0 %v3355_v7, %s10755_s16 }
0x2d59   :  { %v3595_v33 = vpop.permute.xlu1 %3594 }
0x2d5a   :  { %9180 = vmatmul.mubr.msk.bf16.vlgmr.msra.gmra.mrb[108].mxu0 %vm317_vm1, %v3595_v33 }
0x2d5b   :  { %v3358_v12 = vpop.permute.xlu0 %3357  ;;  %9192 = vmatpush3.bf16.msra.mxu0 %v11586_v14  ;;  %9195 = vmatprep.mubr.msk.bf16.mxu0 %vm10753_vm0, %v10752_v0 }
0x2d5c   :  { %v11885_v41 = vadd.f32 %v3358_v12, %v3350_v58  ;;  %9193 = vmatprep.subr.bf16.mxu0 %v10752_v0 }
0x2d5e   :  { %10062 = vtanh.f32 %v11885_v41 }
0x2d5f   :  { %9194 = vmatpush3.bf16.msra.mxu0 %v11596_v34  ;;  %v11895_v34 = vld [vmem:[#allocation11] sm:$0xff]  }
0x2d60   :  { %9207 = vmatprep.subr.bf16.mxu0 %v10752_v0 }
0x2d68   :  { %v10063_v42 = vpop.eup %10062 }
0x2d69   :  { %3363 = vrot.lane.b32.xlu0 %v10063_v42, %s13137_s4 }
0x2ddb   :  { %v3364_v59 = vpop.permute.xlu0 %3363 }
0x2ddc   :  { %v3366_v29 = vmul.f32 %v10061_v47, %v3364_v59 }
0x2dde   :  { %v3665_v62 = vpack.c.bf16 %v3366_v29, %v3366_v29 }
0x2de0   :  { %3667 = vrot.lane.b32.xlu0 %v3665_v62, %s10755_s16 }
0x2e2d   :  { %v3633_v14 = vpop.f32.mrb[108].mxu0 }
0x2e2e   :  { %v3634_v63 = vadd.f32 %v3633_v14, %v3587_v55  ;;  %v9181_v56 = vpop.f32.mrb[109].mxu0  ;;  %v11929_v55 = vld [vmem:[#allocation11 + $0x28] sm:$0xff]   ;;  %v11958_v14 = vld [vmem:[%s13141_s0] sm:$0xff]  }
0x2e2f   :  { %v3636_v24 = vpop.f32.mrb[110].mxu0  ;;  %v11969_v56 = vld [vmem:[#allocation11 + $0x38] sm:$0xff]  }
0x2e30   :  { %v3639_v53 = vadd.f32 %v11605_v6, %v3634_v63  ;;  %v9182_v19 = vpop.f32.mrb[111].mxu0  ;;  %v11905_v6 = vld [vmem:[#allocation11 + $0x10] sm:$0xff]  }
0x2e31   :  { %v11960_v63 = vld [vmem:[#allocation11 + $0x30] sm:$0xff]  }
0x2e32   :  { %10064 = vtanh.f32 %v3639_v53  ;;  %v8222_v31 = vmul.f32 -1.442695, %v3639_v53 }
0x2e34   :  { %10066 = vpow2.f32 %v8222_v31  ;;  %v11989_v31 = vld [vmem:[#allocation12] ss:$0 sm:$0xff] }
0x2e3c   :  { %v10065_v60 = vpop.eup %10064 }
0x2e3d   :  { %3649 = vrot.lane.b32.xlu1 %v10065_v60, %s13137_s4 }
0x2e52   :  { %v3668_v2 = vpop.permute.xlu0 %3667 }
0x2e53   :  { %9188 = vmatmul.mubr.msk.bf16.vlgmr.msra.gmra.mrb[108].mxu1 %vm317_vm1, %v3668_v2 }
0x2e54   :  { %9200 = vmatpush3.bf16.msra.mxu1 %v11895_v34  ;;  %9203 = vmatprep.mubr.msk.bf16.mxu1 %vm10753_vm0, %v10752_v0 }
0x2e55   :  { %9201 = vmatprep.subr.bf16.mxu1 %v10752_v0 }
0x2e58   :  { %9202 = vmatpush3.bf16.msra.mxu1 %v11899_v48 }
0x2e59   :  { %9215 = vmatprep.subr.bf16.mxu1 %v10752_v0 }
0x2e5b   :  { %9204 = vmatmul.mubr.msk.bf16.vlgmr.msra.gmra.mrb[112].mxu1 %vm317_vm1, %v11842_v35  ;;  %v10067_v35 = vpop.eup %10066 }
0x2e5c   :  { %9216 = vmatpush3.bf16.msra.mxu1 %v11905_v6  ;;  %9219 = vmatprep.mubr.msk.bf16.mxu1 %vm10753_vm0, %v10752_v0  ;;  %v3643_v46 = vadd.f32 1.0, %v10067_v35 }
0x2e5d   :  { %9217 = vmatprep.subr.bf16.mxu1 %v10752_v0 }
0x2e5e   :  { %10068 = vrcp.f32 %v3643_v46 }
0x2e60   :  { %9218 = vmatpush3.bf16.msra.mxu1 %v11911_v54 }
0x2e61   :  { %9231 = vmatprep.subr.bf16.mxu1 %v10752_v0 }
0x2e63   :  { %9220 = vmatmul.mubr.msk.bf16.vlgmr.msra.gmra.mrb[116].mxu1 %vm317_vm1, %v3595_v33 }
0x2e64   :  { %9235 = vmatprep.mubr.msk.bf16.mxu1 %vm10753_vm0, %v10752_v0  ;;  %9232 = vmatpush3.bf16.msra.mxu1 %v11926_v16 }
0x2e65   :  { %9233 = vmatprep.subr.bf16.mxu1 %v10752_v0 }
0x2e68   :  { %v10069_v43 = vpop.eup %10068  ;;  %9234 = vmatpush3.bf16.msra.mxu1 %v11929_v55 }
0x2e69   :  { %v3647_v52 = vmul.f32 %v10069_v43, %v11827_v49  ;;  %9247 = vmatprep.subr.bf16.mxu1 %v10752_v0 }
0x2eaf   :  { %v3650_v13 = vpop.permute.xlu1 %3649 }
0x2eb0   :  { %v3652_v3 = vmul.f32 %v10069_v43, %v3650_v13 }
0x2eb2   :  { %3654 = vrot.lane.b32.xlu1 %v3652_v3, %s10755_s16 }
0x2f24   :  { %v3655_v20 = vpop.permute.xlu1 %3654 }
0x2f25   :  { %v11923_v51 = vadd.f32 %v3655_v20, %v3647_v52 }
0x2f26   :  { %v3706_v8 = vpop.f32.mrb[108].mxu1 }
0x2f27   :  { %10070 = vtanh.f32 %v11923_v51  ;;  %v9189_v11 = vpop.f32.mrb[109].mxu1 }
0x2f28   :  { %v3709_v50 = vpop.f32.mrb[110].mxu1 }
0x2f29   :  { %v9190_v9 = vpop.f32.mrb[111].mxu1 }
0x2f2e   :  { %v11932_v4 = vpop.f32.mrb[112].mxu1 }
0x2f2f   :  { %v9205_v49 = vpop.f32.mrb[113].mxu1 }
0x2f30   :  { %v3833_v21 = vpop.f32.mrb[114].mxu1 }
0x2f31   :  { %v10071_v17 = vpop.eup %10070  ;;  %v9206_v37 = vpop.f32.mrb[115].mxu1 }
0x2f32   :  { %3660 = vrot.lane.b32.xlu1 %v10071_v17, %s13137_s4 }
0x2f36   :  { %v11937_v10 = vpop.f32.mrb[116].mxu1 }
0x2f37   :  { %v9221_v61 = vpop.f32.mrb[117].mxu1 }
0x2f38   :  { %v3978_v36 = vpop.f32.mrb[118].mxu1 }
0x2f39   :  { %v9222_v22 = vpop.f32.mrb[119].mxu1  ;;  %v3909_v36 = vrot.slane %v11830_v30, 6 }
0x2fa4   :  { %v3661_v38 = vpop.permute.xlu1 %3660 }
0x2fa5   :  { %v3663_v23 = vmul.f32 %v10069_v43, %v3661_v38 }
0x2fa7   :  { %v3664_v25 = vpack.c.bf16 %v3663_v23, %v3663_v23 }
0x2fa9   :  { %3713 = vrot.lane.b32.xlu1 %v3664_v25, %s10755_s16  ;;  %v12004_v25 = vld [vmem:[%s13141_s0 + $0x10] sm:$0xff]  }
0x301b   :  { %v3714_v26 = vpop.permute.xlu1 %3713 }
0x301c   :  { %9196 = vmatmul.mubr.msk.bf16.vlgmr.msra.gmra.mrb[112].mxu0 %vm317_vm1, %v3714_v26  ;;  %9236 = vmatmul.mubr.msk.bf16.vlgmr.msra.gmra.mrb[120].mxu1 %vm317_vm1, %v3714_v26  ;;  %v12010_v26 = vld [vmem:[%s13141_s0 + $0x18] sm:$0xff]  }
0x301d   :  { %9211 = vmatprep.mubr.msk.bf16.mxu0 %vm10753_vm0, %v10752_v0  ;;  %9251 = vmatprep.mubr.msk.bf16.mxu1 %vm10753_vm0, %v10752_v0 }
0x301e   :  { %9208 = vmatpush3.bf16.msra.mxu0 %v11958_v14  ;;  %9248 = vmatpush3.bf16.msra.mxu1 %v11960_v63 }
0x301f   :  { %9209 = vmatprep.subr.bf16.mxu0 %v10752_v0  ;;  %9249 = vmatprep.subr.bf16.mxu1 %v10752_v0 }
0x3022   :  { %9250 = vmatpush3.bf16.msra.mxu1 %v11969_v56 }
0x3023   :  { %9263 = vmatprep.subr.bf16.mxu1 %v10752_v0 }
0x30ef   :  { %v3752_v39 = vpop.f32.mrb[112].mxu0  ;;  %v11946_v28 = vpop.f32.mrb[120].mxu1 }
0x30f0   :  { %v3753_v44 = vadd.f32 %v3752_v39, %v3706_v8  ;;  %v9197_v1 = vpop.f32.mrb[113].mxu0  ;;  %v9237_v45 = vpop.f32.mrb[121].mxu1 }
0x30f1   :  { %v3755_v32 = vpop.f32.mrb[114].mxu0  ;;  %v4120_v5 = vpop.f32.mrb[122].mxu1 }
0x30f2   :  { %v3758_v40 = vadd.f32 %v11872_v15, %v3753_v44  ;;  %v9198_v18 = vpop.f32.mrb[115].mxu0  ;;  %v9238_v47 = vpop.f32.mrb[123].mxu1  ;;  %v12027_v32 = vld [vmem:[#allocation12 + $0x1] ss:$0 sm:$0xff] }
0x30f4   :  { %10072 = vtanh.f32 %v3758_v40  ;;  %v8225_v7 = vmul.f32 -1.442695, %v3758_v40 }
0x30f6   :  { %10074 = vpow2.f32 %v8225_v7 }
0x30fe   :  { %v10073_v57 = vpop.eup %10072 }
0x30ff   :  { %3768 = vrot.lane.b32.xlu0 %v10073_v57, %s13137_s4 }
0x3100   :  { %v10075_v33 = vpop.eup %10074 }
0x3101   :  { %v3762_v58 = vadd.f32 1.0, %v10075_v33 }
0x3103   :  { %10076 = vrcp.f32 %v3762_v58 }
0x310d   :  { %v10077_v12 = vpop.eup %10076 }
0x310e   :  { %v3766_v29 = vmul.f32 %v10077_v12, %v11885_v41  ;;  %v11967_v41 = vld [vmem:[%s13141_s0 + $0x8] sm:$0xff]  }
0x310f   :  { %9210 = vmatpush3.bf16.msra.mxu0 %v11967_v41 }
0x3110   :  { %9223 = vmatprep.subr.bf16.mxu0 %v10752_v0 }
0x3171   :  { %v3769_v42 = vpop.permute.xlu0 %3768 }
0x3172   :  { %v3771_v59 = vmul.f32 %v10077_v12, %v3769_v42 }
0x3174   :  { %3773 = vrot.lane.b32.xlu1 %v3771_v59, %s10755_s16 }
0x31e6   :  { %v3774_v62 = vpop.permute.xlu1 %3773 }
0x31e7   :  { %v11952_v15 = vadd.f32 %v3774_v62, %v3766_v29 }
0x31e9   :  { %10078 = vtanh.f32 %v11952_v15 }
0x31f3   :  { %v10079_v24 = vpop.eup %10078 }
0x31f4   :  { %3779 = vrot.lane.b32.xlu0 %v10079_v24, %s13137_s4 }
0x3266   :  { %v3780_v53 = vpop.permute.xlu0 %3779 }
0x3267   :  { %v3782_v19 = vmul.f32 %v10077_v12, %v3780_v53 }
0x3269   :  { %v3783_v60 = vpack.c.bf16 %v3782_v19, %v3782_v19 }
0x326b   :  { %3837 = vrot.lane.b32.xlu1 %v3783_v60, %s10755_s16 }
0x32dd   :  { %v3838_v2 = vpop.permute.xlu1 %3837 }
0x32de   :  { %9212 = vmatmul.mubr.msk.bf16.vlgmr.msra.gmra.mrb[116].mxu0 %vm317_vm1, %v3838_v2  ;;  %9252 = vmatmul.mubr.msk.bf16.vlgmr.msra.gmra.mrb[124].mxu1 %vm317_vm1, %v3838_v2 }
0x32df   :  { %9264 = vmatpush3.bf16.msra.mxu1 %v11895_v34  ;;  %9227 = vmatprep.mubr.msk.bf16.mxu0 %vm10753_vm0, %v10752_v0 }
0x32e0   :  { %9265 = vmatprep.subr.bf16.mxu1 %v10752_v0  ;;  %9267 = vmatprep.mubr.msk.bf16.mxu1 %vm10753_vm0, %v10752_v0 }
0x32e1   :  { %9224 = vmatpush3.bf16.msra.mxu0 %v12004_v25 }
0x32e2   :  { %9225 = vmatprep.subr.bf16.mxu0 %v10752_v0 }
0x32e3   :  { %9266 = vmatpush3.bf16.msra.mxu1 %v11899_v48 }
0x32e4   :  { %9279 = vmatprep.subr.bf16.mxu1 %v10752_v0 }
0x32e5   :  { %9226 = vmatpush3.bf16.msra.mxu0 %v12010_v26 }
0x32e6   :  { %9239 = vmatprep.subr.bf16.mxu0 %v10752_v0 }
0x33b1   :  { %v3888_v35 = vpop.f32.mrb[116].mxu0  ;;  %v11991_v46 = vpop.f32.mrb[124].mxu1 }
0x33b2   :  { %v3889_v43 = vadd.f32 %v3888_v35, %v11932_v4  ;;  %v9213_v13 = vpop.f32.mrb[117].mxu0  ;;  %v9253_v3 = vpop.f32.mrb[125].mxu1 }
0x33b3   :  { %v3891_v52 = vpop.f32.mrb[118].mxu0  ;;  %v4262_v20 = vpop.f32.mrb[126].mxu1  ;;  %v12048_v13 = vld [vmem:[%s13141_s0 + $0x28] sm:$0xff]  }
0x33b4   :  { %v3900_v8 = vadd.f32 %v11989_v31, %v3889_v43  ;;  %v9214_v11 = vpop.f32.mrb[119].mxu0  ;;  %v9254_v50 = vpop.f32.mrb[127].mxu1  ;;  %v12042_v43 = vld [vmem:[%s13141_s0 + $0x20] sm:$0xff]  }
0x33b5   :  { %v12065_v11 = vld [vmem:[#allocation12 + $0x2] ss:$0 sm:$0xff] }
0x33b6   :  { %10080 = vtanh.f32 %v3900_v8  ;;  %v8233_v49 = vmul.f32 -1.442695, %v3900_v8 }
0x33b8   :  { %10082 = vpow2.f32 %v8233_v49 }
0x33c0   :  { %v10081_v9 = vpop.eup %10080 }
0x33c1   :  { %3913 = vrot.lane.b32.xlu0 %v10081_v9, %s13137_s4 }
0x33c2   :  { %v10083_v21 = vpop.eup %10082 }
0x33c3   :  { %v3904_v17 = vadd.f32 1.0, %v10083_v21 }
0x33c5   :  { %10084 = vrcp.f32 %v3904_v17 }
0x33cf   :  { %v10085_v37 = vpop.eup %10084 }
0x33d0   :  { %v3911_v22 = vmul.f32 %v10085_v37, %v3909_v36 }
0x3433   :  { %v3914_v61 = vpop.permute.xlu0 %3913 }
0x3434   :  { %v3916_v4 = vmul.f32 %v10085_v37, %v3914_v61 }
0x3436   :  { %3918 = vrot.lane.b32.xlu1 %v3916_v4, %s10755_s16 }
0x34a8   :  { %v3919_v38 = vpop.permute.xlu1 %3918 }
0x34a9   :  { %v11998_v23 = vadd.f32 %v3919_v38, %v3911_v22 }
0x34ab   :  { %10086 = vtanh.f32 %v11998_v23 }
0x34b5   :  { %v10087_v30 = vpop.eup %10086 }
0x34b6   :  { %3924 = vrot.lane.b32.xlu0 %v10087_v30, %s13137_s4 }
0x3528   :  { %v3925_v39 = vpop.permute.xlu0 %3924 }
0x3529   :  { %v3927_v44 = vmul.f32 %v10085_v37, %v3925_v39 }
0x352b   :  { %v3928_v1 = vpack.c.bf16 %v3927_v44, %v3927_v44 }
0x352d   :  { %3982 = vrot.lane.b32.xlu1 %v3928_v1, %s10755_s16 }
0x359f   :  { %v3983_v45 = vpop.permute.xlu1 %3982 }
0x35a0   :  { %9228 = vmatmul.mubr.msk.bf16.vlgmr.msra.gmra.mrb[120].mxu0 %vm317_vm1, %v3983_v45  ;;  %9268 = vmatmul.mubr.msk.bf16.vlgmr.msra.gmra.mrb[128].mxu1 %vm317_vm1, %v3983_v45 }
0x35a1   :  { %9280 = vmatpush3.bf16.msra.mxu1 %v11905_v6  ;;  %9243 = vmatprep.mubr.msk.bf16.mxu0 %vm10753_vm0, %v10752_v0 }
0x35a2   :  { %9281 = vmatprep.subr.bf16.mxu1 %v10752_v0  ;;  %9283 = vmatprep.mubr.msk.bf16.mxu1 %vm10753_vm0, %v10752_v0 }
0x35a3   :  { %9240 = vmatpush3.bf16.msra.mxu0 %v12042_v43 }
0x35a4   :  { %9241 = vmatprep.subr.bf16.mxu0 %v10752_v0 }
0x35a5   :  { %9282 = vmatpush3.bf16.msra.mxu1 %v11911_v54 }
0x35a6   :  { %9295 = vmatprep.subr.bf16.mxu1 %v10752_v0 }
0x35a7   :  { %9242 = vmatpush3.bf16.msra.mxu0 %v12048_v13 }
0x35a8   :  { %9255 = vmatprep.subr.bf16.mxu0 %v10752_v0 }
0x3673   :  { %v4033_v5 = vpop.f32.mrb[120].mxu0  ;;  %v12029_v40 = vpop.f32.mrb[128].mxu1 }
0x3674   :  { %v4034_v18 = vadd.f32 %v4033_v5, %v11937_v10  ;;  %v9229_v47 = vpop.f32.mrb[121].mxu0  ;;  %v9269_v57 = vpop.f32.mrb[129].mxu1 }
0x3675   :  { %v4036_v7 = vpop.f32.mrb[122].mxu0  ;;  %v4398_v33 = vpop.f32.mrb[130].mxu1  ;;  %v12080_v57 = vld [vmem:[%s13141_s0 + $0x30] sm:$0xff]  }
0x3676   :  { %v4045_v58 = vadd.f32 %v12027_v32, %v4034_v18  ;;  %v9230_v12 = vpop.f32.mrb[123].mxu0  ;;  %v9270_v42 = vpop.f32.mrb[131].mxu1  ;;  %v12086_v7 = vld [vmem:[%s13141_s0 + $0x38] sm:$0xff]  }
0x3678   :  { %10088 = vtanh.f32 %v4045_v58  ;;  %v8241_v29 = vmul.f32 -1.442695, %v4045_v58 }
0x367a   :  { %10090 = vpow2.f32 %v8241_v29 }
0x3682   :  { %v10089_v59 = vpop.eup %10088 }
0x3683   :  { %4055 = vrot.lane.b32.xlu0 %v10089_v59, %s13137_s4  ;;  %v12107_v59 = vld [vmem:[#allocation12 + $0x3] ss:$0 sm:$0xff] }
0x3684   :  { %v10091_v62 = vpop.eup %10090 }
0x3685   :  { %v4049_v24 = vadd.f32 1.0, %v10091_v62 }
0x3687   :  { %10092 = vrcp.f32 %v4049_v24 }
0x3691   :  { %v10093_v53 = vpop.eup %10092 }
0x3692   :  { %v4053_v60 = vmul.f32 %v10093_v53, %v11870_v27 }
0x36f5   :  { %v4056_v19 = vpop.permute.xlu0 %4055 }
0x36f6   :  { %v4058_v10 = vmul.f32 %v10093_v53, %v4056_v19 }
0x36f8   :  { %4060 = vrot.lane.b32.xlu1 %v4058_v10, %s10755_s16 }
0x376a   :  { %v4061_v2 = vpop.permute.xlu1 %4060 }
0x376b   :  { %v12036_v35 = vadd.f32 %v4061_v2, %v4053_v60 }
0x376d   :  { %10094 = vtanh.f32 %v12036_v35 }
0x3777   :  { %v10095_v27 = vpop.eup %10094 }
0x3778   :  { %4066 = vrot.lane.b32.xlu0 %v10095_v27, %s13137_s4 }
0x37ea   :  { %v4067_v3 = vpop.permute.xlu0 %4066 }
0x37eb   :  { %v4069_v52 = vmul.f32 %v10093_v53, %v4067_v3 }
0x37ed   :  { %v4070_v20 = vpack.c.bf16 %v4069_v52, %v4069_v52 }
0x37ef   :  { %4124 = vrot.lane.b32.xlu1 %v4070_v20, %s10755_s16 }
0x3861   :  { %v4125_v8 = vpop.permute.xlu1 %4124 }
0x3862   :  { %9244 = vmatmul.mubr.msk.bf16.vlgmr.msra.gmra.mrb[124].mxu0 %vm317_vm1, %v4125_v8  ;;  %9284 = vmatmul.mubr.msk.bf16.vlgmr.msra.gmra.mrb[132].mxu1 %vm317_vm1, %v4125_v8 }
0x3863   :  { %9296 = vmatpush3.bf16.msra.mxu1 %v11926_v16  ;;  %9259 = vmatprep.mubr.msk.bf16.mxu0 %vm10753_vm0, %v10752_v0 }
0x3864   :  { %9297 = vmatprep.subr.bf16.mxu1 %v10752_v0  ;;  %9299 = vmatprep.mubr.msk.bf16.mxu1 %vm10753_vm0, %v10752_v0 }
0x3865   :  { %9256 = vmatpush3.bf16.msra.mxu0 %v12080_v57 }
0x3866   :  { %9257 = vmatprep.subr.bf16.mxu0 %v10752_v0 }
0x3867   :  { %9298 = vmatpush3.bf16.msra.mxu1 %v11929_v55 }
0x3868   :  { %9311 = vmatprep.subr.bf16.mxu1 %v10752_v0 }
0x3869   :  { %9258 = vmatpush3.bf16.msra.mxu0 %v12086_v7 }
0x386a   :  { %9271 = vmatprep.subr.bf16.mxu0 %v10752_v0 }
0x3935   :  { %v4175_v50 = vpop.f32.mrb[124].mxu0  ;;  %v12067_v9 = vpop.f32.mrb[132].mxu1 }
0x3936   :  { %v4176_v49 = vadd.f32 %v4175_v50, %v11946_v28  ;;  %v9245_v21 = vpop.f32.mrb[125].mxu0  ;;  %v9285_v17 = vpop.f32.mrb[133].mxu1 }
0x3937   :  { %v4178_v37 = vpop.f32.mrb[126].mxu0  ;;  %v4510_v61 = vpop.f32.mrb[134].mxu1 }
0x3938   :  { %v4187_v4 = vadd.f32 %v12065_v11, %v4176_v49  ;;  %v9246_v36 = vpop.f32.mrb[127].mxu0  ;;  %v9286_v22 = vpop.f32.mrb[135].mxu1 }
0x393a   :  { %10096 = vtanh.f32 %v4187_v4  ;;  %v8249_v30 = vmul.f32 -1.442695, %v4187_v4 }
0x393c   :  { %10098 = vpow2.f32 %v8249_v30 }
0x3944   :  { %v10097_v38 = vpop.eup %10096 }
0x3945   :  { %4197 = vrot.lane.b32.xlu0 %v10097_v38, %s13137_s4 }
0x3946   :  { %v10099_v39 = vpop.eup %10098 }
0x3947   :  { %v4191_v44 = vadd.f32 1.0, %v10099_v39 }
0x3949   :  { %10100 = vrcp.f32 %v4191_v44 }
0x3953   :  { %v10101_v1 = vpop.eup %10100 }
0x3954   :  { %v4195_v5 = vmul.f32 %v10101_v1, %v11923_v51 }
0x39b7   :  { %v4198_v45 = vpop.permute.xlu0 %4197 }
0x39b8   :  { %v4200_v28 = vmul.f32 %v10101_v1, %v4198_v45 }
0x39ba   :  { %4202 = vrot.lane.b32.xlu1 %v4200_v28, %s10755_s16 }
0x3a2c   :  { %v4203_v18 = vpop.permute.xlu1 %4202 }
0x3a2d   :  { %v12074_v47 = vadd.f32 %v4203_v18, %v4195_v5 }
0x3a2f   :  { %10102 = vtanh.f32 %v12074_v47 }
0x3a39   :  { %v10103_v51 = vpop.eup %10102 }
0x3a3a   :  { %4208 = vrot.lane.b32.xlu0 %v10103_v51, %s13137_s4 }
0x3aac   :  { %v4209_v33 = vpop.permute.xlu0 %4208 }
0x3aad   :  { %v4211_v58 = vmul.f32 %v10101_v1, %v4209_v33 }
0x3aaf   :  { %v4212_v12 = vpack.c.bf16 %v4211_v58, %v4211_v58 }
0x3ab1   :  { %4266 = vrot.lane.b32.xlu1 %v4212_v12, %s10755_s16 }
0x3b23   :  { %v4267_v42 = vpop.permute.xlu1 %4266 }
0x3b24   :  { %9260 = vmatmul.mubr.msk.bf16.vlgmr.msra.gmra.mrb[128].mxu0 %vm317_vm1, %v4267_v42  ;;  %9300 = vmatmul.mubr.msk.bf16.vlgmr.msra.gmra.mrb[136].mxu1 %vm317_vm1, %v4267_v42 }
0x3b25   :  { %9272 = vmatpush3.bf16.msra.mxu0 %v11958_v14  ;;  %9312 = vmatpush3.bf16.msra.mxu1 %v11960_v63 }
0x3b26   :  { %9273 = vmatprep.subr.bf16.mxu0 %v10752_v0  ;;  %9313 = vmatprep.subr.bf16.mxu1 %v10752_v0 }
0x3b27   :  { %9275 = vmatprep.mubr.msk.bf16.mxu0 %vm10753_vm0, %v10752_v0  ;;  %9315 = vmatprep.mubr.msk.bf16.mxu1 %vm10753_vm0, %v10752_v0 }
0x3b29   :  { %9274 = vmatpush3.bf16.msra.mxu0 %v11967_v41  ;;  %9314 = vmatpush3.bf16.msra.mxu1 %v11969_v56 }
0x3b2a   :  { %9287 = vmatprep.subr.bf16.mxu0 %v10752_v0  ;;  %9327 = vmatprep.subr.bf16.mxu1 %v10752_v0 }
0x3bf7   :  { %v4317_v29 = vpop.f32.mrb[128].mxu0  ;;  %v12109_v62 = vpop.f32.mrb[136].mxu1 }
0x3bf8   :  { %v4318_v24 = vadd.f32 %v4317_v29, %v11991_v46  ;;  %v9261_v53 = vpop.f32.mrb[129].mxu0  ;;  %v9301_v19 = vpop.f32.mrb[137].mxu1 }
0x3bf9   :  { %v4320_v10 = vpop.f32.mrb[130].mxu0  ;;  %v4622_v60 = vpop.f32.mrb[138].mxu1 }
0x3bfa   :  { %v4329_v2 = vadd.f32 %v12107_v59, %v4318_v24  ;;  %v9262_v27 = vpop.f32.mrb[131].mxu0  ;;  %v9302_v3 = vpop.f32.mrb[139].mxu1 }
0x3bfc   :  { %10104 = vtanh.f32 %v4329_v2  ;;  %v8257_v20 = vmul.f32 -1.442695, %v4329_v2 }
0x3bfe   :  { %10106 = vpow2.f32 %v8257_v20 }
0x3c06   :  { %v10105_v52 = vpop.eup %10104 }
0x3c07   :  { %4339 = vrot.lane.b32.xlu0 %v10105_v52, %s13137_s4 }
0x3c08   :  { %v10107_v8 = vpop.eup %10106 }
0x3c09   :  { %v4333_v50 = vadd.f32 1.0, %v10107_v8 }
0x3c0b   :  { %10108 = vrcp.f32 %v4333_v50 }
0x3c15   :  { %v10109_v49 = vpop.eup %10108 }
0x3c16   :  { %v4337_v17 = vmul.f32 %v10109_v49, %v11952_v15 }
0x3c79   :  { %v4340_v21 = vpop.permute.xlu0 %4339 }
0x3c7a   :  { %v4342_v46 = vmul.f32 %v10109_v49, %v4340_v21 }
0x3c7c   :  { %4344 = vrot.lane.b32.xlu1 %v4342_v46, %s10755_s16 }
0x3cee   :  { %v4345_v37 = vpop.permute.xlu1 %4344 }
0x3cef   :  { %v12116_v61 = vadd.f32 %v4345_v37, %v4337_v17 }
0x3cf1   :  { %10110 = vtanh.f32 %v12116_v61 }
0x3cfb   :  { %v10111_v4 = vpop.eup %10110 }
0x3cfc   :  { %4350 = vrot.lane.b32.xlu0 %v10111_v4, %s13137_s4 }
0x3d6e   :  { %v4351_v36 = vpop.permute.xlu0 %4350 }
0x3d6f   :  { %v12120_v22 = vmul.f32 %v10109_v49, %v4351_v36 }
0x3d71   :  { %v4360_v38 = vpack.c.bf16 %v12120_v22, %v12120_v22 }
0x3d73   :  { %4402 = vrot.lane.b32.xlu1 %v4360_v38, %s10755_s16 }
0x3de5   :  { %v4403_v30 = vpop.permute.xlu1 %4402 }
0x3de6   :  { %9276 = vmatmul.mubr.msk.bf16.vlgmr.msra.gmra.mrb[132].mxu0 %vm317_vm1, %v4403_v30  ;;  %9316 = vmatmul.mubr.msk.bf16.vlgmr.msra.gmra.mrb[140].mxu1 %vm317_vm1, %v4403_v30 }
0x3de7   :  { %9288 = vmatpush3.bf16.msra.mxu0 %v12004_v25  ;;  %9328 = vmatpush3.bf16.msra.mxu1 %v11895_v34 }
0x3de8   :  { %9289 = vmatprep.subr.bf16.mxu0 %v10752_v0  ;;  %9329 = vmatprep.subr.bf16.mxu1 %v10752_v0 }
0x3de9   :  { %9291 = vmatprep.mubr.msk.bf16.mxu0 %vm10753_vm0, %v10752_v0  ;;  %9331 = vmatprep.mubr.msk.bf16.mxu1 %vm10753_vm0, %v10752_v0 }
0x3deb   :  { %9290 = vmatpush3.bf16.msra.mxu0 %v12010_v26  ;;  %9330 = vmatpush3.bf16.msra.mxu1 %v11899_v48 }
0x3dec   :  { %9303 = vmatprep.subr.bf16.mxu0 %v10752_v0  ;;  %9343 = vmatprep.subr.bf16.mxu1 %v10752_v0 }
0x3eb9   :  { %v4441_v15 = vpop.f32.mrb[132].mxu0  ;;  %v12139_v39 = vpop.f32.mrb[140].mxu1 }
0x3eba   :  { %v4442_v44 = vadd.f32 %v4441_v15, %v12029_v40  ;;  %v9277_v1 = vpop.f32.mrb[133].mxu0  ;;  %v9317_v45 = vpop.f32.mrb[141].mxu1 }
0x3ebb   :  { %v4444_v28 = vpop.f32.mrb[134].mxu0  ;;  %v4734_v5 = vpop.f32.mrb[142].mxu1 }
0x3ebc   :  { %v4447_v18 = vadd.f32 %v11989_v31, %v4442_v44  ;;  %v9278_v51 = vpop.f32.mrb[135].mxu0  ;;  %v9318_v33 = vpop.f32.mrb[143].mxu1 }
0x3ebe   :  { %10112 = vtanh.f32 %v4447_v18  ;;  %v8260_v12 = vmul.f32 -1.442695, %v4447_v18 }
0x3ec0   :  { %10114 = vpow2.f32 %v8260_v12 }
0x3ec8   :  { %v10113_v58 = vpop.eup %10112 }
0x3ec9   :  { %4457 = vrot.lane.b32.xlu0 %v10113_v58, %s13137_s4 }
0x3eca   :  { %v10115_v42 = vpop.eup %10114 }
0x3ecb   :  { %v4451_v29 = vadd.f32 1.0, %v10115_v42 }
0x3ecd   :  { %10116 = vrcp.f32 %v4451_v29 }
0x3ed7   :  { %v10117_v24 = vpop.eup %10116 }
0x3ed8   :  { %v4455_v19 = vmul.f32 %v10117_v24, %v11998_v23 }
0x3f3b   :  { %v4458_v53 = vpop.permute.xlu0 %4457 }
0x3f3c   :  { %v4460_v40 = vmul.f32 %v10117_v24, %v4458_v53 }
0x3f3e   :  { %4462 = vrot.lane.b32.xlu1 %v4460_v40, %s10755_s16 }
0x3fb0   :  { %v4463_v10 = vpop.permute.xlu1 %4462 }
0x3fb1   :  { %v12146_v60 = vadd.f32 %v4463_v10, %v4455_v19 }
0x3fb3   :  { %10118 = vtanh.f32 %v12146_v60 }
0x3fbd   :  { %v10119_v2 = vpop.eup %10118 }
0x3fbe   :  { %4468 = vrot.lane.b32.xlu0 %v10119_v2, %s13137_s4 }
0x4030   :  { %v4469_v27 = vpop.permute.xlu0 %4468 }
0x4031   :  { %v4471_v3 = vmul.f32 %v10117_v24, %v4469_v27 }
0x4033   :  { %v4472_v52 = vpack.c.bf16 %v4471_v3, %v4471_v3 }
0x4035   :  { %4514 = vrot.lane.b32.xlu1 %v4472_v52, %s10755_s16 }
0x40a7   :  { %v4515_v20 = vpop.permute.xlu1 %4514 }
0x40a8   :  { %9292 = vmatmul.mubr.msk.bf16.vlgmr.msra.gmra.mrb[136].mxu0 %vm317_vm1, %v4515_v20  ;;  %9332 = vmatmul.mubr.msk.bf16.vlgmr.msra.gmra.mrb[144].mxu1 %vm317_vm1, %v4515_v20 }
0x40a9   :  { %9304 = vmatpush3.bf16.msra.mxu0 %v12042_v43  ;;  %9344 = vmatpush3.bf16.msra.mxu1 %v11905_v6 }
0x40aa   :  { %9305 = vmatprep.subr.bf16.mxu0 %v10752_v0  ;;  %9345 = vmatprep.subr.bf16.mxu1 %v10752_v0 }
0x40ab   :  { %9307 = vmatprep.mubr.msk.bf16.mxu0 %vm10753_vm0, %v10752_v0  ;;  %9347 = vmatprep.mubr.msk.bf16.mxu1 %vm10753_vm0, %v10752_v0 }
0x40ad   :  { %9306 = vmatpush3.bf16.msra.mxu0 %v12048_v13  ;;  %9346 = vmatpush3.bf16.msra.mxu1 %v11911_v54 }
0x40ae   :  { %9319 = vmatprep.subr.bf16.mxu0 %v10752_v0  ;;  %9359 = vmatprep.subr.bf16.mxu1 %v10752_v0 }
0x417b   :  { %v4553_v23 = vpop.f32.mrb[136].mxu0  ;;  %v12165_v6 = vpop.f32.mrb[144].mxu1 }
0x417c   :  { %v4554_v8 = vadd.f32 %v4553_v23, %v12067_v9  ;;  %v9293_v50 = vpop.f32.mrb[137].mxu0  ;;  %v9333_v49 = vpop.f32.mrb[145].mxu1 }
0x417d   :  { %v4556_v21 = vpop.f32.mrb[138].mxu0  ;;  %v4851_v46 = vpop.f32.mrb[146].mxu1 }
0x417e   :  { %v4559_v17 = vadd.f32 %v12027_v32, %v4554_v8  ;;  %v9294_v37 = vpop.f32.mrb[139].mxu0  ;;  %v9334_v4 = vpop.f32.mrb[147].mxu1 }
0x4180   :  { %10120 = vtanh.f32 %v4559_v17  ;;  %v8263_v54 = vmul.f32 -1.442695, %v4559_v17 }
0x4182   :  { %10122 = vpow2.f32 %v8263_v54 }
0x418a   :  { %v10121_v36 = vpop.eup %10120 }
0x418b   :  { %4569 = vrot.lane.b32.xlu0 %v10121_v36, %s13137_s4 }
0x418c   :  { %v10123_v38 = vpop.eup %10122 }
0x418d   :  { %v4563_v30 = vadd.f32 1.0, %v10123_v38 }
0x418f   :  { %10124 = vrcp.f32 %v4563_v30 }
0x4199   :  { %v10125_v15 = vpop.eup %10124 }
0x419a   :  { %v4567_v1 = vmul.f32 %v10125_v15, %v12036_v35 }
0x41fd   :  { %v4570_v44 = vpop.permute.xlu0 %4569 }
0x41fe   :  { %v4572_v9 = vmul.f32 %v10125_v15, %v4570_v44 }
0x4200   :  { %4574 = vrot.lane.b32.xlu1 %v4572_v9, %s10755_s16 }
0x4272   :  { %v4575_v45 = vpop.permute.xlu1 %4574 }
0x4273   :  { %v12172_v28 = vadd.f32 %v4575_v45, %v4567_v1 }
0x4275   :  { %10126 = vtanh.f32 %v12172_v28 }
0x427f   :  { %v10127_v5 = vpop.eup %10126 }
0x4280   :  { %4580 = vrot.lane.b32.xlu0 %v10127_v5, %s13137_s4 }
0x42f2   :  { %v4581_v18 = vpop.permute.xlu0 %4580 }
0x42f3   :  { %v4583_v51 = vmul.f32 %v10125_v15, %v4581_v18 }
0x42f5   :  { %v4584_v33 = vpack.c.bf16 %v4583_v51, %v4583_v51 }
0x42f7   :  { %4626 = vrot.lane.b32.xlu1 %v4584_v33, %s10755_s16 }
0x4369   :  { %v4627_v58 = vpop.permute.xlu1 %4626 }
0x436a   :  { %9308 = vmatmul.mubr.msk.bf16.vlgmr.msra.gmra.mrb[140].mxu0 %vm317_vm1, %v4627_v58  ;;  %9348 = vmatmul.mubr.msk.bf16.vlgmr.msra.gmra.mrb[148].mxu1 %vm317_vm1, %v4627_v58 }
0x436b   :  { %9320 = vmatpush3.bf16.msra.mxu0 %v12080_v57  ;;  %9360 = vmatpush3.bf16.msra.mxu1 %v11926_v16 }
0x436c   :  { %9321 = vmatprep.subr.bf16.mxu0 %v10752_v0  ;;  %9361 = vmatprep.subr.bf16.mxu1 %v10752_v0 }
0x436d   :  { %9323 = vmatprep.mubr.msk.bf16.mxu0 %vm10753_vm0, %v10752_v0  ;;  %9363 = vmatprep.mubr.msk.bf16.mxu1 %vm10753_vm0, %v10752_v0 }
0x436f   :  { %9322 = vmatpush3.bf16.msra.mxu0 %v12086_v7  ;;  %9362 = vmatpush3.bf16.msra.mxu1 %v11929_v55 }
0x4370   :  { %9335 = vmatprep.subr.bf16.mxu0 %v10752_v0  ;;  %9375 = vmatprep.subr.bf16.mxu1 %v10752_v0 }
0x443d   :  { %v4665_v35 = vpop.f32.mrb[140].mxu0  ;;  %v12191_v16 = vpop.f32.mrb[148].mxu1 }
0x443e   :  { %v4666_v12 = vadd.f32 %v4665_v35, %v12109_v62  ;;  %v9309_v42 = vpop.f32.mrb[141].mxu0  ;;  %v9349_v29 = vpop.f32.mrb[149].mxu1 }
0x443f   :  { %v4668_v24 = vpop.f32.mrb[142].mxu0  ;;  %v4963_v53 = vpop.f32.mrb[150].mxu1 }
0x4440   :  { %v4671_v40 = vadd.f32 %v12065_v11, %v4666_v12  ;;  %v9310_v19 = vpop.f32.mrb[143].mxu0  ;;  %v9350_v10 = vpop.f32.mrb[151].mxu1 }
0x4442   :  { %10128 = vtanh.f32 %v4671_v40  ;;  %v8266_v55 = vmul.f32 -1.442695, %v4671_v40 }
0x4444   :  { %10130 = vpow2.f32 %v8266_v55 }
0x444c   :  { %v10129_v2 = vpop.eup %10128 }
0x444d   :  { %4681 = vrot.lane.b32.xlu0 %v10129_v2, %s13137_s4 }
0x444e   :  { %v10131_v27 = vpop.eup %10130 }
0x444f   :  { %v4675_v3 = vadd.f32 1.0, %v10131_v27 }
0x4451   :  { %10132 = vrcp.f32 %v4675_v3 }
0x445b   :  { %v10133_v52 = vpop.eup %10132 }
0x445c   :  { %v4679_v23 = vmul.f32 %v10133_v52, %v12074_v47 }
0x44bf   :  { %v4682_v20 = vpop.permute.xlu0 %4681 }
0x44c0   :  { %v4684_v62 = vmul.f32 %v10133_v52, %v4682_v20 }
0x44c2   :  { %4686 = vrot.lane.b32.xlu1 %v4684_v62, %s10755_s16 }
0x4534   :  { %v4687_v8 = vpop.permute.xlu1 %4686 }
0x4535   :  { %v12198_v50 = vadd.f32 %v4687_v8, %v4679_v23 }
0x4537   :  { %10134 = vtanh.f32 %v12198_v50 }
0x4541   :  { %v10135_v49 = vpop.eup %10134 }
0x4542   :  { %4692 = vrot.lane.b32.xlu0 %v10135_v49, %s13137_s4 }
0x45b4   :  { %v4693_v21 = vpop.permute.xlu0 %4692 }
0x45b5   :  { %v4695_v46 = vmul.f32 %v10133_v52, %v4693_v21 }
0x45b7   :  { %v4696_v17 = vpack.c.bf16 %v4695_v46, %v4695_v46 }
0x45b9   :  { %4738 = vrot.lane.b32.xlu1 %v4696_v17, %s10755_s16 }
0x462b   :  { %v4739_v37 = vpop.permute.xlu1 %4738 }
0x462c   :  { %9324 = vmatmul.mubr.msk.bf16.vlgmr.msra.gmra.mrb[144].mxu0 %vm317_vm1, %v4739_v37  ;;  %9364 = vmatmul.mubr.msk.bf16.vlgmr.msra.gmra.mrb[152].mxu1 %vm317_vm1, %v4739_v37  ;;  %v12272_v37 = vld [vmem:[#allocation11 + $0x18] sm:$0xff]  }
0x462d   :  { %9336 = vmatpush3.bf16.msra.mxu0 %v11958_v14  ;;  %9376 = vmatpush3.bf16.msra.mxu1 %v11960_v63 }
0x462e   :  { %9337 = vmatprep.subr.bf16.mxu0 %v10752_v0  ;;  %9377 = vmatprep.subr.bf16.mxu1 %v10752_v0 }
0x462f   :  { %9339 = vmatprep.mubr.msk.bf16.mxu0 %vm10753_vm0, %v10752_v0  ;;  %9379 = vmatprep.mubr.msk.bf16.mxu1 %vm10753_vm0, %v10752_v0 }
0x4631   :  { %9338 = vmatpush3.bf16.msra.mxu0 %v11967_v41  ;;  %9378 = vmatpush3.bf16.msra.mxu1 %v11969_v56 }
0x4632   :  { %9351 = vmatprep.subr.bf16.mxu0 %v10752_v0  ;;  %9391 = vmatprep.subr.bf16.mxu1 %v10752_v0 }
0x46ff   :  { %v4777_v14 = vpop.f32.mrb[144].mxu0  ;;  %v12217_v63 = vpop.f32.mrb[152].mxu1 }
0x4700   :  { %v4778_v47 = vadd.f32 %v4777_v14, %v12139_v39  ;;  %v9325_v4 = vpop.f32.mrb[145].mxu0  ;;  %v9365_v36 = vpop.f32.mrb[153].mxu1 }
0x4701   :  { %v4780_v54 = vpop.f32.mrb[146].mxu0  ;;  %v5075_v38 = vpop.f32.mrb[154].mxu1 }
0x4702   :  { %v4783_v30 = vadd.f32 %v12107_v59, %v4778_v47  ;;  %v9326_v15 = vpop.f32.mrb[147].mxu0  ;;  %v9366_v44 = vpop.f32.mrb[155].mxu1 }
0x4704   :  { %10136 = vtanh.f32 %v4783_v30  ;;  %v8269_v56 = vmul.f32 -1.442695, %v4783_v30 }
0x4706   :  { %10138 = vpow2.f32 %v8269_v56 }
0x470e   :  { %v10137_v41 = vpop.eup %10136 }
0x470f   :  { %4793 = vrot.lane.b32.xlu0 %v10137_v41, %s13137_s4 }
0x4710   :  { %v10139_v9 = vpop.eup %10138 }
0x4711   :  { %v4787_v1 = vadd.f32 1.0, %v10139_v9 }
0x4713   :  { %10140 = vrcp.f32 %v4787_v1 }
0x471d   :  { %v10141_v45 = vpop.eup %10140 }
0x471e   :  { %v4791_v18 = vmul.f32 %v10141_v45, %v12116_v61 }
0x4781   :  { %v4794_v5 = vpop.permute.xlu0 %4793 }
0x4782   :  { %v4796_v39 = vmul.f32 %v10141_v45, %v4794_v5 }
0x4784   :  { %4798 = vrot.lane.b32.xlu1 %v4796_v39, %s10755_s16 }
0x47f6   :  { %v4799_v51 = vpop.permute.xlu1 %4798 }
0x47f7   :  { %v12224_v33 = vadd.f32 %v4799_v51, %v4791_v18 }
0x47f9   :  { %10142 = vtanh.f32 %v12224_v33 }
0x4803   :  { %v10143_v58 = vpop.eup %10142 }
0x4804   :  { %4804 = vrot.lane.b32.xlu0 %v10143_v58, %s13137_s4 }
0x4876   :  { %v4805_v35 = vpop.permute.xlu0 %4804 }
0x4877   :  { %v12228_v12 = vmul.f32 %v10141_v45, %v4805_v35 }
0x4879   :  { %v4813_v42 = vpack.c.bf16 %v12228_v12, %v12228_v12 }
0x487b   :  { %4855 = vrot.lane.b32.xlu1 %v4813_v42, %s10755_s16 }
0x48ed   :  { %v4856_v29 = vpop.permute.xlu1 %4855 }
0x48ee   :  { %9340 = vmatmul.mubr.msk.bf16.vlgmr.msra.gmra.mrb[148].mxu0 %vm317_vm1, %v4856_v29  ;;  %9380 = vmatmul.mubr.msk.bf16.vlgmr.msra.gmra.mrb[156].mxu1 %vm317_vm1, %v4856_v29  ;;  %v12302_v29 = vld [vmem:[#allocation11 + $0x28] sm:$0xff]  }
0x48ef   :  { %9352 = vmatpush3.bf16.msra.mxu0 %v12004_v25  ;;  %9392 = vmatpush3.bf16.msra.mxu1 %v11895_v34 }
0x48f0   :  { %9353 = vmatprep.subr.bf16.mxu0 %v10752_v0  ;;  %9393 = vmatprep.subr.bf16.mxu1 %v10752_v0 }
0x48f1   :  { %9355 = vmatprep.mubr.msk.bf16.mxu0 %vm10753_vm0, %v10752_v0  ;;  %9395 = vmatprep.mubr.msk.bf16.mxu1 %vm10753_vm0, %v10752_v0 }
0x48f3   :  { %9354 = vmatpush3.bf16.msra.mxu0 %v12010_v26  ;;  %9394 = vmatpush3.bf16.msra.mxu1 %v11899_v48 }
0x48f4   :  { %9367 = vmatprep.subr.bf16.mxu0 %v10752_v0  ;;  %9407 = vmatprep.subr.bf16.mxu1 %v10752_v0 }
0x49c1   :  { %v4894_v25 = vpop.f32.mrb[148].mxu0  ;;  %v12247_v34 = vpop.f32.mrb[156].mxu1 }
0x49c2   :  { %v4895_v61 = vadd.f32 %v4894_v25, %v12165_v6  ;;  %v9341_v24 = vpop.f32.mrb[149].mxu0  ;;  %v9381_v53 = vpop.f32.mrb[157].mxu1 }
0x49c3   :  { %v4897_v40 = vpop.f32.mrb[150].mxu0  ;;  %v5187_v19 = vpop.f32.mrb[158].mxu1 }
0x49c4   :  { %v4900_v10 = vadd.f32 %v11989_v31, %v4895_v61  ;;  %v9342_v2 = vpop.f32.mrb[151].mxu0  ;;  %v9382_v55 = vpop.f32.mrb[159].mxu1 }
0x49c6   :  { %10144 = vtanh.f32 %v4900_v10  ;;  %v8272_v48 = vmul.f32 -1.442695, %v4900_v10 }
0x49c8   :  { %10146 = vpow2.f32 %v8272_v48 }
0x49d0   :  { %v10145_v26 = vpop.eup %10144 }
0x49d1   :  { %4910 = vrot.lane.b32.xlu0 %v10145_v26, %s13137_s4 }
0x49d2   :  { %v10147_v27 = vpop.eup %10146 }
0x49d3   :  { %v4904_v3 = vadd.f32 1.0, %v10147_v27 }
0x49d5   :  { %10148 = vrcp.f32 %v4904_v3 }
0x49df   :  { %v10149_v52 = vpop.eup %10148 }
0x49e0   :  { %v4908_v62 = vmul.f32 %v10149_v52, %v12146_v60  ;;  %v12262_v60 = vld [vmem:[#allocation11 + $0x10] sm:$0xff]  }
0x4a43   :  { %v4911_v20 = vpop.permute.xlu0 %4910 }
0x4a44   :  { %v4913_v6 = vmul.f32 %v10149_v52, %v4911_v20 }
0x4a46   :  { %4915 = vrot.lane.b32.xlu1 %v4913_v6, %s10755_s16 }
0x4ab8   :  { %v4916_v23 = vpop.permute.xlu1 %4915 }
0x4ab9   :  { %v12254_v31 = vadd.f32 %v4916_v23, %v4908_v62 }
0x4abb   :  { %10150 = vtanh.f32 %v12254_v31 }
0x4ac5   :  { %v10151_v8 = vpop.eup %10150 }
0x4ac6   :  { %4921 = vrot.lane.b32.xlu0 %v10151_v8, %s13137_s4 }
0x4b38   :  { %v4922_v49 = vpop.permute.xlu0 %4921 }
0x4b39   :  { %v4924_v21 = vmul.f32 %v10149_v52, %v4922_v49 }
0x4b3b   :  { %v4925_v46 = vpack.c.bf16 %v4924_v21, %v4924_v21 }
0x4b3d   :  { %4967 = vrot.lane.b32.xlu1 %v4925_v46, %s10755_s16 }
0x4baf   :  { %v4968_v17 = vpop.permute.xlu1 %4967 }
0x4bb0   :  { %9356 = vmatmul.mubr.msk.bf16.vlgmr.msra.gmra.mrb[152].mxu0 %vm317_vm1, %v4968_v17  ;;  %9396 = vmatmul.mubr.msk.bf16.vlgmr.msra.gmra.mrb[160].mxu1 %vm317_vm1, %v4968_v17  ;;  %v12327_v17 = vld [vmem:[#allocation11 + $0x30] sm:$0xff]  }
0x4bb1   :  { %9368 = vmatpush3.bf16.msra.mxu0 %v12042_v43  ;;  %9408 = vmatpush3.bf16.msra.mxu1 %v12262_v60 }
0x4bb2   :  { %9369 = vmatprep.subr.bf16.mxu0 %v10752_v0  ;;  %9409 = vmatprep.subr.bf16.mxu1 %v10752_v0 }
0x4bb3   :  { %9371 = vmatprep.mubr.msk.bf16.mxu0 %vm10753_vm0, %v10752_v0  ;;  %9411 = vmatprep.mubr.msk.bf16.mxu1 %vm10753_vm0, %v10752_v0 }
0x4bb5   :  { %9370 = vmatpush3.bf16.msra.mxu0 %v12048_v13  ;;  %9410 = vmatpush3.bf16.msra.mxu1 %v12272_v37 }
0x4bb6   :  { %9383 = vmatprep.subr.bf16.mxu0 %v10752_v0  ;;  %9423 = vmatprep.subr.bf16.mxu1 %v10752_v0 }
0x4c83   :  { %v5006_v43 = vpop.f32.mrb[152].mxu0  ;;  %v12277_v14 = vpop.f32.mrb[160].mxu1 }
0x4c84   :  { %v5007_v47 = vadd.f32 %v5006_v43, %v12191_v16  ;;  %v9357_v4 = vpop.f32.mrb[153].mxu0  ;;  %v9397_v36 = vpop.f32.mrb[161].mxu1  ;;  %v12339_v43 = vld [vmem:[%s13141_s0 + $0x8] sm:$0xff]  }
0x4c85   :  { %v5009_v54 = vpop.f32.mrb[154].mxu0  ;;  %v5304_v38 = vpop.f32.mrb[162].mxu1 }
0x4c86   :  { %v5012_v30 = vadd.f32 %v12027_v32, %v5007_v47  ;;  %v9358_v13 = vpop.f32.mrb[155].mxu0  ;;  %v9398_v15 = vpop.f32.mrb[163].mxu1  ;;  %v12342_v47 = vld [vmem:[#allocation11 + $0x38] sm:$0xff]  }
0x4c88   :  { %10152 = vtanh.f32 %v5012_v30  ;;  %v8275_v41 = vmul.f32 -1.442695, %v5012_v30 }
0x4c8a   :  { %10154 = vpow2.f32 %v8275_v41 }
0x4c92   :  { %v10153_v44 = vpop.eup %10152 }
0x4c93   :  { %5022 = vrot.lane.b32.xlu0 %v10153_v44, %s13137_s4 }
0x4c94   :  { %v10155_v56 = vpop.eup %10154 }
0x4c95   :  { %v5016_v9 = vadd.f32 1.0, %v10155_v56 }
0x4c97   :  { %10156 = vrcp.f32 %v5016_v9 }
0x4ca1   :  { %v10157_v1 = vpop.eup %10156 }
0x4ca2   :  { %v5020_v5 = vmul.f32 %v10157_v1, %v12172_v28  ;;  %v12292_v28 = vld [vmem:[#allocation11 + $0x20] sm:$0xff]  }
0x4d05   :  { %v5023_v45 = vpop.permute.xlu0 %5022 }
0x4d06   :  { %v5025_v16 = vmul.f32 %v10157_v1, %v5023_v45 }
0x4d08   :  { %5027 = vrot.lane.b32.xlu1 %v5025_v16, %s10755_s16 }
0x4d7a   :  { %v5028_v39 = vpop.permute.xlu1 %5027 }
0x4d7b   :  { %v12284_v32 = vadd.f32 %v5028_v39, %v5020_v5 }
0x4d7d   :  { %10158 = vtanh.f32 %v12284_v32 }
0x4d87   :  { %v10159_v18 = vpop.eup %10158 }
0x4d88   :  { %5033 = vrot.lane.b32.xlu0 %v10159_v18, %s13137_s4 }
0x4dfa   :  { %v5034_v51 = vpop.permute.xlu0 %5033 }
0x4dfb   :  { %v5036_v58 = vmul.f32 %v10157_v1, %v5034_v51 }
0x4dfd   :  { %v5037_v35 = vpack.c.bf16 %v5036_v58, %v5036_v58 }
0x4dff   :  { %5079 = vrot.lane.b32.xlu1 %v5037_v35, %s10755_s16 }
0x4e71   :  { %v5080_v42 = vpop.permute.xlu1 %5079 }
0x4e72   :  { %9372 = vmatmul.mubr.msk.bf16.vlgmr.msra.gmra.mrb[156].mxu0 %vm317_vm1, %v5080_v42  ;;  %9412 = vmatmul.mubr.msk.bf16.vlgmr.msra.gmra.mrb[164].mxu1 %vm317_vm1, %v5080_v42 }
0x4e73   :  { %9384 = vmatpush3.bf16.msra.mxu0 %v12080_v57  ;;  %9424 = vmatpush3.bf16.msra.mxu1 %v12292_v28 }
0x4e74   :  { %9385 = vmatprep.subr.bf16.mxu0 %v10752_v0  ;;  %9425 = vmatprep.subr.bf16.mxu1 %v10752_v0 }
0x4e75   :  { %9387 = vmatprep.mubr.msk.bf16.mxu0 %vm10753_vm0, %v10752_v0  ;;  %9427 = vmatprep.mubr.msk.bf16.mxu1 %vm10753_vm0, %v10752_v0 }
0x4e77   :  { %9386 = vmatpush3.bf16.msra.mxu0 %v12086_v7  ;;  %9426 = vmatpush3.bf16.msra.mxu1 %v12302_v29 }
0x4e78   :  { %9399 = vmatprep.subr.bf16.mxu0 %v10752_v0  ;;  %9439 = vmatprep.subr.bf16.mxu1 %v10752_v0 }
0x4f45   :  { %v5118_v25 = vpop.f32.mrb[156].mxu0  ;;  %v12307_v61 = vpop.f32.mrb[164].mxu1 }
0x4f46   :  { %v5119_v24 = vadd.f32 %v5118_v25, %v12217_v63  ;;  %v9373_v53 = vpop.f32.mrb[157].mxu0  ;;  %v9413_v40 = vpop.f32.mrb[165].mxu1 }
0x4f47   :  { %v5121_v19 = vpop.f32.mrb[158].mxu0  ;;  %v5416_v10 = vpop.f32.mrb[166].mxu1  ;;  %v12371_v53 = vld [vmem:[#allocation11] sm:$0xff]   ;;  %v12383_v40 = vld [vmem:[%s13141_s0 + $0x18] sm:$0xff]  }
0x4f48   :  { %v5124_v2 = vadd.f32 %v12065_v11, %v5119_v24  ;;  %v9374_v7 = vpop.f32.mrb[159].mxu0  ;;  %v9414_v55 = vpop.f32.mrb[167].mxu1  ;;  %v12386_v19 = vld [vmem:[#allocation11 + $0x8] sm:$0xff]  }
0x4f4a   :  { %10160 = vtanh.f32 %v5124_v2  ;;  %v8278_v48 = vmul.f32 -1.442695, %v5124_v2 }
0x4f4c   :  { %10162 = vpow2.f32 %v8278_v48 }
0x4f54   :  { %v10161_v26 = vpop.eup %10160 }
0x4f55   :  { %5134 = vrot.lane.b32.xlu0 %v10161_v26, %s13137_s4 }
0x4f56   :  { %v10163_v27 = vpop.eup %10162 }
0x4f57   :  { %v5128_v3 = vadd.f32 1.0, %v10163_v27 }
0x4f59   :  { %10164 = vrcp.f32 %v5128_v3  ;;  %v12394_v3 = vld [vmem:[#allocation12] ss:$0 sm:$0xff] }
0x4f63   :  { %v10165_v52 = vpop.eup %10164 }
0x4f64   :  { %v5132_v6 = vmul.f32 %v10165_v52, %v12198_v50  ;;  %v12324_v50 = vld [vmem:[%s13141_s0] sm:$0xff]  }
0x4fc7   :  { %v5135_v20 = vpop.permute.xlu0 %5134 }
0x4fc8   :  { %v5137_v63 = vmul.f32 %v10165_v52, %v5135_v20 }
0x4fca   :  { %5139 = vrot.lane.b32.xlu1 %v5137_v63, %s10755_s16 }
0x503c   :  { %v5140_v62 = vpop.permute.xlu1 %5139 }
0x503d   :  { %v12314_v11 = vadd.f32 %v5140_v62, %v5132_v6 }
0x503f   :  { %10166 = vtanh.f32 %v12314_v11 }
0x5049   :  { %v10167_v23 = vpop.eup %10166 }
0x504a   :  { %5145 = vrot.lane.b32.xlu0 %v10167_v23, %s13137_s4 }
0x50bc   :  { %v5146_v8 = vpop.permute.xlu0 %5145 }
0x50bd   :  { %v5148_v49 = vmul.f32 %v10165_v52, %v5146_v8 }
0x50bf   :  { %v5149_v21 = vpack.c.bf16 %v5148_v49, %v5148_v49 }
0x50c1   :  { %5191 = vrot.lane.b32.xlu1 %v5149_v21, %s10755_s16 }
0x5133   :  { %v5192_v46 = vpop.permute.xlu1 %5191 }
0x5134   :  { %9388 = vmatmul.mubr.msk.bf16.vlgmr.msra.gmra.mrb[160].mxu0 %vm317_vm1, %v5192_v46  ;;  %9428 = vmatmul.mubr.msk.bf16.vlgmr.msra.gmra.mrb[168].mxu1 %vm317_vm1, %v5192_v46 }
0x5135   :  { %9400 = vmatpush3.bf16.msra.mxu0 %v12324_v50  ;;  %9440 = vmatpush3.bf16.msra.mxu1 %v12327_v17 }
0x5136   :  { %9401 = vmatprep.subr.bf16.mxu0 %v10752_v0  ;;  %9441 = vmatprep.subr.bf16.mxu1 %v10752_v0 }
0x5137   :  { %9403 = vmatprep.mubr.msk.bf16.mxu0 %vm10753_vm0, %v10752_v0  ;;  %9443 = vmatprep.mubr.msk.bf16.mxu1 %vm10753_vm0, %v10752_v0 }
0x5139   :  { %9402 = vmatpush3.bf16.msra.mxu0 %v12339_v43  ;;  %9442 = vmatpush3.bf16.msra.mxu1 %v12342_v47 }
0x513a   :  { %9415 = vmatprep.subr.bf16.mxu0 %v10752_v0  ;;  %9455 = vmatprep.subr.bf16.mxu1 %v10752_v0 }
0x5207   :  { %v5230_v4 = vpop.f32.mrb[160].mxu0  ;;  %v12347_v36 = vpop.f32.mrb[168].mxu1 }
0x5208   :  { %v5231_v54 = vadd.f32 %v5230_v4, %v12247_v34  ;;  %v9389_v38 = vpop.f32.mrb[161].mxu0  ;;  %v9429_v30 = vpop.f32.mrb[169].mxu1 }
0x5209   :  { %v5233_v13 = vpop.f32.mrb[162].mxu0  ;;  %v5528_v15 = vpop.f32.mrb[170].mxu1 }
0x520a   :  { %v5236_v44 = vadd.f32 %v12107_v59, %v5231_v54  ;;  %v9390_v41 = vpop.f32.mrb[163].mxu0  ;;  %v9430_v56 = vpop.f32.mrb[171].mxu1 }
0x520b   :  { %v12423_v41 = vld [vmem:[%s13141_s0 + $0x28] sm:$0xff]  }
0x520c   :  { %10168 = vtanh.f32 %v5236_v44  ;;  %v8281_v1 = vmul.f32 -1.442695, %v5236_v44 }
0x520e   :  { %10170 = vpow2.f32 %v8281_v1 }
0x5216   :  { %v10169_v9 = vpop.eup %10168 }
0x5217   :  { %5246 = vrot.lane.b32.xlu0 %v10169_v9, %s13137_s4 }
0x5218   :  { %v10171_v45 = vpop.eup %10170 }
0x5219   :  { %v5240_v16 = vadd.f32 1.0, %v10171_v45 }
0x521b   :  { %10172 = vrcp.f32 %v5240_v16 }
0x5225   :  { %v10173_v5 = vpop.eup %10172 }
0x5226   :  { %v5244_v18 = vmul.f32 %v10173_v5, %v12224_v33  ;;  %v12368_v33 = vld [vmem:[%s13141_s0 + $0x10] sm:$0xff]  }
0x5289   :  { %v5247_v39 = vpop.permute.xlu0 %5246 }
0x528a   :  { %v5249_v34 = vmul.f32 %v10173_v5, %v5247_v39 }
0x528c   :  { %5251 = vrot.lane.b32.xlu1 %v5249_v34, %s10755_s16  ;;  %v12432_v34 = vld [vmem:[#allocation12 + $0x1] ss:$0 sm:$0xff] }
0x52fe   :  { %v5252_v51 = vpop.permute.xlu1 %5251 }
0x52ff   :  { %v12354_v59 = vadd.f32 %v5252_v51, %v5244_v18 }
0x5301   :  { %10174 = vtanh.f32 %v12354_v59 }
0x530b   :  { %v10175_v58 = vpop.eup %10174 }
0x530c   :  { %5257 = vrot.lane.b32.xlu0 %v10175_v58, %s13137_s4 }
0x537e   :  { %v5258_v35 = vpop.permute.xlu0 %5257 }
0x537f   :  { %v12358_v42 = vmul.f32 %v10173_v5, %v5258_v35 }
0x5381   :  { %v5266_v25 = vpack.c.bf16 %v12358_v42, %v12358_v42 }
0x5383   :  { %5308 = vrot.lane.b32.xlu1 %v5266_v25, %s10755_s16 }
0x53f5   :  { %v5309_v24 = vpop.permute.xlu1 %5308 }
0x53f6   :  { %9404 = vmatmul.mubr.msk.bf16.vlgmr.msra.gmra.mrb[164].mxu0 %vm317_vm1, %v5309_v24  ;;  %9444 = vmatmul.mubr.msk.bf16.vlgmr.msra.gmra.mrb[172].mxu1 %vm317_vm1, %v5309_v24 }
0x53f7   :  { %9416 = vmatpush3.bf16.msra.mxu0 %v12368_v33  ;;  %9456 = vmatpush3.bf16.msra.mxu1 %v12371_v53 }
0x53f8   :  { %9417 = vmatprep.subr.bf16.mxu0 %v10752_v0  ;;  %9457 = vmatprep.subr.bf16.mxu1 %v10752_v0 }
0x53f9   :  { %9419 = vmatprep.mubr.msk.bf16.mxu0 %vm10753_vm0, %v10752_v0  ;;  %9459 = vmatprep.mubr.msk.bf16.mxu1 %vm10753_vm0, %v10752_v0 }
0x53fb   :  { %9418 = vmatpush3.bf16.msra.mxu0 %v12383_v40  ;;  %9458 = vmatpush3.bf16.msra.mxu1 %v12386_v19 }
0x53fc   :  { %9431 = vmatprep.subr.bf16.mxu0 %v10752_v0  ;;  %9471 = vmatprep.subr.bf16.mxu1 %v10752_v0 }
0x54c9   :  { %v5347_v10 = vpop.f32.mrb[164].mxu0  ;;  %v12391_v2 = vpop.f32.mrb[172].mxu1 }
0x54ca   :  { %v5348_v7 = vadd.f32 %v5347_v10, %v12277_v14  ;;  %v9405_v55 = vpop.f32.mrb[165].mxu0  ;;  %v9445_v26 = vpop.f32.mrb[173].mxu1 }
0x54cb   :  { %v5350_v48 = vpop.f32.mrb[166].mxu0  ;;  %v5640_v27 = vpop.f32.mrb[174].mxu1 }
0x54cc   :  { %v5353_v52 = vadd.f32 %v12394_v3, %v5348_v7  ;;  %v9406_v20 = vpop.f32.mrb[167].mxu0  ;;  %v9446_v63 = vpop.f32.mrb[175].mxu1 }
0x54ce   :  { %10176 = vtanh.f32 %v5353_v52  ;;  %v8284_v62 = vmul.f32 -1.442695, %v5353_v52 }
0x54d0   :  { %10178 = vpow2.f32 %v8284_v62 }
0x54d8   :  { %v10177_v6 = vpop.eup %10176 }
0x54d9   :  { %5363 = vrot.lane.b32.xlu0 %v10177_v6, %s13137_s4 }
0x54da   :  { %v10179_v23 = vpop.eup %10178 }
0x54db   :  { %v5357_v8 = vadd.f32 1.0, %v10179_v23 }
0x54dd   :  { %10180 = vrcp.f32 %v5357_v8 }
0x54e7   :  { %v10181_v14 = vpop.eup %10180 }
0x54e8   :  { %v5361_v46 = vmul.f32 %v10181_v14, %v12254_v31  ;;  %v12410_v31 = vld [vmem:[%s13141_s0 + $0x20] sm:$0xff]  }
0x554b   :  { %v5364_v49 = vpop.permute.xlu0 %5363 }
0x554c   :  { %v5366_v21 = vmul.f32 %v10181_v14, %v5364_v49 }
0x554e   :  { %5368 = vrot.lane.b32.xlu1 %v5366_v21, %s10755_s16 }
0x55c0   :  { %v5369_v4 = vpop.permute.xlu1 %5368 }
0x55c1   :  { %v12400_v54 = vadd.f32 %v5369_v4, %v5361_v46  ;;  %v12465_v4 = vld [vmem:[#allocation12 + $0x2] ss:$0 sm:$0xff] }
0x55c3   :  { %10182 = vtanh.f32 %v12400_v54 }
0x55cd   :  { %v10183_v38 = vpop.eup %10182 }
0x55ce   :  { %5374 = vrot.lane.b32.xlu0 %v10183_v38, %s13137_s4 }
0x5640   :  { %v5375_v30 = vpop.permute.xlu0 %5374 }
0x5641   :  { %v5377_v13 = vmul.f32 %v10181_v14, %v5375_v30 }
0x5643   :  { %v5378_v15 = vpack.c.bf16 %v5377_v13, %v5377_v13 }
0x5645   :  { %5420 = vrot.lane.b32.xlu1 %v5378_v15, %s10755_s16 }
0x56b7   :  { %v5421_v44 = vpop.permute.xlu1 %5420 }
0x56b8   :  { %9420 = vmatmul.mubr.msk.bf16.vlgmr.msra.gmra.mrb[168].mxu0 %vm317_vm1, %v5421_v44  ;;  %9460 = vmatmul.mubr.msk.bf16.vlgmr.msra.gmra.mrb[176].mxu1 %vm317_vm1, %v5421_v44 }
0x56b9   :  { %9432 = vmatpush3.bf16.msra.mxu0 %v12410_v31  ;;  %9472 = vmatpush3.bf16.msra.mxu1 %v12262_v60 }
0x56ba   :  { %9433 = vmatprep.subr.bf16.mxu0 %v10752_v0  ;;  %9473 = vmatprep.subr.bf16.mxu1 %v10752_v0 }
0x56bb   :  { %9435 = vmatprep.mubr.msk.bf16.mxu0 %vm10753_vm0, %v10752_v0  ;;  %9475 = vmatprep.mubr.msk.bf16.mxu1 %vm10753_vm0, %v10752_v0 }
0x56bd   :  { %9434 = vmatpush3.bf16.msra.mxu0 %v12423_v41  ;;  %9474 = vmatpush3.bf16.msra.mxu1 %v12272_v37 }
0x56be   :  { %9447 = vmatprep.subr.bf16.mxu0 %v10752_v0  ;;  %9487 = vmatprep.subr.bf16.mxu1 %v10752_v0 }
0x578b   :  { %v5459_v56 = vpop.f32.mrb[168].mxu0  ;;  %v12429_v9 = vpop.f32.mrb[176].mxu1 }
0x578c   :  { %v5460_v1 = vadd.f32 %v5459_v56, %v12307_v61  ;;  %v9421_v45 = vpop.f32.mrb[169].mxu0  ;;  %v9461_v16 = vpop.f32.mrb[177].mxu1 }
0x578d   :  { %v5462_v5 = vpop.f32.mrb[170].mxu0  ;;  %v5757_v39 = vpop.f32.mrb[178].mxu1 }
0x578e   :  { %v5465_v18 = vadd.f32 %v12432_v34, %v5460_v1  ;;  %v9422_v51 = vpop.f32.mrb[171].mxu0  ;;  %v9462_v58 = vpop.f32.mrb[179].mxu1 }
0x5790   :  { %10184 = vtanh.f32 %v5465_v18  ;;  %v8287_v25 = vmul.f32 -1.442695, %v5465_v18 }
0x5792   :  { %10186 = vpow2.f32 %v8287_v25 }
0x579a   :  { %v10185_v35 = vpop.eup %10184 }
0x579b   :  { %5475 = vrot.lane.b32.xlu0 %v10185_v35, %s13137_s4 }
0x579c   :  { %v10187_v24 = vpop.eup %10186 }
0x579d   :  { %v5469_v10 = vadd.f32 1.0, %v10187_v24 }
0x579f   :  { %10188 = vrcp.f32 %v5469_v10 }
0x57a9   :  { %v10189_v61 = vpop.eup %10188 }
0x57aa   :  { %v5473_v26 = vmul.f32 %v10189_v61, %v12284_v32  ;;  %v12456_v32 = vld [vmem:[%s13141_s0 + $0x38] sm:$0xff]  }
0x580d   :  { %v5476_v7 = vpop.permute.xlu0 %5475 }
0x580e   :  { %v5478_v55 = vmul.f32 %v10189_v61, %v5476_v7 }
0x5810   :  { %5480 = vrot.lane.b32.xlu1 %v5478_v55, %s10755_s16 }
0x5882   :  { %v5481_v48 = vpop.permute.xlu1 %5480 }
0x5883   :  { %v12438_v27 = vadd.f32 %v5481_v48, %v5473_v26 }
0x5885   :  { %10190 = vtanh.f32 %v12438_v27 }
0x588f   :  { %v10191_v52 = vpop.eup %10190 }
0x5890   :  { %5486 = vrot.lane.b32.xlu0 %v10191_v52, %s13137_s4  ;;  %v12493_v52 = vld [vmem:[#allocation12 + $0x3] ss:$0 sm:$0xff] }
0x5902   :  { %v5487_v20 = vpop.permute.xlu0 %5486 }
0x5903   :  { %v5489_v63 = vmul.f32 %v10189_v61, %v5487_v20 }
0x5905   :  { %v5490_v6 = vpack.c.bf16 %v5489_v63, %v5489_v63 }
0x5907   :  { %5532 = vrot.lane.b32.xlu1 %v5490_v6, %s10755_s16 }
0x5979   :  { %v5533_v62 = vpop.permute.xlu1 %5532 }
0x597a   :  { %9436 = vmatmul.mubr.msk.bf16.vlgmr.msra.gmra.mrb[172].mxu0 %vm317_vm1, %v5533_v62  ;;  %9476 = vmatmul.mubr.msk.bf16.vlgmr.msra.gmra.mrb[180].mxu1 %vm317_vm1, %v5533_v62 }
0x597b   :  { %9448 = vmatpush3.bf16.msra.mxu0 %v12080_v57  ;;  %9488 = vmatpush3.bf16.msra.mxu1 %v12292_v28 }
0x597c   :  { %9449 = vmatprep.subr.bf16.mxu0 %v10752_v0  ;;  %9489 = vmatprep.subr.bf16.mxu1 %v10752_v0 }
0x597d   :  { %9451 = vmatprep.mubr.msk.bf16.mxu0 %vm10753_vm0, %v10752_v0  ;;  %9491 = vmatprep.mubr.msk.bf16.mxu1 %vm10753_vm0, %v10752_v0 }
0x597f   :  { %9450 = vmatpush3.bf16.msra.mxu0 %v12456_v32  ;;  %9490 = vmatpush3.bf16.msra.mxu1 %v12302_v29 }
0x5980   :  { %9463 = vmatprep.subr.bf16.mxu0 %v10752_v0  ;;  %9503 = vmatprep.subr.bf16.mxu1 %v10752_v0 }
0x5a4d   :  { %v5571_v57 = vpop.f32.mrb[172].mxu0  ;;  %v12462_v23 = vpop.f32.mrb[180].mxu1 }
0x5a4e   :  { %v5572_v8 = vadd.f32 %v5571_v57, %v12347_v36  ;;  %v9437_v14 = vpop.f32.mrb[173].mxu0  ;;  %v9477_v49 = vpop.f32.mrb[181].mxu1 }
0x5a4f   :  { %v5574_v21 = vpop.f32.mrb[174].mxu0  ;;  %v5869_v46 = vpop.f32.mrb[182].mxu1 }
0x5a50   :  { %v5577_v38 = vadd.f32 %v12465_v4, %v5572_v8  ;;  %v9438_v30 = vpop.f32.mrb[175].mxu0  ;;  %v9478_v13 = vpop.f32.mrb[183].mxu1 }
0x5a52   :  { %10192 = vtanh.f32 %v5577_v38  ;;  %v8290_v44 = vmul.f32 -1.442695, %v5577_v38 }
0x5a54   :  { %10194 = vpow2.f32 %v8290_v44 }
0x5a5c   :  { %v10193_v15 = vpop.eup %10192 }
0x5a5d   :  { %5587 = vrot.lane.b32.xlu0 %v10193_v15, %s13137_s4 }
0x5a5e   :  { %v10195_v56 = vpop.eup %10194 }
0x5a5f   :  { %v5581_v1 = vadd.f32 1.0, %v10195_v56 }
0x5a61   :  { %10196 = vrcp.f32 %v5581_v1 }
0x5a6b   :  { %v10197_v36 = vpop.eup %10196 }
0x5a6c   :  { %v5585_v5 = vmul.f32 %v10197_v36, %v12314_v11 }
0x5acf   :  { %v5588_v45 = vpop.permute.xlu0 %5587 }
0x5ad0   :  { %v5590_v16 = vmul.f32 %v10197_v36, %v5588_v45 }
0x5ad2   :  { %5592 = vrot.lane.b32.xlu1 %v5590_v16, %s10755_s16 }
0x5b44   :  { %v5593_v39 = vpop.permute.xlu1 %5592 }
0x5b45   :  { %v12471_v18 = vadd.f32 %v5593_v39, %v5585_v5 }
0x5b47   :  { %10198 = vtanh.f32 %v12471_v18 }
0x5b51   :  { %v10199_v51 = vpop.eup %10198 }
0x5b52   :  { %5598 = vrot.lane.b32.xlu0 %v10199_v51, %s13137_s4 }
0x5bc4   :  { %v5599_v58 = vpop.permute.xlu0 %5598 }
0x5bc5   :  { %v5601_v35 = vmul.f32 %v10197_v36, %v5599_v58 }
0x5bc7   :  { %v5602_v25 = vpack.c.bf16 %v5601_v35, %v5601_v35 }
0x5bc9   :  { %5644 = vrot.lane.b32.xlu1 %v5602_v25, %s10755_s16 }
0x5c3b   :  { %v5645_v24 = vpop.permute.xlu1 %5644 }
0x5c3c   :  { %9452 = vmatmul.mubr.msk.bf16.vlgmr.msra.gmra.mrb[176].mxu0 %vm317_vm1, %v5645_v24  ;;  %9492 = vmatmul.mubr.msk.bf16.vlgmr.msra.gmra.mrb[184].mxu1 %vm317_vm1, %v5645_v24 }
0x5c3d   :  { %9464 = vmatpush3.bf16.msra.mxu0 %v12324_v50  ;;  %9504 = vmatpush3.bf16.msra.mxu1 %v12327_v17 }
0x5c3e   :  { %9465 = vmatprep.subr.bf16.mxu0 %v10752_v0  ;;  %9505 = vmatprep.subr.bf16.mxu1 %v10752_v0 }
0x5c3f   :  { %9467 = vmatprep.mubr.msk.bf16.mxu0 %vm10753_vm0, %v10752_v0  ;;  %9507 = vmatprep.mubr.msk.bf16.mxu1 %vm10753_vm0, %v10752_v0 }
0x5c41   :  { %9466 = vmatpush3.bf16.msra.mxu0 %v12339_v43  ;;  %9506 = vmatpush3.bf16.msra.mxu1 %v12342_v47 }
0x5c42   :  { %9479 = vmatprep.subr.bf16.mxu0 %v10752_v0  ;;  %9519 = vmatprep.subr.bf16.mxu1 %v10752_v0 }
0x5d0f   :  { %v5683_v11 = vpop.f32.mrb[176].mxu0  ;;  %v12490_v10 = vpop.f32.mrb[184].mxu1 }
0x5d10   :  { %v5684_v61 = vadd.f32 %v5683_v11, %v12391_v2  ;;  %v9453_v7 = vpop.f32.mrb[177].mxu0  ;;  %v9493_v55 = vpop.f32.mrb[185].mxu1 }
0x5d11   :  { %v5686_v26 = vpop.f32.mrb[178].mxu0  ;;  %v5981_v48 = vpop.f32.mrb[186].mxu1 }
0x5d12   :  { %v5689_v20 = vadd.f32 %v12493_v52, %v5684_v61  ;;  %v9454_v63 = vpop.f32.mrb[179].mxu0  ;;  %v9494_v6 = vpop.f32.mrb[187].mxu1 }
0x5d14   :  { %10200 = vtanh.f32 %v5689_v20  ;;  %v8293_v57 = vmul.f32 -1.442695, %v5689_v20 }
0x5d16   :  { %10202 = vpow2.f32 %v8293_v57 }
0x5d1e   :  { %v10201_v62 = vpop.eup %10200 }
0x5d1f   :  { %5699 = vrot.lane.b32.xlu0 %v10201_v62, %s13137_s4 }
0x5d20   :  { %v10203_v8 = vpop.eup %10202 }
0x5d21   :  { %v5693_v14 = vadd.f32 1.0, %v10203_v8 }
0x5d23   :  { %10204 = vrcp.f32 %v5693_v14 }
0x5d2d   :  { %v10205_v2 = vpop.eup %10204 }
0x5d2e   :  { %v5697_v46 = vmul.f32 %v10205_v2, %v12354_v59 }
0x5d91   :  { %v5700_v49 = vpop.permute.xlu0 %5699 }
0x5d92   :  { %v5702_v21 = vmul.f32 %v10205_v2, %v5700_v49 }
0x5d94   :  { %5704 = vrot.lane.b32.xlu1 %v5702_v21, %s10755_s16 }
0x5e06   :  { %v5705_v38 = vpop.permute.xlu1 %5704 }
0x5e07   :  { %v12499_v30 = vadd.f32 %v5705_v38, %v5697_v46 }
0x5e09   :  { %10206 = vtanh.f32 %v12499_v30 }
0x5e13   :  { %v10207_v13 = vpop.eup %10206 }
0x5e14   :  { %5710 = vrot.lane.b32.xlu0 %v10207_v13, %s13137_s4 }
0x5e86   :  { %v5711_v15 = vpop.permute.xlu0 %5710 }
0x5e87   :  { %v12503_v44 = vmul.f32 %v10205_v2, %v5711_v15 }
0x5e89   :  { %v5719_v56 = vpack.c.bf16 %v12503_v44, %v12503_v44 }
0x5e8b   :  { %5761 = vrot.lane.b32.xlu1 %v5719_v56, %s10755_s16 }
0x5efd   :  { %v5762_v1 = vpop.permute.xlu1 %5761 }
0x5efe   :  { %9468 = vmatmul.mubr.msk.bf16.vlgmr.msra.gmra.mrb[180].mxu0 %vm317_vm1, %v5762_v1  ;;  %9508 = vmatmul.mubr.msk.bf16.vlgmr.msra.gmra.mrb[188].mxu1 %vm317_vm1, %v5762_v1 }
0x5eff   :  { %9480 = vmatpush3.bf16.msra.mxu0 %v12368_v33  ;;  %9520 = vmatpush3.bf16.msra.mxu1 %v12371_v53 }
0x5f00   :  { %9481 = vmatprep.subr.bf16.mxu0 %v10752_v0  ;;  %9521 = vmatprep.subr.bf16.mxu1 %v10752_v0 }
0x5f01   :  { %9483 = vmatprep.mubr.msk.bf16.mxu0 %vm10753_vm0, %v10752_v0  ;;  %9523 = vmatprep.mubr.msk.bf16.mxu1 %vm10753_vm0, %v10752_v0 }
0x5f03   :  { %9482 = vmatpush3.bf16.msra.mxu0 %v12383_v40  ;;  %9522 = vmatpush3.bf16.msra.mxu1 %v12386_v19 }
0x5f04   :  { %9495 = vmatprep.subr.bf16.mxu0 %v10752_v0  ;;  %9535 = vmatprep.subr.bf16.mxu1 %v10752_v0 }
0x5fd1   :  { %v5800_v59 = vpop.f32.mrb[180].mxu0  ;;  %v12522_v36 = vpop.f32.mrb[188].mxu1 }
0x5fd2   :  { %v5801_v45 = vadd.f32 %v5800_v59, %v12429_v9  ;;  %v9469_v16 = vpop.f32.mrb[181].mxu0  ;;  %v9509_v5 = vpop.f32.mrb[189].mxu1 }
0x5fd3   :  { %v5803_v39 = vpop.f32.mrb[182].mxu0  ;;  %v6093_v51 = vpop.f32.mrb[190].mxu1 }
0x5fd4   :  { %v5806_v58 = vadd.f32 %v12394_v3, %v5801_v45  ;;  %v9470_v35 = vpop.f32.mrb[183].mxu0  ;;  %v9510_v25 = vpop.f32.mrb[191].mxu1 }
0x5fd6   :  { %10208 = vtanh.f32 %v5806_v58  ;;  %v8296_v11 = vmul.f32 -1.442695, %v5806_v58 }
0x5fd8   :  { %10210 = vpow2.f32 %v8296_v11 }
0x5fe0   :  { %v10209_v24 = vpop.eup %10208 }
0x5fe1   :  { %5816 = vrot.lane.b32.xlu0 %v10209_v24, %s13137_s4 }
0x5fe2   :  { %v10211_v61 = vpop.eup %10210 }
0x5fe3   :  { %v5810_v7 = vadd.f32 1.0, %v10211_v61 }
0x5fe5   :  { %10212 = vrcp.f32 %v5810_v7 }
0x5fef   :  { %v10213_v55 = vpop.eup %10212 }
0x5ff0   :  { %v5814_v48 = vmul.f32 %v10213_v55, %v12400_v54 }
0x6053   :  { %v5817_v26 = vpop.permute.xlu0 %5816 }
0x6054   :  { %v5819_v9 = vmul.f32 %v10213_v55, %v5817_v26 }
0x6056   :  { %5821 = vrot.lane.b32.xlu1 %v5819_v9, %s10755_s16 }
0x60c8   :  { %v5822_v20 = vpop.permute.xlu1 %5821 }
0x60c9   :  { %v12529_v63 = vadd.f32 %v5822_v20, %v5814_v48 }
0x60cb   :  { %10214 = vtanh.f32 %v12529_v63 }
0x60d5   :  { %v10215_v6 = vpop.eup %10214 }
0x60d6   :  { %5827 = vrot.lane.b32.xlu0 %v10215_v6, %s13137_s4 }
0x6148   :  { %v5828_v62 = vpop.permute.xlu0 %5827 }
0x6149   :  { %v5830_v57 = vmul.f32 %v10213_v55, %v5828_v62 }
0x614b   :  { %v5831_v8 = vpack.c.bf16 %v5830_v57, %v5830_v57 }
0x614d   :  { %5873 = vrot.lane.b32.xlu1 %v5831_v8, %s10755_s16 }
0x61bf   :  { %v5874_v14 = vpop.permute.xlu1 %5873 }
0x61c0   :  { %9484 = vmatmul.mubr.msk.bf16.vlgmr.msra.gmra.mrb[184].mxu0 %vm317_vm1, %v5874_v14  ;;  %9524 = vmatmul.mubr.msk.bf16.vlgmr.msra.gmra.mrb[192].mxu1 %vm317_vm1, %v5874_v14 }
0x61c1   :  { %9496 = vmatpush3.bf16.msra.mxu0 %v12410_v31  ;;  %9536 = vmatpush3.bf16.msra.mxu1 %v12262_v60 }
0x61c2   :  { %9497 = vmatprep.subr.bf16.mxu0 %v10752_v0  ;;  %9537 = vmatprep.subr.bf16.mxu1 %v10752_v0 }
0x61c3   :  { %9499 = vmatprep.mubr.msk.bf16.mxu0 %vm10753_vm0, %v10752_v0  ;;  %9539 = vmatprep.mubr.msk.bf16.mxu1 %vm10753_vm0, %v10752_v0 }
0x61c5   :  { %9498 = vmatpush3.bf16.msra.mxu0 %v12423_v41  ;;  %9538 = vmatpush3.bf16.msra.mxu1 %v12272_v37 }
0x61c6   :  { %9511 = vmatprep.subr.bf16.mxu0 %v10752_v0  ;;  %9551 = vmatprep.subr.bf16.mxu1 %v10752_v0 }
0x6293   :  { %v5912_v54 = vpop.f32.mrb[184].mxu0  ;;  %v12548_v60 = vpop.f32.mrb[192].mxu1 }
0x6294   :  { %v5913_v2 = vadd.f32 %v5912_v54, %v12462_v23  ;;  %v9485_v49 = vpop.f32.mrb[185].mxu0  ;;  %v9525_v21 = vpop.f32.mrb[193].mxu1 }
0x6295   :  { %v5915_v46 = vpop.f32.mrb[186].mxu0  ;;  %v6210_v38 = vpop.f32.mrb[194].mxu1 }
0x6296   :  { %v5918_v13 = vadd.f32 %v12432_v34, %v5913_v2  ;;  %v9486_v15 = vpop.f32.mrb[187].mxu0  ;;  %v9526_v56 = vpop.f32.mrb[195].mxu1 }
0x6298   :  { %10216 = vtanh.f32 %v5918_v13  ;;  %v8299_v37 = vmul.f32 -1.442695, %v5918_v13 }
0x629a   :  { %10218 = vpow2.f32 %v8299_v37 }
0x62a2   :  { %v10217_v1 = vpop.eup %10216 }
0x62a3   :  { %5928 = vrot.lane.b32.xlu0 %v10217_v1, %s13137_s4 }
0x62a4   :  { %v10219_v59 = vpop.eup %10218 }
0x62a5   :  { %v5922_v45 = vadd.f32 1.0, %v10219_v59 }
0x62a7   :  { %10220 = vrcp.f32 %v5922_v45 }
0x62b1   :  { %v10221_v16 = vpop.eup %10220 }
0x62b2   :  { %v5926_v39 = vmul.f32 %v10221_v16, %v12438_v27  ;;  %v12565_v27 = vld [vmem:[%s13141_s0 + $0x30] sm:$0xff]  }
0x6315   :  { %v5929_v5 = vpop.permute.xlu0 %5928 }
0x6316   :  { %v5931_v23 = vmul.f32 %v10221_v16, %v5929_v5 }
0x6318   :  { %5933 = vrot.lane.b32.xlu1 %v5931_v23, %s10755_s16 }
0x638a   :  { %v5934_v51 = vpop.permute.xlu1 %5933 }
0x638b   :  { %v12555_v58 = vadd.f32 %v5934_v51, %v5926_v39 }
0x638d   :  { %10222 = vtanh.f32 %v12555_v58 }
0x6397   :  { %v10223_v35 = vpop.eup %10222 }
0x6398   :  { %5939 = vrot.lane.b32.xlu0 %v10223_v35, %s13137_s4 }
0x640a   :  { %v5940_v25 = vpop.permute.xlu0 %5939 }
0x640b   :  { %v5942_v24 = vmul.f32 %v10221_v16, %v5940_v25 }
0x640d   :  { %v5943_v11 = vpack.c.bf16 %v5942_v24, %v5942_v24 }
0x640f   :  { %5985 = vrot.lane.b32.xlu1 %v5943_v11, %s10755_s16 }
0x6481   :  { %v5986_v61 = vpop.permute.xlu1 %5985 }
0x6482   :  { %9500 = vmatmul.mubr.msk.bf16.vlgmr.msra.gmra.mrb[188].mxu0 %vm317_vm1, %v5986_v61  ;;  %9540 = vmatmul.mubr.msk.bf16.vlgmr.msra.gmra.mrb[196].mxu1 %vm317_vm1, %v5986_v61 }
0x6483   :  { %9512 = vmatpush3.bf16.msra.mxu0 %v12565_v27  ;;  %9552 = vmatpush3.bf16.msra.mxu1 %v12292_v28 }
0x6484   :  { %9513 = vmatprep.subr.bf16.mxu0 %v10752_v0  ;;  %9553 = vmatprep.subr.bf16.mxu1 %v10752_v0 }
0x6485   :  { %9515 = vmatprep.mubr.msk.bf16.mxu0 %vm10753_vm0, %v10752_v0  ;;  %9555 = vmatprep.mubr.msk.bf16.mxu1 %vm10753_vm0, %v10752_v0 }
0x6487   :  { %9514 = vmatpush3.bf16.msra.mxu0 %v12456_v32  ;;  %9554 = vmatpush3.bf16.msra.mxu1 %v12302_v29 }
0x6488   :  { %9527 = vmatprep.subr.bf16.mxu0 %v10752_v0  ;;  %9567 = vmatprep.subr.bf16.mxu1 %v10752_v0 }
0x6555   :  { %v6024_v7 = vpop.f32.mrb[188].mxu0  ;;  %v12579_v28 = vpop.f32.mrb[196].mxu1 }
0x6556   :  { %v6025_v55 = vadd.f32 %v6024_v7, %v12490_v10  ;;  %v9501_v26 = vpop.f32.mrb[189].mxu0  ;;  %v9541_v9 = vpop.f32.mrb[197].mxu1 }
0x6557   :  { %v6027_v48 = vpop.f32.mrb[190].mxu0  ;;  %v6322_v20 = vpop.f32.mrb[198].mxu1 }
0x6558   :  { %v6030_v6 = vadd.f32 %v12465_v4, %v6025_v55  ;;  %v9502_v62 = vpop.f32.mrb[191].mxu0  ;;  %v9542_v57 = vpop.f32.mrb[199].mxu1 }
0x655a   :  { %10224 = vtanh.f32 %v6030_v6  ;;  %v8302_v29 = vmul.f32 -1.442695, %v6030_v6 }
0x655c   :  { %10226 = vpow2.f32 %v8302_v29 }
0x6564   :  { %v10225_v8 = vpop.eup %10224 }
0x6565   :  { %6040 = vrot.lane.b32.xlu0 %v10225_v8, %s13137_s4 }
0x6566   :  { %v10227_v14 = vpop.eup %10226 }
0x6567   :  { %v6034_v54 = vadd.f32 1.0, %v10227_v14 }
0x6569   :  { %10228 = vrcp.f32 %v6034_v54 }
0x6573   :  { %v10229_v2 = vpop.eup %10228 }
0x6574   :  { %v6038_v21 = vmul.f32 %v10229_v2, %v12471_v18 }
0x65d7   :  { %v6041_v49 = vpop.permute.xlu0 %6040 }
0x65d8   :  { %v6043_v10 = vmul.f32 %v10229_v2, %v6041_v49 }
0x65da   :  { %6045 = vrot.lane.b32.xlu1 %v6043_v10, %s10755_s16 }
0x664c   :  { %v6046_v46 = vpop.permute.xlu1 %6045 }
0x664d   :  { %v12586_v38 = vadd.f32 %v6046_v46, %v6038_v21 }
0x664f   :  { %10230 = vtanh.f32 %v12586_v38 }
0x6659   :  { %v10231_v13 = vpop.eup %10230 }
0x665a   :  { %6051 = vrot.lane.b32.xlu0 %v10231_v13, %s13137_s4 }
0x66cc   :  { %v6052_v15 = vpop.permute.xlu0 %6051 }
0x66cd   :  { %v6054_v56 = vmul.f32 %v10229_v2, %v6052_v15 }
0x66cf   :  { %v6055_v1 = vpack.c.bf16 %v6054_v56, %v6054_v56 }
0x66d1   :  { %6097 = vrot.lane.b32.xlu1 %v6055_v1, %s10755_s16 }
0x6743   :  { %v6098_v37 = vpop.permute.xlu1 %6097 }
0x6744   :  { %9516 = vmatmul.mubr.msk.bf16.vlgmr.msra.gmra.mrb[192].mxu0 %vm317_vm1, %v6098_v37  ;;  %9556 = vmatmul.mubr.msk.bf16.vlgmr.msra.gmra.mrb[200].mxu1 %vm317_vm1, %v6098_v37 }
0x6745   :  { %9528 = vmatpush3.bf16.msra.mxu0 %v12324_v50  ;;  %9568 = vmatpush3.bf16.msra.mxu1 %v12327_v17 }
0x6746   :  { %9529 = vmatprep.subr.bf16.mxu0 %v10752_v0  ;;  %9569 = vmatprep.subr.bf16.mxu1 %v10752_v0 }
0x6747   :  { %9531 = vmatprep.mubr.msk.bf16.mxu0 %vm10753_vm0, %v10752_v0  ;;  %9571 = vmatprep.mubr.msk.bf16.mxu1 %vm10753_vm0, %v10752_v0 }
0x6749   :  { %9530 = vmatpush3.bf16.msra.mxu0 %v12339_v43  ;;  %9570 = vmatpush3.bf16.msra.mxu1 %v12342_v47 }
0x674a   :  { %9543 = vmatprep.subr.bf16.mxu0 %v10752_v0  ;;  %9583 = vmatprep.subr.bf16.mxu1 %v10752_v0 }
0x6817   :  { %v6136_v50 = vpop.f32.mrb[192].mxu0  ;;  %v12605_v17 = vpop.f32.mrb[200].mxu1 }
0x6818   :  { %v6137_v18 = vadd.f32 %v6136_v50, %v12522_v36  ;;  %v9517_v59 = vpop.f32.mrb[193].mxu0  ;;  %v9557_v45 = vpop.f32.mrb[201].mxu1 }
0x6819   :  { %v6139_v16 = vpop.f32.mrb[194].mxu0  ;;  %v6434_v5 = vpop.f32.mrb[202].mxu1  ;;  %v12660_v59 = vld [vmem:[#allocation11 + $0x18] sm:$0xff]  }
0x681a   :  { %v6142_v23 = vadd.f32 %v12493_v52, %v6137_v18  ;;  %v9518_v39 = vpop.f32.mrb[195].mxu0  ;;  %v9558_v51 = vpop.f32.mrb[203].mxu1 }
0x681c   :  { %10232 = vtanh.f32 %v6142_v23  ;;  %v8305_v47 = vmul.f32 -1.442695, %v6142_v23 }
0x681e   :  { %10234 = vpow2.f32 %v8305_v47 }
0x6826   :  { %v10233_v43 = vpop.eup %10232 }
0x6827   :  { %6152 = vrot.lane.b32.xlu0 %v10233_v43, %s13137_s4 }
0x6828   :  { %v10235_v35 = vpop.eup %10234 }
0x6829   :  { %v6146_v25 = vadd.f32 1.0, %v10235_v35 }
0x682b   :  { %10236 = vrcp.f32 %v6146_v25 }
0x6835   :  { %v10237_v24 = vpop.eup %10236 }
0x6836   :  { %v6150_v61 = vmul.f32 %v10237_v24, %v12499_v30 }
0x6899   :  { %v6153_v11 = vpop.permute.xlu0 %6152 }
0x689a   :  { %v6155_v36 = vmul.f32 %v10237_v24, %v6153_v11 }
0x689c   :  { %6157 = vrot.lane.b32.xlu1 %v6155_v36, %s10755_s16 }
0x690e   :  { %v6158_v7 = vpop.permute.xlu1 %6157 }
0x690f   :  { %v12612_v55 = vadd.f32 %v6158_v7, %v6150_v61 }
0x6911   :  { %10238 = vtanh.f32 %v12612_v55 }
0x691b   :  { %v10239_v26 = vpop.eup %10238 }
0x691c   :  { %6163 = vrot.lane.b32.xlu0 %v10239_v26, %s13137_s4 }
0x698e   :  { %v6164_v9 = vpop.permute.xlu0 %6163 }
0x698f   :  { %v12616_v48 = vmul.f32 %v10237_v24, %v6164_v9 }
0x6991   :  { %v6172_v20 = vpack.c.bf16 %v12616_v48, %v12616_v48 }
0x6993   :  { %6214 = vrot.lane.b32.xlu1 %v6172_v20, %s10755_s16 }
0x6a05   :  { %v6215_v6 = vpop.permute.xlu1 %6214 }
0x6a06   :  { %9532 = vmatmul.mubr.msk.bf16.vlgmr.msra.gmra.mrb[196].mxu0 %vm317_vm1, %v6215_v6  ;;  %9572 = vmatmul.mubr.msk.bf16.vlgmr.msra.gmra.mrb[204].mxu1 %vm317_vm1, %v6215_v6 }
0x6a07   :  { %9544 = vmatpush3.bf16.msra.mxu0 %v12368_v33  ;;  %9584 = vmatpush3.bf16.msra.mxu1 %v12371_v53 }
0x6a08   :  { %9545 = vmatprep.subr.bf16.mxu0 %v10752_v0  ;;  %9585 = vmatprep.subr.bf16.mxu1 %v10752_v0 }
0x6a09   :  { %9547 = vmatprep.mubr.msk.bf16.mxu0 %vm10753_vm0, %v10752_v0  ;;  %9587 = vmatprep.mubr.msk.bf16.mxu1 %vm10753_vm0, %v10752_v0 }
0x6a0b   :  { %9546 = vmatpush3.bf16.msra.mxu0 %v12383_v40  ;;  %9586 = vmatpush3.bf16.msra.mxu1 %v12386_v19 }
0x6a0c   :  { %9559 = vmatprep.subr.bf16.mxu0 %v10752_v0  ;;  %9599 = vmatprep.subr.bf16.mxu1 %v10752_v0 }
0x6ad9   :  { %v6253_v33 = vpop.f32.mrb[196].mxu0  ;;  %v12635_v53 = vpop.f32.mrb[204].mxu1 }
0x6ada   :  { %v6254_v30 = vadd.f32 %v6253_v33, %v12548_v60  ;;  %v9533_v62 = vpop.f32.mrb[197].mxu0  ;;  %v9573_v57 = vpop.f32.mrb[205].mxu1 }
0x6adb   :  { %v6256_v8 = vpop.f32.mrb[198].mxu0  ;;  %v6546_v29 = vpop.f32.mrb[206].mxu1  ;;  %v12690_v62 = vld [vmem:[#allocation11 + $0x28] sm:$0xff]  }
0x6adc   :  { %v6259_v14 = vadd.f32 %v12394_v3, %v6254_v30  ;;  %v9534_v54 = vpop.f32.mrb[199].mxu0  ;;  %v9574_v2 = vpop.f32.mrb[207].mxu1 }
0x6ade   :  { %10240 = vtanh.f32 %v6259_v14  ;;  %v8308_v19 = vmul.f32 -1.442695, %v6259_v14 }
0x6ae0   :  { %10242 = vpow2.f32 %v8308_v19 }
0x6ae8   :  { %v10241_v40 = vpop.eup %10240 }
0x6ae9   :  { %6269 = vrot.lane.b32.xlu0 %v10241_v40, %s13137_s4 }
0x6aea   :  { %v10243_v49 = vpop.eup %10242 }
0x6aeb   :  { %v6263_v10 = vadd.f32 1.0, %v10243_v49 }
0x6aed   :  { %10244 = vrcp.f32 %v6263_v10 }
0x6af7   :  { %v10245_v21 = vpop.eup %10244 }
0x6af8   :  { %v6267_v13 = vmul.f32 %v10245_v21, %v12529_v63  ;;  %v12650_v63 = vld [vmem:[#allocation11 + $0x10] sm:$0xff]  }
0x6b5b   :  { %v6270_v46 = vpop.permute.xlu0 %6269 }
0x6b5c   :  { %v6272_v60 = vmul.f32 %v10245_v21, %v6270_v46 }
0x6b5e   :  { %6274 = vrot.lane.b32.xlu1 %v6272_v60, %s10755_s16 }
0x6bd0   :  { %v6275_v15 = vpop.permute.xlu1 %6274 }
0x6bd1   :  { %v12642_v3 = vadd.f32 %v6275_v15, %v6267_v13 }
0x6bd3   :  { %10246 = vtanh.f32 %v12642_v3 }
0x6bdd   :  { %v10247_v56 = vpop.eup %10246 }
0x6bde   :  { %6280 = vrot.lane.b32.xlu0 %v10247_v56, %s13137_s4 }
0x6c50   :  { %v6281_v1 = vpop.permute.xlu0 %6280 }
0x6c51   :  { %v6283_v37 = vmul.f32 %v10245_v21, %v6281_v1 }
0x6c53   :  { %v6284_v50 = vpack.c.bf16 %v6283_v37, %v6283_v37 }
0x6c55   :  { %6326 = vrot.lane.b32.xlu1 %v6284_v50, %s10755_s16 }
0x6cc7   :  { %v6327_v18 = vpop.permute.xlu1 %6326 }
0x6cc8   :  { %9548 = vmatmul.mubr.msk.bf16.vlgmr.msra.gmra.mrb[200].mxu0 %vm317_vm1, %v6327_v18  ;;  %9588 = vmatmul.mubr.msk.bf16.vlgmr.msra.gmra.mrb[208].mxu1 %vm317_vm1, %v6327_v18 }
0x6cc9   :  { %9560 = vmatpush3.bf16.msra.mxu0 %v12410_v31  ;;  %9600 = vmatpush3.bf16.msra.mxu1 %v12650_v63 }
0x6cca   :  { %9561 = vmatprep.subr.bf16.mxu0 %v10752_v0  ;;  %9601 = vmatprep.subr.bf16.mxu1 %v10752_v0 }
0x6ccb   :  { %9563 = vmatprep.mubr.msk.bf16.mxu0 %vm10753_vm0, %v10752_v0  ;;  %9603 = vmatprep.mubr.msk.bf16.mxu1 %vm10753_vm0, %v10752_v0 }
0x6ccd   :  { %9562 = vmatpush3.bf16.msra.mxu0 %v12423_v41  ;;  %9602 = vmatpush3.bf16.msra.mxu1 %v12660_v59 }
0x6cce   :  { %9575 = vmatprep.subr.bf16.mxu0 %v10752_v0  ;;  %9615 = vmatprep.subr.bf16.mxu1 %v10752_v0 }
0x6d9b   :  { %v6365_v31 = vpop.f32.mrb[200].mxu0  ;;  %v12665_v45 = vpop.f32.mrb[208].mxu1 }
0x6d9c   :  { %v6366_v16 = vadd.f32 %v6365_v31, %v12579_v28  ;;  %v9549_v5 = vpop.f32.mrb[201].mxu0  ;;  %v9589_v23 = vpop.f32.mrb[209].mxu1 }
0x6d9d   :  { %v6368_v39 = vpop.f32.mrb[202].mxu0  ;;  %v6663_v51 = vpop.f32.mrb[210].mxu1  ;;  %v12715_v5 = vld [vmem:[#allocation11 + $0x30] sm:$0xff]   ;;  %v12727_v23 = vld [vmem:[%s13141_s0 + $0x8] sm:$0xff]  }
0x6d9e   :  { %v6371_v43 = vadd.f32 %v12432_v34, %v6366_v16  ;;  %v9550_v41 = vpop.f32.mrb[203].mxu0  ;;  %v9590_v47 = vpop.f32.mrb[211].mxu1  ;;  %v12730_v39 = vld [vmem:[#allocation11 + $0x38] sm:$0xff]  }
0x6da0   :  { %10248 = vtanh.f32 %v6371_v43  ;;  %v8311_v25 = vmul.f32 -1.442695, %v6371_v43 }
0x6da2   :  { %10250 = vpow2.f32 %v8311_v25 }
0x6daa   :  { %v10249_v35 = vpop.eup %10248 }
0x6dab   :  { %6381 = vrot.lane.b32.xlu0 %v10249_v35, %s13137_s4 }
0x6dac   :  { %v10251_v24 = vpop.eup %10250 }
0x6dad   :  { %v6375_v11 = vadd.f32 1.0, %v10251_v24 }
0x6daf   :  { %10252 = vrcp.f32 %v6375_v11 }
0x6db9   :  { %v10253_v36 = vpop.eup %10252 }
0x6dba   :  { %v6379_v7 = vmul.f32 %v10253_v36, %v12555_v58  ;;  %v12680_v58 = vld [vmem:[#allocation11 + $0x20] sm:$0xff]  }
0x6e1d   :  { %v6382_v61 = vpop.permute.xlu0 %6381 }
0x6e1e   :  { %v6384_v28 = vmul.f32 %v10253_v36, %v6382_v61 }
0x6e20   :  { %6386 = vrot.lane.b32.xlu1 %v6384_v28, %s10755_s16 }
0x6e92   :  { %v6387_v26 = vpop.permute.xlu1 %6386 }
0x6e93   :  { %v12672_v34 = vadd.f32 %v6387_v26, %v6379_v7 }
0x6e95   :  { %10254 = vtanh.f32 %v12672_v34 }
0x6e9f   :  { %v10255_v9 = vpop.eup %10254 }
0x6ea0   :  { %6392 = vrot.lane.b32.xlu0 %v10255_v9, %s13137_s4 }
0x6f12   :  { %v6393_v20 = vpop.permute.xlu0 %6392 }
0x6f13   :  { %v6395_v6 = vmul.f32 %v10253_v36, %v6393_v20 }
0x6f15   :  { %v6396_v33 = vpack.c.bf16 %v6395_v6, %v6395_v6 }
0x6f17   :  { %6438 = vrot.lane.b32.xlu1 %v6396_v33, %s10755_s16 }
0x6f89   :  { %v6439_v30 = vpop.permute.xlu1 %6438 }
0x6f8a   :  { %9564 = vmatmul.mubr.msk.bf16.vlgmr.msra.gmra.mrb[204].mxu0 %vm317_vm1, %v6439_v30  ;;  %9604 = vmatmul.mubr.msk.bf16.vlgmr.msra.gmra.mrb[212].mxu1 %vm317_vm1, %v6439_v30 }
0x6f8b   :  { %9576 = vmatpush3.bf16.msra.mxu0 %v12565_v27  ;;  %9616 = vmatpush3.bf16.msra.mxu1 %v12680_v58 }
0x6f8c   :  { %9577 = vmatprep.subr.bf16.mxu0 %v10752_v0  ;;  %9617 = vmatprep.subr.bf16.mxu1 %v10752_v0 }
0x6f8d   :  { %9579 = vmatprep.mubr.msk.bf16.mxu0 %vm10753_vm0, %v10752_v0  ;;  %9619 = vmatprep.mubr.msk.bf16.mxu1 %vm10753_vm0, %v10752_v0 }
0x6f8f   :  { %9578 = vmatpush3.bf16.msra.mxu0 %v12456_v32  ;;  %9618 = vmatpush3.bf16.msra.mxu1 %v12690_v62 }
0x6f90   :  { %9591 = vmatprep.subr.bf16.mxu0 %v10752_v0  ;;  %9631 = vmatprep.subr.bf16.mxu1 %v10752_v0 }
0x705d   :  { %v6477_v57 = vpop.f32.mrb[204].mxu0  ;;  %v12695_v8 = vpop.f32.mrb[212].mxu1 }
0x705e   :  { %v6478_v29 = vadd.f32 %v6477_v57, %v12605_v17  ;;  %v9565_v14 = vpop.f32.mrb[205].mxu0  ;;  %v9605_v54 = vpop.f32.mrb[213].mxu1 }
0x705f   :  { %v6480_v2 = vpop.f32.mrb[206].mxu0  ;;  %v6775_v40 = vpop.f32.mrb[214].mxu1 }
0x7060   :  { %v6483_v19 = vadd.f32 %v12465_v4, %v6478_v29  ;;  %v9566_v32 = vpop.f32.mrb[207].mxu0  ;;  %v9606_v49 = vpop.f32.mrb[215].mxu1  ;;  %v10422_v40 = vld [vmem:[#allocation11] sm:$0xff]  }
0x7061   :  { %v10424_v32 = vld [vmem:[#allocation11 + $0x8] sm:$0xff]  }
0x7062   :  { %10256 = vtanh.f32 %v6483_v19  ;;  %v8314_v21 = vmul.f32 -1.442695, %v6483_v19  ;;  %v12768_v19 = vld [vmem:[%s13141_s0 + $0x18] sm:$0xff]  }
0x7064   :  { %10258 = vpow2.f32 %v8314_v21 }
0x706c   :  { %v10257_v10 = vpop.eup %10256 }
0x706d   :  { %6493 = vrot.lane.b32.xlu0 %v10257_v10, %s13137_s4 }
0x706e   :  { %v10259_v46 = vpop.eup %10258 }
0x706f   :  { %v6487_v60 = vadd.f32 1.0, %v10259_v46 }
0x7071   :  { %10260 = vrcp.f32 %v6487_v60 }
0x707b   :  { %v10261_v13 = vpop.eup %10260 }
0x707c   :  { %v6491_v56 = vmul.f32 %v10261_v13, %v12586_v38  ;;  %v12712_v38 = vld [vmem:[%s13141_s0] sm:$0xff]  }
0x70df   :  { %v6494_v15 = vpop.permute.xlu0 %6493 }
0x70e0   :  { %v6496_v17 = vmul.f32 %v10261_v13, %v6494_v15 }
0x70e2   :  { %6498 = vrot.lane.b32.xlu1 %v6496_v17, %s10755_s16  ;;  %v12776_v17 = vld [vmem:[#allocation12] ss:$0 sm:$0xff] }
0x7154   :  { %v6499_v1 = vpop.permute.xlu1 %6498 }
0x7155   :  { %v12702_v4 = vadd.f32 %v6499_v1, %v6491_v56 }
0x7157   :  { %10262 = vtanh.f32 %v12702_v4 }
0x7161   :  { %v10263_v37 = vpop.eup %10262 }
0x7162   :  { %6504 = vrot.lane.b32.xlu0 %v10263_v37, %s13137_s4 }
0x71d4   :  { %v6505_v50 = vpop.permute.xlu0 %6504 }
0x71d5   :  { %v6507_v18 = vmul.f32 %v10261_v13, %v6505_v50 }
0x71d7   :  { %v6508_v31 = vpack.c.bf16 %v6507_v18, %v6507_v18 }
0x71d9   :  { %6550 = vrot.lane.b32.xlu1 %v6508_v31, %s10755_s16 }
0x724b   :  { %v6551_v16 = vpop.permute.xlu1 %6550 }
0x724c   :  { %9580 = vmatmul.mubr.msk.bf16.vlgmr.msra.gmra.mrb[208].mxu0 %vm317_vm1, %v6551_v16  ;;  %9620 = vmatmul.mubr.msk.bf16.vlgmr.msra.gmra.mrb[216].mxu1 %vm317_vm1, %v6551_v16 }
0x724d   :  { %9592 = vmatpush3.bf16.msra.mxu0 %v12712_v38  ;;  %9632 = vmatpush3.bf16.msra.mxu1 %v12715_v5 }
0x724e   :  { %9593 = vmatprep.subr.bf16.mxu0 %v10752_v0  ;;  %9633 = vmatprep.subr.bf16.mxu1 %v10752_v0 }
0x724f   :  { %9595 = vmatprep.mubr.msk.bf16.mxu0 %vm10753_vm0, %v10752_v0  ;;  %9635 = vmatprep.mubr.msk.bf16.mxu1 %vm10753_vm0, %v10752_v0 }
0x7251   :  { %9594 = vmatpush3.bf16.msra.mxu0 %v12727_v23  ;;  %9634 = vmatpush3.bf16.msra.mxu1 %v12730_v39 }
0x7252   :  { %9607 = vmatprep.subr.bf16.mxu0 %v10752_v0  ;;  %9647 = vmatprep.subr.bf16.mxu1 %v10752_v0 }
0x731f   :  { %v6589_v51 = vpop.f32.mrb[208].mxu0  ;;  %v12735_v43 = vpop.f32.mrb[216].mxu1 }
0x7320   :  { %v6590_v41 = vadd.f32 %v6589_v51, %v12635_v53  ;;  %v9581_v47 = vpop.f32.mrb[209].mxu0  ;;  %v9621_v35 = vpop.f32.mrb[217].mxu1 }
0x7321   :  { %v6592_v25 = vpop.f32.mrb[210].mxu0  ;;  %v6887_v24 = vpop.f32.mrb[218].mxu1 }
0x7322   :  { %v6595_v11 = vadd.f32 %v12493_v52, %v6590_v41  ;;  %v9582_v36 = vpop.f32.mrb[211].mxu0  ;;  %v9622_v61 = vpop.f32.mrb[219].mxu1 }
0x7324   :  { %10264 = vtanh.f32 %v6595_v11  ;;  %v8317_v7 = vmul.f32 -1.442695, %v6595_v11 }
0x7326   :  { %10266 = vpow2.f32 %v8317_v7  ;;  %v12805_v7 = vld [vmem:[%s13141_s0 + $0x28] sm:$0xff]  }
0x732e   :  { %v10265_v28 = vpop.eup %10264 }
0x732f   :  { %6605 = vrot.lane.b32.xlu0 %v10265_v28, %s13137_s4 }
0x7330   :  { %v10267_v26 = vpop.eup %10266 }
0x7331   :  { %v6599_v9 = vadd.f32 1.0, %v10267_v26 }
0x7333   :  { %10268 = vrcp.f32 %v6599_v9 }
0x733d   :  { %v10269_v20 = vpop.eup %10268 }
0x733e   :  { %v6603_v33 = vmul.f32 %v10269_v20, %v12612_v55  ;;  %v12756_v55 = vld [vmem:[%s13141_s0 + $0x10] sm:$0xff]  }
0x73a1   :  { %v6606_v6 = vpop.permute.xlu0 %6605 }
0x73a2   :  { %v6608_v53 = vmul.f32 %v10269_v20, %v6606_v6 }
0x73a4   :  { %6610 = vrot.lane.b32.xlu1 %v6608_v53, %s10755_s16 }
0x7416   :  { %v6611_v30 = vpop.permute.xlu1 %6610 }
0x7417   :  { %v12742_v52 = vadd.f32 %v6611_v30, %v6603_v33  ;;  %v12814_v30 = vld [vmem:[#allocation12 + $0x1] ss:$0 sm:$0xff] }
0x7419   :  { %10270 = vtanh.f32 %v12742_v52 }
0x7423   :  { %v10271_v57 = vpop.eup %10270 }
0x7424   :  { %6616 = vrot.lane.b32.xlu0 %v10271_v57, %s13137_s4 }
0x7496   :  { %v6617_v29 = vpop.permute.xlu0 %6616 }
0x7497   :  { %v12746_v14 = vmul.f32 %v10269_v20, %v6617_v29 }
0x7499   :  { %v6625_v54 = vpack.c.bf16 %v12746_v14, %v12746_v14 }
0x749b   :  { %6667 = vrot.lane.b32.xlu1 %v6625_v54, %s10755_s16 }
0x750d   :  { %v6668_v2 = vpop.permute.xlu1 %6667 }
0x750e   :  { %9596 = vmatmul.mubr.msk.bf16.vlgmr.msra.gmra.mrb[212].mxu0 %vm317_vm1, %v6668_v2  ;;  %9636 = vmatmul.mubr.msk.bf16.vlgmr.msra.gmra.mrb[220].mxu1 %vm317_vm1, %v6668_v2 }
0x750f   :  { %9608 = vmatpush3.bf16.msra.mxu0 %v12756_v55  ;;  %9648 = vmatpush3.bf16.msra.mxu1 %v10422_v40 }
0x7510   :  { %9609 = vmatprep.subr.bf16.mxu0 %v10752_v0  ;;  %9649 = vmatprep.subr.bf16.mxu1 %v10752_v0 }
0x7511   :  { %9611 = vmatprep.mubr.msk.bf16.mxu0 %vm10753_vm0, %v10752_v0  ;;  %9651 = vmatprep.mubr.msk.bf16.mxu1 %vm10753_vm0, %v10752_v0 }
0x7513   :  { %9610 = vmatpush3.bf16.msra.mxu0 %v12768_v19  ;;  %9650 = vmatpush3.bf16.msra.mxu1 %v10424_v32 }
0x7514   :  { %9623 = vmatprep.subr.bf16.mxu0 %v10752_v0  ;;  %9663 = vmatprep.subr.bf16.mxu1 %v10752_v0 }
0x75e1   :  { %v6706_v49 = vpop.f32.mrb[212].mxu0  ;;  %v12773_v10 = vpop.f32.mrb[220].mxu1 }
0x75e2   :  { %v6707_v21 = vadd.f32 %v6706_v49, %v12665_v45  ;;  %v9597_v46 = vpop.f32.mrb[213].mxu0  ;;  %v9637_v60 = vpop.f32.mrb[221].mxu1 }
0x75e3   :  { %v6709_v13 = vpop.f32.mrb[214].mxu0  ;;  %v6999_v15 = vpop.f32.mrb[222].mxu1 }
0x75e4   :  { %v6712_v56 = vadd.f32 %v12776_v17, %v6707_v21  ;;  %v9598_v1 = vpop.f32.mrb[215].mxu0  ;;  %v9638_v37 = vpop.f32.mrb[223].mxu1 }
0x75e6   :  { %10272 = vtanh.f32 %v6712_v56  ;;  %v8320_v18 = vmul.f32 -1.442695, %v6712_v56 }
0x75e8   :  { %10274 = vpow2.f32 %v8320_v18 }
0x75f0   :  { %v10273_v50 = vpop.eup %10272 }
0x75f1   :  { %6722 = vrot.lane.b32.xlu0 %v10273_v50, %s13137_s4 }
0x75f2   :  { %v10275_v31 = vpop.eup %10274 }
0x75f3   :  { %v6716_v16 = vadd.f32 1.0, %v10275_v31 }
0x75f5   :  { %10276 = vrcp.f32 %v6716_v16 }
0x75ff   :  { %v10277_v45 = vpop.eup %10276 }
0x7600   :  { %v6720_v47 = vmul.f32 %v10277_v45, %v12642_v3  ;;  %v12792_v3 = vld [vmem:[%s13141_s0 + $0x20] sm:$0xff]  }
0x7663   :  { %v6723_v51 = vpop.permute.xlu0 %6722 }
0x7664   :  { %v6725_v41 = vmul.f32 %v10277_v45, %v6723_v51 }
0x7666   :  { %6727 = vrot.lane.b32.xlu1 %v6725_v41, %s10755_s16  ;;  %v12847_v41 = vld [vmem:[#allocation12 + $0x2] ss:$0 sm:$0xff] }
0x76d8   :  { %v6728_v35 = vpop.permute.xlu1 %6727 }
0x76d9   :  { %v12782_v25 = vadd.f32 %v6728_v35, %v6720_v47 }
0x76db   :  { %10278 = vtanh.f32 %v12782_v25 }
0x76e5   :  { %v10279_v24 = vpop.eup %10278 }
0x76e6   :  { %6733 = vrot.lane.b32.xlu0 %v10279_v24, %s13137_s4 }
0x7758   :  { %v6734_v11 = vpop.permute.xlu0 %6733 }
0x7759   :  { %v6736_v36 = vmul.f32 %v10277_v45, %v6734_v11 }
0x775b   :  { %v6737_v61 = vpack.c.bf16 %v6736_v36, %v6736_v36 }
0x775d   :  { %6779 = vrot.lane.b32.xlu1 %v6737_v61, %s10755_s16 }
0x77cf   :  { %v6780_v28 = vpop.permute.xlu1 %6779 }
0x77d0   :  { %9612 = vmatmul.mubr.msk.bf16.vlgmr.msra.gmra.mrb[216].mxu0 %vm317_vm1, %v6780_v28  ;;  %9652 = vmatmul.mubr.msk.bf16.vlgmr.msra.gmra.mrb[224].mxu1 %vm317_vm1, %v6780_v28 }
0x77d1   :  { %9624 = vmatpush3.bf16.msra.mxu0 %v12792_v3  ;;  %9664 = vmatpush3.bf16.msra.mxu1 %v12650_v63 }
0x77d2   :  { %9625 = vmatprep.subr.bf16.mxu0 %v10752_v0  ;;  %9665 = vmatprep.subr.bf16.mxu1 %v10752_v0 }
0x77d3   :  { %9627 = vmatprep.mubr.msk.bf16.mxu0 %vm10753_vm0, %v10752_v0  ;;  %9667 = vmatprep.mubr.msk.bf16.mxu1 %vm10753_vm0, %v10752_v0 }
0x77d5   :  { %9626 = vmatpush3.bf16.msra.mxu0 %v12805_v7  ;;  %9666 = vmatpush3.bf16.msra.mxu1 %v12660_v59 }
0x77d6   :  { %9639 = vmatprep.subr.bf16.mxu0 %v10752_v0  ;;  %9679 = vmatprep.subr.bf16.mxu1 %v10752_v0 }
0x78a3   :  { %v6818_v63 = vpop.f32.mrb[216].mxu0  ;;  %v12811_v26 = vpop.f32.mrb[224].mxu1 }
0x78a4   :  { %v6819_v9 = vadd.f32 %v6818_v63, %v12695_v8  ;;  %v9613_v20 = vpop.f32.mrb[217].mxu0  ;;  %v9653_v6 = vpop.f32.mrb[225].mxu1 }
0x78a5   :  { %v6821_v53 = vpop.f32.mrb[218].mxu0  ;;  %v7116_v33 = vpop.f32.mrb[226].mxu1 }
0x78a6   :  { %v6824_v57 = vadd.f32 %v12814_v30, %v6819_v9  ;;  %v9614_v29 = vpop.f32.mrb[219].mxu0  ;;  %v9654_v54 = vpop.f32.mrb[227].mxu1 }
0x78a8   :  { %10280 = vtanh.f32 %v6824_v57  ;;  %v8323_v2 = vmul.f32 -1.442695, %v6824_v57 }
0x78aa   :  { %10282 = vpow2.f32 %v8323_v2 }
0x78b2   :  { %v10281_v59 = vpop.eup %10280 }
0x78b3   :  { %6834 = vrot.lane.b32.xlu0 %v10281_v59, %s13137_s4 }
0x78b4   :  { %v10283_v40 = vpop.eup %10282 }
0x78b5   :  { %v6828_v32 = vadd.f32 1.0, %v10283_v40 }
0x78b7   :  { %10284 = vrcp.f32 %v6828_v32 }
0x78c1   :  { %v10285_v8 = vpop.eup %10284 }
0x78c2   :  { %v6832_v46 = vmul.f32 %v10285_v8, %v12672_v34  ;;  %v12838_v34 = vld [vmem:[%s13141_s0 + $0x38] sm:$0xff]  }
0x7925   :  { %v6835_v49 = vpop.permute.xlu0 %6834 }
0x7926   :  { %v6837_v21 = vmul.f32 %v10285_v8, %v6835_v49 }
0x7928   :  { %6839 = vrot.lane.b32.xlu1 %v6837_v21, %s10755_s16 }
0x799a   :  { %v6840_v60 = vpop.permute.xlu1 %6839 }
0x799b   :  { %v12820_v13 = vadd.f32 %v6840_v60, %v6832_v46 }
0x799d   :  { %10286 = vtanh.f32 %v12820_v13 }
0x79a7   :  { %v10287_v15 = vpop.eup %10286 }
0x79a8   :  { %6845 = vrot.lane.b32.xlu0 %v10287_v15, %s13137_s4 }
0x7a1a   :  { %v6846_v56 = vpop.permute.xlu0 %6845 }
0x7a1b   :  { %v6848_v1 = vmul.f32 %v10285_v8, %v6846_v56  ;;  %v12875_v8 = vld [vmem:[#allocation12 + $0x3] ss:$0 sm:$0xff] }
0x7a1d   :  { %v6849_v37 = vpack.c.bf16 %v6848_v1, %v6848_v1 }
0x7a1f   :  { %6891 = vrot.lane.b32.xlu1 %v6849_v37, %s10755_s16 }
0x7a91   :  { %v6892_v50 = vpop.permute.xlu1 %6891 }
0x7a92   :  { %9628 = vmatmul.mubr.msk.bf16.vlgmr.msra.gmra.mrb[220].mxu0 %vm317_vm1, %v6892_v50  ;;  %9668 = vmatmul.mubr.msk.bf16.vlgmr.msra.gmra.mrb[228].mxu1 %vm317_vm1, %v6892_v50 }
0x7a93   :  { %9640 = vmatpush3.bf16.msra.mxu0 %v12565_v27  ;;  %9680 = vmatpush3.bf16.msra.mxu1 %v12680_v58 }
0x7a94   :  { %9641 = vmatprep.subr.bf16.mxu0 %v10752_v0  ;;  %9681 = vmatprep.subr.bf16.mxu1 %v10752_v0 }
0x7a95   :  { %9643 = vmatprep.mubr.msk.bf16.mxu0 %vm10753_vm0, %v10752_v0  ;;  %9683 = vmatprep.mubr.msk.bf16.mxu1 %vm10753_vm0, %v10752_v0 }
0x7a97   :  { %9642 = vmatpush3.bf16.msra.mxu0 %v12838_v34  ;;  %9682 = vmatpush3.bf16.msra.mxu1 %v12690_v62 }
0x7a98   :  { %9655 = vmatprep.subr.bf16.mxu0 %v10752_v0  ;;  %9695 = vmatprep.subr.bf16.mxu1 %v10752_v0 }
0x7b65   :  { %v6930_v27 = vpop.f32.mrb[220].mxu0  ;;  %v12844_v58 = vpop.f32.mrb[228].mxu1 }
0x7b66   :  { %v6931_v18 = vadd.f32 %v6930_v27, %v12735_v43  ;;  %v9629_v31 = vpop.f32.mrb[221].mxu0  ;;  %v9669_v16 = vpop.f32.mrb[229].mxu1 }
0x7b67   :  { %v6933_v45 = vpop.f32.mrb[222].mxu0  ;;  %v7228_v51 = vpop.f32.mrb[230].mxu1 }
0x7b68   :  { %v6936_v47 = vadd.f32 %v12847_v41, %v6931_v18  ;;  %v9630_v35 = vpop.f32.mrb[223].mxu0  ;;  %v9670_v24 = vpop.f32.mrb[231].mxu1 }
0x7b6a   :  { %10288 = vtanh.f32 %v6936_v47  ;;  %v8326_v11 = vmul.f32 -1.442695, %v6936_v47 }
0x7b6c   :  { %10290 = vpow2.f32 %v8326_v11 }
0x7b74   :  { %v10289_v62 = vpop.eup %10288 }
0x7b75   :  { %6946 = vrot.lane.b32.xlu0 %v10289_v62, %s13137_s4 }
0x7b76   :  { %v10291_v36 = vpop.eup %10290 }
0x7b77   :  { %v6940_v61 = vadd.f32 1.0, %v10291_v36 }
0x7b79   :  { %10292 = vrcp.f32 %v6940_v61 }
0x7b83   :  { %v10293_v43 = vpop.eup %10292 }
0x7b84   :  { %v6944_v9 = vmul.f32 %v10293_v43, %v12702_v4 }
0x7be7   :  { %v6947_v28 = vpop.permute.xlu0 %6946 }
0x7be8   :  { %v6949_v63 = vmul.f32 %v10293_v43, %v6947_v28 }
0x7bea   :  { %6951 = vrot.lane.b32.xlu1 %v6949_v63, %s10755_s16 }
0x7c5c   :  { %v6952_v20 = vpop.permute.xlu1 %6951 }
0x7c5d   :  { %v12853_v6 = vadd.f32 %v6952_v20, %v6944_v9 }
0x7c5f   :  { %10294 = vtanh.f32 %v12853_v6 }
0x7c69   :  { %v10295_v53 = vpop.eup %10294 }
0x7c6a   :  { %6957 = vrot.lane.b32.xlu0 %v10295_v53, %s13137_s4 }
0x7cdc   :  { %v6958_v33 = vpop.permute.xlu0 %6957 }
0x7cdd   :  { %v6960_v57 = vmul.f32 %v10293_v43, %v6958_v33 }
0x7cdf   :  { %v6961_v29 = vpack.c.bf16 %v6960_v57, %v6960_v57 }
0x7ce1   :  { %7003 = vrot.lane.b32.xlu1 %v6961_v29, %s10755_s16 }
0x7d53   :  { %v7004_v54 = vpop.permute.xlu1 %7003 }
0x7d54   :  { %9644 = vmatmul.mubr.msk.bf16.vlgmr.msra.gmra.mrb[224].mxu0 %vm317_vm1, %v7004_v54  ;;  %9684 = vmatmul.mubr.msk.bf16.vlgmr.msra.gmra.mrb[232].mxu1 %vm317_vm1, %v7004_v54 }
0x7d55   :  { %9656 = vmatpush3.bf16.msra.mxu0 %v12712_v38  ;;  %9696 = vmatpush3.bf16.msra.mxu1 %v12715_v5 }
0x7d56   :  { %9657 = vmatprep.subr.bf16.mxu0 %v10752_v0  ;;  %9697 = vmatprep.subr.bf16.mxu1 %v10752_v0 }
0x7d57   :  { %9659 = vmatprep.mubr.msk.bf16.mxu0 %vm10753_vm0, %v10752_v0  ;;  %9699 = vmatprep.mubr.msk.bf16.mxu1 %vm10753_vm0, %v10752_v0 }
0x7d59   :  { %9658 = vmatpush3.bf16.msra.mxu0 %v12727_v23  ;;  %9698 = vmatpush3.bf16.msra.mxu1 %v12730_v39 }
0x7d5a   :  { %9671 = vmatprep.subr.bf16.mxu0 %v10752_v0  ;;  %9711 = vmatprep.subr.bf16.mxu1 %v10752_v0 }
0x7e27   :  { %v7042_v4 = vpop.f32.mrb[224].mxu0  ;;  %v12872_v38 = vpop.f32.mrb[232].mxu1 }
0x7e28   :  { %v7043_v5 = vadd.f32 %v7042_v4, %v12773_v10  ;;  %v9645_v59 = vpop.f32.mrb[225].mxu0  ;;  %v9685_v2 = vpop.f32.mrb[233].mxu1 }
0x7e29   :  { %v7045_v40 = vpop.f32.mrb[226].mxu0  ;;  %v7340_v32 = vpop.f32.mrb[234].mxu1 }
0x7e2a   :  { %v7048_v49 = vadd.f32 %v12875_v8, %v7043_v5  ;;  %v9646_v23 = vpop.f32.mrb[227].mxu0  ;;  %v9686_v21 = vpop.f32.mrb[235].mxu1 }
0x7e2c   :  { %10296 = vtanh.f32 %v7048_v49  ;;  %v8329_v46 = vmul.f32 -1.442695, %v7048_v49 }
0x7e2e   :  { %10298 = vpow2.f32 %v8329_v46 }
0x7e36   :  { %v10297_v39 = vpop.eup %10296 }
0x7e37   :  { %7058 = vrot.lane.b32.xlu0 %v10297_v39, %s13137_s4 }
0x7e38   :  { %v10299_v60 = vpop.eup %10298 }
0x7e39   :  { %v7052_v15 = vadd.f32 1.0, %v10299_v60 }
0x7e3b   :  { %10300 = vrcp.f32 %v7052_v15 }
0x7e45   :  { %v10301_v10 = vpop.eup %10300 }
0x7e46   :  { %v7056_v37 = vmul.f32 %v10301_v10, %v12742_v52 }
0x7ea9   :  { %v7059_v56 = vpop.permute.xlu0 %7058 }
0x7eaa   :  { %v7061_v1 = vmul.f32 %v10301_v10, %v7059_v56 }
0x7eac   :  { %7063 = vrot.lane.b32.xlu1 %v7061_v1, %s10755_s16 }
0x7f1e   :  { %v7064_v50 = vpop.permute.xlu1 %7063 }
0x7f1f   :  { %v12881_v27 = vadd.f32 %v7064_v50, %v7056_v37 }
0x7f21   :  { %10302 = vtanh.f32 %v12881_v27 }
0x7f2b   :  { %v10303_v18 = vpop.eup %10302 }
0x7f2c   :  { %7069 = vrot.lane.b32.xlu0 %v10303_v18, %s13137_s4 }
0x7f9e   :  { %v7070_v31 = vpop.permute.xlu0 %7069 }
0x7f9f   :  { %v12885_v16 = vmul.f32 %v10301_v10, %v7070_v31  ;;  %v10432_v31 = vld [vmem:[%s13141_s0 + $0x30] sm:$0xff]   ;;  %s10756_s0 = smov [#allocation21]  }
0x7fa0   :  { %s8079_s11 = sshll.u32 %s10756_s0, 4  ;;  %s8080_s11 = int_to_ptr.vmem [resolvable:$true] %s8079_s11 }
0x7fa1   :  { %v7078_v45 = vpack.c.bf16 %v12885_v16, %v12885_v16  ;;  %s10675_s28 = scalar_lea.vmem %s8080_s11, 16  ;;  %s10679_s5 = scalar_lea.vmem %s8080_s11, 32 }
0x7fa2   :  { %p10676_p4 = scmp.ne.s32.totalorder %s8080_s11, %s10675_s28  ;;  %p10680_p5 = scmp.lt.s32.totalorder %s8080_s11, %s8080_s11 }
0x7fa3   :  { %7120 = vrot.lane.b32.xlu1 %v7078_v45, %s10755_s16  ;;  %p10681_p6 = scmp.lt.s32.totalorder %s10679_s5, %s10675_s28 }
0x7fa5   :  { %p10682_p7 = por %p10681_p6, %p10680_p5 }
0x7fa7   :  { %p10683_p8 = pnand %p10682_p7, %p10676_p4 }
0x8015   :  { %v7121_v51 = vpop.permute.xlu1 %7120 }
0x8016   :  { %9660 = vmatmul.mubr.msk.bf16.vlgmr.msra.gmra.mrb[228].mxu0 %vm317_vm1, %v7121_v51  ;;  %9700 = vmatmul.mubr.msk.bf16.vlgmr.msra.gmra.mrb[236].mxu1 %vm317_vm1, %v7121_v51 }
0x8017   :  { %9672 = vmatpush3.bf16.msra.mxu0 %v12756_v55  ;;  %9675 = vmatprep.mubr.msk.bf16.mxu0 %vm10753_vm0, %v10752_v0 }
0x8018   :  { %9673 = vmatprep.subr.bf16.mxu0 %v10752_v0  ;;  %9715 = vmatprep.mubr.msk.bf16.mxu1 %vm10753_vm0, %v10752_v0 }
0x801b   :  { %9674 = vmatpush3.bf16.msra.mxu0 %v12768_v19 }
0x801c   :  { %9687 = vmatprep.subr.bf16.mxu0 %v10752_v0 }
0x80e9   :  { %v7159_v52 = vpop.f32.mrb[228].mxu0  ;;  %v12900_v47 = vpop.f32.mrb[236].mxu1 }
0x80ea   :  { %v7160_v35 = vadd.f32 %v7159_v52, %v12811_v26  ;;  %v9661_v24 = vpop.f32.mrb[229].mxu0  ;;  %v9701_v62 = vpop.f32.mrb[237].mxu1 }
0x80eb   :  { %v7162_v55 = vpop.f32.mrb[230].mxu0  ;;  %v7452_v11 = vpop.f32.mrb[238].mxu1 }
0x80ec   :  { %v7165_v36 = vadd.f32 %v12776_v17, %v7160_v35  ;;  %v9662_v61 = vpop.f32.mrb[231].mxu0  ;;  %v9702_v43 = vpop.f32.mrb[239].mxu1 }
0x80ee   :  { %10304 = vtanh.f32 %v7165_v36  ;;  %v8332_v19 = vmul.f32 -1.442695, %v7165_v36 }
0x80f0   :  { %10306 = vpow2.f32 %v8332_v19 }
0x80f8   :  { %v10305_v28 = vpop.eup %10304 }
0x80f9   :  { %7175 = vrot.lane.b32.xlu0 %v10305_v28, %s13137_s4 }
0x80fa   :  { %v10307_v63 = vpop.eup %10306 }
0x80fb   :  { %v7169_v9 = vadd.f32 1.0, %v10307_v63 }
0x80fd   :  { %10308 = vrcp.f32 %v7169_v9 }
0x8107   :  { %v10309_v20 = vpop.eup %10308 }
0x8108   :  { %v7173_v33 = vmul.f32 %v10309_v20, %v12782_v25 }
0x816b   :  { %v7176_v53 = vpop.permute.xlu0 %7175 }
0x816c   :  { %v7178_v26 = vmul.f32 %v10309_v20, %v7176_v53 }
0x816e   :  { %7180 = vrot.lane.b32.xlu1 %v7178_v26, %s10755_s16 }
0x81e0   :  { %v7181_v57 = vpop.permute.xlu1 %7180 }
0x81e1   :  { %v7183_v17 = vadd.f32 %v7181_v57, %v7173_v33 }
0x81e3   :  { %10310 = vtanh.f32 %v7183_v17 }
0x81ed   :  { %v10311_v29 = vpop.eup %10310 }
0x81ee   :  { %7186 = vrot.lane.b32.xlu0 %v10311_v29, %s13137_s4 }
0x8260   :  { %v7187_v54 = vpop.permute.xlu0 %7186 }
0x8261   :  { %v7189_v4 = vmul.f32 %v10309_v20, %v7187_v54 }
0x8263   :  { %v7190_v5 = vpack.c.bf16 %v7189_v4, %v7189_v4 }
0x8265   :  { %7232 = vrot.lane.b32.xlu1 %v7190_v5, %s10755_s16 }
0x82d7   :  { %v7233_v59 = vpop.permute.xlu1 %7232 }
0x82d8   :  { %9676 = vmatmul.mubr.msk.bf16.vlgmr.msra.gmra.mrb[232].mxu0 %vm317_vm1, %v7233_v59 }
0x82d9   :  { %9688 = vmatpush3.bf16.msra.mxu0 %v12792_v3  ;;  %9691 = vmatprep.mubr.msk.bf16.mxu0 %vm10753_vm0, %v10752_v0 }
0x82da   :  { %9689 = vmatprep.subr.bf16.mxu0 %v10752_v0 }
0x82dd   :  { %9690 = vmatpush3.bf16.msra.mxu0 %v12805_v7 }
0x82de   :  { %9703 = vmatprep.subr.bf16.mxu0 %v10752_v0 }
0x83ab   :  { %v7271_v25 = vpop.f32.mrb[232].mxu0 }
0x83ac   :  { %v7272_v2 = vadd.f32 %v7271_v25, %v12844_v58  ;;  %v9677_v40 = vpop.f32.mrb[233].mxu0 }
0x83ad   :  { %v7274_v32 = vpop.f32.mrb[234].mxu0 }
0x83ae   :  { %v7277_v49 = vadd.f32 %v12814_v30, %v7272_v2  ;;  %v9678_v23 = vpop.f32.mrb[235].mxu0 }
0x83b0   :  { %10312 = vtanh.f32 %v7277_v49  ;;  %v8335_v3 = vmul.f32 -1.442695, %v7277_v49 }
0x83b2   :  { %10314 = vpow2.f32 %v8335_v3 }
0x83ba   :  { %v10313_v21 = vpop.eup %10312 }
0x83bb   :  { %7287 = vrot.lane.b32.xlu0 %v10313_v21, %s13137_s4 }
0x83bc   :  { %v10315_v39 = vpop.eup %10314 }
0x83bd   :  { %v7281_v46 = vadd.f32 1.0, %v10315_v39 }
0x83bf   :  { %10316 = vrcp.f32 %v7281_v46 }
0x83c9   :  { %v10317_v7 = vpop.eup %10316 }
0x83ca   :  { %v7285_v58 = vmul.f32 %v10317_v7, %v12820_v13 }
0x842d   :  { %v7288_v60 = vpop.permute.xlu0 %7287 }
0x842e   :  { %v7290_v15 = vmul.f32 %v10317_v7, %v7288_v60 }
0x8430   :  { %7292 = vrot.lane.b32.xlu1 %v7290_v15, %s10755_s16 }
0x84a2   :  { %v7293_v10 = vpop.permute.xlu1 %7292 }
0x84a3   :  { %v7295_v56 = vadd.f32 %v7293_v10, %v7285_v58 }
0x84a5   :  { %10318 = vtanh.f32 %v7295_v56 }
0x84af   :  { %v10319_v30 = vpop.eup %10318 }
0x84b0   :  { %7298 = vrot.lane.b32.xlu0 %v10319_v30, %s13137_s4 }
0x8522   :  { %v7299_v1 = vpop.permute.xlu0 %7298 }
0x8523   :  { %v7301_v37 = vmul.f32 %v10317_v7, %v7299_v1 }
0x8525   :  { %v7302_v50 = vpack.c.bf16 %v7301_v37, %v7301_v37 }
0x8527   :  { %7344 = vrot.lane.b32.xlu1 %v7302_v50, %s10755_s16 }
0x8599   :  { %v7345_v18 = vpop.permute.xlu1 %7344 }
0x859a   :  { %9692 = vmatmul.mubr.msk.bf16.vlgmr.msra.gmra.mrb[236].mxu0 %vm317_vm1, %v7345_v18 }
0x859b   :  { %9704 = vmatpush3.bf16.msra.mxu0 %v10432_v31  ;;  %9707 = vmatprep.mubr.msk.bf16.mxu0 %vm10753_vm0, %v10752_v0  ;;  %v9816_v31 = vld [vmem:[%s13095_s9] sm:$0xff]  }
0x859c   :  { %9705 = vmatprep.subr.bf16.mxu0 %v10752_v0  ;;  %9712 = vmatpush3.bf16.msra.mxu1 %v9816_v31 }
0x859d   :  { %9713 = vmatprep.subr.bf16.mxu1 %v10752_v0 }
0x859f   :  { %9706 = vmatpush3.bf16.msra.mxu0 %v12838_v34 }
0x85a0   :  { %9719 = vmatprep.subr.bf16.mxu0 %v10752_v0 }
0x866d   :  { %v7383_v13 = vpop.f32.mrb[236].mxu0 }
0x866e   :  { %v7384_v45 = vadd.f32 %v7383_v13, %v12872_v38  ;;  %v9693_v51 = vpop.f32.mrb[237].mxu0  ;;  %v9817_v13 = vld [vmem:[#allocation15] sm:$0xff]  }
0x866f   :  { %v7386_v52 = vpop.f32.mrb[238].mxu0  ;;  %v9819_v51 = vld [vmem:[#allocation15 + $0x8] sm:$0xff]  }
0x8670   :  { %v7389_v35 = vadd.f32 %v12847_v41, %v7384_v45  ;;  %v9694_v24 = vpop.f32.mrb[239].mxu0  ;;  %v9818_v45 = vld [vmem:[%s13095_s9 + $0x8] sm:$0xff]  }
0x8671   :  { %9714 = vmatpush3.bf16.msra.mxu1 %v9818_v45 }
0x8672   :  { %10320 = vtanh.f32 %v7389_v35  ;;  %v8338_v55 = vmul.f32 -1.442695, %v7389_v35  ;;  %9727 = vmatprep.subr.bf16.mxu1 %v10752_v0 }
0x8674   :  { %10322 = vpow2.f32 %v8338_v55 }
0x867c   :  { %v10321_v62 = vpop.eup %10320 }
0x867d   :  { %7399 = vrot.lane.b32.xlu0 %v10321_v62, %s13137_s4 }
0x867e   :  { %v10323_v11 = vpop.eup %10322 }
0x867f   :  { %v7393_v36 = vadd.f32 1.0, %v10323_v11 }
0x8681   :  { %10324 = vrcp.f32 %v7393_v36 }
0x868b   :  { %v10325_v34 = vpop.eup %10324 }
0x868c   :  { %v7397_v38 = vmul.f32 %v10325_v34, %v12853_v6 }
0x86ef   :  { %v7400_v61 = vpop.permute.xlu0 %7399 }
0x86f0   :  { %v7402_v43 = vmul.f32 %v10325_v34, %v7400_v61  ;;  %v8342_v61 = vld [vmem:[#allocation14] ss:$0 sm:$0xff] }
0x86f2   :  { %7404 = vrot.lane.b32.xlu1 %v7402_v43, %s10755_s16 }
0x8764   :  { %v7405_v28 = vpop.permute.xlu1 %7404 }
0x8765   :  { %v7407_v19 = vadd.f32 %v7405_v28, %v7397_v38 }
0x8767   :  { %10326 = vtanh.f32 %v7407_v19  ;;  %v8343_v19 = vld [vmem:[%s13094_s8] ss:$0 sm:$0xff] }
0x8771   :  { %v10327_v41 = vpop.eup %10326 }
0x8772   :  { %7410 = vrot.lane.b32.xlu0 %v10327_v41, %s13137_s4 }
0x87e4   :  { %v7411_v63 = vpop.permute.xlu0 %7410 }
0x87e5   :  { %v7413_v9 = vmul.f32 %v10325_v34, %v7411_v63 }
0x87e7   :  { %v7414_v20 = vpack.c.bf16 %v7413_v9, %v7413_v9 }
0x87e9   :  { %7456 = vrot.lane.b32.xlu1 %v7414_v20, %s10755_s16  ;;  %v9820_v20 = vld [vmem:[%s13099_s13] sm:$0xff]  }
0x885b   :  { %v7457_v53 = vpop.permute.xlu1 %7456 }
0x885c   :  { %9708 = vmatmul.mubr.msk.bf16.vlgmr.msra.gmra.mrb[240].mxu0 %vm317_vm1, %v7457_v53 }
0x885d   :  { %9723 = vmatprep.mubr.msk.bf16.mxu0 %vm10753_vm0, %v10752_v0  ;;  %9720 = vmatpush3.bf16.msra.mxu0 %v9817_v13 }
0x885e   :  { %9721 = vmatprep.subr.bf16.mxu0 %v10752_v0 }
0x8861   :  { %9722 = vmatpush3.bf16.msra.mxu0 %v9819_v51 }
0x8862   :  { %9735 = vmatprep.subr.bf16.mxu0 %v10752_v0 }
0x892f   :  { %v7495_v26 = vpop.f32.mrb[240].mxu0 }
0x8930   :  { %v7496_v6 = vadd.f32 %v7495_v26, %v12900_v47  ;;  %v9709_v33 = vpop.f32.mrb[241].mxu0  ;;  %v9821_v26 = vld [vmem:[%s13099_s13 + $0x8] sm:$0xff]  }
0x8931   :  { %v7498_v57 = vpop.f32.mrb[242].mxu0 }
0x8932   :  { %v7501_v17 = vadd.f32 %v12875_v8, %v7496_v6  ;;  %v9710_v29 = vpop.f32.mrb[243].mxu0  ;;  %v8344_v6 = vld [vmem:[%s13096_s10] ss:$0 sm:$0xff]  ;;  %v8348_v57 = vld [vmem:[#allocation17] ss:$0 sm:$0xff] }
0x8934   :  { %10328 = vtanh.f32 %v7501_v17  ;;  %v8341_v4 = vmul.f32 -1.442695, %v7501_v17 }
0x8936   :  { %10330 = vpow2.f32 %v8341_v4 }
0x893e   :  { %v10329_v54 = vpop.eup %10328 }
0x893f   :  { %7511 = vrot.lane.b32.xlu0 %v10329_v54, %s13137_s4 }
0x8940   :  { %v10331_v5 = vpop.eup %10330 }
0x8941   :  { %v7505_v59 = vadd.f32 1.0, %v10331_v5 }
0x8943   :  { %10332 = vrcp.f32 %v7505_v59 }
0x894d   :  { %v10333_v25 = vpop.eup %10332 }
0x894e   :  { %v7509_v8 = vmul.f32 %v10333_v25, %v12881_v27 }
0x89b1   :  { %v7512_v2 = vpop.permute.xlu0 %7511 }
0x89b2   :  { %v7514_v40 = vmul.f32 %v10333_v25, %v7512_v2 }
0x89b4   :  { %7516 = vrot.lane.b32.xlu1 %v7514_v40, %s10755_s16 }
0x89b8   :  { %4355 = vrot.lane.b32.xlu1 %v12120_v22, %s10755_s16 }
0x89bc   :  { %5262 = vrot.lane.b32.xlu1 %v12358_v42, %s10755_s16 }
0x89c0   :  { %6168 = vrot.lane.b32.xlu1 %v12616_v48, %s10755_s16 }
0x89c4   :  { %7074 = vrot.lane.b32.xlu1 %v12885_v16, %s10755_s16 }
0x8a26   :  { %v7517_v47 = vpop.permute.xlu1 %7516 }
0x8a27   :  { %v7519_v32 = vadd.f32 %v7517_v47, %v7509_v8 }
0x8a29   :  { %10334 = vtanh.f32 %v7519_v32 }
0x8a2a   :  { %v4356_v49 = vpop.permute.xlu1 %4355 }
0x8a2b   :  { %4359 = vst.msk [vmem:[#allocation2] sm:$0x3] %vm4358_vm2, %v4356_v49 }
0x8a2e   :  { %v5263_v23 = vpop.permute.xlu1 %5262 }
0x8a2f   :  { %5265 = vst.msk [vmem:[#allocation2 + $0x4] sm:$0x3] %vm4358_vm2, %v5263_v23 }
0x8a32   :  { %v6169_v22 = vpop.permute.xlu1 %6168 }
0x8a33   :  { %v10335_v42 = vpop.eup %10334  ;;  %6171 = vst.msk [vmem:[#allocation2 + $0x8] sm:$0x3] %vm4358_vm2, %v6169_v22  ;;  %v8352_v22 = vld [vmem:[#allocation18] ss:$0 sm:$0xff] }
0x8a34   :  { %7522 = vrot.lane.b32.xlu0 %v10335_v42, %s13137_s4 }
0x8a36   :  { %v7075_v48 = vpop.permute.xlu1 %7074 }
0x8a37   :  { %7077 = vst.msk [vmem:[#allocation2 + $0xc] sm:$0x3] %vm4358_vm2, %v7075_v48 }
0x8a38   :  { %4809 = vrot.lane.b32.xlu0 %v12228_v12, %s10755_s16 }
0x8a3c   :  { %5715 = vrot.lane.b32.xlu0 %v12503_v44, %s10755_s16 }
0x8a40   :  { %6621 = vrot.lane.b32.xlu0 %v12746_v14, %s10755_s16 }
0x8aa6   :  { %v7523_v27 = vpop.permute.xlu0 %7522 }
0x8aa7   :  { %v7525_v16 = vmul.f32 %v10333_v25, %v7523_v27 }
0x8aa9   :  { %7527 = vrot.lane.b32.xlu0 %v7525_v16, %s10755_s16 }
0x8aaa   :  { %v4810_v21 = vpop.permute.xlu0 %4809 }
0x8aab   :  { %4812 = vst.msk [vmem:[#allocation2 + $0x2] sm:$0x3] %vm4358_vm2, %v4810_v21 }
0x8aae   :  { %v5716_v3 = vpop.permute.xlu0 %5715 }
0x8aaf   :  { %5718 = vst.msk [vmem:[#allocation2 + $0x6] sm:$0x3] %vm4358_vm2, %v5716_v3 }
0x8ab2   :  { %v6622_v39 = vpop.permute.xlu0 %6621 }
0x8ab3   :  { %6624 = vst.msk [vmem:[#allocation2 + $0xa] sm:$0x3] %vm4358_vm2, %v6622_v39 }
0x8ab6   :  { %v7531_v12 = vld [vmem:[#allocation2] sm:$0xff] }
0x8ab7   :  { %v7533_v46 = vsel %vm317_vm1, %v7531_v12, 0.0 }
0x8ab8   :  { %7534 = vadd.xlane.f32.xlu1 %v7533_v46 }
0x8b1b   :  { %v7528_v44 = vpop.permute.xlu0 %7527 }
0x8b1c   :  { %7530 = vst.msk [vmem:[#allocation2 + $0xe] sm:$0x3] %vm4358_vm2, %v7528_v44  ;;  %v7777_v44 = vld [vmem:[%s13103_s17 + $0x8] sm:$0xff] }
0x8b23   :  { %v7532_v14 = vld [vmem:[#allocation2 + $0x8] sm:$0xff] }
0x8b24   :  { %v7536_v7 = vsel %vm317_vm1, %v7532_v14, 0.0 }
0x8b25   :  { %7537 = vadd.xlane.f32.xlu0 %v7536_v7 }
0x8b45   :  { %v7535_v60 = vpop.xlane.xlu1 %7534 }
0x8b46   :  { %v7540_v15 = vmul.f32 0.03125, %v7535_v60 }
0x8b48   :  { %v7542_v58 = vsub.f32 %v7531_v12, %v7540_v15  ;;  %v7776_v12 = vld [vmem:[%s13103_s17] sm:$0xff] }
0x8b4a   :  { %v7544_v10 = vmul.f32 %v7542_v58, %v7542_v58 }
0x8b4c   :  { %v7546_v56 = vsel %vm317_vm1, %v7544_v10, 0.0 }
0x8b4d   :  { %7547 = vadd.xlane.f32.xlu0 %v7546_v56 }
0x8bb2   :  { %v7538_v30 = vpop.xlane.xlu0 %7537 }
0x8bb3   :  { %v7541_v1 = vmul.f32 0.03125, %v7538_v30 }
0x8bb5   :  { %v7543_v37 = vsub.f32 %v7532_v14, %v7541_v1 }
0x8bb7   :  { %v7545_v50 = vmul.f32 %v7543_v37, %v7543_v37 }
0x8bb9   :  { %v7549_v18 = vsel %vm317_vm1, %v7545_v50, 0.0 }
0x8bba   :  { %7550 = vadd.xlane.f32.xlu1 %v7549_v18 }
0x8bda   :  { %v7548_v52 = vpop.xlane.xlu0 %7547 }
0x8bdb   :  { %v7552_v35 = vmul.f32 0.03125, %v7548_v52 }
0x8bdd   :  { %v7554_v24 = vadd.f32 1e-05, %v7552_v35  ;;  %v9822_v35 = vld [vmem:[%s13101_s15] sm:$0xff]  }
0x8bdf   :  { %10336 = vrsqrt.f32 %v7554_v24 }
0x8be9   :  { %v10337_v36 = vpop.eup %10336 }
0x8bea   :  { %v7558_v34 = vmul.f32 %v10337_v36, %v7542_v58 }
0x8bec   :  { %v7567_v38 = vmul.f32 %v8342_v61, %v7558_v34 }
0x8bee   :  { %v7576_v63 = vadd.f32 %v8343_v19, %v7567_v38  ;;  %v7962_v38 = vld [vmem:[%s13104_s18] sm:$0xff] }
0x8c47   :  { %v7551_v62 = vpop.xlane.xlu1 %7550 }
0x8c48   :  { %v7553_v55 = vmul.f32 0.03125, %v7551_v62 }
0x8c4a   :  { %v7555_v11 = vadd.f32 1e-05, %v7553_v55 }
0x8c4c   :  { %10338 = vrsqrt.f32 %v7555_v11 }
0x8c56   :  { %v10339_v43 = vpop.eup %10338 }
0x8c57   :  { %v7559_v28 = vmul.f32 %v10339_v43, %v7543_v37  ;;  %v9823_v43 = vld [vmem:[%s13101_s15 + $0x8] sm:$0xff]  }
0x8c59   :  { %v7568_v41 = vmul.f32 %v8342_v61, %v7559_v28  ;;  %v7963_v28 = vld [vmem:[%s13104_s18 + $0x8] sm:$0xff] }
0x8c5b   :  { %v7577_v9 = vadd.f32 %v8343_v19, %v7568_v41  ;;  %v7964_v19 = vsub.f32 1.0, %v7962_v38  ;;  %v7965_v41 = vsub.f32 1.0, %v7963_v28 }
0x8c5d   :  { %v7578_v53 = vpack.c.bf16 %v7577_v9, %v7576_v63  ;;  %v7966_v63 = vmul.f32 -1e+32, %v7964_v19  ;;  %v7967_v9 = vmul.f32 -1e+32, %v7965_v41 }
0x8c5f   :  { %9716 = vmatmul.mubr.msk.bf16.vlgmr.msra.gmra.mrb[240].mxu1 %vm317_vm1, %v7578_v53  ;;  %9724 = vmatmul.mubr.msk.bf16.vlgmr.msra.gmra.mrb[244].mxu0 %vm317_vm1, %v7578_v53 }
0x8c60   :  { %9728 = vmatpush3.bf16.msra.mxu1 %v9820_v20  ;;  %9731 = vmatprep.mubr.msk.bf16.mxu1 %vm10753_vm0, %v10752_v0 }
0x8c61   :  { %9729 = vmatprep.subr.bf16.mxu1 %v10752_v0  ;;  %9737 = vmatprep.mubr.msk.bf16.mxu0 %vm10753_vm0, %v10752_v0 }
0x8c64   :  { %9730 = vmatpush3.bf16.msra.mxu1 %v9821_v26 }
0x8c65   :  { %9741 = vmatprep.subr.bf16.mxu1 %v10752_v0 }
0x8c67   :  { %9732 = vmatmul.mubr.msk.bf16.vlgmr.msra.gmra.mrb[244].mxu1 %vm317_vm1, %v7578_v53 }
0x8c68   :  { %9743 = vmatprep.mubr.msk.bf16.mxu1 %vm10753_vm0, %v10752_v0 }
0x8d32   :  { %v7639_v33 = vpop.f32.mrb[240].mxu1  ;;  %v7703_v17 = vpop.f32.mrb[244].mxu0 }
0x8d33   :  { %v9717_v29 = vpop.f32.mrb[241].mxu1  ;;  %v9725_v54 = vpop.f32.mrb[245].mxu0  ;;  %v7640_v59 = vadd.f32 %v8344_v6, %v7639_v33  ;;  %v7704_v25 = vadd.f32 %v8348_v57, %v7703_v17 }
0x8d34   :  { %v7642_v4 = vpop.f32.mrb[242].mxu1  ;;  %v7706_v5 = vpop.f32.mrb[246].mxu0 }
0x8d35   :  { %v7643_v2 = vadd.f32 %v8344_v6, %v7642_v4  ;;  %v7707_v40 = vadd.f32 %v8348_v57, %v7706_v5  ;;  %v9718_v8 = vpop.f32.mrb[243].mxu1  ;;  %v9726_v47 = vpop.f32.mrb[247].mxu0  ;;  %v8358_v57 = vld [vmem:[#allocation20] ss:$0 sm:$0xff] }
0x8d37   :  { %v7774_v32 = vpack.c.bf16 %v7643_v2, %v7640_v59  ;;  %v7775_v49 = vpack.c.bf16 %v7707_v40, %v7704_v25 }
0x8d39   :  { %v7782_v23 = vsel %vm317_vm1, %v7775_v49, 0  ;;  %v8011_v49 = vld [vmem:[%s13105_s19] sm:$0xff] }
0x8d3a   :  { %v7767_v42 = vpop.f32.mrb[244].mxu1  ;;  %9736 = vmatpush3.bf16.xpose.msra.mxu0 %v7782_v23  ;;  %v8012_v23 = vld [vmem:[%s13105_s19 + $0x8] sm:$0xff]  ;;  %vm8031_vm7 = vcmp.ne.s32.totalorder %v8011_v49, 0 }
0x8d3b   :  { %v9733_v48 = vpop.f32.mrb[245].mxu1  ;;  %9747 = vmatprep.subr.bf16.mxu0 %v10752_v0  ;;  %v7768_v16 = vadd.f32 %v8352_v22, %v7767_v42  ;;  %vm8032_vm8 = vcmp.ne.s32.totalorder %v8012_v23, 0 }
0x8d3c   :  { %v7770_v27 = vpop.f32.mrb[246].mxu1 }
0x8d3d   :  { %v7771_v21 = vadd.f32 %v8352_v22, %v7770_v27  ;;  %v9734_v3 = vpop.f32.mrb[247].mxu1 }
0x8d3e   :  { %v8013_v3 = vlaneseq }
0x8d3f   :  { %v7849_v39 = vpack.c.bf16 %v7771_v21, %v7768_v16 }
0x8d41   :  { %9738 = vmatmul.mubr.msk.bf16.vlgmr.msra.gmra.mrb[248].mxu0 %vm317_vm1, %v7774_v32  ;;  %9742 = vmatpush3.bf16.msra.mxu1 %v7849_v39 }
0x8d42   :  { %9751 = vmatprep.mubr.msk.bf16.mxu0 %vm10753_vm0, %v10752_v0  ;;  %9748 = vmatpush3.bf16.msra.mxu0 %v9822_v35 }
0x8d43   :  { %9749 = vmatprep.subr.bf16.mxu0 %v10752_v0 }
0x8d46   :  { %9750 = vmatpush3.bf16.msra.mxu0 %v9823_v43 }
0x8e14   :  { %v7818_v46 = vpop.f32.mrb[248].mxu0 }
0x8e15   :  { %v7819_v14 = vadd.f32 %v7818_v46, %v7776_v12  ;;  %v9739_v7 = vpop.f32.mrb[249].mxu0  ;;  %v8014_v12 = vand.u32 127, %v8013_v3 }
0x8e16   :  { %v7821_v60 = vpop.f32.mrb[250].mxu0 }
0x8e17   :  { %v7822_v15 = vadd.f32 %v7821_v60, %v7777_v44  ;;  %v9740_v58 = vpop.f32.mrb[251].mxu0  ;;  %v7826_v10 = vsel %vm7825_vm3, %v7819_v14, -inf }
0x8e18   :  { %7827 = vmax.xlane.f32.xlu0 %v7826_v10 }
0x8e19   :  { %v7829_v56 = vsel %vm7825_vm3, %v7822_v15, -inf }
0x8e1a   :  { %7830 = vmax.xlane.f32.xlu1 %v7829_v56 }
0x8ea5   :  { %v7828_v30 = vpop.xlane.xlu0 %7827 }
0x8ea6   :  { %v7832_v1 = vsub.f32 %v7819_v14, %v7828_v30 }
0x8ea7   :  { %v7831_v37 = vpop.xlane.xlu1 %7830 }
0x8ea8   :  { %v7834_v50 = vmul.f32 1.442695, %v7832_v1  ;;  %v7833_v18 = vsub.f32 %v7822_v15, %v7831_v37 }
0x8eaa   :  { %10340 = vpow2.f32 %v7834_v50  ;;  %v7836_v31 = vmul.f32 1.442695, %v7833_v18 }
0x8eac   :  { %10342 = vpow2.f32 %v7836_v31 }
0x8eb4   :  { %v10341_v13 = vpop.eup %10340 }
0x8eb5   :  { %v7838_v45 = vsel %vm7825_vm3, %v10341_v13, 0.0 }
0x8eb6   :  { %v10343_v51 = vpop.eup %10342  ;;  %7839 = vadd.xlane.f32.xlu0 %v7838_v45 }
0x8eb7   :  { %v7841_v52 = vsel %vm7825_vm3, %v10343_v51, 0.0 }
0x8eb8   :  { %7842 = vadd.xlane.f32.xlu1 %v7841_v52 }
0x8ec9   :  { %7975 = vperm.xlu1 %9783, %v7967_v9  }
0x8ecc   :  { %7970 = vperm.xlu0 %9782, %v7966_v63  }
0x8f43   :  { %v7840_v24 = vpop.xlane.xlu0 %7839 }
0x8f44   :  { %10344 = vrcp.f32 %v7840_v24 }
0x8f45   :  { %v7843_v62 = vpop.xlane.xlu1 %7842 }
0x8f46   :  { %10346 = vrcp.f32 %v7843_v62  ;;  %v8362_v62 = vsel %vm8031_vm7, 1.0, %v10752_v0 }
0x8f47   :  { %v8057_v28 = vsel %vm8041_vm9, %v8362_v62, 0.0 }
0x8f49   :  { %v7976_v59 = vpop.permute.xlu1 %7975 }
0x8f4b   :  { %v7971_v29 = vpop.permute.xlu0 %7970 }
0x8f4e   :  { %v10345_v55 = vpop.eup %10344 }
0x8f4f   :  { %v7846_v36 = vmul.f32 %v10345_v55, %v10341_v13 }
0x8f50   :  { %v10347_v11 = vpop.eup %10346 }
0x8f51   :  { %v7847_v34 = vmul.f32 %v10347_v11, %v10343_v51 }
0x8f53   :  { %v7848_v61 = vpack.c.bf16 %v7847_v34, %v7846_v36  ;;  %v8363_v36 = vsel %vm8032_vm8, 1.0, %v10752_v0 }
0x8f54   :  { %v8058_v41 = vsel %vm8041_vm9, %v8363_v36, 0.0 }
0x8f55   :  { %9744 = vmatmul.mubr.msk.bf16.vlgmr.msra.gmra.mrb[248].mxu1 %vm7825_vm3, %v7848_v61 }
0x9028   :  { %v7887_v20 = vpop.f32.mrb[248].mxu1 }
0x9029   :  { %v9745_v53 = vpop.f32.mrb[249].mxu1 }
0x902a   :  { %v7890_v26 = vpop.f32.mrb[250].mxu1 }
0x902b   :  { %v7894_v6 = vpack.c.bf16 %v7890_v26, %v7887_v20  ;;  %v9746_v33 = vpop.f32.mrb[251].mxu1  ;;  %v8059_v20 = vadd.f32 %v8058_v41, %v8057_v28 }
0x902d   :  { %9752 = vmatmul.mubr.msk.bf16.vlgmr.msra.gmra.mrb[252].mxu0 %vm317_vm1, %v7894_v6 }
0x9100   :  { %v7955_v17 = vpop.f32.mrb[252].mxu0 }
0x9101   :  { %v7956_v54 = vadd.f32 %v8358_v57, %v7955_v17  ;;  %v9753_v4 = vpop.f32.mrb[253].mxu0 }
0x9102   :  { %v7958_v5 = vpop.f32.mrb[254].mxu0 }
0x9103   :  { %v7978_v25 = vadd.f32 %v7971_v29, %v7956_v54  ;;  %v7959_v2 = vadd.f32 %v8358_v57, %v7958_v5  ;;  %v9754_v40 = vpop.f32.mrb[255].mxu0 }
0x9105   :  { %v7979_v8 = vadd.f32 %v7976_v59, %v7959_v2  ;;  %v7981_v47 = vsel %vm7980_vm4, %v7978_v25, -inf }
0x9106   :  { %7982 = vmax.xlane.f32.xlu1 %v7981_v47 }
0x9107   :  { %v7984_v32 = vsel %vm7980_vm4, %v7979_v8, -inf }
0x9108   :  { %7985 = vmax.xlane.f32.xlu0 %v7984_v32 }
0x9117   :  { %8016 = vperm.xlu1 %9783, %v8011_v49  }
0x911b   :  { %8019 = vperm.xlu1 %9783, %v8012_v23  }
0x9193   :  { %v7983_v22 = vpop.xlane.xlu1 %7982 }
0x9194   :  { %v7987_v42 = vsub.f32 %v7978_v25, %v7983_v22 }
0x9195   :  { %v7986_v48 = vpop.xlane.xlu0 %7985 }
0x9196   :  { %v7989_v27 = vmul.f32 1.442695, %v7987_v42  ;;  %v7988_v16 = vsub.f32 %v7979_v8, %v7986_v48 }
0x9197   :  { %v8017_v39 = vpop.permute.xlu1 %8016 }
0x9198   :  { %10348 = vpow2.f32 %v7989_v27  ;;  %v7991_v21 = vmul.f32 1.442695, %v7988_v16  ;;  %vm8021_vm5 = vcmp.eq.s32.totalorder %v8014_v12, %v8017_v39 }
0x9199   :  { %v8023_v60 = vsel %vm8021_vm5, %v7978_v25, 0.0 }
0x919a   :  { %10350 = vpow2.f32 %v7991_v21  ;;  %v8025_v58 = vsel %vm7980_vm4, %v8023_v60, 0.0 }
0x919b   :  { %v8020_v44 = vpop.permute.xlu1 %8019 }
0x919c   :  { %vm8022_vm6 = vcmp.eq.s32.totalorder %v8014_v12, %v8020_v44 }
0x919d   :  { %v8024_v10 = vsel %vm8022_vm6, %v7979_v8, 0.0 }
0x919e   :  { %v8028_v56 = vsel %vm7980_vm4, %v8024_v10, 0.0 }
0x91a2   :  { %v10349_v46 = vpop.eup %10348 }
0x91a3   :  { %v7993_v14 = vsel %vm7980_vm4, %v10349_v46, 0.0 }
0x91a4   :  { %v10351_v7 = vpop.eup %10350  ;;  %7994 = vadd.xlane.f32.xlu0 %v7993_v14 }
0x91a5   :  { %v7996_v15 = vsel %vm7980_vm4, %v10351_v7, 0.0 }
0x91a6   :  { %7997 = vadd.xlane.f32.xlu1 %v7996_v15 }
0x91a8   :  { %8026 = vadd.xlane.f32.xlu0 %v8025_v58 }
0x91ac   :  { %8029 = vadd.xlane.f32.xlu0 %v8028_v56 }
0x9231   :  { %v7995_v30 = vpop.xlane.xlu0 %7994 }
0x9232   :  { %10352 = vrcp.f32 %v7995_v30 }
0x9233   :  { %10354 = vlog2.f32 %v7995_v30  ;;  %v7998_v1 = vpop.xlane.xlu1 %7997 }
0x9234   :  { %10356 = vrcp.f32 %v7998_v1 }
0x9235   :  { %10358 = vlog2.f32 %v7998_v1  ;;  %v8027_v31 = vpop.xlane.xlu0 %8026 }
0x9239   :  { %v8030_v34 = vpop.xlane.xlu0 %8029 }
0x923c   :  { %v10353_v37 = vpop.eup %10352 }
0x923d   :  { %v10355_v50 = vpop.eup %10354  ;;  %v8000_v18 = vmul.f32 %v10353_v37, %v10349_v46 }
0x923e   :  { %v10357_v13 = vpop.eup %10356  ;;  %v8006_v45 = vmul.f32 0.6931472, %v10355_v50 }
0x923f   :  { %v10359_v51 = vpop.eup %10358  ;;  %8003 = vst.msk [vmem:[%s13142_s20] sm:$0xff] %vm7980_vm4, %v8000_v18  ;;  %v8002_v52 = vmul.f32 %v10357_v13, %v10351_v7 }
0x9240   :  { %v8008_v35 = vmul.f32 0.6931472, %v10359_v51  ;;  %v8009_v24 = vadd.f32 %v8006_v45, %v7983_v22 }
0x9241   :  { %8004 = vst.msk [vmem:[%s13142_s20 + $0x8] sm:$0xff] %vm7980_vm4, %v8002_v52 }
0x9242   :  { %v8037_v55 = vsub.f32 %v8009_v24, %v8027_v31  ;;  %v8010_v11 = vadd.f32 %v8008_v35, %v7986_v48 }
0x9244   :  { %v8039_v61 = vmul.f32 %v8362_v62, %v8037_v55  ;;  %v8038_v43 = vsub.f32 %v8010_v11, %v8030_v34 }
0x9246   :  { %v8040_v38 = vmul.f32 %v8363_v36, %v8038_v43  ;;  %v8042_v19 = vsel %vm8041_vm9, %v8039_v61, 0.0 }
0x9248   :  { %v8043_v63 = vsel %vm8041_vm9, %v8040_v38, 0.0 }
0x9249   :  { %v8044_v9 = vadd.f32 %v8043_v63, %v8042_v19 }
0x924b   :  { %8045 = vadd.xlane.f32.xlu0 %v8044_v9 }
0x924f   :  { %8060 = vadd.xlane.f32.xlu0 %v8059_v20 }
0x92d8   :  { %v8046_v53 = vpop.xlane.xlu0 %8045 }
0x92d9   :  { %v8047_v26 = vrot.slane %v8046_v53, 4 }
0x92db   :  { %v8048_v6 = vadd.f32 %v8047_v26, %v8046_v53 }
0x92dc   :  { %v8061_v33 = vpop.xlane.xlu0 %8060 }
0x92dd   :  { %v8049_v57 = vrot.slane %v8048_v6, 2  ;;  %v8062_v17 = vrot.slane %v8061_v33, 4 }
0x92df   :  { %v8063_v0 = vadd.f32 %v8062_v17, %v8061_v33  ;;  %v8050_v29 = vadd.f32 %v8049_v57, %v8048_v6 }
0x92e1   :  { %v8064_v54 = vrot.slane %v8063_v0, 2  ;;  %v8051_v4 = vrot.slane %v8050_v29, 1 }
0x92e3   :  { %v8065_v5 = vadd.f32 %v8064_v54, %v8063_v0  ;;  %v8052_v59 = vadd.f32 %v8051_v4, %v8050_v29 }
0x92e5   :  { %9755 = vpush %v8052_v59  ;;  %v8066_v25 = vrot.slane %v8065_v5, 1 }
0x92e7   :  { %v8067_v2 = vadd.f32 %v8066_v25, %v8065_v5 }
0x92e9   :  { %9757 = vpush %v8067_v2 }
0x9316   :  { %s9756_s9 = spop %9755 }
0x9317   :  { %v8054_v40 = vstv %s9756_s9 }
0x9318   :  { %8056 = vst.msk [vmem:[#allocation21] sm:$0x1] %vm8055_vm10, %v8054_v40 }
0x9319   :  { %10686 = shalt.err (!%p10683_p8)
}
0x931a   :  { %s13143_s24 = sld [smem:[#allocation40_spill]] }
0x9320   :  { %s10687_s10 = scalar_lea.hbm %s13143_s24, 16 }
0x9321   :  { %p10688_p9 = scmp.ne.s32.totalorder %s13143_s24, %s10687_s10  ;;  %p10691_p10 = scmp.lt.u32.totalorder %s10687_s10, %s13143_s24 }
0x9323   :  { %p10693_p11 = pnand %p10691_p10, %p10688_p9 }
0x9325   :  { %10696 = shalt.err (!%p10693_p11)
}
0x9326   :  { %8082 = dma.vmem_to_hbm [thread:$0]  %s8080_s11, 16, %s13143_s24, [#allocation5]  }
0x9327   :  { %s9758_s22 = spop %9757  ;;  %s10697_s29 = scalar_lea.vmem %s8090_s30, 16 }
0x9328   :  { %v8069_v8 = vstv %s9758_s22  ;;  %p10698_p12 = scmp.ne.s32.totalorder %s8090_s30, %s10697_s29  ;;  %s10701_s25 = scalar_lea.vmem %s8090_s30, 32 }
0x9329   :  { %8070 = vst.msk [vmem:[#allocation22] sm:$0x1] %vm8055_vm10, %v8069_v8  ;;  %p10702_p13 = scmp.lt.s32.totalorder %s8090_s30, %s8090_s30  ;;  %p10703_p0 = scmp.lt.s32.totalorder %s10701_s25, %s10697_s29 }
0x932b   :  { %p10704_p1 = por %p10703_p0, %p10702_p13 }
0x932d   :  { %p10705_p2 = pnand %p10704_p1, %p10698_p12 }
0x932f   :  { %10708 = shalt.err (!%p10705_p2)
}
0x9330   :  { %s13144_s15 = sld [smem:[#allocation41_spill]] }
0x9336   :  { %s10709_s18 = scalar_lea.hbm %s13144_s15, 16 }
0x9337   :  { %p10710_p3 = scmp.ne.s32.totalorder %s13144_s15, %s10709_s18  ;;  %p10713_p4 = scmp.lt.u32.totalorder %s10709_s18, %s13144_s15 }
0x9339   :  { %p10715_p5 = pnand %p10713_p4, %p10710_p3 }
0x933b   :  { %10718 = shalt.err (!%p10715_p5)
}
0x933c   :  { %8092 = dma.vmem_to_hbm [thread:$0]  %s8090_s30, 16, %s13144_s15, [#allocation23]  }
0x933d   :  { %10731 = dma.done.wait [#allocation5], 16  }
0x933e   :  { %10732 = vsyncadd [#allocation5], 4294967280 }
0x933f   :  { %10733 = dma.done.wait [#allocation23], 16  }
0x9340   :  { %10734 = vsyncadd [#allocation23], 4294967280 }
0x9341   :  { %8101 = vsyncpa [#allocation4], 1 }
0x9342   :  { %8102 = vsyncpa [#allocation7], 1 }
0x9343   :  { %8103 = vsyncpa [#allocation10], 1 }
0x9344   :  { %8104 = vsyncpa [#allocation13], 1 }
0x9345   :  { %8105 = vsyncpa [#allocation16], 1 }
0x9346   :  { %8106 = vsyncpa [#allocation19], 1 }
0x9347   :  { %8107 = vsyncpa [#allocation5], 1 }
0x9348   :  { %8108 = vsyncpa [#allocation23], 1 }

</bundles_post_ra>
